<compile_context>
chip_gen: v7x
topology: tpu7x:2x2x1
jax: 0.10.0
libtpu: 0.0.40
codegen_flags: <defaults>
</compile_context>

<pallas_src>
import math
import functools

import jax
import jax.numpy as jnp
from jax import lax
from jax.experimental import pallas as pl
from jax.experimental.pallas import tpu as pltpu


def _full_spec(shape):
    """Whole-array BlockSpec for grid=(1,)."""
    zeros = (0,) * len(shape)
    return pl.BlockSpec(tuple(shape), lambda i, _z=zeros: _z)


# --------------------------- fused forward kernel ----------------------------

def _lstm_elementwise(g, c, H):
    """PyTorch LSTM cell elementwise math.  g: (B, 4H) pre-activation gates in
    i, f, g, o order; c: (B, H) previous cell state."""
    sg = jax.nn.sigmoid(g)                 # i, f, o come from here
    i_g = sg[:, 0 * H:1 * H]
    f_g = sg[:, 1 * H:2 * H]
    o_g = sg[:, 3 * H:4 * H]
    g_g = jnp.tanh(g[:, 2 * H:3 * H])      # tanh only on the cell-gate slice
    c_new = f_g * c + i_g * g_g
    h_new = o_g * jnp.tanh(c_new)
    return h_new, c_new


def _lstm_tagger_kernel(*refs, n_lstm, n_dense, hidden, seq_len, batch):
    H, S, B = hidden, seq_len, batch
    N = S * B

    idx_ref = refs[0]                                  # (N, 2) int32
    table_ref = refs[1]                                # (VP, In0) f32
    lstm_refs = refs[2:2 + 3 * n_lstm]                 # (w_ih_cat, w_hh_blk, b)*L
    dense_refs = refs[2 + 3 * n_lstm:2 + 3 * n_lstm + 2 * n_dense]
    out_ref = refs[2 + 3 * n_lstm + 2 * n_dense]       # (N, n_tags)
    seq_buf = refs[3 + 3 * n_lstm + 2 * n_dense]       # (N, 2H) VMEM scratch

    # --- embedding gather + positional-encoding add as ONE one-hot matmul ---
    # Row n = t*B + b selects token column idx[n,0] (scaled embedding row) and
    # virtual column idx[n,1] = V + b (PE row b; the reference adds pe[b] to
    # every timestep of batch element b — intentional quirk, reproduced).
    idx = idx_ref[...]
    VP = table_ref.shape[0]
    col = lax.broadcasted_iota(jnp.int32, (N, VP), 1)
    sel = jnp.logical_or(col == idx[:, 0:1], col == idx[:, 1:2]).astype(jnp.float32)
    cur = jnp.dot(sel, table_ref[...], preferred_element_type=jnp.float32)  # (N, In0)
    # TODO(synk): Dropout(p=0.1) after PE omitted (eval-mode identity).

    # --- stacked bidirectional LSTM layers (encoder + avgpool-folded decoder) ---
    for l in range(n_lstm):
        w_ih = lstm_refs[3 * l + 0][...]   # (In_l, 8H)  cols [fwd i,f,g,o | rev i,f,g,o]
        w_hh = lstm_refs[3 * l + 1][...]   # (2H, 8H)    block-diag fwd/rev
        b = lstm_refs[3 * l + 2][...]      # (1, 8H)

        # Hoisted input projection: one big matmul instead of 2*S tiny ones.
        gx = jnp.dot(cur, w_ih, preferred_element_type=jnp.float32)        # (N, 8H)

        h_cat = jnp.zeros((B, 2 * H), jnp.float32)                         # [h_f | h_r]
        c_f = jnp.zeros((B, H), jnp.float32)
        c_r = jnp.zeros((B, H), jnp.float32)
        for t in range(S):                         # static unroll (S is small)
            rf = slice(t * B, (t + 1) * B)         # forward reads time t
            rr = slice((S - 1 - t) * B, (S - t) * B)   # reverse reads time S-1-t
            # Single fused recurrent matmul for both directions per step.
            g_rec = jnp.dot(h_cat, w_hh, preferred_element_type=jnp.float32) + b
            g_f = g_rec[:, :4 * H] + gx[rf, :4 * H]
            g_r = g_rec[:, 4 * H:] + gx[rr, 4 * H:]
            h_f, c_f = _lstm_elementwise(g_f, c_f, H)
            h_r, c_r = _lstm_elementwise(g_r, c_r, H)
            # Write directly into the layer-output halves (no concat pass).
            seq_buf[rf, 0:H] = h_f
            seq_buf[rr, H:2 * H] = h_r
            h_cat = jnp.concatenate([h_f, h_r], axis=-1)
        cur = seq_buf[...]                         # (N, 2H) -> next layer input
        # TODO(synk): inter-layer LSTM dropout omitted (eval-mode identity).

    # --- epilogue: clip -> tanh -> (Linear + tanh)^n -> softmax (exact) ---
    h = jnp.tanh(jnp.clip(cur, -0.99999, 0.99999))
    for i in range(n_dense):
        w = dense_refs[2 * i][...]
        bb = dense_refs[2 * i + 1][...]
        h = jnp.tanh(jnp.dot(h, w, preferred_element_type=jnp.float32) + bb)
    m = jnp.max(h, axis=-1, keepdims=True)
    e = jnp.exp(h - m)
    out_ref[...] = e / jnp.sum(e, axis=-1, keepdims=True)   # exact divide (tiny)


# ------------------------------- forward pass --------------------------------

def lstm_tagger_forward(tokens, params, *, d_model, input_size):
    B, S = tokens.shape
    H = d_model
    N = S * B
    emb = params["embedding"]                       # (V, In0)
    V = emb.shape[0]
    n_tags = params["dense"][-1][0].shape[1]

    # Combined one-hot table: scaled embedding rows + B positional-encoding
    # rows, zero-padded to a lane-friendly multiple of 128 rows (tiny).
    table = jnp.concatenate([emb * math.sqrt(d_model), params["pe"][:B]], axis=0)
    vp = ((V + B + 127) // 128) * 128
    table = jnp.pad(table, ((0, vp - (V + B)), (0, 0)))

    # Time-major flat row n = t*B + b -> [token id, V + b] (virtual PE column).
    tok_tm = jnp.transpose(tokens).reshape(N).astype(jnp.int32)
    b_idx = jnp.tile(jnp.arange(B, dtype=jnp.int32), S)
    idx = jnp.stack([tok_tm, V + b_idx], axis=1)    # (N, 2) int32

    lstm_layers = list(params["encoder"]) + list(params["decoder"])
    dense = params["dense"]

    arrays = [idx, table]
    in_specs = [_full_spec(idx.shape), _full_spec(table.shape)]
    for (w_ih, w_hh, b) in lstm_layers:
        arrays += [w_ih, w_hh, b]
        in_specs += [_full_spec(w_ih.shape), _full_spec(w_hh.shape),
                     _full_spec(b.shape)]
    for (w, b) in dense:
        arrays += [w, b]
        in_specs += [_full_spec(w.shape), _full_spec(b.shape)]

    kernel = functools.partial(_lstm_tagger_kernel, n_lstm=len(lstm_layers),
                               n_dense=len(dense), hidden=H, seq_len=S, batch=B)
    probs = pl.pallas_call(
        kernel,
        out_shape=jax.ShapeDtypeStruct((N, n_tags), jnp.float32),
        grid=(1,),
        in_specs=in_specs,
        out_specs=_full_spec((N, n_tags)),
        scratch_shapes=[pltpu.VMEM((N, 2 * H), jnp.float32)],
        compiler_params=pltpu.CompilerParams(dimension_semantics=("arbitrary",)),
    )(*arrays)

    # TODO(synk): optional additive mask path omitted (mask=None in this example).
    return jnp.transpose(probs.reshape(S, B, n_tags), (1, 0, 2))   # (B, S, n_tags)


# ----------------------------- parameter setup -------------------------------

def _uniform(key, shape, bound):
    return jax.random.uniform(key, shape, jnp.float32, -bound, bound)


def make_bilstm_params(key, num_layers, input_size, hidden, fold_avgpool_from=None):
    """Packed bidirectional-LSTM params, PyTorch init & gate order (i,f,g,o).
    Per layer: (w_ih_cat (In,8H), w_hh_blk (2H,8H) block-diag, b_cat (1,8H)),
    columns ordered [fwd 4H | rev 4H].  If fold_avgpool_from=(d_model, in_sz),
    AvgPool1d over the feature dim (a fixed linear map P) is folded into the
    layer-0 input weights so the encoder output feeds the decoder directly."""
    H = hidden
    bound = 1.0 / math.sqrt(H)
    layers = []
    for layer_idx in range(num_layers):
        in_dim = input_size if layer_idx == 0 else 2 * H
        dir_ih, dir_hh, dir_b = [], [], []
        for _d in range(2):                                  # fwd, rev
            key, k1, k2, k3, k4 = jax.random.split(key, 5)
            w_ih = _uniform(k1, (4 * H, in_dim), bound)
            w_hh = _uniform(k2, (4 * H, H), bound)
            b_ih = _uniform(k3, (4 * H,), bound)
            b_hh = _uniform(k4, (4 * H,), bound)
            dir_ih.append(w_ih.T)                            # (in_dim, 4H)
            dir_hh.append(w_hh.T)                            # (H, 4H)
            dir_b.append(b_ih + b_hh)
        w_ih_cat = jnp.concatenate(dir_ih, axis=1)           # (in_dim, 8H)
        if layer_idx == 0 and fold_avgpool_from is not None:
            d_model, in_sz = fold_avgpool_from
            k = (d_model // in_sz) * 2                       # AvgPool1d kernel=stride
            P = jnp.repeat(jnp.eye(in_sz, dtype=jnp.float32), k, axis=0) / float(k)
            w_ih_cat = P @ w_ih_cat                          # (2*d_model, 8H)
        w_hh_blk = jnp.zeros((2 * H, 8 * H), jnp.float32)
        w_hh_blk = w_hh_blk.at[:H, :4 * H].set(dir_hh[0])
        w_hh_blk = w_hh_blk.at[H:, 4 * H:].set(dir_hh[1])
        b_cat = jnp.concatenate(dir_b)[None, :]              # (1, 8H)
        layers.append((w_ih_cat, w_hh_blk, b_cat))
    return key, layers


def make_dense_params(key, d_model, num_dir, n_tags, n_dense):
    increment = max(1, math.floor((d_model // n_tags) ** (1.0 / n_dense)))
    sizes = []
    in_f, out_f = d_model * num_dir, d_model * num_dir // increment
    for _ in range(1, n_dense):
        sizes.append((in_f, out_f))
        in_f, out_f = out_f, out_f // increment
    sizes.append((in_f, n_tags))
    denses = []
    for fi, fo in sizes:
        key, kw, kb = jax.random.split(key, 3)
        bound = 1.0 / math.sqrt(fi)
        w = _uniform(kw, (fo, fi), bound)
        b = _uniform(kb, (fo,), bound)
        denses.append((w.T, b[None, :]))
    return key, denses


def make_positional_encoding(max_len, dim):
    pos = jnp.arange(max_len, dtype=jnp.float32)[:, None]
    div = jnp.exp(jnp.arange(0, dim, 2, dtype=jnp.float32)
                  * (-math.log(10000.0) / dim))
    pe = jnp.zeros((max_len, dim), jnp.float32)
    pe = pe.at[:, 0::2].set(jnp.sin(pos * div))
    pe = pe.at[:, 1::2].set(jnp.cos(pos * div))
    return pe


# ----------------------------------- main -------------------------------------

if __name__ == "__main__":
    # Small, internally consistent hyper-parameters (d_model % input_size == 0,
    # d_model >= n_tags, bidirectional).
    B, S = 2, 8
    d_model = 32
    input_size = 16
    vocab_size = 100
    n_tags = 10
    num_encoder_layers = 2
    num_decoder_layers = 2
    num_dense_layers = 3
    pad_token_idx = 0

    key = jax.random.PRNGKey(0)
    key, k_emb, k_tok = jax.random.split(key, 3)

    embedding = jax.random.normal(k_emb, (vocab_size, input_size), jnp.float32)
    embedding = embedding.at[pad_token_idx].set(0.0)

    key, enc_layers = make_bilstm_params(key, num_encoder_layers, input_size, d_model)
    key, dec_layers = make_bilstm_params(key, num_decoder_layers, input_size, d_model,
                                         fold_avgpool_from=(d_model, input_size))
    key, dense_params = make_dense_params(key, d_model, 2, n_tags, num_dense_layers)

    params = dict(
        embedding=embedding,
        pe=make_positional_encoding(1000, input_size),
        encoder=enc_layers,
        decoder=dec_layers,
        dense=dense_params,
    )

    tokens = jax.random.randint(k_tok, (B, S), 1, vocab_size, dtype=jnp.int32)

    fwd = jax.jit(functools.partial(lstm_tagger_forward,
                                    d_model=d_model, input_size=input_size))
    out = jax.block_until_ready(fwd(tokens, params))

    assert out.shape == (B, S, n_tags), out.shape
    assert bool(jnp.all(jnp.isfinite(out)))
    # exact softmax divide -> rows sum to 1 tightly
    assert bool(jnp.allclose(jnp.sum(out, axis=-1), 1.0, atol=1e-4))
    print("KERNEL_OK")
</pallas_src>

<mosaic_0001>
module attributes {stable_mosaic.version = 11 : i64} {
  func.func @_lstm_tagger_kernel(%arg0: i32, %arg1: memref<16x2xi32, #tpu.memory_space<vmem>>, %arg2: memref<128x16xf32, #tpu.memory_space<vmem>>, %arg3: memref<16x256xf32, #tpu.memory_space<vmem>>, %arg4: memref<64x256xf32, #tpu.memory_space<vmem>>, %arg5: memref<1x256xf32, #tpu.memory_space<vmem>>, %arg6: memref<64x256xf32, #tpu.memory_space<vmem>>, %arg7: memref<64x256xf32, #tpu.memory_space<vmem>>, %arg8: memref<1x256xf32, #tpu.memory_space<vmem>>, %arg9: memref<64x256xf32, #tpu.memory_space<vmem>>, %arg10: memref<64x256xf32, #tpu.memory_space<vmem>>, %arg11: memref<1x256xf32, #tpu.memory_space<vmem>>, %arg12: memref<64x256xf32, #tpu.memory_space<vmem>>, %arg13: memref<64x256xf32, #tpu.memory_space<vmem>>, %arg14: memref<1x256xf32, #tpu.memory_space<vmem>>, %arg15: memref<64x64xf32, #tpu.memory_space<vmem>>, %arg16: memref<1x64xf32, #tpu.memory_space<vmem>>, %arg17: memref<64x64xf32, #tpu.memory_space<vmem>>, %arg18: memref<1x64xf32, #tpu.memory_space<vmem>>, %arg19: memref<64x10xf32, #tpu.memory_space<vmem>>, %arg20: memref<1x10xf32, #tpu.memory_space<vmem>>, %arg21: memref<16x10xf32, #tpu.memory_space<vmem>>, %arg22: memref<16x64xf32, #tpu.memory_space<vmem>>) attributes {dimension_semantics = [#tpu.dimension_semantics<arbitrary>], iteration_bounds = array<i64: 1>, scalar_prefetch = 0 : i64, scratch_operands = 1 : i64, tpu.core_type = #tpu.core_type<tc>, window_params = [{pipeline_mode = #tpu.pipeline_mode<synchronous>, transform_indices = @transform_0, window_bounds = array<i64: 16, 2>}, {pipeline_mode = #tpu.pipeline_mode<synchronous>, transform_indices = @transform_1, window_bounds = array<i64: 128, 16>}, {pipeline_mode = #tpu.pipeline_mode<synchronous>, transform_indices = @transform_2, window_bounds = array<i64: 16, 256>}, {pipeline_mode = #tpu.pipeline_mode<synchronous>, transform_indices = @transform_3, window_bounds = array<i64: 64, 256>}, {pipeline_mode = #tpu.pipeline_mode<synchronous>, transform_indices = @transform_4, window_bounds = array<i64: 1, 256>}, {pipeline_mode = #tpu.pipeline_mode<synchronous>, transform_indices = @transform_5, window_bounds = array<i64: 64, 256>}, {pipeline_mode = #tpu.pipeline_mode<synchronous>, transform_indices = @transform_6, window_bounds = array<i64: 64, 256>}, {pipeline_mode = #tpu.pipeline_mode<synchronous>, transform_indices = @transform_7, window_bounds = array<i64: 1, 256>}, {pipeline_mode = #tpu.pipeline_mode<synchronous>, transform_indices = @transform_8, window_bounds = array<i64: 64, 256>}, {pipeline_mode = #tpu.pipeline_mode<synchronous>, transform_indices = @transform_9, window_bounds = array<i64: 64, 256>}, {pipeline_mode = #tpu.pipeline_mode<synchronous>, transform_indices = @transform_10, window_bounds = array<i64: 1, 256>}, {pipeline_mode = #tpu.pipeline_mode<synchronous>, transform_indices = @transform_11, window_bounds = array<i64: 64, 256>}, {pipeline_mode = #tpu.pipeline_mode<synchronous>, transform_indices = @transform_12, window_bounds = array<i64: 64, 256>}, {pipeline_mode = #tpu.pipeline_mode<synchronous>, transform_indices = @transform_13, window_bounds = array<i64: 1, 256>}, {pipeline_mode = #tpu.pipeline_mode<synchronous>, transform_indices = @transform_14, window_bounds = array<i64: 64, 64>}, {pipeline_mode = #tpu.pipeline_mode<synchronous>, transform_indices = @transform_15, window_bounds = array<i64: 1, 64>}, {pipeline_mode = #tpu.pipeline_mode<synchronous>, transform_indices = @transform_16, window_bounds = array<i64: 64, 64>}, {pipeline_mode = #tpu.pipeline_mode<synchronous>, transform_indices = @transform_17, window_bounds = array<i64: 1, 64>}, {pipeline_mode = #tpu.pipeline_mode<synchronous>, transform_indices = @transform_18, window_bounds = array<i64: 64, 10>}, {pipeline_mode = #tpu.pipeline_mode<synchronous>, transform_indices = @transform_19, window_bounds = array<i64: 1, 10>}, {pipeline_mode = #tpu.pipeline_mode<synchronous>, transform_indices = @transform_20, window_bounds = array<i64: 16, 10>}]} {
    %c0 = arith.constant 0 : index
    %c0_0 = arith.constant 0 : index
    %0 = vector.load %arg1[%c0, %c0_0] : memref<16x2xi32, #tpu.memory_space<vmem>>, vector<16x2xi32>
    %1 = tpu.iota {dimensions = array<i32: 1>} : vector<16x128xi32>
    %2 = vector.extract_strided_slice %0 {offsets = [0, 0], sizes = [16, 1], strides = [1, 1]} : vector<16x2xi32> to vector<16x1xi32>
    %3 = vector.broadcast %2 : vector<16x1xi32> to vector<16x128xi32>
    %4 = arith.cmpi eq, %1, %3 : vector<16x128xi32>
    %5 = vector.extract_strided_slice %0 {offsets = [0, 1], sizes = [16, 1], strides = [1, 1]} : vector<16x2xi32> to vector<16x1xi32>
    %6 = vector.broadcast %5 : vector<16x1xi32> to vector<16x128xi32>
    %7 = arith.cmpi eq, %1, %6 : vector<16x128xi32>
    %8 = arith.ori %4, %7 : vector<16x128xi1>
    %9 = arith.extui %8 : vector<16x128xi1> to vector<16x128xi32>
    %10 = arith.sitofp %9 : vector<16x128xi32> to vector<16x128xf32>
    %c0_1 = arith.constant 0 : index
    %c0_2 = arith.constant 0 : index
    %11 = vector.load %arg2[%c0_1, %c0_2] : memref<128x16xf32, #tpu.memory_space<vmem>>, vector<128x16xf32>
    %cst = arith.constant dense<0.000000e+00> : vector<16x16xf32>
    %12 = tpu.matmul %10, %11, %cst {dimension_numbers = #tpu.dot_dimension_numbers<[1], [0], [0], [1], [0, 0, 1, 1], [], []>} : vector<16x128xf32>, vector<128x16xf32>, vector<16x16xf32> -> vector<16x16xf32>
    %c0_3 = arith.constant 0 : index
    %c0_4 = arith.constant 0 : index
    %13 = vector.load %arg3[%c0_3, %c0_4] : memref<16x256xf32, #tpu.memory_space<vmem>>, vector<16x256xf32>
    %c0_5 = arith.constant 0 : index
    %c0_6 = arith.constant 0 : index
    %14 = vector.load %arg4[%c0_5, %c0_6] : memref<64x256xf32, #tpu.memory_space<vmem>>, vector<64x256xf32>
    %c0_7 = arith.constant 0 : index
    %c0_8 = arith.constant 0 : index
    %15 = vector.load %arg5[%c0_7, %c0_8] : memref<1x256xf32, #tpu.memory_space<vmem>>, vector<1x256xf32>
    %cst_9 = arith.constant dense<0.000000e+00> : vector<16x256xf32>
    %16 = tpu.matmul %12, %13, %cst_9 {dimension_numbers = #tpu.dot_dimension_numbers<[1], [0], [0], [1], [0, 0, 1, 1], [], []>} : vector<16x16xf32>, vector<16x256xf32>, vector<16x256xf32> -> vector<16x256xf32>
    %cst_10 = arith.constant 0.000000e+00 : f32
    %17 = vector.broadcast %cst_10 : f32 to vector<2x64xf32>
    %cst_11 = arith.constant 0.000000e+00 : f32
    %18 = vector.broadcast %cst_11 : f32 to vector<2x32xf32>
    %cst_12 = arith.constant 0.000000e+00 : f32
    %19 = vector.broadcast %cst_12 : f32 to vector<2x32xf32>
    %cst_13 = arith.constant dense<0.000000e+00> : vector<2x256xf32>
    %20 = tpu.matmul %17, %14, %cst_13 {dimension_numbers = #tpu.dot_dimension_numbers<[1], [0], [0], [1], [0, 0, 1, 1], [], []>} : vector<2x64xf32>, vector<64x256xf32>, vector<2x256xf32> -> vector<2x256xf32>
    %21 = vector.broadcast %15 : vector<1x256xf32> to vector<2x256xf32>
    %22 = arith.addf %20, %21 : vector<2x256xf32>
    %23 = vector.extract_strided_slice %22 {offsets = [0, 0], sizes = [2, 128], strides = [1, 1]} : vector<2x256xf32> to vector<2x128xf32>
    %24 = vector.extract_strided_slice %16 {offsets = [0, 0], sizes = [2, 128], strides = [1, 1]} : vector<16x256xf32> to vector<2x128xf32>
    %25 = arith.addf %23, %24 : vector<2x128xf32>
    %26 = vector.extract_strided_slice %22 {offsets = [0, 128], sizes = [2, 128], strides = [1, 1]} : vector<2x256xf32> to vector<2x128xf32>
    %27 = vector.extract_strided_slice %16 {offsets = [14, 128], sizes = [2, 128], strides = [1, 1]} : vector<16x256xf32> to vector<2x128xf32>
    %28 = arith.addf %26, %27 : vector<2x128xf32>
    %29 = arith.negf %25 : vector<2x128xf32>
    %30 = math.exp %29 : vector<2x128xf32>
    %cst_14 = arith.constant 1.000000e+00 : f32
    %31 = vector.broadcast %cst_14 : f32 to vector<2x128xf32>
    %32 = arith.addf %31, %30 : vector<2x128xf32>
    %33 = arith.divf %31, %32 : vector<2x128xf32>
    %34 = vector.extract_strided_slice %33 {offsets = [0, 0], sizes = [2, 32], strides = [1, 1]} : vector<2x128xf32> to vector<2x32xf32>
    %35 = vector.extract_strided_slice %33 {offsets = [0, 32], sizes = [2, 32], strides = [1, 1]} : vector<2x128xf32> to vector<2x32xf32>
    %36 = vector.extract_strided_slice %33 {offsets = [0, 96], sizes = [2, 32], strides = [1, 1]} : vector<2x128xf32> to vector<2x32xf32>
    %37 = vector.extract_strided_slice %25 {offsets = [0, 64], sizes = [2, 32], strides = [1, 1]} : vector<2x128xf32> to vector<2x32xf32>
    %38 = math.tanh %37 : vector<2x32xf32>
    %39 = arith.mulf %35, %18 : vector<2x32xf32>
    %40 = arith.mulf %34, %38 : vector<2x32xf32>
    %41 = arith.addf %39, %40 : vector<2x32xf32>
    %42 = math.tanh %41 : vector<2x32xf32>
    %43 = arith.mulf %36, %42 : vector<2x32xf32>
    %44 = arith.negf %28 : vector<2x128xf32>
    %45 = math.exp %44 : vector<2x128xf32>
    %cst_15 = arith.constant 1.000000e+00 : f32
    %46 = vector.broadcast %cst_15 : f32 to vector<2x128xf32>
    %47 = arith.addf %46, %45 : vector<2x128xf32>
    %48 = arith.divf %46, %47 : vector<2x128xf32>
    %49 = vector.extract_strided_slice %48 {offsets = [0, 0], sizes = [2, 32], strides = [1, 1]} : vector<2x128xf32> to vector<2x32xf32>
    %50 = vector.extract_strided_slice %48 {offsets = [0, 32], sizes = [2, 32], strides = [1, 1]} : vector<2x128xf32> to vector<2x32xf32>
    %51 = vector.extract_strided_slice %48 {offsets = [0, 96], sizes = [2, 32], strides = [1, 1]} : vector<2x128xf32> to vector<2x32xf32>
    %52 = vector.extract_strided_slice %28 {offsets = [0, 64], sizes = [2, 32], strides = [1, 1]} : vector<2x128xf32> to vector<2x32xf32>
    %53 = math.tanh %52 : vector<2x32xf32>
    %54 = arith.mulf %50, %19 : vector<2x32xf32>
    %55 = arith.mulf %49, %53 : vector<2x32xf32>
    %56 = arith.addf %54, %55 : vector<2x32xf32>
    %57 = math.tanh %56 : vector<2x32xf32>
    %58 = arith.mulf %51, %57 : vector<2x32xf32>
    %c0_16 = arith.constant 0 : index
    %c0_17 = arith.constant 0 : index
    %59 = vector.load %arg22[%c0_16, %c0_17] : memref<16x64xf32, #tpu.memory_space<vmem>>, vector<2x32xf32>
    tpu.vector_store %arg22[%c0_16, %c0_17], %43 {strides = array<i32>} : memref<16x64xf32, #tpu.memory_space<vmem>>, vector<2x32xf32>,
    %c14 = arith.constant 14 : index
    %c32 = arith.constant 32 : index
    %60 = vector.load %arg22[%c14, %c32] : memref<16x64xf32, #tpu.memory_space<vmem>>, vector<2x32xf32>
    tpu.vector_store %arg22[%c14, %c32], %58 {strides = array<i32>} : memref<16x64xf32, #tpu.memory_space<vmem>>, vector<2x32xf32>,
    %61 = tpu.concatenate %43, %58 in 1 : vector<2x32xf32>, vector<2x32xf32> -> vector<2x64xf32>
    %cst_18 = arith.constant dense<0.000000e+00> : vector<2x256xf32>
    %62 = tpu.matmul %61, %14, %cst_18 {dimension_numbers = #tpu.dot_dimension_numbers<[1], [0], [0], [1], [0, 0, 1, 1], [], []>} : vector<2x64xf32>, vector<64x256xf32>, vector<2x256xf32> -> vector<2x256xf32>
    %63 = vector.broadcast %15 : vector<1x256xf32> to vector<2x256xf32>
    %64 = arith.addf %62, %63 : vector<2x256xf32>
    %65 = vector.extract_strided_slice %64 {offsets = [0, 0], sizes = [2, 128], strides = [1, 1]} : vector<2x256xf32> to vector<2x128xf32>
    %66 = vector.extract_strided_slice %16 {offsets = [2, 0], sizes = [2, 128], strides = [1, 1]} : vector<16x256xf32> to vector<2x128xf32>
    %67 = arith.addf %65, %66 : vector<2x128xf32>
    %68 = vector.extract_strided_slice %64 {offsets = [0, 128], sizes = [2, 128], strides = [1, 1]} : vector<2x256xf32> to vector<2x128xf32>
    %69 = vector.extract_strided_slice %16 {offsets = [12, 128], sizes = [2, 128], strides = [1, 1]} : vector<16x256xf32> to vector<2x128xf32>
    %70 = arith.addf %68, %69 : vector<2x128xf32>
    %71 = arith.negf %67 : vector<2x128xf32>
    %72 = math.exp %71 : vector<2x128xf32>
    %cst_19 = arith.constant 1.000000e+00 : f32
    %73 = vector.broadcast %cst_19 : f32 to vector<2x128xf32>
    %74 = arith.addf %73, %72 : vector<2x128xf32>
    %75 = arith.divf %73, %74 : vector<2x128xf32>
    %76 = vector.extract_strided_slice %75 {offsets = [0, 0], sizes = [2, 32], strides = [1, 1]} : vector<2x128xf32> to vector<2x32xf32>
    %77 = vector.extract_strided_slice %75 {offsets = [0, 32], sizes = [2, 32], strides = [1, 1]} : vector<2x128xf32> to vector<2x32xf32>
    %78 = vector.extract_strided_slice %75 {offsets = [0, 96], sizes = [2, 32], strides = [1, 1]} : vector<2x128xf32> to vector<2x32xf32>
    %79 = vector.extract_strided_slice %67 {offsets = [0, 64], sizes = [2, 32], strides = [1, 1]} : vector<2x128xf32> to vector<2x32xf32>
    %80 = math.tanh %79 : vector<2x32xf32>
    %81 = arith.mulf %77, %41 : vector<2x32xf32>
    %82 = arith.mulf %76, %80 : vector<2x32xf32>
    %83 = arith.addf %81, %82 : vector<2x32xf32>
    %84 = math.tanh %83 : vector<2x32xf32>
    %85 = arith.mulf %78, %84 : vector<2x32xf32>
    %86 = arith.negf %70 : vector<2x128xf32>
    %87 = math.exp %86 : vector<2x128xf32>
    %cst_20 = arith.constant 1.000000e+00 : f32
    %88 = vector.broadcast %cst_20 : f32 to vector<2x128xf32>
    %89 = arith.addf %88, %87 : vector<2x128xf32>
    %90 = arith.divf %88, %89 : vector<2x128xf32>
    %91 = vector.extract_strided_slice %90 {offsets = [0, 0], sizes = [2, 32], strides = [1, 1]} : vector<2x128xf32> to vector<2x32xf32>
    %92 = vector.extract_strided_slice %90 {offsets = [0, 32], sizes = [2, 32], strides = [1, 1]} : vector<2x128xf32> to vector<2x32xf32>
    %93 = vector.extract_strided_slice %90 {offsets = [0, 96], sizes = [2, 32], strides = [1, 1]} : vector<2x128xf32> to vector<2x32xf32>
    %94 = vector.extract_strided_slice %70 {offsets = [0, 64], sizes = [2, 32], strides = [1, 1]} : vector<2x128xf32> to vector<2x32xf32>
    %95 = math.tanh %94 : vector<2x32xf32>
    %96 = arith.mulf %92, %56 : vector<2x32xf32>
    %97 = arith.mulf %91, %95 : vector<2x32xf32>
    %98 = arith.addf %96, %97 : vector<2x32xf32>
    %99 = math.tanh %98 : vector<2x32xf32>
    %100 = arith.mulf %93, %99 : vector<2x32xf32>
    %c2 = arith.constant 2 : index
    %c0_21 = arith.constant 0 : index
    %101 = vector.load %arg22[%c2, %c0_21] : memref<16x64xf32, #tpu.memory_space<vmem>>, vector<2x32xf32>
    tpu.vector_store %arg22[%c2, %c0_21], %85 {strides = array<i32>} : memref<16x64xf32, #tpu.memory_space<vmem>>, vector<2x32xf32>,
    %c12 = arith.constant 12 : index
    %c32_22 = arith.constant 32 : index
    %102 = vector.load %arg22[%c12, %c32_22] : memref<16x64xf32, #tpu.memory_space<vmem>>, vector<2x32xf32>
    tpu.vector_store %arg22[%c12, %c32_22], %100 {strides = array<i32>} : memref<16x64xf32, #tpu.memory_space<vmem>>, vector<2x32xf32>,
    %103 = tpu.concatenate %85, %100 in 1 : vector<2x32xf32>, vector<2x32xf32> -> vector<2x64xf32>
    %cst_23 = arith.constant dense<0.000000e+00> : vector<2x256xf32>
    %104 = tpu.matmul %103, %14, %cst_23 {dimension_numbers = #tpu.dot_dimension_numbers<[1], [0], [0], [1], [0, 0, 1, 1], [], []>} : vector<2x64xf32>, vector<64x256xf32>, vector<2x256xf32> -> vector<2x256xf32>
    %105 = vector.broadcast %15 : vector<1x256xf32> to vector<2x256xf32>
    %106 = arith.addf %104, %105 : vector<2x256xf32>
    %107 = vector.extract_strided_slice %106 {offsets = [0, 0], sizes = [2, 128], strides = [1, 1]} : vector<2x256xf32> to vector<2x128xf32>
    %108 = vector.extract_strided_slice %16 {offsets = [4, 0], sizes = [2, 128], strides = [1, 1]} : vector<16x256xf32> to vector<2x128xf32>
    %109 = arith.addf %107, %108 : vector<2x128xf32>
    %110 = vector.extract_strided_slice %106 {offsets = [0, 128], sizes = [2, 128], strides = [1, 1]} : vector<2x256xf32> to vector<2x128xf32>
    %111 = vector.extract_strided_slice %16 {offsets = [10, 128], sizes = [2, 128], strides = [1, 1]} : vector<16x256xf32> to vector<2x128xf32>
    %112 = arith.addf %110, %111 : vector<2x128xf32>
    %113 = arith.negf %109 : vector<2x128xf32>
    %114 = math.exp %113 : vector<2x128xf32>
    %cst_24 = arith.constant 1.000000e+00 : f32
    %115 = vector.broadcast %cst_24 : f32 to vector<2x128xf32>
    %116 = arith.addf %115, %114 : vector<2x128xf32>
    %117 = arith.divf %115, %116 : vector<2x128xf32>
    %118 = vector.extract_strided_slice %117 {offsets = [0, 0], sizes = [2, 32], strides = [1, 1]} : vector<2x128xf32> to vector<2x32xf32>
    %119 = vector.extract_strided_slice %117 {offsets = [0, 32], sizes = [2, 32], strides = [1, 1]} : vector<2x128xf32> to vector<2x32xf32>
    %120 = vector.extract_strided_slice %117 {offsets = [0, 96], sizes = [2, 32], strides = [1, 1]} : vector<2x128xf32> to vector<2x32xf32>
    %121 = vector.extract_strided_slice %109 {offsets = [0, 64], sizes = [2, 32], strides = [1, 1]} : vector<2x128xf32> to vector<2x32xf32>
    %122 = math.tanh %121 : vector<2x32xf32>
    %123 = arith.mulf %119, %83 : vector<2x32xf32>
    %124 = arith.mulf %118, %122 : vector<2x32xf32>
    %125 = arith.addf %123, %124 : vector<2x32xf32>
    %126 = math.tanh %125 : vector<2x32xf32>
    %127 = arith.mulf %120, %126 : vector<2x32xf32>
    %128 = arith.negf %112 : vector<2x128xf32>
    %129 = math.exp %128 : vector<2x128xf32>
    %cst_25 = arith.constant 1.000000e+00 : f32
    %130 = vector.broadcast %cst_25 : f32 to vector<2x128xf32>
    %131 = arith.addf %130, %129 : vector<2x128xf32>
    %132 = arith.divf %130, %131 : vector<2x128xf32>
    %133 = vector.extract_strided_slice %132 {offsets = [0, 0], sizes = [2, 32], strides = [1, 1]} : vector<2x128xf32> to vector<2x32xf32>
    %134 = vector.extract_strided_slice %132 {offsets = [0, 32], sizes = [2, 32], strides = [1, 1]} : vector<2x128xf32> to vector<2x32xf32>
    %135 = vector.extract_strided_slice %132 {offsets = [0, 96], sizes = [2, 32], strides = [1, 1]} : vector<2x128xf32> to vector<2x32xf32>
    %136 = vector.extract_strided_slice %112 {offsets = [0, 64], sizes = [2, 32], strides = [1, 1]} : vector<2x128xf32> to vector<2x32xf32>
    %137 = math.tanh %136 : vector<2x32xf32>
    %138 = arith.mulf %134, %98 : vector<2x32xf32>
    %139 = arith.mulf %133, %137 : vector<2x32xf32>
    %140 = arith.addf %138, %139 : vector<2x32xf32>
    %141 = math.tanh %140 : vector<2x32xf32>
    %142 = arith.mulf %135, %141 : vector<2x32xf32>
    %c4 = arith.constant 4 : index
    %c0_26 = arith.constant 0 : index
    %143 = vector.load %arg22[%c4, %c0_26] : memref<16x64xf32, #tpu.memory_space<vmem>>, vector<2x32xf32>
    tpu.vector_store %arg22[%c4, %c0_26], %127 {strides = array<i32>} : memref<16x64xf32, #tpu.memory_space<vmem>>, vector<2x32xf32>,
    %c10 = arith.constant 10 : index
    %c32_27 = arith.constant 32 : index
    %144 = vector.load %arg22[%c10, %c32_27] : memref<16x64xf32, #tpu.memory_space<vmem>>, vector<2x32xf32>
    tpu.vector_store %arg22[%c10, %c32_27], %142 {strides = array<i32>} : memref<16x64xf32, #tpu.memory_space<vmem>>, vector<2x32xf32>,
    %145 = tpu.concatenate %127, %142 in 1 : vector<2x32xf32>, vector<2x32xf32> -> vector<2x64xf32>
    %cst_28 = arith.constant dense<0.000000e+00> : vector<2x256xf32>
    %146 = tpu.matmul %145, %14, %cst_28 {dimension_numbers = #tpu.dot_dimension_numbers<[1], [0], [0], [1], [0, 0, 1, 1], [], []>} : vector<2x64xf32>, vector<64x256xf32>, vector<2x256xf32> -> vector<2x256xf32>
    %147 = vector.broadcast %15 : vector<1x256xf32> to vector<2x256xf32>
    %148 = arith.addf %146, %147 : vector<2x256xf32>
    %149 = vector.extract_strided_slice %148 {offsets = [0, 0], sizes = [2, 128], strides = [1, 1]} : vector<2x256xf32> to vector<2x128xf32>
    %150 = vector.extract_strided_slice %16 {offsets = [6, 0], sizes = [2, 128], strides = [1, 1]} : vector<16x256xf32> to vector<2x128xf32>
    %151 = arith.addf %149, %150 : vector<2x128xf32>
    %152 = vector.extract_strided_slice %148 {offsets = [0, 128], sizes = [2, 128], strides = [1, 1]} : vector<2x256xf32> to vector<2x128xf32>
    %153 = vector.extract_strided_slice %16 {offsets = [8, 128], sizes = [2, 128], strides = [1, 1]} : vector<16x256xf32> to vector<2x128xf32>
    %154 = arith.addf %152, %153 : vector<2x128xf32>
    %155 = arith.negf %151 : vector<2x128xf32>
    %156 = math.exp %155 : vector<2x128xf32>
    %cst_29 = arith.constant 1.000000e+00 : f32
    %157 = vector.broadcast %cst_29 : f32 to vector<2x128xf32>
    %158 = arith.addf %157, %156 : vector<2x128xf32>
    %159 = arith.divf %157, %158 : vector<2x128xf32>
    %160 = vector.extract_strided_slice %159 {offsets = [0, 0], sizes = [2, 32], strides = [1, 1]} : vector<2x128xf32> to vector<2x32xf32>
    %161 = vector.extract_strided_slice %159 {offsets = [0, 32], sizes = [2, 32], strides = [1, 1]} : vector<2x128xf32> to vector<2x32xf32>
    %162 = vector.extract_strided_slice %159 {offsets = [0, 96], sizes = [2, 32], strides = [1, 1]} : vector<2x128xf32> to vector<2x32xf32>
    %163 = vector.extract_strided_slice %151 {offsets = [0, 64], sizes = [2, 32], strides = [1, 1]} : vector<2x128xf32> to vector<2x32xf32>
    %164 = math.tanh %163 : vector<2x32xf32>
    %165 = arith.mulf %161, %125 : vector<2x32xf32>
    %166 = arith.mulf %160, %164 : vector<2x32xf32>
    %167 = arith.addf %165, %166 : vector<2x32xf32>
    %168 = math.tanh %167 : vector<2x32xf32>
    %169 = arith.mulf %162, %168 : vector<2x32xf32>
    %170 = arith.negf %154 : vector<2x128xf32>
    %171 = math.exp %170 : vector<2x128xf32>
    %cst_30 = arith.constant 1.000000e+00 : f32
    %172 = vector.broadcast %cst_30 : f32 to vector<2x128xf32>
    %173 = arith.addf %172, %171 : vector<2x128xf32>
    %174 = arith.divf %172, %173 : vector<2x128xf32>
    %175 = vector.extract_strided_slice %174 {offsets = [0, 0], sizes = [2, 32], strides = [1, 1]} : vector<2x128xf32> to vector<2x32xf32>
    %176 = vector.extract_strided_slice %174 {offsets = [0, 32], sizes = [2, 32], strides = [1, 1]} : vector<2x128xf32> to vector<2x32xf32>
    %177 = vector.extract_strided_slice %174 {offsets = [0, 96], sizes = [2, 32], strides = [1, 1]} : vector<2x128xf32> to vector<2x32xf32>
    %178 = vector.extract_strided_slice %154 {offsets = [0, 64], sizes = [2, 32], strides = [1, 1]} : vector<2x128xf32> to vector<2x32xf32>
    %179 = math.tanh %178 : vector<2x32xf32>
    %180 = arith.mulf %176, %140 : vector<2x32xf32>
    %181 = arith.mulf %175, %179 : vector<2x32xf32>
    %182 = arith.addf %180, %181 : vector<2x32xf32>
    %183 = math.tanh %182 : vector<2x32xf32>
    %184 = arith.mulf %177, %183 : vector<2x32xf32>
    %c6 = arith.constant 6 : index
    %c0_31 = arith.constant 0 : index
    %185 = vector.load %arg22[%c6, %c0_31] : memref<16x64xf32, #tpu.memory_space<vmem>>, vector<2x32xf32>
    tpu.vector_store %arg22[%c6, %c0_31], %169 {strides = array<i32>} : memref<16x64xf32, #tpu.memory_space<vmem>>, vector<2x32xf32>,
    %c8 = arith.constant 8 : index
    %c32_32 = arith.constant 32 : index
    %186 = vector.load %arg22[%c8, %c32_32] : memref<16x64xf32, #tpu.memory_space<vmem>>, vector<2x32xf32>
    tpu.vector_store %arg22[%c8, %c32_32], %184 {strides = array<i32>} : memref<16x64xf32, #tpu.memory_space<vmem>>, vector<2x32xf32>,
    %187 = tpu.concatenate %169, %184 in 1 : vector<2x32xf32>, vector<2x32xf32> -> vector<2x64xf32>
    %cst_33 = arith.constant dense<0.000000e+00> : vector<2x256xf32>
    %188 = tpu.matmul %187, %14, %cst_33 {dimension_numbers = #tpu.dot_dimension_numbers<[1], [0], [0], [1], [0, 0, 1, 1], [], []>} : vector<2x64xf32>, vector<64x256xf32>, vector<2x256xf32> -> vector<2x256xf32>
    %189 = vector.broadcast %15 : vector<1x256xf32> to vector<2x256xf32>
    %190 = arith.addf %188, %189 : vector<2x256xf32>
    %191 = vector.extract_strided_slice %190 {offsets = [0, 0], sizes = [2, 128], strides = [1, 1]} : vector<2x256xf32> to vector<2x128xf32>
    %192 = vector.extract_strided_slice %16 {offsets = [8, 0], sizes = [2, 128], strides = [1, 1]} : vector<16x256xf32> to vector<2x128xf32>
    %193 = arith.addf %191, %192 : vector<2x128xf32>
    %194 = vector.extract_strided_slice %190 {offsets = [0, 128], sizes = [2, 128], strides = [1, 1]} : vector<2x256xf32> to vector<2x128xf32>
    %195 = vector.extract_strided_slice %16 {offsets = [6, 128], sizes = [2, 128], strides = [1, 1]} : vector<16x256xf32> to vector<2x128xf32>
    %196 = arith.addf %194, %195 : vector<2x128xf32>
    %197 = arith.negf %193 : vector<2x128xf32>
    %198 = math.exp %197 : vector<2x128xf32>
    %cst_34 = arith.constant 1.000000e+00 : f32
    %199 = vector.broadcast %cst_34 : f32 to vector<2x128xf32>
    %200 = arith.addf %199, %198 : vector<2x128xf32>
    %201 = arith.divf %199, %200 : vector<2x128xf32>
    %202 = vector.extract_strided_slice %201 {offsets = [0, 0], sizes = [2, 32], strides = [1, 1]} : vector<2x128xf32> to vector<2x32xf32>
    %203 = vector.extract_strided_slice %201 {offsets = [0, 32], sizes = [2, 32], strides = [1, 1]} : vector<2x128xf32> to vector<2x32xf32>
    %204 = vector.extract_strided_slice %201 {offsets = [0, 96], sizes = [2, 32], strides = [1, 1]} : vector<2x128xf32> to vector<2x32xf32>
    %205 = vector.extract_strided_slice %193 {offsets = [0, 64], sizes = [2, 32], strides = [1, 1]} : vector<2x128xf32> to vector<2x32xf32>
    %206 = math.tanh %205 : vector<2x32xf32>
    %207 = arith.mulf %203, %167 : vector<2x32xf32>
    %208 = arith.mulf %202, %206 : vector<2x32xf32>
    %209 = arith.addf %207, %208 : vector<2x32xf32>
    %210 = math.tanh %209 : vector<2x32xf32>
    %211 = arith.mulf %204, %210 : vector<2x32xf32>
    %212 = arith.negf %196 : vector<2x128xf32>
    %213 = math.exp %212 : vector<2x128xf32>
    %cst_35 = arith.constant 1.000000e+00 : f32
    %214 = vector.broadcast %cst_35 : f32 to vector<2x128xf32>
    %215 = arith.addf %214, %213 : vector<2x128xf32>
    %216 = arith.divf %214, %215 : vector<2x128xf32>
    %217 = vector.extract_strided_slice %216 {offsets = [0, 0], sizes = [2, 32], strides = [1, 1]} : vector<2x128xf32> to vector<2x32xf32>
    %218 = vector.extract_strided_slice %216 {offsets = [0, 32], sizes = [2, 32], strides = [1, 1]} : vector<2x128xf32> to vector<2x32xf32>
    %219 = vector.extract_strided_slice %216 {offsets = [0, 96], sizes = [2, 32], strides = [1, 1]} : vector<2x128xf32> to vector<2x32xf32>
    %220 = vector.extract_strided_slice %196 {offsets = [0, 64], sizes = [2, 32], strides = [1, 1]} : vector<2x128xf32> to vector<2x32xf32>
    %221 = math.tanh %220 : vector<2x32xf32>
    %222 = arith.mulf %218, %182 : vector<2x32xf32>
    %223 = arith.mulf %217, %221 : vector<2x32xf32>
    %224 = arith.addf %222, %223 : vector<2x32xf32>
    %225 = math.tanh %224 : vector<2x32xf32>
    %226 = arith.mulf %219, %225 : vector<2x32xf32>
    %c8_36 = arith.constant 8 : index
    %c0_37 = arith.constant 0 : index
    %227 = vector.load %arg22[%c8_36, %c0_37] : memref<16x64xf32, #tpu.memory_space<vmem>>, vector<2x32xf32>
    tpu.vector_store %arg22[%c8_36, %c0_37], %211 {strides = array<i32>} : memref<16x64xf32, #tpu.memory_space<vmem>>, vector<2x32xf32>,
    %c6_38 = arith.constant 6 : index
    %c32_39 = arith.constant 32 : index
    %228 = vector.load %arg22[%c6_38, %c32_39] : memref<16x64xf32, #tpu.memory_space<vmem>>, vector<2x32xf32>
    tpu.vector_store %arg22[%c6_38, %c32_39], %226 {strides = array<i32>} : memref<16x64xf32, #tpu.memory_space<vmem>>, vector<2x32xf32>,
    %229 = tpu.concatenate %211, %226 in 1 : vector<2x32xf32>, vector<2x32xf32> -> vector<2x64xf32>
    %cst_40 = arith.constant dense<0.000000e+00> : vector<2x256xf32>
    %230 = tpu.matmul %229, %14, %cst_40 {dimension_numbers = #tpu.dot_dimension_numbers<[1], [0], [0], [1], [0, 0, 1, 1], [], []>} : vector<2x64xf32>, vector<64x256xf32>, vector<2x256xf32> -> vector<2x256xf32>
    %231 = vector.broadcast %15 : vector<1x256xf32> to vector<2x256xf32>
    %232 = arith.addf %230, %231 : vector<2x256xf32>
    %233 = vector.extract_strided_slice %232 {offsets = [0, 0], sizes = [2, 128], strides = [1, 1]} : vector<2x256xf32> to vector<2x128xf32>
    %234 = vector.extract_strided_slice %16 {offsets = [10, 0], sizes = [2, 128], strides = [1, 1]} : vector<16x256xf32> to vector<2x128xf32>
    %235 = arith.addf %233, %234 : vector<2x128xf32>
    %236 = vector.extract_strided_slice %232 {offsets = [0, 128], sizes = [2, 128], strides = [1, 1]} : vector<2x256xf32> to vector<2x128xf32>
    %237 = vector.extract_strided_slice %16 {offsets = [4, 128], sizes = [2, 128], strides = [1, 1]} : vector<16x256xf32> to vector<2x128xf32>
    %238 = arith.addf %236, %237 : vector<2x128xf32>
    %239 = arith.negf %235 : vector<2x128xf32>
    %240 = math.exp %239 : vector<2x128xf32>
    %cst_41 = arith.constant 1.000000e+00 : f32
    %241 = vector.broadcast %cst_41 : f32 to vector<2x128xf32>
    %242 = arith.addf %241, %240 : vector<2x128xf32>
    %243 = arith.divf %241, %242 : vector<2x128xf32>
    %244 = vector.extract_strided_slice %243 {offsets = [0, 0], sizes = [2, 32], strides = [1, 1]} : vector<2x128xf32> to vector<2x32xf32>
    %245 = vector.extract_strided_slice %243 {offsets = [0, 32], sizes = [2, 32], strides = [1, 1]} : vector<2x128xf32> to vector<2x32xf32>
    %246 = vector.extract_strided_slice %243 {offsets = [0, 96], sizes = [2, 32], strides = [1, 1]} : vector<2x128xf32> to vector<2x32xf32>
    %247 = vector.extract_strided_slice %235 {offsets = [0, 64], sizes = [2, 32], strides = [1, 1]} : vector<2x128xf32> to vector<2x32xf32>
    %248 = math.tanh %247 : vector<2x32xf32>
    %249 = arith.mulf %245, %209 : vector<2x32xf32>
    %250 = arith.mulf %244, %248 : vector<2x32xf32>
    %251 = arith.addf %249, %250 : vector<2x32xf32>
    %252 = math.tanh %251 : vector<2x32xf32>
    %253 = arith.mulf %246, %252 : vector<2x32xf32>
    %254 = arith.negf %238 : vector<2x128xf32>
    %255 = math.exp %254 : vector<2x128xf32>
    %cst_42 = arith.constant 1.000000e+00 : f32
    %256 = vector.broadcast %cst_42 : f32 to vector<2x128xf32>
    %257 = arith.addf %256, %255 : vector<2x128xf32>
    %258 = arith.divf %256, %257 : vector<2x128xf32>
    %259 = vector.extract_strided_slice %258 {offsets = [0, 0], sizes = [2, 32], strides = [1, 1]} : vector<2x128xf32> to vector<2x32xf32>
    %260 = vector.extract_strided_slice %258 {offsets = [0, 32], sizes = [2, 32], strides = [1, 1]} : vector<2x128xf32> to vector<2x32xf32>
    %261 = vector.extract_strided_slice %258 {offsets = [0, 96], sizes = [2, 32], strides = [1, 1]} : vector<2x128xf32> to vector<2x32xf32>
    %262 = vector.extract_strided_slice %238 {offsets = [0, 64], sizes = [2, 32], strides = [1, 1]} : vector<2x128xf32> to vector<2x32xf32>
    %263 = math.tanh %262 : vector<2x32xf32>
    %264 = arith.mulf %260, %224 : vector<2x32xf32>
    %265 = arith.mulf %259, %263 : vector<2x32xf32>
    %266 = arith.addf %264, %265 : vector<2x32xf32>
    %267 = math.tanh %266 : vector<2x32xf32>
    %268 = arith.mulf %261, %267 : vector<2x32xf32>
    %c10_43 = arith.constant 10 : index
    %c0_44 = arith.constant 0 : index
    %269 = vector.load %arg22[%c10_43, %c0_44] : memref<16x64xf32, #tpu.memory_space<vmem>>, vector<2x32xf32>
    tpu.vector_store %arg22[%c10_43, %c0_44], %253 {strides = array<i32>} : memref<16x64xf32, #tpu.memory_space<vmem>>, vector<2x32xf32>,
    %c4_45 = arith.constant 4 : index
    %c32_46 = arith.constant 32 : index
    %270 = vector.load %arg22[%c4_45, %c32_46] : memref<16x64xf32, #tpu.memory_space<vmem>>, vector<2x32xf32>
    tpu.vector_store %arg22[%c4_45, %c32_46], %268 {strides = array<i32>} : memref<16x64xf32, #tpu.memory_space<vmem>>, vector<2x32xf32>,
    %271 = tpu.concatenate %253, %268 in 1 : vector<2x32xf32>, vector<2x32xf32> -> vector<2x64xf32>
    %cst_47 = arith.constant dense<0.000000e+00> : vector<2x256xf32>
    %272 = tpu.matmul %271, %14, %cst_47 {dimension_numbers = #tpu.dot_dimension_numbers<[1], [0], [0], [1], [0, 0, 1, 1], [], []>} : vector<2x64xf32>, vector<64x256xf32>, vector<2x256xf32> -> vector<2x256xf32>
    %273 = vector.broadcast %15 : vector<1x256xf32> to vector<2x256xf32>
    %274 = arith.addf %272, %273 : vector<2x256xf32>
    %275 = vector.extract_strided_slice %274 {offsets = [0, 0], sizes = [2, 128], strides = [1, 1]} : vector<2x256xf32> to vector<2x128xf32>
    %276 = vector.extract_strided_slice %16 {offsets = [12, 0], sizes = [2, 128], strides = [1, 1]} : vector<16x256xf32> to vector<2x128xf32>
    %277 = arith.addf %275, %276 : vector<2x128xf32>
    %278 = vector.extract_strided_slice %274 {offsets = [0, 128], sizes = [2, 128], strides = [1, 1]} : vector<2x256xf32> to vector<2x128xf32>
    %279 = vector.extract_strided_slice %16 {offsets = [2, 128], sizes = [2, 128], strides = [1, 1]} : vector<16x256xf32> to vector<2x128xf32>
    %280 = arith.addf %278, %279 : vector<2x128xf32>
    %281 = arith.negf %277 : vector<2x128xf32>
    %282 = math.exp %281 : vector<2x128xf32>
    %cst_48 = arith.constant 1.000000e+00 : f32
    %283 = vector.broadcast %cst_48 : f32 to vector<2x128xf32>
    %284 = arith.addf %283, %282 : vector<2x128xf32>
    %285 = arith.divf %283, %284 : vector<2x128xf32>
    %286 = vector.extract_strided_slice %285 {offsets = [0, 0], sizes = [2, 32], strides = [1, 1]} : vector<2x128xf32> to vector<2x32xf32>
    %287 = vector.extract_strided_slice %285 {offsets = [0, 32], sizes = [2, 32], strides = [1, 1]} : vector<2x128xf32> to vector<2x32xf32>
    %288 = vector.extract_strided_slice %285 {offsets = [0, 96], sizes = [2, 32], strides = [1, 1]} : vector<2x128xf32> to vector<2x32xf32>
    %289 = vector.extract_strided_slice %277 {offsets = [0, 64], sizes = [2, 32], strides = [1, 1]} : vector<2x128xf32> to vector<2x32xf32>
    %290 = math.tanh %289 : vector<2x32xf32>
    %291 = arith.mulf %287, %251 : vector<2x32xf32>
    %292 = arith.mulf %286, %290 : vector<2x32xf32>
    %293 = arith.addf %291, %292 : vector<2x32xf32>
    %294 = math.tanh %293 : vector<2x32xf32>
    %295 = arith.mulf %288, %294 : vector<2x32xf32>
    %296 = arith.negf %280 : vector<2x128xf32>
    %297 = math.exp %296 : vector<2x128xf32>
    %cst_49 = arith.constant 1.000000e+00 : f32
    %298 = vector.broadcast %cst_49 : f32 to vector<2x128xf32>
    %299 = arith.addf %298, %297 : vector<2x128xf32>
    %300 = arith.divf %298, %299 : vector<2x128xf32>
    %301 = vector.extract_strided_slice %300 {offsets = [0, 0], sizes = [2, 32], strides = [1, 1]} : vector<2x128xf32> to vector<2x32xf32>
    %302 = vector.extract_strided_slice %300 {offsets = [0, 32], sizes = [2, 32], strides = [1, 1]} : vector<2x128xf32> to vector<2x32xf32>
    %303 = vector.extract_strided_slice %300 {offsets = [0, 96], sizes = [2, 32], strides = [1, 1]} : vector<2x128xf32> to vector<2x32xf32>
    %304 = vector.extract_strided_slice %280 {offsets = [0, 64], sizes = [2, 32], strides = [1, 1]} : vector<2x128xf32> to vector<2x32xf32>
    %305 = math.tanh %304 : vector<2x32xf32>
    %306 = arith.mulf %302, %266 : vector<2x32xf32>
    %307 = arith.mulf %301, %305 : vector<2x32xf32>
    %308 = arith.addf %306, %307 : vector<2x32xf32>
    %309 = math.tanh %308 : vector<2x32xf32>
    %310 = arith.mulf %303, %309 : vector<2x32xf32>
    %c12_50 = arith.constant 12 : index
    %c0_51 = arith.constant 0 : index
    %311 = vector.load %arg22[%c12_50, %c0_51] : memref<16x64xf32, #tpu.memory_space<vmem>>, vector<2x32xf32>
    tpu.vector_store %arg22[%c12_50, %c0_51], %295 {strides = array<i32>} : memref<16x64xf32, #tpu.memory_space<vmem>>, vector<2x32xf32>,
    %c2_52 = arith.constant 2 : index
    %c32_53 = arith.constant 32 : index
    %312 = vector.load %arg22[%c2_52, %c32_53] : memref<16x64xf32, #tpu.memory_space<vmem>>, vector<2x32xf32>
    tpu.vector_store %arg22[%c2_52, %c32_53], %310 {strides = array<i32>} : memref<16x64xf32, #tpu.memory_space<vmem>>, vector<2x32xf32>,
    %313 = tpu.concatenate %295, %310 in 1 : vector<2x32xf32>, vector<2x32xf32> -> vector<2x64xf32>
    %cst_54 = arith.constant dense<0.000000e+00> : vector<2x256xf32>
    %314 = tpu.matmul %313, %14, %cst_54 {dimension_numbers = #tpu.dot_dimension_numbers<[1], [0], [0], [1], [0, 0, 1, 1], [], []>} : vector<2x64xf32>, vector<64x256xf32>, vector<2x256xf32> -> vector<2x256xf32>
    %315 = vector.broadcast %15 : vector<1x256xf32> to vector<2x256xf32>
    %316 = arith.addf %314, %315 : vector<2x256xf32>
    %317 = vector.extract_strided_slice %316 {offsets = [0, 0], sizes = [2, 128], strides = [1, 1]} : vector<2x256xf32> to vector<2x128xf32>
    %318 = vector.extract_strided_slice %16 {offsets = [14, 0], sizes = [2, 128], strides = [1, 1]} : vector<16x256xf32> to vector<2x128xf32>
    %319 = arith.addf %317, %318 : vector<2x128xf32>
    %320 = vector.extract_strided_slice %316 {offsets = [0, 128], sizes = [2, 128], strides = [1, 1]} : vector<2x256xf32> to vector<2x128xf32>
    %321 = vector.extract_strided_slice %16 {offsets = [0, 128], sizes = [2, 128], strides = [1, 1]} : vector<16x256xf32> to vector<2x128xf32>
    %322 = arith.addf %320, %321 : vector<2x128xf32>
    %323 = arith.negf %319 : vector<2x128xf32>
    %324 = math.exp %323 : vector<2x128xf32>
    %cst_55 = arith.constant 1.000000e+00 : f32
    %325 = vector.broadcast %cst_55 : f32 to vector<2x128xf32>
    %326 = arith.addf %325, %324 : vector<2x128xf32>
    %327 = arith.divf %325, %326 : vector<2x128xf32>
    %328 = vector.extract_strided_slice %327 {offsets = [0, 0], sizes = [2, 32], strides = [1, 1]} : vector<2x128xf32> to vector<2x32xf32>
    %329 = vector.extract_strided_slice %327 {offsets = [0, 32], sizes = [2, 32], strides = [1, 1]} : vector<2x128xf32> to vector<2x32xf32>
    %330 = vector.extract_strided_slice %327 {offsets = [0, 96], sizes = [2, 32], strides = [1, 1]} : vector<2x128xf32> to vector<2x32xf32>
    %331 = vector.extract_strided_slice %319 {offsets = [0, 64], sizes = [2, 32], strides = [1, 1]} : vector<2x128xf32> to vector<2x32xf32>
    %332 = math.tanh %331 : vector<2x32xf32>
    %333 = arith.mulf %329, %293 : vector<2x32xf32>
    %334 = arith.mulf %328, %332 : vector<2x32xf32>
    %335 = arith.addf %333, %334 : vector<2x32xf32>
    %336 = math.tanh %335 : vector<2x32xf32>
    %337 = arith.mulf %330, %336 : vector<2x32xf32>
    %338 = arith.negf %322 : vector<2x128xf32>
    %339 = math.exp %338 : vector<2x128xf32>
    %cst_56 = arith.constant 1.000000e+00 : f32
    %340 = vector.broadcast %cst_56 : f32 to vector<2x128xf32>
    %341 = arith.addf %340, %339 : vector<2x128xf32>
    %342 = arith.divf %340, %341 : vector<2x128xf32>
    %343 = vector.extract_strided_slice %342 {offsets = [0, 0], sizes = [2, 32], strides = [1, 1]} : vector<2x128xf32> to vector<2x32xf32>
    %344 = vector.extract_strided_slice %342 {offsets = [0, 32], sizes = [2, 32], strides = [1, 1]} : vector<2x128xf32> to vector<2x32xf32>
    %345 = vector.extract_strided_slice %342 {offsets = [0, 96], sizes = [2, 32], strides = [1, 1]} : vector<2x128xf32> to vector<2x32xf32>
    %346 = vector.extract_strided_slice %322 {offsets = [0, 64], sizes = [2, 32], strides = [1, 1]} : vector<2x128xf32> to vector<2x32xf32>
    %347 = math.tanh %346 : vector<2x32xf32>
    %348 = arith.mulf %344, %308 : vector<2x32xf32>
    %349 = arith.mulf %343, %347 : vector<2x32xf32>
    %350 = arith.addf %348, %349 : vector<2x32xf32>
    %351 = math.tanh %350 : vector<2x32xf32>
    %352 = arith.mulf %345, %351 : vector<2x32xf32>
    %c14_57 = arith.constant 14 : index
    %c0_58 = arith.constant 0 : index
    %353 = vector.load %arg22[%c14_57, %c0_58] : memref<16x64xf32, #tpu.memory_space<vmem>>, vector<2x32xf32>
    tpu.vector_store %arg22[%c14_57, %c0_58], %337 {strides = array<i32>} : memref<16x64xf32, #tpu.memory_space<vmem>>, vector<2x32xf32>,
    %c0_59 = arith.constant 0 : index
    %c32_60 = arith.constant 32 : index
    %354 = vector.load %arg22[%c0_59, %c32_60] : memref<16x64xf32, #tpu.memory_space<vmem>>, vector<2x32xf32>
    tpu.vector_store %arg22[%c0_59, %c32_60], %352 {strides = array<i32>} : memref<16x64xf32, #tpu.memory_space<vmem>>, vector<2x32xf32>,
    %c0_61 = arith.constant 0 : index
    %c0_62 = arith.constant 0 : index
    %355 = vector.load %arg22[%c0_61, %c0_62] : memref<16x64xf32, #tpu.memory_space<vmem>>, vector<16x64xf32>
    %c0_63 = arith.constant 0 : index
    %c0_64 = arith.constant 0 : index
    %356 = vector.load %arg6[%c0_63, %c0_64] : memref<64x256xf32, #tpu.memory_space<vmem>>, vector<64x256xf32>
    %c0_65 = arith.constant 0 : index
    %c0_66 = arith.constant 0 : index
    %357 = vector.load %arg7[%c0_65, %c0_66] : memref<64x256xf32, #tpu.memory_space<vmem>>, vector<64x256xf32>
    %c0_67 = arith.constant 0 : index
    %c0_68 = arith.constant 0 : index
    %358 = vector.load %arg8[%c0_67, %c0_68] : memref<1x256xf32, #tpu.memory_space<vmem>>, vector<1x256xf32>
    %cst_69 = arith.constant dense<0.000000e+00> : vector<16x256xf32>
    %359 = tpu.matmul %355, %356, %cst_69 {dimension_numbers = #tpu.dot_dimension_numbers<[1], [0], [0], [1], [0, 0, 1, 1], [], []>} : vector<16x64xf32>, vector<64x256xf32>, vector<16x256xf32> -> vector<16x256xf32>
    %cst_70 = arith.constant 0.000000e+00 : f32
    %360 = vector.broadcast %cst_70 : f32 to vector<2x64xf32>
    %cst_71 = arith.constant 0.000000e+00 : f32
    %361 = vector.broadcast %cst_71 : f32 to vector<2x32xf32>
    %cst_72 = arith.constant 0.000000e+00 : f32
    %362 = vector.broadcast %cst_72 : f32 to vector<2x32xf32>
    %cst_73 = arith.constant dense<0.000000e+00> : vector<2x256xf32>
    %363 = tpu.matmul %360, %357, %cst_73 {dimension_numbers = #tpu.dot_dimension_numbers<[1], [0], [0], [1], [0, 0, 1, 1], [], []>} : vector<2x64xf32>, vector<64x256xf32>, vector<2x256xf32> -> vector<2x256xf32>
    %364 = vector.broadcast %358 : vector<1x256xf32> to vector<2x256xf32>
    %365 = arith.addf %363, %364 : vector<2x256xf32>
    %366 = vector.extract_strided_slice %365 {offsets = [0, 0], sizes = [2, 128], strides = [1, 1]} : vector<2x256xf32> to vector<2x128xf32>
    %367 = vector.extract_strided_slice %359 {offsets = [0, 0], sizes = [2, 128], strides = [1, 1]} : vector<16x256xf32> to vector<2x128xf32>
    %368 = arith.addf %366, %367 : vector<2x128xf32>
    %369 = vector.extract_strided_slice %365 {offsets = [0, 128], sizes = [2, 128], strides = [1, 1]} : vector<2x256xf32> to vector<2x128xf32>
    %370 = vector.extract_strided_slice %359 {offsets = [14, 128], sizes = [2, 128], strides = [1, 1]} : vector<16x256xf32> to vector<2x128xf32>
    %371 = arith.addf %369, %370 : vector<2x128xf32>
    %372 = arith.negf %368 : vector<2x128xf32>
    %373 = math.exp %372 : vector<2x128xf32>
    %cst_74 = arith.constant 1.000000e+00 : f32
    %374 = vector.broadcast %cst_74 : f32 to vector<2x128xf32>
    %375 = arith.addf %374, %373 : vector<2x128xf32>
    %376 = arith.divf %374, %375 : vector<2x128xf32>
    %377 = vector.extract_strided_slice %376 {offsets = [0, 0], sizes = [2, 32], strides = [1, 1]} : vector<2x128xf32> to vector<2x32xf32>
    %378 = vector.extract_strided_slice %376 {offsets = [0, 32], sizes = [2, 32], strides = [1, 1]} : vector<2x128xf32> to vector<2x32xf32>
    %379 = vector.extract_strided_slice %376 {offsets = [0, 96], sizes = [2, 32], strides = [1, 1]} : vector<2x128xf32> to vector<2x32xf32>
    %380 = vector.extract_strided_slice %368 {offsets = [0, 64], sizes = [2, 32], strides = [1, 1]} : vector<2x128xf32> to vector<2x32xf32>
    %381 = math.tanh %380 : vector<2x32xf32>
    %382 = arith.mulf %378, %361 : vector<2x32xf32>
    %383 = arith.mulf %377, %381 : vector<2x32xf32>
    %384 = arith.addf %382, %383 : vector<2x32xf32>
    %385 = math.tanh %384 : vector<2x32xf32>
    %386 = arith.mulf %379, %385 : vector<2x32xf32>
    %387 = arith.negf %371 : vector<2x128xf32>
    %388 = math.exp %387 : vector<2x128xf32>
    %cst_75 = arith.constant 1.000000e+00 : f32
    %389 = vector.broadcast %cst_75 : f32 to vector<2x128xf32>
    %390 = arith.addf %389, %388 : vector<2x128xf32>
    %391 = arith.divf %389, %390 : vector<2x128xf32>
    %392 = vector.extract_strided_slice %391 {offsets = [0, 0], sizes = [2, 32], strides = [1, 1]} : vector<2x128xf32> to vector<2x32xf32>
    %393 = vector.extract_strided_slice %391 {offsets = [0, 32], sizes = [2, 32], strides = [1, 1]} : vector<2x128xf32> to vector<2x32xf32>
    %394 = vector.extract_strided_slice %391 {offsets = [0, 96], sizes = [2, 32], strides = [1, 1]} : vector<2x128xf32> to vector<2x32xf32>
    %395 = vector.extract_strided_slice %371 {offsets = [0, 64], sizes = [2, 32], strides = [1, 1]} : vector<2x128xf32> to vector<2x32xf32>
    %396 = math.tanh %395 : vector<2x32xf32>
    %397 = arith.mulf %393, %362 : vector<2x32xf32>
    %398 = arith.mulf %392, %396 : vector<2x32xf32>
    %399 = arith.addf %397, %398 : vector<2x32xf32>
    %400 = math.tanh %399 : vector<2x32xf32>
    %401 = arith.mulf %394, %400 : vector<2x32xf32>
    %c0_76 = arith.constant 0 : index
    %c0_77 = arith.constant 0 : index
    %402 = vector.load %arg22[%c0_76, %c0_77] : memref<16x64xf32, #tpu.memory_space<vmem>>, vector<2x32xf32>
    tpu.vector_store %arg22[%c0_76, %c0_77], %386 {strides = array<i32>} : memref<16x64xf32, #tpu.memory_space<vmem>>, vector<2x32xf32>,
    %c14_78 = arith.constant 14 : index
    %c32_79 = arith.constant 32 : index
    %403 = vector.load %arg22[%c14_78, %c32_79] : memref<16x64xf32, #tpu.memory_space<vmem>>, vector<2x32xf32>
    tpu.vector_store %arg22[%c14_78, %c32_79], %401 {strides = array<i32>} : memref<16x64xf32, #tpu.memory_space<vmem>>, vector<2x32xf32>,
    %404 = tpu.concatenate %386, %401 in 1 : vector<2x32xf32>, vector<2x32xf32> -> vector<2x64xf32>
    %cst_80 = arith.constant dense<0.000000e+00> : vector<2x256xf32>
    %405 = tpu.matmul %404, %357, %cst_80 {dimension_numbers = #tpu.dot_dimension_numbers<[1], [0], [0], [1], [0, 0, 1, 1], [], []>} : vector<2x64xf32>, vector<64x256xf32>, vector<2x256xf32> -> vector<2x256xf32>
    %406 = vector.broadcast %358 : vector<1x256xf32> to vector<2x256xf32>
    %407 = arith.addf %405, %406 : vector<2x256xf32>
    %408 = vector.extract_strided_slice %407 {offsets = [0, 0], sizes = [2, 128], strides = [1, 1]} : vector<2x256xf32> to vector<2x128xf32>
    %409 = vector.extract_strided_slice %359 {offsets = [2, 0], sizes = [2, 128], strides = [1, 1]} : vector<16x256xf32> to vector<2x128xf32>
    %410 = arith.addf %408, %409 : vector<2x128xf32>
    %411 = vector.extract_strided_slice %407 {offsets = [0, 128], sizes = [2, 128], strides = [1, 1]} : vector<2x256xf32> to vector<2x128xf32>
    %412 = vector.extract_strided_slice %359 {offsets = [12, 128], sizes = [2, 128], strides = [1, 1]} : vector<16x256xf32> to vector<2x128xf32>
    %413 = arith.addf %411, %412 : vector<2x128xf32>
    %414 = arith.negf %410 : vector<2x128xf32>
    %415 = math.exp %414 : vector<2x128xf32>
    %cst_81 = arith.constant 1.000000e+00 : f32
    %416 = vector.broadcast %cst_81 : f32 to vector<2x128xf32>
    %417 = arith.addf %416, %415 : vector<2x128xf32>
    %418 = arith.divf %416, %417 : vector<2x128xf32>
    %419 = vector.extract_strided_slice %418 {offsets = [0, 0], sizes = [2, 32], strides = [1, 1]} : vector<2x128xf32> to vector<2x32xf32>
    %420 = vector.extract_strided_slice %418 {offsets = [0, 32], sizes = [2, 32], strides = [1, 1]} : vector<2x128xf32> to vector<2x32xf32>
    %421 = vector.extract_strided_slice %418 {offsets = [0, 96], sizes = [2, 32], strides = [1, 1]} : vector<2x128xf32> to vector<2x32xf32>
    %422 = vector.extract_strided_slice %410 {offsets = [0, 64], sizes = [2, 32], strides = [1, 1]} : vector<2x128xf32> to vector<2x32xf32>
    %423 = math.tanh %422 : vector<2x32xf32>
    %424 = arith.mulf %420, %384 : vector<2x32xf32>
    %425 = arith.mulf %419, %423 : vector<2x32xf32>
    %426 = arith.addf %424, %425 : vector<2x32xf32>
    %427 = math.tanh %426 : vector<2x32xf32>
    %428 = arith.mulf %421, %427 : vector<2x32xf32>
    %429 = arith.negf %413 : vector<2x128xf32>
    %430 = math.exp %429 : vector<2x128xf32>
    %cst_82 = arith.constant 1.000000e+00 : f32
    %431 = vector.broadcast %cst_82 : f32 to vector<2x128xf32>
    %432 = arith.addf %431, %430 : vector<2x128xf32>
    %433 = arith.divf %431, %432 : vector<2x128xf32>
    %434 = vector.extract_strided_slice %433 {offsets = [0, 0], sizes = [2, 32], strides = [1, 1]} : vector<2x128xf32> to vector<2x32xf32>
    %435 = vector.extract_strided_slice %433 {offsets = [0, 32], sizes = [2, 32], strides = [1, 1]} : vector<2x128xf32> to vector<2x32xf32>
    %436 = vector.extract_strided_slice %433 {offsets = [0, 96], sizes = [2, 32], strides = [1, 1]} : vector<2x128xf32> to vector<2x32xf32>
    %437 = vector.extract_strided_slice %413 {offsets = [0, 64], sizes = [2, 32], strides = [1, 1]} : vector<2x128xf32> to vector<2x32xf32>
    %438 = math.tanh %437 : vector<2x32xf32>
    %439 = arith.mulf %435, %399 : vector<2x32xf32>
    %440 = arith.mulf %434, %438 : vector<2x32xf32>
    %441 = arith.addf %439, %440 : vector<2x32xf32>
    %442 = math.tanh %441 : vector<2x32xf32>
    %443 = arith.mulf %436, %442 : vector<2x32xf32>
    %c2_83 = arith.constant 2 : index
    %c0_84 = arith.constant 0 : index
    %444 = vector.load %arg22[%c2_83, %c0_84] : memref<16x64xf32, #tpu.memory_space<vmem>>, vector<2x32xf32>
    tpu.vector_store %arg22[%c2_83, %c0_84], %428 {strides = array<i32>} : memref<16x64xf32, #tpu.memory_space<vmem>>, vector<2x32xf32>,
    %c12_85 = arith.constant 12 : index
    %c32_86 = arith.constant 32 : index
    %445 = vector.load %arg22[%c12_85, %c32_86] : memref<16x64xf32, #tpu.memory_space<vmem>>, vector<2x32xf32>
    tpu.vector_store %arg22[%c12_85, %c32_86], %443 {strides = array<i32>} : memref<16x64xf32, #tpu.memory_space<vmem>>, vector<2x32xf32>,
    %446 = tpu.concatenate %428, %443 in 1 : vector<2x32xf32>, vector<2x32xf32> -> vector<2x64xf32>
    %cst_87 = arith.constant dense<0.000000e+00> : vector<2x256xf32>
    %447 = tpu.matmul %446, %357, %cst_87 {dimension_numbers = #tpu.dot_dimension_numbers<[1], [0], [0], [1], [0, 0, 1, 1], [], []>} : vector<2x64xf32>, vector<64x256xf32>, vector<2x256xf32> -> vector<2x256xf32>
    %448 = vector.broadcast %358 : vector<1x256xf32> to vector<2x256xf32>
    %449 = arith.addf %447, %448 : vector<2x256xf32>
    %450 = vector.extract_strided_slice %449 {offsets = [0, 0], sizes = [2, 128], strides = [1, 1]} : vector<2x256xf32> to vector<2x128xf32>
    %451 = vector.extract_strided_slice %359 {offsets = [4, 0], sizes = [2, 128], strides = [1, 1]} : vector<16x256xf32> to vector<2x128xf32>
    %452 = arith.addf %450, %451 : vector<2x128xf32>
    %453 = vector.extract_strided_slice %449 {offsets = [0, 128], sizes = [2, 128], strides = [1, 1]} : vector<2x256xf32> to vector<2x128xf32>
    %454 = vector.extract_strided_slice %359 {offsets = [10, 128], sizes = [2, 128], strides = [1, 1]} : vector<16x256xf32> to vector<2x128xf32>
    %455 = arith.addf %453, %454 : vector<2x128xf32>
    %456 = arith.negf %452 : vector<2x128xf32>
    %457 = math.exp %456 : vector<2x128xf32>
    %cst_88 = arith.constant 1.000000e+00 : f32
    %458 = vector.broadcast %cst_88 : f32 to vector<2x128xf32>
    %459 = arith.addf %458, %457 : vector<2x128xf32>
    %460 = arith.divf %458, %459 : vector<2x128xf32>
    %461 = vector.extract_strided_slice %460 {offsets = [0, 0], sizes = [2, 32], strides = [1, 1]} : vector<2x128xf32> to vector<2x32xf32>
    %462 = vector.extract_strided_slice %460 {offsets = [0, 32], sizes = [2, 32], strides = [1, 1]} : vector<2x128xf32> to vector<2x32xf32>
    %463 = vector.extract_strided_slice %460 {offsets = [0, 96], sizes = [2, 32], strides = [1, 1]} : vector<2x128xf32> to vector<2x32xf32>
    %464 = vector.extract_strided_slice %452 {offsets = [0, 64], sizes = [2, 32], strides = [1, 1]} : vector<2x128xf32> to vector<2x32xf32>
    %465 = math.tanh %464 : vector<2x32xf32>
    %466 = arith.mulf %462, %426 : vector<2x32xf32>
    %467 = arith.mulf %461, %465 : vector<2x32xf32>
    %468 = arith.addf %466, %467 : vector<2x32xf32>
    %469 = math.tanh %468 : vector<2x32xf32>
    %470 = arith.mulf %463, %469 : vector<2x32xf32>
    %471 = arith.negf %455 : vector<2x128xf32>
    %472 = math.exp %471 : vector<2x128xf32>
    %cst_89 = arith.constant 1.000000e+00 : f32
    %473 = vector.broadcast %cst_89 : f32 to vector<2x128xf32>
    %474 = arith.addf %473, %472 : vector<2x128xf32>
    %475 = arith.divf %473, %474 : vector<2x128xf32>
    %476 = vector.extract_strided_slice %475 {offsets = [0, 0], sizes = [2, 32], strides = [1, 1]} : vector<2x128xf32> to vector<2x32xf32>
    %477 = vector.extract_strided_slice %475 {offsets = [0, 32], sizes = [2, 32], strides = [1, 1]} : vector<2x128xf32> to vector<2x32xf32>
    %478 = vector.extract_strided_slice %475 {offsets = [0, 96], sizes = [2, 32], strides = [1, 1]} : vector<2x128xf32> to vector<2x32xf32>
    %479 = vector.extract_strided_slice %455 {offsets = [0, 64], sizes = [2, 32], strides = [1, 1]} : vector<2x128xf32> to vector<2x32xf32>
    %480 = math.tanh %479 : vector<2x32xf32>
    %481 = arith.mulf %477, %441 : vector<2x32xf32>
    %482 = arith.mulf %476, %480 : vector<2x32xf32>
    %483 = arith.addf %481, %482 : vector<2x32xf32>
    %484 = math.tanh %483 : vector<2x32xf32>
    %485 = arith.mulf %478, %484 : vector<2x32xf32>
    %c4_90 = arith.constant 4 : index
    %c0_91 = arith.constant 0 : index
    %486 = vector.load %arg22[%c4_90, %c0_91] : memref<16x64xf32, #tpu.memory_space<vmem>>, vector<2x32xf32>
    tpu.vector_store %arg22[%c4_90, %c0_91], %470 {strides = array<i32>} : memref<16x64xf32, #tpu.memory_space<vmem>>, vector<2x32xf32>,
    %c10_92 = arith.constant 10 : index
    %c32_93 = arith.constant 32 : index
    %487 = vector.load %arg22[%c10_92, %c32_93] : memref<16x64xf32, #tpu.memory_space<vmem>>, vector<2x32xf32>
    tpu.vector_store %arg22[%c10_92, %c32_93], %485 {strides = array<i32>} : memref<16x64xf32, #tpu.memory_space<vmem>>, vector<2x32xf32>,
    %488 = tpu.concatenate %470, %485 in 1 : vector<2x32xf32>, vector<2x32xf32> -> vector<2x64xf32>
    %cst_94 = arith.constant dense<0.000000e+00> : vector<2x256xf32>
    %489 = tpu.matmul %488, %357, %cst_94 {dimension_numbers = #tpu.dot_dimension_numbers<[1], [0], [0], [1], [0, 0, 1, 1], [], []>} : vector<2x64xf32>, vector<64x256xf32>, vector<2x256xf32> -> vector<2x256xf32>
    %490 = vector.broadcast %358 : vector<1x256xf32> to vector<2x256xf32>
    %491 = arith.addf %489, %490 : vector<2x256xf32>
    %492 = vector.extract_strided_slice %491 {offsets = [0, 0], sizes = [2, 128], strides = [1, 1]} : vector<2x256xf32> to vector<2x128xf32>
    %493 = vector.extract_strided_slice %359 {offsets = [6, 0], sizes = [2, 128], strides = [1, 1]} : vector<16x256xf32> to vector<2x128xf32>
    %494 = arith.addf %492, %493 : vector<2x128xf32>
    %495 = vector.extract_strided_slice %491 {offsets = [0, 128], sizes = [2, 128], strides = [1, 1]} : vector<2x256xf32> to vector<2x128xf32>
    %496 = vector.extract_strided_slice %359 {offsets = [8, 128], sizes = [2, 128], strides = [1, 1]} : vector<16x256xf32> to vector<2x128xf32>
    %497 = arith.addf %495, %496 : vector<2x128xf32>
    %498 = arith.negf %494 : vector<2x128xf32>
    %499 = math.exp %498 : vector<2x128xf32>
    %cst_95 = arith.constant 1.000000e+00 : f32
    %500 = vector.broadcast %cst_95 : f32 to vector<2x128xf32>
    %501 = arith.addf %500, %499 : vector<2x128xf32>
    %502 = arith.divf %500, %501 : vector<2x128xf32>
    %503 = vector.extract_strided_slice %502 {offsets = [0, 0], sizes = [2, 32], strides = [1, 1]} : vector<2x128xf32> to vector<2x32xf32>
    %504 = vector.extract_strided_slice %502 {offsets = [0, 32], sizes = [2, 32], strides = [1, 1]} : vector<2x128xf32> to vector<2x32xf32>
    %505 = vector.extract_strided_slice %502 {offsets = [0, 96], sizes = [2, 32], strides = [1, 1]} : vector<2x128xf32> to vector<2x32xf32>
    %506 = vector.extract_strided_slice %494 {offsets = [0, 64], sizes = [2, 32], strides = [1, 1]} : vector<2x128xf32> to vector<2x32xf32>
    %507 = math.tanh %506 : vector<2x32xf32>
    %508 = arith.mulf %504, %468 : vector<2x32xf32>
    %509 = arith.mulf %503, %507 : vector<2x32xf32>
    %510 = arith.addf %508, %509 : vector<2x32xf32>
    %511 = math.tanh %510 : vector<2x32xf32>
    %512 = arith.mulf %505, %511 : vector<2x32xf32>
    %513 = arith.negf %497 : vector<2x128xf32>
    %514 = math.exp %513 : vector<2x128xf32>
    %cst_96 = arith.constant 1.000000e+00 : f32
    %515 = vector.broadcast %cst_96 : f32 to vector<2x128xf32>
    %516 = arith.addf %515, %514 : vector<2x128xf32>
    %517 = arith.divf %515, %516 : vector<2x128xf32>
    %518 = vector.extract_strided_slice %517 {offsets = [0, 0], sizes = [2, 32], strides = [1, 1]} : vector<2x128xf32> to vector<2x32xf32>
    %519 = vector.extract_strided_slice %517 {offsets = [0, 32], sizes = [2, 32], strides = [1, 1]} : vector<2x128xf32> to vector<2x32xf32>
    %520 = vector.extract_strided_slice %517 {offsets = [0, 96], sizes = [2, 32], strides = [1, 1]} : vector<2x128xf32> to vector<2x32xf32>
    %521 = vector.extract_strided_slice %497 {offsets = [0, 64], sizes = [2, 32], strides = [1, 1]} : vector<2x128xf32> to vector<2x32xf32>
    %522 = math.tanh %521 : vector<2x32xf32>
    %523 = arith.mulf %519, %483 : vector<2x32xf32>
    %524 = arith.mulf %518, %522 : vector<2x32xf32>
    %525 = arith.addf %523, %524 : vector<2x32xf32>
    %526 = math.tanh %525 : vector<2x32xf32>
    %527 = arith.mulf %520, %526 : vector<2x32xf32>
    %c6_97 = arith.constant 6 : index
    %c0_98 = arith.constant 0 : index
    %528 = vector.load %arg22[%c6_97, %c0_98] : memref<16x64xf32, #tpu.memory_space<vmem>>, vector<2x32xf32>
    tpu.vector_store %arg22[%c6_97, %c0_98], %512 {strides = array<i32>} : memref<16x64xf32, #tpu.memory_space<vmem>>, vector<2x32xf32>,
    %c8_99 = arith.constant 8 : index
    %c32_100 = arith.constant 32 : index
    %529 = vector.load %arg22[%c8_99, %c32_100] : memref<16x64xf32, #tpu.memory_space<vmem>>, vector<2x32xf32>
    tpu.vector_store %arg22[%c8_99, %c32_100], %527 {strides = array<i32>} : memref<16x64xf32, #tpu.memory_space<vmem>>, vector<2x32xf32>,
    %530 = tpu.concatenate %512, %527 in 1 : vector<2x32xf32>, vector<2x32xf32> -> vector<2x64xf32>
    %cst_101 = arith.constant dense<0.000000e+00> : vector<2x256xf32>
    %531 = tpu.matmul %530, %357, %cst_101 {dimension_numbers = #tpu.dot_dimension_numbers<[1], [0], [0], [1], [0, 0, 1, 1], [], []>} : vector<2x64xf32>, vector<64x256xf32>, vector<2x256xf32> -> vector<2x256xf32>
    %532 = vector.broadcast %358 : vector<1x256xf32> to vector<2x256xf32>
    %533 = arith.addf %531, %532 : vector<2x256xf32>
    %534 = vector.extract_strided_slice %533 {offsets = [0, 0], sizes = [2, 128], strides = [1, 1]} : vector<2x256xf32> to vector<2x128xf32>
    %535 = vector.extract_strided_slice %359 {offsets = [8, 0], sizes = [2, 128], strides = [1, 1]} : vector<16x256xf32> to vector<2x128xf32>
    %536 = arith.addf %534, %535 : vector<2x128xf32>
    %537 = vector.extract_strided_slice %533 {offsets = [0, 128], sizes = [2, 128], strides = [1, 1]} : vector<2x256xf32> to vector<2x128xf32>
    %538 = vector.extract_strided_slice %359 {offsets = [6, 128], sizes = [2, 128], strides = [1, 1]} : vector<16x256xf32> to vector<2x128xf32>
    %539 = arith.addf %537, %538 : vector<2x128xf32>
    %540 = arith.negf %536 : vector<2x128xf32>
    %541 = math.exp %540 : vector<2x128xf32>
    %cst_102 = arith.constant 1.000000e+00 : f32
    %542 = vector.broadcast %cst_102 : f32 to vector<2x128xf32>
    %543 = arith.addf %542, %541 : vector<2x128xf32>
    %544 = arith.divf %542, %543 : vector<2x128xf32>
    %545 = vector.extract_strided_slice %544 {offsets = [0, 0], sizes = [2, 32], strides = [1, 1]} : vector<2x128xf32> to vector<2x32xf32>
    %546 = vector.extract_strided_slice %544 {offsets = [0, 32], sizes = [2, 32], strides = [1, 1]} : vector<2x128xf32> to vector<2x32xf32>
    %547 = vector.extract_strided_slice %544 {offsets = [0, 96], sizes = [2, 32], strides = [1, 1]} : vector<2x128xf32> to vector<2x32xf32>
    %548 = vector.extract_strided_slice %536 {offsets = [0, 64], sizes = [2, 32], strides = [1, 1]} : vector<2x128xf32> to vector<2x32xf32>
    %549 = math.tanh %548 : vector<2x32xf32>
    %550 = arith.mulf %546, %510 : vector<2x32xf32>
    %551 = arith.mulf %545, %549 : vector<2x32xf32>
    %552 = arith.addf %550, %551 : vector<2x32xf32>
    %553 = math.tanh %552 : vector<2x32xf32>
    %554 = arith.mulf %547, %553 : vector<2x32xf32>
    %555 = arith.negf %539 : vector<2x128xf32>
    %556 = math.exp %555 : vector<2x128xf32>
    %cst_103 = arith.constant 1.000000e+00 : f32
    %557 = vector.broadcast %cst_103 : f32 to vector<2x128xf32>
    %558 = arith.addf %557, %556 : vector<2x128xf32>
    %559 = arith.divf %557, %558 : vector<2x128xf32>
    %560 = vector.extract_strided_slice %559 {offsets = [0, 0], sizes = [2, 32], strides = [1, 1]} : vector<2x128xf32> to vector<2x32xf32>
    %561 = vector.extract_strided_slice %559 {offsets = [0, 32], sizes = [2, 32], strides = [1, 1]} : vector<2x128xf32> to vector<2x32xf32>
    %562 = vector.extract_strided_slice %559 {offsets = [0, 96], sizes = [2, 32], strides = [1, 1]} : vector<2x128xf32> to vector<2x32xf32>
    %563 = vector.extract_strided_slice %539 {offsets = [0, 64], sizes = [2, 32], strides = [1, 1]} : vector<2x128xf32> to vector<2x32xf32>
    %564 = math.tanh %563 : vector<2x32xf32>
    %565 = arith.mulf %561, %525 : vector<2x32xf32>
    %566 = arith.mulf %560, %564 : vector<2x32xf32>
    %567 = arith.addf %565, %566 : vector<2x32xf32>
    %568 = math.tanh %567 : vector<2x32xf32>
    %569 = arith.mulf %562, %568 : vector<2x32xf32>
    %c8_104 = arith.constant 8 : index
    %c0_105 = arith.constant 0 : index
    %570 = vector.load %arg22[%c8_104, %c0_105] : memref<16x64xf32, #tpu.memory_space<vmem>>, vector<2x32xf32>
    tpu.vector_store %arg22[%c8_104, %c0_105], %554 {strides = array<i32>} : memref<16x64xf32, #tpu.memory_space<vmem>>, vector<2x32xf32>,
    %c6_106 = arith.constant 6 : index
    %c32_107 = arith.constant 32 : index
    %571 = vector.load %arg22[%c6_106, %c32_107] : memref<16x64xf32, #tpu.memory_space<vmem>>, vector<2x32xf32>
    tpu.vector_store %arg22[%c6_106, %c32_107], %569 {strides = array<i32>} : memref<16x64xf32, #tpu.memory_space<vmem>>, vector<2x32xf32>,
    %572 = tpu.concatenate %554, %569 in 1 : vector<2x32xf32>, vector<2x32xf32> -> vector<2x64xf32>
    %cst_108 = arith.constant dense<0.000000e+00> : vector<2x256xf32>
    %573 = tpu.matmul %572, %357, %cst_108 {dimension_numbers = #tpu.dot_dimension_numbers<[1], [0], [0], [1], [0, 0, 1, 1], [], []>} : vector<2x64xf32>, vector<64x256xf32>, vector<2x256xf32> -> vector<2x256xf32>
    %574 = vector.broadcast %358 : vector<1x256xf32> to vector<2x256xf32>
    %575 = arith.addf %573, %574 : vector<2x256xf32>
    %576 = vector.extract_strided_slice %575 {offsets = [0, 0], sizes = [2, 128], strides = [1, 1]} : vector<2x256xf32> to vector<2x128xf32>
    %577 = vector.extract_strided_slice %359 {offsets = [10, 0], sizes = [2, 128], strides = [1, 1]} : vector<16x256xf32> to vector<2x128xf32>
    %578 = arith.addf %576, %577 : vector<2x128xf32>
    %579 = vector.extract_strided_slice %575 {offsets = [0, 128], sizes = [2, 128], strides = [1, 1]} : vector<2x256xf32> to vector<2x128xf32>
    %580 = vector.extract_strided_slice %359 {offsets = [4, 128], sizes = [2, 128], strides = [1, 1]} : vector<16x256xf32> to vector<2x128xf32>
    %581 = arith.addf %579, %580 : vector<2x128xf32>
    %582 = arith.negf %578 : vector<2x128xf32>
    %583 = math.exp %582 : vector<2x128xf32>
    %cst_109 = arith.constant 1.000000e+00 : f32
    %584 = vector.broadcast %cst_109 : f32 to vector<2x128xf32>
    %585 = arith.addf %584, %583 : vector<2x128xf32>
    %586 = arith.divf %584, %585 : vector<2x128xf32>
    %587 = vector.extract_strided_slice %586 {offsets = [0, 0], sizes = [2, 32], strides = [1, 1]} : vector<2x128xf32> to vector<2x32xf32>
    %588 = vector.extract_strided_slice %586 {offsets = [0, 32], sizes = [2, 32], strides = [1, 1]} : vector<2x128xf32> to vector<2x32xf32>
    %589 = vector.extract_strided_slice %586 {offsets = [0, 96], sizes = [2, 32], strides = [1, 1]} : vector<2x128xf32> to vector<2x32xf32>
    %590 = vector.extract_strided_slice %578 {offsets = [0, 64], sizes = [2, 32], strides = [1, 1]} : vector<2x128xf32> to vector<2x32xf32>
    %591 = math.tanh %590 : vector<2x32xf32>
    %592 = arith.mulf %588, %552 : vector<2x32xf32>
    %593 = arith.mulf %587, %591 : vector<2x32xf32>
    %594 = arith.addf %592, %593 : vector<2x32xf32>
    %595 = math.tanh %594 : vector<2x32xf32>
    %596 = arith.mulf %589, %595 : vector<2x32xf32>
    %597 = arith.negf %581 : vector<2x128xf32>
    %598 = math.exp %597 : vector<2x128xf32>
    %cst_110 = arith.constant 1.000000e+00 : f32
    %599 = vector.broadcast %cst_110 : f32 to vector<2x128xf32>
    %600 = arith.addf %599, %598 : vector<2x128xf32>
    %601 = arith.divf %599, %600 : vector<2x128xf32>
    %602 = vector.extract_strided_slice %601 {offsets = [0, 0], sizes = [2, 32], strides = [1, 1]} : vector<2x128xf32> to vector<2x32xf32>
    %603 = vector.extract_strided_slice %601 {offsets = [0, 32], sizes = [2, 32], strides = [1, 1]} : vector<2x128xf32> to vector<2x32xf32>
    %604 = vector.extract_strided_slice %601 {offsets = [0, 96], sizes = [2, 32], strides = [1, 1]} : vector<2x128xf32> to vector<2x32xf32>
    %605 = vector.extract_strided_slice %581 {offsets = [0, 64], sizes = [2, 32], strides = [1, 1]} : vector<2x128xf32> to vector<2x32xf32>
    %606 = math.tanh %605 : vector<2x32xf32>
    %607 = arith.mulf %603, %567 : vector<2x32xf32>
    %608 = arith.mulf %602, %606 : vector<2x32xf32>
    %609 = arith.addf %607, %608 : vector<2x32xf32>
    %610 = math.tanh %609 : vector<2x32xf32>
    %611 = arith.mulf %604, %610 : vector<2x32xf32>
    %c10_111 = arith.constant 10 : index
    %c0_112 = arith.constant 0 : index
    %612 = vector.load %arg22[%c10_111, %c0_112] : memref<16x64xf32, #tpu.memory_space<vmem>>, vector<2x32xf32>
    tpu.vector_store %arg22[%c10_111, %c0_112], %596 {strides = array<i32>} : memref<16x64xf32, #tpu.memory_space<vmem>>, vector<2x32xf32>,
    %c4_113 = arith.constant 4 : index
    %c32_114 = arith.constant 32 : index
    %613 = vector.load %arg22[%c4_113, %c32_114] : memref<16x64xf32, #tpu.memory_space<vmem>>, vector<2x32xf32>
    tpu.vector_store %arg22[%c4_113, %c32_114], %611 {strides = array<i32>} : memref<16x64xf32, #tpu.memory_space<vmem>>, vector<2x32xf32>,
    %614 = tpu.concatenate %596, %611 in 1 : vector<2x32xf32>, vector<2x32xf32> -> vector<2x64xf32>
    %cst_115 = arith.constant dense<0.000000e+00> : vector<2x256xf32>
    %615 = tpu.matmul %614, %357, %cst_115 {dimension_numbers = #tpu.dot_dimension_numbers<[1], [0], [0], [1], [0, 0, 1, 1], [], []>} : vector<2x64xf32>, vector<64x256xf32>, vector<2x256xf32> -> vector<2x256xf32>
    %616 = vector.broadcast %358 : vector<1x256xf32> to vector<2x256xf32>
    %617 = arith.addf %615, %616 : vector<2x256xf32>
    %618 = vector.extract_strided_slice %617 {offsets = [0, 0], sizes = [2, 128], strides = [1, 1]} : vector<2x256xf32> to vector<2x128xf32>
    %619 = vector.extract_strided_slice %359 {offsets = [12, 0], sizes = [2, 128], strides = [1, 1]} : vector<16x256xf32> to vector<2x128xf32>
    %620 = arith.addf %618, %619 : vector<2x128xf32>
    %621 = vector.extract_strided_slice %617 {offsets = [0, 128], sizes = [2, 128], strides = [1, 1]} : vector<2x256xf32> to vector<2x128xf32>
    %622 = vector.extract_strided_slice %359 {offsets = [2, 128], sizes = [2, 128], strides = [1, 1]} : vector<16x256xf32> to vector<2x128xf32>
    %623 = arith.addf %621, %622 : vector<2x128xf32>
    %624 = arith.negf %620 : vector<2x128xf32>
    %625 = math.exp %624 : vector<2x128xf32>
    %cst_116 = arith.constant 1.000000e+00 : f32
    %626 = vector.broadcast %cst_116 : f32 to vector<2x128xf32>
    %627 = arith.addf %626, %625 : vector<2x128xf32>
    %628 = arith.divf %626, %627 : vector<2x128xf32>
    %629 = vector.extract_strided_slice %628 {offsets = [0, 0], sizes = [2, 32], strides = [1, 1]} : vector<2x128xf32> to vector<2x32xf32>
    %630 = vector.extract_strided_slice %628 {offsets = [0, 32], sizes = [2, 32], strides = [1, 1]} : vector<2x128xf32> to vector<2x32xf32>
    %631 = vector.extract_strided_slice %628 {offsets = [0, 96], sizes = [2, 32], strides = [1, 1]} : vector<2x128xf32> to vector<2x32xf32>
    %632 = vector.extract_strided_slice %620 {offsets = [0, 64], sizes = [2, 32], strides = [1, 1]} : vector<2x128xf32> to vector<2x32xf32>
    %633 = math.tanh %632 : vector<2x32xf32>
    %634 = arith.mulf %630, %594 : vector<2x32xf32>
    %635 = arith.mulf %629, %633 : vector<2x32xf32>
    %636 = arith.addf %634, %635 : vector<2x32xf32>
    %637 = math.tanh %636 : vector<2x32xf32>
    %638 = arith.mulf %631, %637 : vector<2x32xf32>
    %639 = arith.negf %623 : vector<2x128xf32>
    %640 = math.exp %639 : vector<2x128xf32>
    %cst_117 = arith.constant 1.000000e+00 : f32
    %641 = vector.broadcast %cst_117 : f32 to vector<2x128xf32>
    %642 = arith.addf %641, %640 : vector<2x128xf32>
    %643 = arith.divf %641, %642 : vector<2x128xf32>
    %644 = vector.extract_strided_slice %643 {offsets = [0, 0], sizes = [2, 32], strides = [1, 1]} : vector<2x128xf32> to vector<2x32xf32>
    %645 = vector.extract_strided_slice %643 {offsets = [0, 32], sizes = [2, 32], strides = [1, 1]} : vector<2x128xf32> to vector<2x32xf32>
    %646 = vector.extract_strided_slice %643 {offsets = [0, 96], sizes = [2, 32], strides = [1, 1]} : vector<2x128xf32> to vector<2x32xf32>
    %647 = vector.extract_strided_slice %623 {offsets = [0, 64], sizes = [2, 32], strides = [1, 1]} : vector<2x128xf32> to vector<2x32xf32>
    %648 = math.tanh %647 : vector<2x32xf32>
    %649 = arith.mulf %645, %609 : vector<2x32xf32>
    %650 = arith.mulf %644, %648 : vector<2x32xf32>
    %651 = arith.addf %649, %650 : vector<2x32xf32>
    %652 = math.tanh %651 : vector<2x32xf32>
    %653 = arith.mulf %646, %652 : vector<2x32xf32>
    %c12_118 = arith.constant 12 : index
    %c0_119 = arith.constant 0 : index
    %654 = vector.load %arg22[%c12_118, %c0_119] : memref<16x64xf32, #tpu.memory_space<vmem>>, vector<2x32xf32>
    tpu.vector_store %arg22[%c12_118, %c0_119], %638 {strides = array<i32>} : memref<16x64xf32, #tpu.memory_space<vmem>>, vector<2x32xf32>,
    %c2_120 = arith.constant 2 : index
    %c32_121 = arith.constant 32 : index
    %655 = vector.load %arg22[%c2_120, %c32_121] : memref<16x64xf32, #tpu.memory_space<vmem>>, vector<2x32xf32>
    tpu.vector_store %arg22[%c2_120, %c32_121], %653 {strides = array<i32>} : memref<16x64xf32, #tpu.memory_space<vmem>>, vector<2x32xf32>,
    %656 = tpu.concatenate %638, %653 in 1 : vector<2x32xf32>, vector<2x32xf32> -> vector<2x64xf32>
    %cst_122 = arith.constant dense<0.000000e+00> : vector<2x256xf32>
    %657 = tpu.matmul %656, %357, %cst_122 {dimension_numbers = #tpu.dot_dimension_numbers<[1], [0], [0], [1], [0, 0, 1, 1], [], []>} : vector<2x64xf32>, vector<64x256xf32>, vector<2x256xf32> -> vector<2x256xf32>
    %658 = vector.broadcast %358 : vector<1x256xf32> to vector<2x256xf32>
    %659 = arith.addf %657, %658 : vector<2x256xf32>
    %660 = vector.extract_strided_slice %659 {offsets = [0, 0], sizes = [2, 128], strides = [1, 1]} : vector<2x256xf32> to vector<2x128xf32>
    %661 = vector.extract_strided_slice %359 {offsets = [14, 0], sizes = [2, 128], strides = [1, 1]} : vector<16x256xf32> to vector<2x128xf32>
    %662 = arith.addf %660, %661 : vector<2x128xf32>
    %663 = vector.extract_strided_slice %659 {offsets = [0, 128], sizes = [2, 128], strides = [1, 1]} : vector<2x256xf32> to vector<2x128xf32>
    %664 = vector.extract_strided_slice %359 {offsets = [0, 128], sizes = [2, 128], strides = [1, 1]} : vector<16x256xf32> to vector<2x128xf32>
    %665 = arith.addf %663, %664 : vector<2x128xf32>
    %666 = arith.negf %662 : vector<2x128xf32>
    %667 = math.exp %666 : vector<2x128xf32>
    %cst_123 = arith.constant 1.000000e+00 : f32
    %668 = vector.broadcast %cst_123 : f32 to vector<2x128xf32>
    %669 = arith.addf %668, %667 : vector<2x128xf32>
    %670 = arith.divf %668, %669 : vector<2x128xf32>
    %671 = vector.extract_strided_slice %670 {offsets = [0, 0], sizes = [2, 32], strides = [1, 1]} : vector<2x128xf32> to vector<2x32xf32>
    %672 = vector.extract_strided_slice %670 {offsets = [0, 32], sizes = [2, 32], strides = [1, 1]} : vector<2x128xf32> to vector<2x32xf32>
    %673 = vector.extract_strided_slice %670 {offsets = [0, 96], sizes = [2, 32], strides = [1, 1]} : vector<2x128xf32> to vector<2x32xf32>
    %674 = vector.extract_strided_slice %662 {offsets = [0, 64], sizes = [2, 32], strides = [1, 1]} : vector<2x128xf32> to vector<2x32xf32>
    %675 = math.tanh %674 : vector<2x32xf32>
    %676 = arith.mulf %672, %636 : vector<2x32xf32>
    %677 = arith.mulf %671, %675 : vector<2x32xf32>
    %678 = arith.addf %676, %677 : vector<2x32xf32>
    %679 = math.tanh %678 : vector<2x32xf32>
    %680 = arith.mulf %673, %679 : vector<2x32xf32>
    %681 = arith.negf %665 : vector<2x128xf32>
    %682 = math.exp %681 : vector<2x128xf32>
    %cst_124 = arith.constant 1.000000e+00 : f32
    %683 = vector.broadcast %cst_124 : f32 to vector<2x128xf32>
    %684 = arith.addf %683, %682 : vector<2x128xf32>
    %685 = arith.divf %683, %684 : vector<2x128xf32>
    %686 = vector.extract_strided_slice %685 {offsets = [0, 0], sizes = [2, 32], strides = [1, 1]} : vector<2x128xf32> to vector<2x32xf32>
    %687 = vector.extract_strided_slice %685 {offsets = [0, 32], sizes = [2, 32], strides = [1, 1]} : vector<2x128xf32> to vector<2x32xf32>
    %688 = vector.extract_strided_slice %685 {offsets = [0, 96], sizes = [2, 32], strides = [1, 1]} : vector<2x128xf32> to vector<2x32xf32>
    %689 = vector.extract_strided_slice %665 {offsets = [0, 64], sizes = [2, 32], strides = [1, 1]} : vector<2x128xf32> to vector<2x32xf32>
    %690 = math.tanh %689 : vector<2x32xf32>
    %691 = arith.mulf %687, %651 : vector<2x32xf32>
    %692 = arith.mulf %686, %690 : vector<2x32xf32>
    %693 = arith.addf %691, %692 : vector<2x32xf32>
    %694 = math.tanh %693 : vector<2x32xf32>
    %695 = arith.mulf %688, %694 : vector<2x32xf32>
    %c14_125 = arith.constant 14 : index
    %c0_126 = arith.constant 0 : index
    %696 = vector.load %arg22[%c14_125, %c0_126] : memref<16x64xf32, #tpu.memory_space<vmem>>, vector<2x32xf32>
    tpu.vector_store %arg22[%c14_125, %c0_126], %680 {strides = array<i32>} : memref<16x64xf32, #tpu.memory_space<vmem>>, vector<2x32xf32>,
    %c0_127 = arith.constant 0 : index
    %c32_128 = arith.constant 32 : index
    %697 = vector.load %arg22[%c0_127, %c32_128] : memref<16x64xf32, #tpu.memory_space<vmem>>, vector<2x32xf32>
    tpu.vector_store %arg22[%c0_127, %c32_128], %695 {strides = array<i32>} : memref<16x64xf32, #tpu.memory_space<vmem>>, vector<2x32xf32>,
    %c0_129 = arith.constant 0 : index
    %c0_130 = arith.constant 0 : index
    %698 = vector.load %arg22[%c0_129, %c0_130] : memref<16x64xf32, #tpu.memory_space<vmem>>, vector<16x64xf32>
    %c0_131 = arith.constant 0 : index
    %c0_132 = arith.constant 0 : index
    %699 = vector.load %arg9[%c0_131, %c0_132] : memref<64x256xf32, #tpu.memory_space<vmem>>, vector<64x256xf32>
    %c0_133 = arith.constant 0 : index
    %c0_134 = arith.constant 0 : index
    %700 = vector.load %arg10[%c0_133, %c0_134] : memref<64x256xf32, #tpu.memory_space<vmem>>, vector<64x256xf32>
    %c0_135 = arith.constant 0 : index
    %c0_136 = arith.constant 0 : index
    %701 = vector.load %arg11[%c0_135, %c0_136] : memref<1x256xf32, #tpu.memory_space<vmem>>, vector<1x256xf32>
    %cst_137 = arith.constant dense<0.000000e+00> : vector<16x256xf32>
    %702 = tpu.matmul %698, %699, %cst_137 {dimension_numbers = #tpu.dot_dimension_numbers<[1], [0], [0], [1], [0, 0, 1, 1], [], []>} : vector<16x64xf32>, vector<64x256xf32>, vector<16x256xf32> -> vector<16x256xf32>
    %cst_138 = arith.constant 0.000000e+00 : f32
    %703 = vector.broadcast %cst_138 : f32 to vector<2x64xf32>
    %cst_139 = arith.constant 0.000000e+00 : f32
    %704 = vector.broadcast %cst_139 : f32 to vector<2x32xf32>
    %cst_140 = arith.constant 0.000000e+00 : f32
    %705 = vector.broadcast %cst_140 : f32 to vector<2x32xf32>
    %cst_141 = arith.constant dense<0.000000e+00> : vector<2x256xf32>
    %706 = tpu.matmul %703, %700, %cst_141 {dimension_numbers = #tpu.dot_dimension_numbers<[1], [0], [0], [1], [0, 0, 1, 1], [], []>} : vector<2x64xf32>, vector<64x256xf32>, vector<2x256xf32> -> vector<2x256xf32>
    %707 = vector.broadcast %701 : vector<1x256xf32> to vector<2x256xf32>
    %708 = arith.addf %706, %707 : vector<2x256xf32>
    %709 = vector.extract_strided_slice %708 {offsets = [0, 0], sizes = [2, 128], strides = [1, 1]} : vector<2x256xf32> to vector<2x128xf32>
    %710 = vector.extract_strided_slice %702 {offsets = [0, 0], sizes = [2, 128], strides = [1, 1]} : vector<16x256xf32> to vector<2x128xf32>
    %711 = arith.addf %709, %710 : vector<2x128xf32>
    %712 = vector.extract_strided_slice %708 {offsets = [0, 128], sizes = [2, 128], strides = [1, 1]} : vector<2x256xf32> to vector<2x128xf32>
    %713 = vector.extract_strided_slice %702 {offsets = [14, 128], sizes = [2, 128], strides = [1, 1]} : vector<16x256xf32> to vector<2x128xf32>
    %714 = arith.addf %712, %713 : vector<2x128xf32>
    %715 = arith.negf %711 : vector<2x128xf32>
    %716 = math.exp %715 : vector<2x128xf32>
    %cst_142 = arith.constant 1.000000e+00 : f32
    %717 = vector.broadcast %cst_142 : f32 to vector<2x128xf32>
    %718 = arith.addf %717, %716 : vector<2x128xf32>
    %719 = arith.divf %717, %718 : vector<2x128xf32>
    %720 = vector.extract_strided_slice %719 {offsets = [0, 0], sizes = [2, 32], strides = [1, 1]} : vector<2x128xf32> to vector<2x32xf32>
    %721 = vector.extract_strided_slice %719 {offsets = [0, 32], sizes = [2, 32], strides = [1, 1]} : vector<2x128xf32> to vector<2x32xf32>
    %722 = vector.extract_strided_slice %719 {offsets = [0, 96], sizes = [2, 32], strides = [1, 1]} : vector<2x128xf32> to vector<2x32xf32>
    %723 = vector.extract_strided_slice %711 {offsets = [0, 64], sizes = [2, 32], strides = [1, 1]} : vector<2x128xf32> to vector<2x32xf32>
    %724 = math.tanh %723 : vector<2x32xf32>
    %725 = arith.mulf %721, %704 : vector<2x32xf32>
    %726 = arith.mulf %720, %724 : vector<2x32xf32>
    %727 = arith.addf %725, %726 : vector<2x32xf32>
    %728 = math.tanh %727 : vector<2x32xf32>
    %729 = arith.mulf %722, %728 : vector<2x32xf32>
    %730 = arith.negf %714 : vector<2x128xf32>
    %731 = math.exp %730 : vector<2x128xf32>
    %cst_143 = arith.constant 1.000000e+00 : f32
    %732 = vector.broadcast %cst_143 : f32 to vector<2x128xf32>
    %733 = arith.addf %732, %731 : vector<2x128xf32>
    %734 = arith.divf %732, %733 : vector<2x128xf32>
    %735 = vector.extract_strided_slice %734 {offsets = [0, 0], sizes = [2, 32], strides = [1, 1]} : vector<2x128xf32> to vector<2x32xf32>
    %736 = vector.extract_strided_slice %734 {offsets = [0, 32], sizes = [2, 32], strides = [1, 1]} : vector<2x128xf32> to vector<2x32xf32>
    %737 = vector.extract_strided_slice %734 {offsets = [0, 96], sizes = [2, 32], strides = [1, 1]} : vector<2x128xf32> to vector<2x32xf32>
    %738 = vector.extract_strided_slice %714 {offsets = [0, 64], sizes = [2, 32], strides = [1, 1]} : vector<2x128xf32> to vector<2x32xf32>
    %739 = math.tanh %738 : vector<2x32xf32>
    %740 = arith.mulf %736, %705 : vector<2x32xf32>
    %741 = arith.mulf %735, %739 : vector<2x32xf32>
    %742 = arith.addf %740, %741 : vector<2x32xf32>
    %743 = math.tanh %742 : vector<2x32xf32>
    %744 = arith.mulf %737, %743 : vector<2x32xf32>
    %c0_144 = arith.constant 0 : index
    %c0_145 = arith.constant 0 : index
    %745 = vector.load %arg22[%c0_144, %c0_145] : memref<16x64xf32, #tpu.memory_space<vmem>>, vector<2x32xf32>
    tpu.vector_store %arg22[%c0_144, %c0_145], %729 {strides = array<i32>} : memref<16x64xf32, #tpu.memory_space<vmem>>, vector<2x32xf32>,
    %c14_146 = arith.constant 14 : index
    %c32_147 = arith.constant 32 : index
    %746 = vector.load %arg22[%c14_146, %c32_147] : memref<16x64xf32, #tpu.memory_space<vmem>>, vector<2x32xf32>
    tpu.vector_store %arg22[%c14_146, %c32_147], %744 {strides = array<i32>} : memref<16x64xf32, #tpu.memory_space<vmem>>, vector<2x32xf32>,
    %747 = tpu.concatenate %729, %744 in 1 : vector<2x32xf32>, vector<2x32xf32> -> vector<2x64xf32>
    %cst_148 = arith.constant dense<0.000000e+00> : vector<2x256xf32>
    %748 = tpu.matmul %747, %700, %cst_148 {dimension_numbers = #tpu.dot_dimension_numbers<[1], [0], [0], [1], [0, 0, 1, 1], [], []>} : vector<2x64xf32>, vector<64x256xf32>, vector<2x256xf32> -> vector<2x256xf32>
    %749 = vector.broadcast %701 : vector<1x256xf32> to vector<2x256xf32>
    %750 = arith.addf %748, %749 : vector<2x256xf32>
    %751 = vector.extract_strided_slice %750 {offsets = [0, 0], sizes = [2, 128], strides = [1, 1]} : vector<2x256xf32> to vector<2x128xf32>
    %752 = vector.extract_strided_slice %702 {offsets = [2, 0], sizes = [2, 128], strides = [1, 1]} : vector<16x256xf32> to vector<2x128xf32>
    %753 = arith.addf %751, %752 : vector<2x128xf32>
    %754 = vector.extract_strided_slice %750 {offsets = [0, 128], sizes = [2, 128], strides = [1, 1]} : vector<2x256xf32> to vector<2x128xf32>
    %755 = vector.extract_strided_slice %702 {offsets = [12, 128], sizes = [2, 128], strides = [1, 1]} : vector<16x256xf32> to vector<2x128xf32>
    %756 = arith.addf %754, %755 : vector<2x128xf32>
    %757 = arith.negf %753 : vector<2x128xf32>
    %758 = math.exp %757 : vector<2x128xf32>
    %cst_149 = arith.constant 1.000000e+00 : f32
    %759 = vector.broadcast %cst_149 : f32 to vector<2x128xf32>
    %760 = arith.addf %759, %758 : vector<2x128xf32>
    %761 = arith.divf %759, %760 : vector<2x128xf32>
    %762 = vector.extract_strided_slice %761 {offsets = [0, 0], sizes = [2, 32], strides = [1, 1]} : vector<2x128xf32> to vector<2x32xf32>
    %763 = vector.extract_strided_slice %761 {offsets = [0, 32], sizes = [2, 32], strides = [1, 1]} : vector<2x128xf32> to vector<2x32xf32>
    %764 = vector.extract_strided_slice %761 {offsets = [0, 96], sizes = [2, 32], strides = [1, 1]} : vector<2x128xf32> to vector<2x32xf32>
    %765 = vector.extract_strided_slice %753 {offsets = [0, 64], sizes = [2, 32], strides = [1, 1]} : vector<2x128xf32> to vector<2x32xf32>
    %766 = math.tanh %765 : vector<2x32xf32>
    %767 = arith.mulf %763, %727 : vector<2x32xf32>
    %768 = arith.mulf %762, %766 : vector<2x32xf32>
    %769 = arith.addf %767, %768 : vector<2x32xf32>
    %770 = math.tanh %769 : vector<2x32xf32>
    %771 = arith.mulf %764, %770 : vector<2x32xf32>
    %772 = arith.negf %756 : vector<2x128xf32>
    %773 = math.exp %772 : vector<2x128xf32>
    %cst_150 = arith.constant 1.000000e+00 : f32
    %774 = vector.broadcast %cst_150 : f32 to vector<2x128xf32>
    %775 = arith.addf %774, %773 : vector<2x128xf32>
    %776 = arith.divf %774, %775 : vector<2x128xf32>
    %777 = vector.extract_strided_slice %776 {offsets = [0, 0], sizes = [2, 32], strides = [1, 1]} : vector<2x128xf32> to vector<2x32xf32>
    %778 = vector.extract_strided_slice %776 {offsets = [0, 32], sizes = [2, 32], strides = [1, 1]} : vector<2x128xf32> to vector<2x32xf32>
    %779 = vector.extract_strided_slice %776 {offsets = [0, 96], sizes = [2, 32], strides = [1, 1]} : vector<2x128xf32> to vector<2x32xf32>
    %780 = vector.extract_strided_slice %756 {offsets = [0, 64], sizes = [2, 32], strides = [1, 1]} : vector<2x128xf32> to vector<2x32xf32>
    %781 = math.tanh %780 : vector<2x32xf32>
    %782 = arith.mulf %778, %742 : vector<2x32xf32>
    %783 = arith.mulf %777, %781 : vector<2x32xf32>
    %784 = arith.addf %782, %783 : vector<2x32xf32>
    %785 = math.tanh %784 : vector<2x32xf32>
    %786 = arith.mulf %779, %785 : vector<2x32xf32>
    %c2_151 = arith.constant 2 : index
    %c0_152 = arith.constant 0 : index
    %787 = vector.load %arg22[%c2_151, %c0_152] : memref<16x64xf32, #tpu.memory_space<vmem>>, vector<2x32xf32>
    tpu.vector_store %arg22[%c2_151, %c0_152], %771 {strides = array<i32>} : memref<16x64xf32, #tpu.memory_space<vmem>>, vector<2x32xf32>,
    %c12_153 = arith.constant 12 : index
    %c32_154 = arith.constant 32 : index
    %788 = vector.load %arg22[%c12_153, %c32_154] : memref<16x64xf32, #tpu.memory_space<vmem>>, vector<2x32xf32>
    tpu.vector_store %arg22[%c12_153, %c32_154], %786 {strides = array<i32>} : memref<16x64xf32, #tpu.memory_space<vmem>>, vector<2x32xf32>,
    %789 = tpu.concatenate %771, %786 in 1 : vector<2x32xf32>, vector<2x32xf32> -> vector<2x64xf32>
    %cst_155 = arith.constant dense<0.000000e+00> : vector<2x256xf32>
    %790 = tpu.matmul %789, %700, %cst_155 {dimension_numbers = #tpu.dot_dimension_numbers<[1], [0], [0], [1], [0, 0, 1, 1], [], []>} : vector<2x64xf32>, vector<64x256xf32>, vector<2x256xf32> -> vector<2x256xf32>
    %791 = vector.broadcast %701 : vector<1x256xf32> to vector<2x256xf32>
    %792 = arith.addf %790, %791 : vector<2x256xf32>
    %793 = vector.extract_strided_slice %792 {offsets = [0, 0], sizes = [2, 128], strides = [1, 1]} : vector<2x256xf32> to vector<2x128xf32>
    %794 = vector.extract_strided_slice %702 {offsets = [4, 0], sizes = [2, 128], strides = [1, 1]} : vector<16x256xf32> to vector<2x128xf32>
    %795 = arith.addf %793, %794 : vector<2x128xf32>
    %796 = vector.extract_strided_slice %792 {offsets = [0, 128], sizes = [2, 128], strides = [1, 1]} : vector<2x256xf32> to vector<2x128xf32>
    %797 = vector.extract_strided_slice %702 {offsets = [10, 128], sizes = [2, 128], strides = [1, 1]} : vector<16x256xf32> to vector<2x128xf32>
    %798 = arith.addf %796, %797 : vector<2x128xf32>
    %799 = arith.negf %795 : vector<2x128xf32>
    %800 = math.exp %799 : vector<2x128xf32>
    %cst_156 = arith.constant 1.000000e+00 : f32
    %801 = vector.broadcast %cst_156 : f32 to vector<2x128xf32>
    %802 = arith.addf %801, %800 : vector<2x128xf32>
    %803 = arith.divf %801, %802 : vector<2x128xf32>
    %804 = vector.extract_strided_slice %803 {offsets = [0, 0], sizes = [2, 32], strides = [1, 1]} : vector<2x128xf32> to vector<2x32xf32>
    %805 = vector.extract_strided_slice %803 {offsets = [0, 32], sizes = [2, 32], strides = [1, 1]} : vector<2x128xf32> to vector<2x32xf32>
    %806 = vector.extract_strided_slice %803 {offsets = [0, 96], sizes = [2, 32], strides = [1, 1]} : vector<2x128xf32> to vector<2x32xf32>
    %807 = vector.extract_strided_slice %795 {offsets = [0, 64], sizes = [2, 32], strides = [1, 1]} : vector<2x128xf32> to vector<2x32xf32>
    %808 = math.tanh %807 : vector<2x32xf32>
    %809 = arith.mulf %805, %769 : vector<2x32xf32>
    %810 = arith.mulf %804, %808 : vector<2x32xf32>
    %811 = arith.addf %809, %810 : vector<2x32xf32>
    %812 = math.tanh %811 : vector<2x32xf32>
    %813 = arith.mulf %806, %812 : vector<2x32xf32>
    %814 = arith.negf %798 : vector<2x128xf32>
    %815 = math.exp %814 : vector<2x128xf32>
    %cst_157 = arith.constant 1.000000e+00 : f32
    %816 = vector.broadcast %cst_157 : f32 to vector<2x128xf32>
    %817 = arith.addf %816, %815 : vector<2x128xf32>
    %818 = arith.divf %816, %817 : vector<2x128xf32>
    %819 = vector.extract_strided_slice %818 {offsets = [0, 0], sizes = [2, 32], strides = [1, 1]} : vector<2x128xf32> to vector<2x32xf32>
    %820 = vector.extract_strided_slice %818 {offsets = [0, 32], sizes = [2, 32], strides = [1, 1]} : vector<2x128xf32> to vector<2x32xf32>
    %821 = vector.extract_strided_slice %818 {offsets = [0, 96], sizes = [2, 32], strides = [1, 1]} : vector<2x128xf32> to vector<2x32xf32>
    %822 = vector.extract_strided_slice %798 {offsets = [0, 64], sizes = [2, 32], strides = [1, 1]} : vector<2x128xf32> to vector<2x32xf32>
    %823 = math.tanh %822 : vector<2x32xf32>
    %824 = arith.mulf %820, %784 : vector<2x32xf32>
    %825 = arith.mulf %819, %823 : vector<2x32xf32>
    %826 = arith.addf %824, %825 : vector<2x32xf32>
    %827 = math.tanh %826 : vector<2x32xf32>
    %828 = arith.mulf %821, %827 : vector<2x32xf32>
    %c4_158 = arith.constant 4 : index
    %c0_159 = arith.constant 0 : index
    %829 = vector.load %arg22[%c4_158, %c0_159] : memref<16x64xf32, #tpu.memory_space<vmem>>, vector<2x32xf32>
    tpu.vector_store %arg22[%c4_158, %c0_159], %813 {strides = array<i32>} : memref<16x64xf32, #tpu.memory_space<vmem>>, vector<2x32xf32>,
    %c10_160 = arith.constant 10 : index
    %c32_161 = arith.constant 32 : index
    %830 = vector.load %arg22[%c10_160, %c32_161] : memref<16x64xf32, #tpu.memory_space<vmem>>, vector<2x32xf32>
    tpu.vector_store %arg22[%c10_160, %c32_161], %828 {strides = array<i32>} : memref<16x64xf32, #tpu.memory_space<vmem>>, vector<2x32xf32>,
    %831 = tpu.concatenate %813, %828 in 1 : vector<2x32xf32>, vector<2x32xf32> -> vector<2x64xf32>
    %cst_162 = arith.constant dense<0.000000e+00> : vector<2x256xf32>
    %832 = tpu.matmul %831, %700, %cst_162 {dimension_numbers = #tpu.dot_dimension_numbers<[1], [0], [0], [1], [0, 0, 1, 1], [], []>} : vector<2x64xf32>, vector<64x256xf32>, vector<2x256xf32> -> vector<2x256xf32>
    %833 = vector.broadcast %701 : vector<1x256xf32> to vector<2x256xf32>
    %834 = arith.addf %832, %833 : vector<2x256xf32>
    %835 = vector.extract_strided_slice %834 {offsets = [0, 0], sizes = [2, 128], strides = [1, 1]} : vector<2x256xf32> to vector<2x128xf32>
    %836 = vector.extract_strided_slice %702 {offsets = [6, 0], sizes = [2, 128], strides = [1, 1]} : vector<16x256xf32> to vector<2x128xf32>
    %837 = arith.addf %835, %836 : vector<2x128xf32>
    %838 = vector.extract_strided_slice %834 {offsets = [0, 128], sizes = [2, 128], strides = [1, 1]} : vector<2x256xf32> to vector<2x128xf32>
    %839 = vector.extract_strided_slice %702 {offsets = [8, 128], sizes = [2, 128], strides = [1, 1]} : vector<16x256xf32> to vector<2x128xf32>
    %840 = arith.addf %838, %839 : vector<2x128xf32>
    %841 = arith.negf %837 : vector<2x128xf32>
    %842 = math.exp %841 : vector<2x128xf32>
    %cst_163 = arith.constant 1.000000e+00 : f32
    %843 = vector.broadcast %cst_163 : f32 to vector<2x128xf32>
    %844 = arith.addf %843, %842 : vector<2x128xf32>
    %845 = arith.divf %843, %844 : vector<2x128xf32>
    %846 = vector.extract_strided_slice %845 {offsets = [0, 0], sizes = [2, 32], strides = [1, 1]} : vector<2x128xf32> to vector<2x32xf32>
    %847 = vector.extract_strided_slice %845 {offsets = [0, 32], sizes = [2, 32], strides = [1, 1]} : vector<2x128xf32> to vector<2x32xf32>
    %848 = vector.extract_strided_slice %845 {offsets = [0, 96], sizes = [2, 32], strides = [1, 1]} : vector<2x128xf32> to vector<2x32xf32>
    %849 = vector.extract_strided_slice %837 {offsets = [0, 64], sizes = [2, 32], strides = [1, 1]} : vector<2x128xf32> to vector<2x32xf32>
    %850 = math.tanh %849 : vector<2x32xf32>
    %851 = arith.mulf %847, %811 : vector<2x32xf32>
    %852 = arith.mulf %846, %850 : vector<2x32xf32>
    %853 = arith.addf %851, %852 : vector<2x32xf32>
    %854 = math.tanh %853 : vector<2x32xf32>
    %855 = arith.mulf %848, %854 : vector<2x32xf32>
    %856 = arith.negf %840 : vector<2x128xf32>
    %857 = math.exp %856 : vector<2x128xf32>
    %cst_164 = arith.constant 1.000000e+00 : f32
    %858 = vector.broadcast %cst_164 : f32 to vector<2x128xf32>
    %859 = arith.addf %858, %857 : vector<2x128xf32>
    %860 = arith.divf %858, %859 : vector<2x128xf32>
    %861 = vector.extract_strided_slice %860 {offsets = [0, 0], sizes = [2, 32], strides = [1, 1]} : vector<2x128xf32> to vector<2x32xf32>
    %862 = vector.extract_strided_slice %860 {offsets = [0, 32], sizes = [2, 32], strides = [1, 1]} : vector<2x128xf32> to vector<2x32xf32>
    %863 = vector.extract_strided_slice %860 {offsets = [0, 96], sizes = [2, 32], strides = [1, 1]} : vector<2x128xf32> to vector<2x32xf32>
    %864 = vector.extract_strided_slice %840 {offsets = [0, 64], sizes = [2, 32], strides = [1, 1]} : vector<2x128xf32> to vector<2x32xf32>
    %865 = math.tanh %864 : vector<2x32xf32>
    %866 = arith.mulf %862, %826 : vector<2x32xf32>
    %867 = arith.mulf %861, %865 : vector<2x32xf32>
    %868 = arith.addf %866, %867 : vector<2x32xf32>
    %869 = math.tanh %868 : vector<2x32xf32>
    %870 = arith.mulf %863, %869 : vector<2x32xf32>
    %c6_165 = arith.constant 6 : index
    %c0_166 = arith.constant 0 : index
    %871 = vector.load %arg22[%c6_165, %c0_166] : memref<16x64xf32, #tpu.memory_space<vmem>>, vector<2x32xf32>
    tpu.vector_store %arg22[%c6_165, %c0_166], %855 {strides = array<i32>} : memref<16x64xf32, #tpu.memory_space<vmem>>, vector<2x32xf32>,
    %c8_167 = arith.constant 8 : index
    %c32_168 = arith.constant 32 : index
    %872 = vector.load %arg22[%c8_167, %c32_168] : memref<16x64xf32, #tpu.memory_space<vmem>>, vector<2x32xf32>
    tpu.vector_store %arg22[%c8_167, %c32_168], %870 {strides = array<i32>} : memref<16x64xf32, #tpu.memory_space<vmem>>, vector<2x32xf32>,
    %873 = tpu.concatenate %855, %870 in 1 : vector<2x32xf32>, vector<2x32xf32> -> vector<2x64xf32>
    %cst_169 = arith.constant dense<0.000000e+00> : vector<2x256xf32>
    %874 = tpu.matmul %873, %700, %cst_169 {dimension_numbers = #tpu.dot_dimension_numbers<[1], [0], [0], [1], [0, 0, 1, 1], [], []>} : vector<2x64xf32>, vector<64x256xf32>, vector<2x256xf32> -> vector<2x256xf32>
    %875 = vector.broadcast %701 : vector<1x256xf32> to vector<2x256xf32>
    %876 = arith.addf %874, %875 : vector<2x256xf32>
    %877 = vector.extract_strided_slice %876 {offsets = [0, 0], sizes = [2, 128], strides = [1, 1]} : vector<2x256xf32> to vector<2x128xf32>
    %878 = vector.extract_strided_slice %702 {offsets = [8, 0], sizes = [2, 128], strides = [1, 1]} : vector<16x256xf32> to vector<2x128xf32>
    %879 = arith.addf %877, %878 : vector<2x128xf32>
    %880 = vector.extract_strided_slice %876 {offsets = [0, 128], sizes = [2, 128], strides = [1, 1]} : vector<2x256xf32> to vector<2x128xf32>
    %881 = vector.extract_strided_slice %702 {offsets = [6, 128], sizes = [2, 128], strides = [1, 1]} : vector<16x256xf32> to vector<2x128xf32>
    %882 = arith.addf %880, %881 : vector<2x128xf32>
    %883 = arith.negf %879 : vector<2x128xf32>
    %884 = math.exp %883 : vector<2x128xf32>
    %cst_170 = arith.constant 1.000000e+00 : f32
    %885 = vector.broadcast %cst_170 : f32 to vector<2x128xf32>
    %886 = arith.addf %885, %884 : vector<2x128xf32>
    %887 = arith.divf %885, %886 : vector<2x128xf32>
    %888 = vector.extract_strided_slice %887 {offsets = [0, 0], sizes = [2, 32], strides = [1, 1]} : vector<2x128xf32> to vector<2x32xf32>
    %889 = vector.extract_strided_slice %887 {offsets = [0, 32], sizes = [2, 32], strides = [1, 1]} : vector<2x128xf32> to vector<2x32xf32>
    %890 = vector.extract_strided_slice %887 {offsets = [0, 96], sizes = [2, 32], strides = [1, 1]} : vector<2x128xf32> to vector<2x32xf32>
    %891 = vector.extract_strided_slice %879 {offsets = [0, 64], sizes = [2, 32], strides = [1, 1]} : vector<2x128xf32> to vector<2x32xf32>
    %892 = math.tanh %891 : vector<2x32xf32>
    %893 = arith.mulf %889, %853 : vector<2x32xf32>
    %894 = arith.mulf %888, %892 : vector<2x32xf32>
    %895 = arith.addf %893, %894 : vector<2x32xf32>
    %896 = math.tanh %895 : vector<2x32xf32>
    %897 = arith.mulf %890, %896 : vector<2x32xf32>
    %898 = arith.negf %882 : vector<2x128xf32>
    %899 = math.exp %898 : vector<2x128xf32>
    %cst_171 = arith.constant 1.000000e+00 : f32
    %900 = vector.broadcast %cst_171 : f32 to vector<2x128xf32>
    %901 = arith.addf %900, %899 : vector<2x128xf32>
    %902 = arith.divf %900, %901 : vector<2x128xf32>
    %903 = vector.extract_strided_slice %902 {offsets = [0, 0], sizes = [2, 32], strides = [1, 1]} : vector<2x128xf32> to vector<2x32xf32>
    %904 = vector.extract_strided_slice %902 {offsets = [0, 32], sizes = [2, 32], strides = [1, 1]} : vector<2x128xf32> to vector<2x32xf32>
    %905 = vector.extract_strided_slice %902 {offsets = [0, 96], sizes = [2, 32], strides = [1, 1]} : vector<2x128xf32> to vector<2x32xf32>
    %906 = vector.extract_strided_slice %882 {offsets = [0, 64], sizes = [2, 32], strides = [1, 1]} : vector<2x128xf32> to vector<2x32xf32>
    %907 = math.tanh %906 : vector<2x32xf32>
    %908 = arith.mulf %904, %868 : vector<2x32xf32>
    %909 = arith.mulf %903, %907 : vector<2x32xf32>
    %910 = arith.addf %908, %909 : vector<2x32xf32>
    %911 = math.tanh %910 : vector<2x32xf32>
    %912 = arith.mulf %905, %911 : vector<2x32xf32>
    %c8_172 = arith.constant 8 : index
    %c0_173 = arith.constant 0 : index
    %913 = vector.load %arg22[%c8_172, %c0_173] : memref<16x64xf32, #tpu.memory_space<vmem>>, vector<2x32xf32>
    tpu.vector_store %arg22[%c8_172, %c0_173], %897 {strides = array<i32>} : memref<16x64xf32, #tpu.memory_space<vmem>>, vector<2x32xf32>,
    %c6_174 = arith.constant 6 : index
    %c32_175 = arith.constant 32 : index
    %914 = vector.load %arg22[%c6_174, %c32_175] : memref<16x64xf32, #tpu.memory_space<vmem>>, vector<2x32xf32>
    tpu.vector_store %arg22[%c6_174, %c32_175], %912 {strides = array<i32>} : memref<16x64xf32, #tpu.memory_space<vmem>>, vector<2x32xf32>,
    %915 = tpu.concatenate %897, %912 in 1 : vector<2x32xf32>, vector<2x32xf32> -> vector<2x64xf32>
    %cst_176 = arith.constant dense<0.000000e+00> : vector<2x256xf32>
    %916 = tpu.matmul %915, %700, %cst_176 {dimension_numbers = #tpu.dot_dimension_numbers<[1], [0], [0], [1], [0, 0, 1, 1], [], []>} : vector<2x64xf32>, vector<64x256xf32>, vector<2x256xf32> -> vector<2x256xf32>
    %917 = vector.broadcast %701 : vector<1x256xf32> to vector<2x256xf32>
    %918 = arith.addf %916, %917 : vector<2x256xf32>
    %919 = vector.extract_strided_slice %918 {offsets = [0, 0], sizes = [2, 128], strides = [1, 1]} : vector<2x256xf32> to vector<2x128xf32>
    %920 = vector.extract_strided_slice %702 {offsets = [10, 0], sizes = [2, 128], strides = [1, 1]} : vector<16x256xf32> to vector<2x128xf32>
    %921 = arith.addf %919, %920 : vector<2x128xf32>
    %922 = vector.extract_strided_slice %918 {offsets = [0, 128], sizes = [2, 128], strides = [1, 1]} : vector<2x256xf32> to vector<2x128xf32>
    %923 = vector.extract_strided_slice %702 {offsets = [4, 128], sizes = [2, 128], strides = [1, 1]} : vector<16x256xf32> to vector<2x128xf32>
    %924 = arith.addf %922, %923 : vector<2x128xf32>
    %925 = arith.negf %921 : vector<2x128xf32>
    %926 = math.exp %925 : vector<2x128xf32>
    %cst_177 = arith.constant 1.000000e+00 : f32
    %927 = vector.broadcast %cst_177 : f32 to vector<2x128xf32>
    %928 = arith.addf %927, %926 : vector<2x128xf32>
    %929 = arith.divf %927, %928 : vector<2x128xf32>
    %930 = vector.extract_strided_slice %929 {offsets = [0, 0], sizes = [2, 32], strides = [1, 1]} : vector<2x128xf32> to vector<2x32xf32>
    %931 = vector.extract_strided_slice %929 {offsets = [0, 32], sizes = [2, 32], strides = [1, 1]} : vector<2x128xf32> to vector<2x32xf32>
    %932 = vector.extract_strided_slice %929 {offsets = [0, 96], sizes = [2, 32], strides = [1, 1]} : vector<2x128xf32> to vector<2x32xf32>
    %933 = vector.extract_strided_slice %921 {offsets = [0, 64], sizes = [2, 32], strides = [1, 1]} : vector<2x128xf32> to vector<2x32xf32>
    %934 = math.tanh %933 : vector<2x32xf32>
    %935 = arith.mulf %931, %895 : vector<2x32xf32>
    %936 = arith.mulf %930, %934 : vector<2x32xf32>
    %937 = arith.addf %935, %936 : vector<2x32xf32>
    %938 = math.tanh %937 : vector<2x32xf32>
    %939 = arith.mulf %932, %938 : vector<2x32xf32>
    %940 = arith.negf %924 : vector<2x128xf32>
    %941 = math.exp %940 : vector<2x128xf32>
    %cst_178 = arith.constant 1.000000e+00 : f32
    %942 = vector.broadcast %cst_178 : f32 to vector<2x128xf32>
    %943 = arith.addf %942, %941 : vector<2x128xf32>
    %944 = arith.divf %942, %943 : vector<2x128xf32>
    %945 = vector.extract_strided_slice %944 {offsets = [0, 0], sizes = [2, 32], strides = [1, 1]} : vector<2x128xf32> to vector<2x32xf32>
    %946 = vector.extract_strided_slice %944 {offsets = [0, 32], sizes = [2, 32], strides = [1, 1]} : vector<2x128xf32> to vector<2x32xf32>
    %947 = vector.extract_strided_slice %944 {offsets = [0, 96], sizes = [2, 32], strides = [1, 1]} : vector<2x128xf32> to vector<2x32xf32>
    %948 = vector.extract_strided_slice %924 {offsets = [0, 64], sizes = [2, 32], strides = [1, 1]} : vector<2x128xf32> to vector<2x32xf32>
    %949 = math.tanh %948 : vector<2x32xf32>
    %950 = arith.mulf %946, %910 : vector<2x32xf32>
    %951 = arith.mulf %945, %949 : vector<2x32xf32>
    %952 = arith.addf %950, %951 : vector<2x32xf32>
    %953 = math.tanh %952 : vector<2x32xf32>
    %954 = arith.mulf %947, %953 : vector<2x32xf32>
    %c10_179 = arith.constant 10 : index
    %c0_180 = arith.constant 0 : index
    %955 = vector.load %arg22[%c10_179, %c0_180] : memref<16x64xf32, #tpu.memory_space<vmem>>, vector<2x32xf32>
    tpu.vector_store %arg22[%c10_179, %c0_180], %939 {strides = array<i32>} : memref<16x64xf32, #tpu.memory_space<vmem>>, vector<2x32xf32>,
    %c4_181 = arith.constant 4 : index
    %c32_182 = arith.constant 32 : index
    %956 = vector.load %arg22[%c4_181, %c32_182] : memref<16x64xf32, #tpu.memory_space<vmem>>, vector<2x32xf32>
    tpu.vector_store %arg22[%c4_181, %c32_182], %954 {strides = array<i32>} : memref<16x64xf32, #tpu.memory_space<vmem>>, vector<2x32xf32>,
    %957 = tpu.concatenate %939, %954 in 1 : vector<2x32xf32>, vector<2x32xf32> -> vector<2x64xf32>
    %cst_183 = arith.constant dense<0.000000e+00> : vector<2x256xf32>
    %958 = tpu.matmul %957, %700, %cst_183 {dimension_numbers = #tpu.dot_dimension_numbers<[1], [0], [0], [1], [0, 0, 1, 1], [], []>} : vector<2x64xf32>, vector<64x256xf32>, vector<2x256xf32> -> vector<2x256xf32>
    %959 = vector.broadcast %701 : vector<1x256xf32> to vector<2x256xf32>
    %960 = arith.addf %958, %959 : vector<2x256xf32>
    %961 = vector.extract_strided_slice %960 {offsets = [0, 0], sizes = [2, 128], strides = [1, 1]} : vector<2x256xf32> to vector<2x128xf32>
    %962 = vector.extract_strided_slice %702 {offsets = [12, 0], sizes = [2, 128], strides = [1, 1]} : vector<16x256xf32> to vector<2x128xf32>
    %963 = arith.addf %961, %962 : vector<2x128xf32>
    %964 = vector.extract_strided_slice %960 {offsets = [0, 128], sizes = [2, 128], strides = [1, 1]} : vector<2x256xf32> to vector<2x128xf32>
    %965 = vector.extract_strided_slice %702 {offsets = [2, 128], sizes = [2, 128], strides = [1, 1]} : vector<16x256xf32> to vector<2x128xf32>
    %966 = arith.addf %964, %965 : vector<2x128xf32>
    %967 = arith.negf %963 : vector<2x128xf32>
    %968 = math.exp %967 : vector<2x128xf32>
    %cst_184 = arith.constant 1.000000e+00 : f32
    %969 = vector.broadcast %cst_184 : f32 to vector<2x128xf32>
    %970 = arith.addf %969, %968 : vector<2x128xf32>
    %971 = arith.divf %969, %970 : vector<2x128xf32>
    %972 = vector.extract_strided_slice %971 {offsets = [0, 0], sizes = [2, 32], strides = [1, 1]} : vector<2x128xf32> to vector<2x32xf32>
    %973 = vector.extract_strided_slice %971 {offsets = [0, 32], sizes = [2, 32], strides = [1, 1]} : vector<2x128xf32> to vector<2x32xf32>
    %974 = vector.extract_strided_slice %971 {offsets = [0, 96], sizes = [2, 32], strides = [1, 1]} : vector<2x128xf32> to vector<2x32xf32>
    %975 = vector.extract_strided_slice %963 {offsets = [0, 64], sizes = [2, 32], strides = [1, 1]} : vector<2x128xf32> to vector<2x32xf32>
    %976 = math.tanh %975 : vector<2x32xf32>
    %977 = arith.mulf %973, %937 : vector<2x32xf32>
    %978 = arith.mulf %972, %976 : vector<2x32xf32>
    %979 = arith.addf %977, %978 : vector<2x32xf32>
    %980 = math.tanh %979 : vector<2x32xf32>
    %981 = arith.mulf %974, %980 : vector<2x32xf32>
    %982 = arith.negf %966 : vector<2x128xf32>
    %983 = math.exp %982 : vector<2x128xf32>
    %cst_185 = arith.constant 1.000000e+00 : f32
    %984 = vector.broadcast %cst_185 : f32 to vector<2x128xf32>
    %985 = arith.addf %984, %983 : vector<2x128xf32>
    %986 = arith.divf %984, %985 : vector<2x128xf32>
    %987 = vector.extract_strided_slice %986 {offsets = [0, 0], sizes = [2, 32], strides = [1, 1]} : vector<2x128xf32> to vector<2x32xf32>
    %988 = vector.extract_strided_slice %986 {offsets = [0, 32], sizes = [2, 32], strides = [1, 1]} : vector<2x128xf32> to vector<2x32xf32>
    %989 = vector.extract_strided_slice %986 {offsets = [0, 96], sizes = [2, 32], strides = [1, 1]} : vector<2x128xf32> to vector<2x32xf32>
    %990 = vector.extract_strided_slice %966 {offsets = [0, 64], sizes = [2, 32], strides = [1, 1]} : vector<2x128xf32> to vector<2x32xf32>
    %991 = math.tanh %990 : vector<2x32xf32>
    %992 = arith.mulf %988, %952 : vector<2x32xf32>
    %993 = arith.mulf %987, %991 : vector<2x32xf32>
    %994 = arith.addf %992, %993 : vector<2x32xf32>
    %995 = math.tanh %994 : vector<2x32xf32>
    %996 = arith.mulf %989, %995 : vector<2x32xf32>
    %c12_186 = arith.constant 12 : index
    %c0_187 = arith.constant 0 : index
    %997 = vector.load %arg22[%c12_186, %c0_187] : memref<16x64xf32, #tpu.memory_space<vmem>>, vector<2x32xf32>
    tpu.vector_store %arg22[%c12_186, %c0_187], %981 {strides = array<i32>} : memref<16x64xf32, #tpu.memory_space<vmem>>, vector<2x32xf32>,
    %c2_188 = arith.constant 2 : index
    %c32_189 = arith.constant 32 : index
    %998 = vector.load %arg22[%c2_188, %c32_189] : memref<16x64xf32, #tpu.memory_space<vmem>>, vector<2x32xf32>
    tpu.vector_store %arg22[%c2_188, %c32_189], %996 {strides = array<i32>} : memref<16x64xf32, #tpu.memory_space<vmem>>, vector<2x32xf32>,
    %999 = tpu.concatenate %981, %996 in 1 : vector<2x32xf32>, vector<2x32xf32> -> vector<2x64xf32>
    %cst_190 = arith.constant dense<0.000000e+00> : vector<2x256xf32>
    %1000 = tpu.matmul %999, %700, %cst_190 {dimension_numbers = #tpu.dot_dimension_numbers<[1], [0], [0], [1], [0, 0, 1, 1], [], []>} : vector<2x64xf32>, vector<64x256xf32>, vector<2x256xf32> -> vector<2x256xf32>
    %1001 = vector.broadcast %701 : vector<1x256xf32> to vector<2x256xf32>
    %1002 = arith.addf %1000, %1001 : vector<2x256xf32>
    %1003 = vector.extract_strided_slice %1002 {offsets = [0, 0], sizes = [2, 128], strides = [1, 1]} : vector<2x256xf32> to vector<2x128xf32>
    %1004 = vector.extract_strided_slice %702 {offsets = [14, 0], sizes = [2, 128], strides = [1, 1]} : vector<16x256xf32> to vector<2x128xf32>
    %1005 = arith.addf %1003, %1004 : vector<2x128xf32>
    %1006 = vector.extract_strided_slice %1002 {offsets = [0, 128], sizes = [2, 128], strides = [1, 1]} : vector<2x256xf32> to vector<2x128xf32>
    %1007 = vector.extract_strided_slice %702 {offsets = [0, 128], sizes = [2, 128], strides = [1, 1]} : vector<16x256xf32> to vector<2x128xf32>
    %1008 = arith.addf %1006, %1007 : vector<2x128xf32>
    %1009 = arith.negf %1005 : vector<2x128xf32>
    %1010 = math.exp %1009 : vector<2x128xf32>
    %cst_191 = arith.constant 1.000000e+00 : f32
    %1011 = vector.broadcast %cst_191 : f32 to vector<2x128xf32>
    %1012 = arith.addf %1011, %1010 : vector<2x128xf32>
    %1013 = arith.divf %1011, %1012 : vector<2x128xf32>
    %1014 = vector.extract_strided_slice %1013 {offsets = [0, 0], sizes = [2, 32], strides = [1, 1]} : vector<2x128xf32> to vector<2x32xf32>
    %1015 = vector.extract_strided_slice %1013 {offsets = [0, 32], sizes = [2, 32], strides = [1, 1]} : vector<2x128xf32> to vector<2x32xf32>
    %1016 = vector.extract_strided_slice %1013 {offsets = [0, 96], sizes = [2, 32], strides = [1, 1]} : vector<2x128xf32> to vector<2x32xf32>
    %1017 = vector.extract_strided_slice %1005 {offsets = [0, 64], sizes = [2, 32], strides = [1, 1]} : vector<2x128xf32> to vector<2x32xf32>
    %1018 = math.tanh %1017 : vector<2x32xf32>
    %1019 = arith.mulf %1015, %979 : vector<2x32xf32>
    %1020 = arith.mulf %1014, %1018 : vector<2x32xf32>
    %1021 = arith.addf %1019, %1020 : vector<2x32xf32>
    %1022 = math.tanh %1021 : vector<2x32xf32>
    %1023 = arith.mulf %1016, %1022 : vector<2x32xf32>
    %1024 = arith.negf %1008 : vector<2x128xf32>
    %1025 = math.exp %1024 : vector<2x128xf32>
    %cst_192 = arith.constant 1.000000e+00 : f32
    %1026 = vector.broadcast %cst_192 : f32 to vector<2x128xf32>
    %1027 = arith.addf %1026, %1025 : vector<2x128xf32>
    %1028 = arith.divf %1026, %1027 : vector<2x128xf32>
    %1029 = vector.extract_strided_slice %1028 {offsets = [0, 0], sizes = [2, 32], strides = [1, 1]} : vector<2x128xf32> to vector<2x32xf32>
    %1030 = vector.extract_strided_slice %1028 {offsets = [0, 32], sizes = [2, 32], strides = [1, 1]} : vector<2x128xf32> to vector<2x32xf32>
    %1031 = vector.extract_strided_slice %1028 {offsets = [0, 96], sizes = [2, 32], strides = [1, 1]} : vector<2x128xf32> to vector<2x32xf32>
    %1032 = vector.extract_strided_slice %1008 {offsets = [0, 64], sizes = [2, 32], strides = [1, 1]} : vector<2x128xf32> to vector<2x32xf32>
    %1033 = math.tanh %1032 : vector<2x32xf32>
    %1034 = arith.mulf %1030, %994 : vector<2x32xf32>
    %1035 = arith.mulf %1029, %1033 : vector<2x32xf32>
    %1036 = arith.addf %1034, %1035 : vector<2x32xf32>
    %1037 = math.tanh %1036 : vector<2x32xf32>
    %1038 = arith.mulf %1031, %1037 : vector<2x32xf32>
    %c14_193 = arith.constant 14 : index
    %c0_194 = arith.constant 0 : index
    %1039 = vector.load %arg22[%c14_193, %c0_194] : memref<16x64xf32, #tpu.memory_space<vmem>>, vector<2x32xf32>
    tpu.vector_store %arg22[%c14_193, %c0_194], %1023 {strides = array<i32>} : memref<16x64xf32, #tpu.memory_space<vmem>>, vector<2x32xf32>,
    %c0_195 = arith.constant 0 : index
    %c32_196 = arith.constant 32 : index
    %1040 = vector.load %arg22[%c0_195, %c32_196] : memref<16x64xf32, #tpu.memory_space<vmem>>, vector<2x32xf32>
    tpu.vector_store %arg22[%c0_195, %c32_196], %1038 {strides = array<i32>} : memref<16x64xf32, #tpu.memory_space<vmem>>, vector<2x32xf32>,
    %c0_197 = arith.constant 0 : index
    %c0_198 = arith.constant 0 : index
    %1041 = vector.load %arg22[%c0_197, %c0_198] : memref<16x64xf32, #tpu.memory_space<vmem>>, vector<16x64xf32>
    %c0_199 = arith.constant 0 : index
    %c0_200 = arith.constant 0 : index
    %1042 = vector.load %arg12[%c0_199, %c0_200] : memref<64x256xf32, #tpu.memory_space<vmem>>, vector<64x256xf32>
    %c0_201 = arith.constant 0 : index
    %c0_202 = arith.constant 0 : index
    %1043 = vector.load %arg13[%c0_201, %c0_202] : memref<64x256xf32, #tpu.memory_space<vmem>>, vector<64x256xf32>
    %c0_203 = arith.constant 0 : index
    %c0_204 = arith.constant 0 : index
    %1044 = vector.load %arg14[%c0_203, %c0_204] : memref<1x256xf32, #tpu.memory_space<vmem>>, vector<1x256xf32>
    %cst_205 = arith.constant dense<0.000000e+00> : vector<16x256xf32>
    %1045 = tpu.matmul %1041, %1042, %cst_205 {dimension_numbers = #tpu.dot_dimension_numbers<[1], [0], [0], [1], [0, 0, 1, 1], [], []>} : vector<16x64xf32>, vector<64x256xf32>, vector<16x256xf32> -> vector<16x256xf32>
    %cst_206 = arith.constant 0.000000e+00 : f32
    %1046 = vector.broadcast %cst_206 : f32 to vector<2x64xf32>
    %cst_207 = arith.constant 0.000000e+00 : f32
    %1047 = vector.broadcast %cst_207 : f32 to vector<2x32xf32>
    %cst_208 = arith.constant 0.000000e+00 : f32
    %1048 = vector.broadcast %cst_208 : f32 to vector<2x32xf32>
    %cst_209 = arith.constant dense<0.000000e+00> : vector<2x256xf32>
    %1049 = tpu.matmul %1046, %1043, %cst_209 {dimension_numbers = #tpu.dot_dimension_numbers<[1], [0], [0], [1], [0, 0, 1, 1], [], []>} : vector<2x64xf32>, vector<64x256xf32>, vector<2x256xf32> -> vector<2x256xf32>
    %1050 = vector.broadcast %1044 : vector<1x256xf32> to vector<2x256xf32>
    %1051 = arith.addf %1049, %1050 : vector<2x256xf32>
    %1052 = vector.extract_strided_slice %1051 {offsets = [0, 0], sizes = [2, 128], strides = [1, 1]} : vector<2x256xf32> to vector<2x128xf32>
    %1053 = vector.extract_strided_slice %1045 {offsets = [0, 0], sizes = [2, 128], strides = [1, 1]} : vector<16x256xf32> to vector<2x128xf32>
    %1054 = arith.addf %1052, %1053 : vector<2x128xf32>
    %1055 = vector.extract_strided_slice %1051 {offsets = [0, 128], sizes = [2, 128], strides = [1, 1]} : vector<2x256xf32> to vector<2x128xf32>
    %1056 = vector.extract_strided_slice %1045 {offsets = [14, 128], sizes = [2, 128], strides = [1, 1]} : vector<16x256xf32> to vector<2x128xf32>
    %1057 = arith.addf %1055, %1056 : vector<2x128xf32>
    %1058 = arith.negf %1054 : vector<2x128xf32>
    %1059 = math.exp %1058 : vector<2x128xf32>
    %cst_210 = arith.constant 1.000000e+00 : f32
    %1060 = vector.broadcast %cst_210 : f32 to vector<2x128xf32>
    %1061 = arith.addf %1060, %1059 : vector<2x128xf32>
    %1062 = arith.divf %1060, %1061 : vector<2x128xf32>
    %1063 = vector.extract_strided_slice %1062 {offsets = [0, 0], sizes = [2, 32], strides = [1, 1]} : vector<2x128xf32> to vector<2x32xf32>
    %1064 = vector.extract_strided_slice %1062 {offsets = [0, 32], sizes = [2, 32], strides = [1, 1]} : vector<2x128xf32> to vector<2x32xf32>
    %1065 = vector.extract_strided_slice %1062 {offsets = [0, 96], sizes = [2, 32], strides = [1, 1]} : vector<2x128xf32> to vector<2x32xf32>
    %1066 = vector.extract_strided_slice %1054 {offsets = [0, 64], sizes = [2, 32], strides = [1, 1]} : vector<2x128xf32> to vector<2x32xf32>
    %1067 = math.tanh %1066 : vector<2x32xf32>
    %1068 = arith.mulf %1064, %1047 : vector<2x32xf32>
    %1069 = arith.mulf %1063, %1067 : vector<2x32xf32>
    %1070 = arith.addf %1068, %1069 : vector<2x32xf32>
    %1071 = math.tanh %1070 : vector<2x32xf32>
    %1072 = arith.mulf %1065, %1071 : vector<2x32xf32>
    %1073 = arith.negf %1057 : vector<2x128xf32>
    %1074 = math.exp %1073 : vector<2x128xf32>
    %cst_211 = arith.constant 1.000000e+00 : f32
    %1075 = vector.broadcast %cst_211 : f32 to vector<2x128xf32>
    %1076 = arith.addf %1075, %1074 : vector<2x128xf32>
    %1077 = arith.divf %1075, %1076 : vector<2x128xf32>
    %1078 = vector.extract_strided_slice %1077 {offsets = [0, 0], sizes = [2, 32], strides = [1, 1]} : vector<2x128xf32> to vector<2x32xf32>
    %1079 = vector.extract_strided_slice %1077 {offsets = [0, 32], sizes = [2, 32], strides = [1, 1]} : vector<2x128xf32> to vector<2x32xf32>
    %1080 = vector.extract_strided_slice %1077 {offsets = [0, 96], sizes = [2, 32], strides = [1, 1]} : vector<2x128xf32> to vector<2x32xf32>
    %1081 = vector.extract_strided_slice %1057 {offsets = [0, 64], sizes = [2, 32], strides = [1, 1]} : vector<2x128xf32> to vector<2x32xf32>
    %1082 = math.tanh %1081 : vector<2x32xf32>
    %1083 = arith.mulf %1079, %1048 : vector<2x32xf32>
    %1084 = arith.mulf %1078, %1082 : vector<2x32xf32>
    %1085 = arith.addf %1083, %1084 : vector<2x32xf32>
    %1086 = math.tanh %1085 : vector<2x32xf32>
    %1087 = arith.mulf %1080, %1086 : vector<2x32xf32>
    %c0_212 = arith.constant 0 : index
    %c0_213 = arith.constant 0 : index
    %1088 = vector.load %arg22[%c0_212, %c0_213] : memref<16x64xf32, #tpu.memory_space<vmem>>, vector<2x32xf32>
    tpu.vector_store %arg22[%c0_212, %c0_213], %1072 {strides = array<i32>} : memref<16x64xf32, #tpu.memory_space<vmem>>, vector<2x32xf32>,
    %c14_214 = arith.constant 14 : index
    %c32_215 = arith.constant 32 : index
    %1089 = vector.load %arg22[%c14_214, %c32_215] : memref<16x64xf32, #tpu.memory_space<vmem>>, vector<2x32xf32>
    tpu.vector_store %arg22[%c14_214, %c32_215], %1087 {strides = array<i32>} : memref<16x64xf32, #tpu.memory_space<vmem>>, vector<2x32xf32>,
    %1090 = tpu.concatenate %1072, %1087 in 1 : vector<2x32xf32>, vector<2x32xf32> -> vector<2x64xf32>
    %cst_216 = arith.constant dense<0.000000e+00> : vector<2x256xf32>
    %1091 = tpu.matmul %1090, %1043, %cst_216 {dimension_numbers = #tpu.dot_dimension_numbers<[1], [0], [0], [1], [0, 0, 1, 1], [], []>} : vector<2x64xf32>, vector<64x256xf32>, vector<2x256xf32> -> vector<2x256xf32>
    %1092 = vector.broadcast %1044 : vector<1x256xf32> to vector<2x256xf32>
    %1093 = arith.addf %1091, %1092 : vector<2x256xf32>
    %1094 = vector.extract_strided_slice %1093 {offsets = [0, 0], sizes = [2, 128], strides = [1, 1]} : vector<2x256xf32> to vector<2x128xf32>
    %1095 = vector.extract_strided_slice %1045 {offsets = [2, 0], sizes = [2, 128], strides = [1, 1]} : vector<16x256xf32> to vector<2x128xf32>
    %1096 = arith.addf %1094, %1095 : vector<2x128xf32>
    %1097 = vector.extract_strided_slice %1093 {offsets = [0, 128], sizes = [2, 128], strides = [1, 1]} : vector<2x256xf32> to vector<2x128xf32>
    %1098 = vector.extract_strided_slice %1045 {offsets = [12, 128], sizes = [2, 128], strides = [1, 1]} : vector<16x256xf32> to vector<2x128xf32>
    %1099 = arith.addf %1097, %1098 : vector<2x128xf32>
    %1100 = arith.negf %1096 : vector<2x128xf32>
    %1101 = math.exp %1100 : vector<2x128xf32>
    %cst_217 = arith.constant 1.000000e+00 : f32
    %1102 = vector.broadcast %cst_217 : f32 to vector<2x128xf32>
    %1103 = arith.addf %1102, %1101 : vector<2x128xf32>
    %1104 = arith.divf %1102, %1103 : vector<2x128xf32>
    %1105 = vector.extract_strided_slice %1104 {offsets = [0, 0], sizes = [2, 32], strides = [1, 1]} : vector<2x128xf32> to vector<2x32xf32>
    %1106 = vector.extract_strided_slice %1104 {offsets = [0, 32], sizes = [2, 32], strides = [1, 1]} : vector<2x128xf32> to vector<2x32xf32>
    %1107 = vector.extract_strided_slice %1104 {offsets = [0, 96], sizes = [2, 32], strides = [1, 1]} : vector<2x128xf32> to vector<2x32xf32>
    %1108 = vector.extract_strided_slice %1096 {offsets = [0, 64], sizes = [2, 32], strides = [1, 1]} : vector<2x128xf32> to vector<2x32xf32>
    %1109 = math.tanh %1108 : vector<2x32xf32>
    %1110 = arith.mulf %1106, %1070 : vector<2x32xf32>
    %1111 = arith.mulf %1105, %1109 : vector<2x32xf32>
    %1112 = arith.addf %1110, %1111 : vector<2x32xf32>
    %1113 = math.tanh %1112 : vector<2x32xf32>
    %1114 = arith.mulf %1107, %1113 : vector<2x32xf32>
    %1115 = arith.negf %1099 : vector<2x128xf32>
    %1116 = math.exp %1115 : vector<2x128xf32>
    %cst_218 = arith.constant 1.000000e+00 : f32
    %1117 = vector.broadcast %cst_218 : f32 to vector<2x128xf32>
    %1118 = arith.addf %1117, %1116 : vector<2x128xf32>
    %1119 = arith.divf %1117, %1118 : vector<2x128xf32>
    %1120 = vector.extract_strided_slice %1119 {offsets = [0, 0], sizes = [2, 32], strides = [1, 1]} : vector<2x128xf32> to vector<2x32xf32>
    %1121 = vector.extract_strided_slice %1119 {offsets = [0, 32], sizes = [2, 32], strides = [1, 1]} : vector<2x128xf32> to vector<2x32xf32>
    %1122 = vector.extract_strided_slice %1119 {offsets = [0, 96], sizes = [2, 32], strides = [1, 1]} : vector<2x128xf32> to vector<2x32xf32>
    %1123 = vector.extract_strided_slice %1099 {offsets = [0, 64], sizes = [2, 32], strides = [1, 1]} : vector<2x128xf32> to vector<2x32xf32>
    %1124 = math.tanh %1123 : vector<2x32xf32>
    %1125 = arith.mulf %1121, %1085 : vector<2x32xf32>
    %1126 = arith.mulf %1120, %1124 : vector<2x32xf32>
    %1127 = arith.addf %1125, %1126 : vector<2x32xf32>
    %1128 = math.tanh %1127 : vector<2x32xf32>
    %1129 = arith.mulf %1122, %1128 : vector<2x32xf32>
    %c2_219 = arith.constant 2 : index
    %c0_220 = arith.constant 0 : index
    %1130 = vector.load %arg22[%c2_219, %c0_220] : memref<16x64xf32, #tpu.memory_space<vmem>>, vector<2x32xf32>
    tpu.vector_store %arg22[%c2_219, %c0_220], %1114 {strides = array<i32>} : memref<16x64xf32, #tpu.memory_space<vmem>>, vector<2x32xf32>,
    %c12_221 = arith.constant 12 : index
    %c32_222 = arith.constant 32 : index
    %1131 = vector.load %arg22[%c12_221, %c32_222] : memref<16x64xf32, #tpu.memory_space<vmem>>, vector<2x32xf32>
    tpu.vector_store %arg22[%c12_221, %c32_222], %1129 {strides = array<i32>} : memref<16x64xf32, #tpu.memory_space<vmem>>, vector<2x32xf32>,
    %1132 = tpu.concatenate %1114, %1129 in 1 : vector<2x32xf32>, vector<2x32xf32> -> vector<2x64xf32>
    %cst_223 = arith.constant dense<0.000000e+00> : vector<2x256xf32>
    %1133 = tpu.matmul %1132, %1043, %cst_223 {dimension_numbers = #tpu.dot_dimension_numbers<[1], [0], [0], [1], [0, 0, 1, 1], [], []>} : vector<2x64xf32>, vector<64x256xf32>, vector<2x256xf32> -> vector<2x256xf32>
    %1134 = vector.broadcast %1044 : vector<1x256xf32> to vector<2x256xf32>
    %1135 = arith.addf %1133, %1134 : vector<2x256xf32>
    %1136 = vector.extract_strided_slice %1135 {offsets = [0, 0], sizes = [2, 128], strides = [1, 1]} : vector<2x256xf32> to vector<2x128xf32>
    %1137 = vector.extract_strided_slice %1045 {offsets = [4, 0], sizes = [2, 128], strides = [1, 1]} : vector<16x256xf32> to vector<2x128xf32>
    %1138 = arith.addf %1136, %1137 : vector<2x128xf32>
    %1139 = vector.extract_strided_slice %1135 {offsets = [0, 128], sizes = [2, 128], strides = [1, 1]} : vector<2x256xf32> to vector<2x128xf32>
    %1140 = vector.extract_strided_slice %1045 {offsets = [10, 128], sizes = [2, 128], strides = [1, 1]} : vector<16x256xf32> to vector<2x128xf32>
    %1141 = arith.addf %1139, %1140 : vector<2x128xf32>
    %1142 = arith.negf %1138 : vector<2x128xf32>
    %1143 = math.exp %1142 : vector<2x128xf32>
    %cst_224 = arith.constant 1.000000e+00 : f32
    %1144 = vector.broadcast %cst_224 : f32 to vector<2x128xf32>
    %1145 = arith.addf %1144, %1143 : vector<2x128xf32>
    %1146 = arith.divf %1144, %1145 : vector<2x128xf32>
    %1147 = vector.extract_strided_slice %1146 {offsets = [0, 0], sizes = [2, 32], strides = [1, 1]} : vector<2x128xf32> to vector<2x32xf32>
    %1148 = vector.extract_strided_slice %1146 {offsets = [0, 32], sizes = [2, 32], strides = [1, 1]} : vector<2x128xf32> to vector<2x32xf32>
    %1149 = vector.extract_strided_slice %1146 {offsets = [0, 96], sizes = [2, 32], strides = [1, 1]} : vector<2x128xf32> to vector<2x32xf32>
    %1150 = vector.extract_strided_slice %1138 {offsets = [0, 64], sizes = [2, 32], strides = [1, 1]} : vector<2x128xf32> to vector<2x32xf32>
    %1151 = math.tanh %1150 : vector<2x32xf32>
    %1152 = arith.mulf %1148, %1112 : vector<2x32xf32>
    %1153 = arith.mulf %1147, %1151 : vector<2x32xf32>
    %1154 = arith.addf %1152, %1153 : vector<2x32xf32>
    %1155 = math.tanh %1154 : vector<2x32xf32>
    %1156 = arith.mulf %1149, %1155 : vector<2x32xf32>
    %1157 = arith.negf %1141 : vector<2x128xf32>
    %1158 = math.exp %1157 : vector<2x128xf32>
    %cst_225 = arith.constant 1.000000e+00 : f32
    %1159 = vector.broadcast %cst_225 : f32 to vector<2x128xf32>
    %1160 = arith.addf %1159, %1158 : vector<2x128xf32>
    %1161 = arith.divf %1159, %1160 : vector<2x128xf32>
    %1162 = vector.extract_strided_slice %1161 {offsets = [0, 0], sizes = [2, 32], strides = [1, 1]} : vector<2x128xf32> to vector<2x32xf32>
    %1163 = vector.extract_strided_slice %1161 {offsets = [0, 32], sizes = [2, 32], strides = [1, 1]} : vector<2x128xf32> to vector<2x32xf32>
    %1164 = vector.extract_strided_slice %1161 {offsets = [0, 96], sizes = [2, 32], strides = [1, 1]} : vector<2x128xf32> to vector<2x32xf32>
    %1165 = vector.extract_strided_slice %1141 {offsets = [0, 64], sizes = [2, 32], strides = [1, 1]} : vector<2x128xf32> to vector<2x32xf32>
    %1166 = math.tanh %1165 : vector<2x32xf32>
    %1167 = arith.mulf %1163, %1127 : vector<2x32xf32>
    %1168 = arith.mulf %1162, %1166 : vector<2x32xf32>
    %1169 = arith.addf %1167, %1168 : vector<2x32xf32>
    %1170 = math.tanh %1169 : vector<2x32xf32>
    %1171 = arith.mulf %1164, %1170 : vector<2x32xf32>
    %c4_226 = arith.constant 4 : index
    %c0_227 = arith.constant 0 : index
    %1172 = vector.load %arg22[%c4_226, %c0_227] : memref<16x64xf32, #tpu.memory_space<vmem>>, vector<2x32xf32>
    tpu.vector_store %arg22[%c4_226, %c0_227], %1156 {strides = array<i32>} : memref<16x64xf32, #tpu.memory_space<vmem>>, vector<2x32xf32>,
    %c10_228 = arith.constant 10 : index
    %c32_229 = arith.constant 32 : index
    %1173 = vector.load %arg22[%c10_228, %c32_229] : memref<16x64xf32, #tpu.memory_space<vmem>>, vector<2x32xf32>
    tpu.vector_store %arg22[%c10_228, %c32_229], %1171 {strides = array<i32>} : memref<16x64xf32, #tpu.memory_space<vmem>>, vector<2x32xf32>,
    %1174 = tpu.concatenate %1156, %1171 in 1 : vector<2x32xf32>, vector<2x32xf32> -> vector<2x64xf32>
    %cst_230 = arith.constant dense<0.000000e+00> : vector<2x256xf32>
    %1175 = tpu.matmul %1174, %1043, %cst_230 {dimension_numbers = #tpu.dot_dimension_numbers<[1], [0], [0], [1], [0, 0, 1, 1], [], []>} : vector<2x64xf32>, vector<64x256xf32>, vector<2x256xf32> -> vector<2x256xf32>
    %1176 = vector.broadcast %1044 : vector<1x256xf32> to vector<2x256xf32>
    %1177 = arith.addf %1175, %1176 : vector<2x256xf32>
    %1178 = vector.extract_strided_slice %1177 {offsets = [0, 0], sizes = [2, 128], strides = [1, 1]} : vector<2x256xf32> to vector<2x128xf32>
    %1179 = vector.extract_strided_slice %1045 {offsets = [6, 0], sizes = [2, 128], strides = [1, 1]} : vector<16x256xf32> to vector<2x128xf32>
    %1180 = arith.addf %1178, %1179 : vector<2x128xf32>
    %1181 = vector.extract_strided_slice %1177 {offsets = [0, 128], sizes = [2, 128], strides = [1, 1]} : vector<2x256xf32> to vector<2x128xf32>
    %1182 = vector.extract_strided_slice %1045 {offsets = [8, 128], sizes = [2, 128], strides = [1, 1]} : vector<16x256xf32> to vector<2x128xf32>
    %1183 = arith.addf %1181, %1182 : vector<2x128xf32>
    %1184 = arith.negf %1180 : vector<2x128xf32>
    %1185 = math.exp %1184 : vector<2x128xf32>
    %cst_231 = arith.constant 1.000000e+00 : f32
    %1186 = vector.broadcast %cst_231 : f32 to vector<2x128xf32>
    %1187 = arith.addf %1186, %1185 : vector<2x128xf32>
    %1188 = arith.divf %1186, %1187 : vector<2x128xf32>
    %1189 = vector.extract_strided_slice %1188 {offsets = [0, 0], sizes = [2, 32], strides = [1, 1]} : vector<2x128xf32> to vector<2x32xf32>
    %1190 = vector.extract_strided_slice %1188 {offsets = [0, 32], sizes = [2, 32], strides = [1, 1]} : vector<2x128xf32> to vector<2x32xf32>
    %1191 = vector.extract_strided_slice %1188 {offsets = [0, 96], sizes = [2, 32], strides = [1, 1]} : vector<2x128xf32> to vector<2x32xf32>
    %1192 = vector.extract_strided_slice %1180 {offsets = [0, 64], sizes = [2, 32], strides = [1, 1]} : vector<2x128xf32> to vector<2x32xf32>
    %1193 = math.tanh %1192 : vector<2x32xf32>
    %1194 = arith.mulf %1190, %1154 : vector<2x32xf32>
    %1195 = arith.mulf %1189, %1193 : vector<2x32xf32>
    %1196 = arith.addf %1194, %1195 : vector<2x32xf32>
    %1197 = math.tanh %1196 : vector<2x32xf32>
    %1198 = arith.mulf %1191, %1197 : vector<2x32xf32>
    %1199 = arith.negf %1183 : vector<2x128xf32>
    %1200 = math.exp %1199 : vector<2x128xf32>
    %cst_232 = arith.constant 1.000000e+00 : f32
    %1201 = vector.broadcast %cst_232 : f32 to vector<2x128xf32>
    %1202 = arith.addf %1201, %1200 : vector<2x128xf32>
    %1203 = arith.divf %1201, %1202 : vector<2x128xf32>
    %1204 = vector.extract_strided_slice %1203 {offsets = [0, 0], sizes = [2, 32], strides = [1, 1]} : vector<2x128xf32> to vector<2x32xf32>
    %1205 = vector.extract_strided_slice %1203 {offsets = [0, 32], sizes = [2, 32], strides = [1, 1]} : vector<2x128xf32> to vector<2x32xf32>
    %1206 = vector.extract_strided_slice %1203 {offsets = [0, 96], sizes = [2, 32], strides = [1, 1]} : vector<2x128xf32> to vector<2x32xf32>
    %1207 = vector.extract_strided_slice %1183 {offsets = [0, 64], sizes = [2, 32], strides = [1, 1]} : vector<2x128xf32> to vector<2x32xf32>
    %1208 = math.tanh %1207 : vector<2x32xf32>
    %1209 = arith.mulf %1205, %1169 : vector<2x32xf32>
    %1210 = arith.mulf %1204, %1208 : vector<2x32xf32>
    %1211 = arith.addf %1209, %1210 : vector<2x32xf32>
    %1212 = math.tanh %1211 : vector<2x32xf32>
    %1213 = arith.mulf %1206, %1212 : vector<2x32xf32>
    %c6_233 = arith.constant 6 : index
    %c0_234 = arith.constant 0 : index
    %1214 = vector.load %arg22[%c6_233, %c0_234] : memref<16x64xf32, #tpu.memory_space<vmem>>, vector<2x32xf32>
    tpu.vector_store %arg22[%c6_233, %c0_234], %1198 {strides = array<i32>} : memref<16x64xf32, #tpu.memory_space<vmem>>, vector<2x32xf32>,
    %c8_235 = arith.constant 8 : index
    %c32_236 = arith.constant 32 : index
    %1215 = vector.load %arg22[%c8_235, %c32_236] : memref<16x64xf32, #tpu.memory_space<vmem>>, vector<2x32xf32>
    tpu.vector_store %arg22[%c8_235, %c32_236], %1213 {strides = array<i32>} : memref<16x64xf32, #tpu.memory_space<vmem>>, vector<2x32xf32>,
    %1216 = tpu.concatenate %1198, %1213 in 1 : vector<2x32xf32>, vector<2x32xf32> -> vector<2x64xf32>
    %cst_237 = arith.constant dense<0.000000e+00> : vector<2x256xf32>
    %1217 = tpu.matmul %1216, %1043, %cst_237 {dimension_numbers = #tpu.dot_dimension_numbers<[1], [0], [0], [1], [0, 0, 1, 1], [], []>} : vector<2x64xf32>, vector<64x256xf32>, vector<2x256xf32> -> vector<2x256xf32>
    %1218 = vector.broadcast %1044 : vector<1x256xf32> to vector<2x256xf32>
    %1219 = arith.addf %1217, %1218 : vector<2x256xf32>
    %1220 = vector.extract_strided_slice %1219 {offsets = [0, 0], sizes = [2, 128], strides = [1, 1]} : vector<2x256xf32> to vector<2x128xf32>
    %1221 = vector.extract_strided_slice %1045 {offsets = [8, 0], sizes = [2, 128], strides = [1, 1]} : vector<16x256xf32> to vector<2x128xf32>
    %1222 = arith.addf %1220, %1221 : vector<2x128xf32>
    %1223 = vector.extract_strided_slice %1219 {offsets = [0, 128], sizes = [2, 128], strides = [1, 1]} : vector<2x256xf32> to vector<2x128xf32>
    %1224 = vector.extract_strided_slice %1045 {offsets = [6, 128], sizes = [2, 128], strides = [1, 1]} : vector<16x256xf32> to vector<2x128xf32>
    %1225 = arith.addf %1223, %1224 : vector<2x128xf32>
    %1226 = arith.negf %1222 : vector<2x128xf32>
    %1227 = math.exp %1226 : vector<2x128xf32>
    %cst_238 = arith.constant 1.000000e+00 : f32
    %1228 = vector.broadcast %cst_238 : f32 to vector<2x128xf32>
    %1229 = arith.addf %1228, %1227 : vector<2x128xf32>
    %1230 = arith.divf %1228, %1229 : vector<2x128xf32>
    %1231 = vector.extract_strided_slice %1230 {offsets = [0, 0], sizes = [2, 32], strides = [1, 1]} : vector<2x128xf32> to vector<2x32xf32>
    %1232 = vector.extract_strided_slice %1230 {offsets = [0, 32], sizes = [2, 32], strides = [1, 1]} : vector<2x128xf32> to vector<2x32xf32>
    %1233 = vector.extract_strided_slice %1230 {offsets = [0, 96], sizes = [2, 32], strides = [1, 1]} : vector<2x128xf32> to vector<2x32xf32>
    %1234 = vector.extract_strided_slice %1222 {offsets = [0, 64], sizes = [2, 32], strides = [1, 1]} : vector<2x128xf32> to vector<2x32xf32>
    %1235 = math.tanh %1234 : vector<2x32xf32>
    %1236 = arith.mulf %1232, %1196 : vector<2x32xf32>
    %1237 = arith.mulf %1231, %1235 : vector<2x32xf32>
    %1238 = arith.addf %1236, %1237 : vector<2x32xf32>
    %1239 = math.tanh %1238 : vector<2x32xf32>
    %1240 = arith.mulf %1233, %1239 : vector<2x32xf32>
    %1241 = arith.negf %1225 : vector<2x128xf32>
    %1242 = math.exp %1241 : vector<2x128xf32>
    %cst_239 = arith.constant 1.000000e+00 : f32
    %1243 = vector.broadcast %cst_239 : f32 to vector<2x128xf32>
    %1244 = arith.addf %1243, %1242 : vector<2x128xf32>
    %1245 = arith.divf %1243, %1244 : vector<2x128xf32>
    %1246 = vector.extract_strided_slice %1245 {offsets = [0, 0], sizes = [2, 32], strides = [1, 1]} : vector<2x128xf32> to vector<2x32xf32>
    %1247 = vector.extract_strided_slice %1245 {offsets = [0, 32], sizes = [2, 32], strides = [1, 1]} : vector<2x128xf32> to vector<2x32xf32>
    %1248 = vector.extract_strided_slice %1245 {offsets = [0, 96], sizes = [2, 32], strides = [1, 1]} : vector<2x128xf32> to vector<2x32xf32>
    %1249 = vector.extract_strided_slice %1225 {offsets = [0, 64], sizes = [2, 32], strides = [1, 1]} : vector<2x128xf32> to vector<2x32xf32>
    %1250 = math.tanh %1249 : vector<2x32xf32>
    %1251 = arith.mulf %1247, %1211 : vector<2x32xf32>
    %1252 = arith.mulf %1246, %1250 : vector<2x32xf32>
    %1253 = arith.addf %1251, %1252 : vector<2x32xf32>
    %1254 = math.tanh %1253 : vector<2x32xf32>
    %1255 = arith.mulf %1248, %1254 : vector<2x32xf32>
    %c8_240 = arith.constant 8 : index
    %c0_241 = arith.constant 0 : index
    %1256 = vector.load %arg22[%c8_240, %c0_241] : memref<16x64xf32, #tpu.memory_space<vmem>>, vector<2x32xf32>
    tpu.vector_store %arg22[%c8_240, %c0_241], %1240 {strides = array<i32>} : memref<16x64xf32, #tpu.memory_space<vmem>>, vector<2x32xf32>,
    %c6_242 = arith.constant 6 : index
    %c32_243 = arith.constant 32 : index
    %1257 = vector.load %arg22[%c6_242, %c32_243] : memref<16x64xf32, #tpu.memory_space<vmem>>, vector<2x32xf32>
    tpu.vector_store %arg22[%c6_242, %c32_243], %1255 {strides = array<i32>} : memref<16x64xf32, #tpu.memory_space<vmem>>, vector<2x32xf32>,
    %1258 = tpu.concatenate %1240, %1255 in 1 : vector<2x32xf32>, vector<2x32xf32> -> vector<2x64xf32>
    %cst_244 = arith.constant dense<0.000000e+00> : vector<2x256xf32>
    %1259 = tpu.matmul %1258, %1043, %cst_244 {dimension_numbers = #tpu.dot_dimension_numbers<[1], [0], [0], [1], [0, 0, 1, 1], [], []>} : vector<2x64xf32>, vector<64x256xf32>, vector<2x256xf32> -> vector<2x256xf32>
    %1260 = vector.broadcast %1044 : vector<1x256xf32> to vector<2x256xf32>
    %1261 = arith.addf %1259, %1260 : vector<2x256xf32>
    %1262 = vector.extract_strided_slice %1261 {offsets = [0, 0], sizes = [2, 128], strides = [1, 1]} : vector<2x256xf32> to vector<2x128xf32>
    %1263 = vector.extract_strided_slice %1045 {offsets = [10, 0], sizes = [2, 128], strides = [1, 1]} : vector<16x256xf32> to vector<2x128xf32>
    %1264 = arith.addf %1262, %1263 : vector<2x128xf32>
    %1265 = vector.extract_strided_slice %1261 {offsets = [0, 128], sizes = [2, 128], strides = [1, 1]} : vector<2x256xf32> to vector<2x128xf32>
    %1266 = vector.extract_strided_slice %1045 {offsets = [4, 128], sizes = [2, 128], strides = [1, 1]} : vector<16x256xf32> to vector<2x128xf32>
    %1267 = arith.addf %1265, %1266 : vector<2x128xf32>
    %1268 = arith.negf %1264 : vector<2x128xf32>
    %1269 = math.exp %1268 : vector<2x128xf32>
    %cst_245 = arith.constant 1.000000e+00 : f32
    %1270 = vector.broadcast %cst_245 : f32 to vector<2x128xf32>
    %1271 = arith.addf %1270, %1269 : vector<2x128xf32>
    %1272 = arith.divf %1270, %1271 : vector<2x128xf32>
    %1273 = vector.extract_strided_slice %1272 {offsets = [0, 0], sizes = [2, 32], strides = [1, 1]} : vector<2x128xf32> to vector<2x32xf32>
    %1274 = vector.extract_strided_slice %1272 {offsets = [0, 32], sizes = [2, 32], strides = [1, 1]} : vector<2x128xf32> to vector<2x32xf32>
    %1275 = vector.extract_strided_slice %1272 {offsets = [0, 96], sizes = [2, 32], strides = [1, 1]} : vector<2x128xf32> to vector<2x32xf32>
    %1276 = vector.extract_strided_slice %1264 {offsets = [0, 64], sizes = [2, 32], strides = [1, 1]} : vector<2x128xf32> to vector<2x32xf32>
    %1277 = math.tanh %1276 : vector<2x32xf32>
    %1278 = arith.mulf %1274, %1238 : vector<2x32xf32>
    %1279 = arith.mulf %1273, %1277 : vector<2x32xf32>
    %1280 = arith.addf %1278, %1279 : vector<2x32xf32>
    %1281 = math.tanh %1280 : vector<2x32xf32>
    %1282 = arith.mulf %1275, %1281 : vector<2x32xf32>
    %1283 = arith.negf %1267 : vector<2x128xf32>
    %1284 = math.exp %1283 : vector<2x128xf32>
    %cst_246 = arith.constant 1.000000e+00 : f32
    %1285 = vector.broadcast %cst_246 : f32 to vector<2x128xf32>
    %1286 = arith.addf %1285, %1284 : vector<2x128xf32>
    %1287 = arith.divf %1285, %1286 : vector<2x128xf32>
    %1288 = vector.extract_strided_slice %1287 {offsets = [0, 0], sizes = [2, 32], strides = [1, 1]} : vector<2x128xf32> to vector<2x32xf32>
    %1289 = vector.extract_strided_slice %1287 {offsets = [0, 32], sizes = [2, 32], strides = [1, 1]} : vector<2x128xf32> to vector<2x32xf32>
    %1290 = vector.extract_strided_slice %1287 {offsets = [0, 96], sizes = [2, 32], strides = [1, 1]} : vector<2x128xf32> to vector<2x32xf32>
    %1291 = vector.extract_strided_slice %1267 {offsets = [0, 64], sizes = [2, 32], strides = [1, 1]} : vector<2x128xf32> to vector<2x32xf32>
    %1292 = math.tanh %1291 : vector<2x32xf32>
    %1293 = arith.mulf %1289, %1253 : vector<2x32xf32>
    %1294 = arith.mulf %1288, %1292 : vector<2x32xf32>
    %1295 = arith.addf %1293, %1294 : vector<2x32xf32>
    %1296 = math.tanh %1295 : vector<2x32xf32>
    %1297 = arith.mulf %1290, %1296 : vector<2x32xf32>
    %c10_247 = arith.constant 10 : index
    %c0_248 = arith.constant 0 : index
    %1298 = vector.load %arg22[%c10_247, %c0_248] : memref<16x64xf32, #tpu.memory_space<vmem>>, vector<2x32xf32>
    tpu.vector_store %arg22[%c10_247, %c0_248], %1282 {strides = array<i32>} : memref<16x64xf32, #tpu.memory_space<vmem>>, vector<2x32xf32>,
    %c4_249 = arith.constant 4 : index
    %c32_250 = arith.constant 32 : index
    %1299 = vector.load %arg22[%c4_249, %c32_250] : memref<16x64xf32, #tpu.memory_space<vmem>>, vector<2x32xf32>
    tpu.vector_store %arg22[%c4_249, %c32_250], %1297 {strides = array<i32>} : memref<16x64xf32, #tpu.memory_space<vmem>>, vector<2x32xf32>,
    %1300 = tpu.concatenate %1282, %1297 in 1 : vector<2x32xf32>, vector<2x32xf32> -> vector<2x64xf32>
    %cst_251 = arith.constant dense<0.000000e+00> : vector<2x256xf32>
    %1301 = tpu.matmul %1300, %1043, %cst_251 {dimension_numbers = #tpu.dot_dimension_numbers<[1], [0], [0], [1], [0, 0, 1, 1], [], []>} : vector<2x64xf32>, vector<64x256xf32>, vector<2x256xf32> -> vector<2x256xf32>
    %1302 = vector.broadcast %1044 : vector<1x256xf32> to vector<2x256xf32>
    %1303 = arith.addf %1301, %1302 : vector<2x256xf32>
    %1304 = vector.extract_strided_slice %1303 {offsets = [0, 0], sizes = [2, 128], strides = [1, 1]} : vector<2x256xf32> to vector<2x128xf32>
    %1305 = vector.extract_strided_slice %1045 {offsets = [12, 0], sizes = [2, 128], strides = [1, 1]} : vector<16x256xf32> to vector<2x128xf32>
    %1306 = arith.addf %1304, %1305 : vector<2x128xf32>
    %1307 = vector.extract_strided_slice %1303 {offsets = [0, 128], sizes = [2, 128], strides = [1, 1]} : vector<2x256xf32> to vector<2x128xf32>
    %1308 = vector.extract_strided_slice %1045 {offsets = [2, 128], sizes = [2, 128], strides = [1, 1]} : vector<16x256xf32> to vector<2x128xf32>
    %1309 = arith.addf %1307, %1308 : vector<2x128xf32>
    %1310 = arith.negf %1306 : vector<2x128xf32>
    %1311 = math.exp %1310 : vector<2x128xf32>
    %cst_252 = arith.constant 1.000000e+00 : f32
    %1312 = vector.broadcast %cst_252 : f32 to vector<2x128xf32>
    %1313 = arith.addf %1312, %1311 : vector<2x128xf32>
    %1314 = arith.divf %1312, %1313 : vector<2x128xf32>
    %1315 = vector.extract_strided_slice %1314 {offsets = [0, 0], sizes = [2, 32], strides = [1, 1]} : vector<2x128xf32> to vector<2x32xf32>
    %1316 = vector.extract_strided_slice %1314 {offsets = [0, 32], sizes = [2, 32], strides = [1, 1]} : vector<2x128xf32> to vector<2x32xf32>
    %1317 = vector.extract_strided_slice %1314 {offsets = [0, 96], sizes = [2, 32], strides = [1, 1]} : vector<2x128xf32> to vector<2x32xf32>
    %1318 = vector.extract_strided_slice %1306 {offsets = [0, 64], sizes = [2, 32], strides = [1, 1]} : vector<2x128xf32> to vector<2x32xf32>
    %1319 = math.tanh %1318 : vector<2x32xf32>
    %1320 = arith.mulf %1316, %1280 : vector<2x32xf32>
    %1321 = arith.mulf %1315, %1319 : vector<2x32xf32>
    %1322 = arith.addf %1320, %1321 : vector<2x32xf32>
    %1323 = math.tanh %1322 : vector<2x32xf32>
    %1324 = arith.mulf %1317, %1323 : vector<2x32xf32>
    %1325 = arith.negf %1309 : vector<2x128xf32>
    %1326 = math.exp %1325 : vector<2x128xf32>
    %cst_253 = arith.constant 1.000000e+00 : f32
    %1327 = vector.broadcast %cst_253 : f32 to vector<2x128xf32>
    %1328 = arith.addf %1327, %1326 : vector<2x128xf32>
    %1329 = arith.divf %1327, %1328 : vector<2x128xf32>
    %1330 = vector.extract_strided_slice %1329 {offsets = [0, 0], sizes = [2, 32], strides = [1, 1]} : vector<2x128xf32> to vector<2x32xf32>
    %1331 = vector.extract_strided_slice %1329 {offsets = [0, 32], sizes = [2, 32], strides = [1, 1]} : vector<2x128xf32> to vector<2x32xf32>
    %1332 = vector.extract_strided_slice %1329 {offsets = [0, 96], sizes = [2, 32], strides = [1, 1]} : vector<2x128xf32> to vector<2x32xf32>
    %1333 = vector.extract_strided_slice %1309 {offsets = [0, 64], sizes = [2, 32], strides = [1, 1]} : vector<2x128xf32> to vector<2x32xf32>
    %1334 = math.tanh %1333 : vector<2x32xf32>
    %1335 = arith.mulf %1331, %1295 : vector<2x32xf32>
    %1336 = arith.mulf %1330, %1334 : vector<2x32xf32>
    %1337 = arith.addf %1335, %1336 : vector<2x32xf32>
    %1338 = math.tanh %1337 : vector<2x32xf32>
    %1339 = arith.mulf %1332, %1338 : vector<2x32xf32>
    %c12_254 = arith.constant 12 : index
    %c0_255 = arith.constant 0 : index
    %1340 = vector.load %arg22[%c12_254, %c0_255] : memref<16x64xf32, #tpu.memory_space<vmem>>, vector<2x32xf32>
    tpu.vector_store %arg22[%c12_254, %c0_255], %1324 {strides = array<i32>} : memref<16x64xf32, #tpu.memory_space<vmem>>, vector<2x32xf32>,
    %c2_256 = arith.constant 2 : index
    %c32_257 = arith.constant 32 : index
    %1341 = vector.load %arg22[%c2_256, %c32_257] : memref<16x64xf32, #tpu.memory_space<vmem>>, vector<2x32xf32>
    tpu.vector_store %arg22[%c2_256, %c32_257], %1339 {strides = array<i32>} : memref<16x64xf32, #tpu.memory_space<vmem>>, vector<2x32xf32>,
    %1342 = tpu.concatenate %1324, %1339 in 1 : vector<2x32xf32>, vector<2x32xf32> -> vector<2x64xf32>
    %cst_258 = arith.constant dense<0.000000e+00> : vector<2x256xf32>
    %1343 = tpu.matmul %1342, %1043, %cst_258 {dimension_numbers = #tpu.dot_dimension_numbers<[1], [0], [0], [1], [0, 0, 1, 1], [], []>} : vector<2x64xf32>, vector<64x256xf32>, vector<2x256xf32> -> vector<2x256xf32>
    %1344 = vector.broadcast %1044 : vector<1x256xf32> to vector<2x256xf32>
    %1345 = arith.addf %1343, %1344 : vector<2x256xf32>
    %1346 = vector.extract_strided_slice %1345 {offsets = [0, 0], sizes = [2, 128], strides = [1, 1]} : vector<2x256xf32> to vector<2x128xf32>
    %1347 = vector.extract_strided_slice %1045 {offsets = [14, 0], sizes = [2, 128], strides = [1, 1]} : vector<16x256xf32> to vector<2x128xf32>
    %1348 = arith.addf %1346, %1347 : vector<2x128xf32>
    %1349 = vector.extract_strided_slice %1345 {offsets = [0, 128], sizes = [2, 128], strides = [1, 1]} : vector<2x256xf32> to vector<2x128xf32>
    %1350 = vector.extract_strided_slice %1045 {offsets = [0, 128], sizes = [2, 128], strides = [1, 1]} : vector<16x256xf32> to vector<2x128xf32>
    %1351 = arith.addf %1349, %1350 : vector<2x128xf32>
    %1352 = arith.negf %1348 : vector<2x128xf32>
    %1353 = math.exp %1352 : vector<2x128xf32>
    %cst_259 = arith.constant 1.000000e+00 : f32
    %1354 = vector.broadcast %cst_259 : f32 to vector<2x128xf32>
    %1355 = arith.addf %1354, %1353 : vector<2x128xf32>
    %1356 = arith.divf %1354, %1355 : vector<2x128xf32>
    %1357 = vector.extract_strided_slice %1356 {offsets = [0, 0], sizes = [2, 32], strides = [1, 1]} : vector<2x128xf32> to vector<2x32xf32>
    %1358 = vector.extract_strided_slice %1356 {offsets = [0, 32], sizes = [2, 32], strides = [1, 1]} : vector<2x128xf32> to vector<2x32xf32>
    %1359 = vector.extract_strided_slice %1356 {offsets = [0, 96], sizes = [2, 32], strides = [1, 1]} : vector<2x128xf32> to vector<2x32xf32>
    %1360 = vector.extract_strided_slice %1348 {offsets = [0, 64], sizes = [2, 32], strides = [1, 1]} : vector<2x128xf32> to vector<2x32xf32>
    %1361 = math.tanh %1360 : vector<2x32xf32>
    %1362 = arith.mulf %1358, %1322 : vector<2x32xf32>
    %1363 = arith.mulf %1357, %1361 : vector<2x32xf32>
    %1364 = arith.addf %1362, %1363 : vector<2x32xf32>
    %1365 = math.tanh %1364 : vector<2x32xf32>
    %1366 = arith.mulf %1359, %1365 : vector<2x32xf32>
    %1367 = arith.negf %1351 : vector<2x128xf32>
    %1368 = math.exp %1367 : vector<2x128xf32>
    %cst_260 = arith.constant 1.000000e+00 : f32
    %1369 = vector.broadcast %cst_260 : f32 to vector<2x128xf32>
    %1370 = arith.addf %1369, %1368 : vector<2x128xf32>
    %1371 = arith.divf %1369, %1370 : vector<2x128xf32>
    %1372 = vector.extract_strided_slice %1371 {offsets = [0, 0], sizes = [2, 32], strides = [1, 1]} : vector<2x128xf32> to vector<2x32xf32>
    %1373 = vector.extract_strided_slice %1371 {offsets = [0, 32], sizes = [2, 32], strides = [1, 1]} : vector<2x128xf32> to vector<2x32xf32>
    %1374 = vector.extract_strided_slice %1371 {offsets = [0, 96], sizes = [2, 32], strides = [1, 1]} : vector<2x128xf32> to vector<2x32xf32>
    %1375 = vector.extract_strided_slice %1351 {offsets = [0, 64], sizes = [2, 32], strides = [1, 1]} : vector<2x128xf32> to vector<2x32xf32>
    %1376 = math.tanh %1375 : vector<2x32xf32>
    %1377 = arith.mulf %1373, %1337 : vector<2x32xf32>
    %1378 = arith.mulf %1372, %1376 : vector<2x32xf32>
    %1379 = arith.addf %1377, %1378 : vector<2x32xf32>
    %1380 = math.tanh %1379 : vector<2x32xf32>
    %1381 = arith.mulf %1374, %1380 : vector<2x32xf32>
    %c14_261 = arith.constant 14 : index
    %c0_262 = arith.constant 0 : index
    %1382 = vector.load %arg22[%c14_261, %c0_262] : memref<16x64xf32, #tpu.memory_space<vmem>>, vector<2x32xf32>
    tpu.vector_store %arg22[%c14_261, %c0_262], %1366 {strides = array<i32>} : memref<16x64xf32, #tpu.memory_space<vmem>>, vector<2x32xf32>,
    %c0_263 = arith.constant 0 : index
    %c32_264 = arith.constant 32 : index
    %1383 = vector.load %arg22[%c0_263, %c32_264] : memref<16x64xf32, #tpu.memory_space<vmem>>, vector<2x32xf32>
    tpu.vector_store %arg22[%c0_263, %c32_264], %1381 {strides = array<i32>} : memref<16x64xf32, #tpu.memory_space<vmem>>, vector<2x32xf32>,
    %c0_265 = arith.constant 0 : index
    %c0_266 = arith.constant 0 : index
    %1384 = vector.load %arg22[%c0_265, %c0_266] : memref<16x64xf32, #tpu.memory_space<vmem>>, vector<16x64xf32>
    %cst_267 = arith.constant -0.999989986 : f32
    %cst_268 = arith.constant 0.999989986 : f32
    %1385 = vector.broadcast %cst_267 : f32 to vector<16x64xf32>
    %1386 = arith.maximumf %1385, %1384 : vector<16x64xf32>
    %1387 = vector.broadcast %cst_268 : f32 to vector<16x64xf32>
    %1388 = arith.minimumf %1387, %1386 : vector<16x64xf32>
    %1389 = math.tanh %1388 : vector<16x64xf32>
    %c0_269 = arith.constant 0 : index
    %c0_270 = arith.constant 0 : index
    %1390 = vector.load %arg15[%c0_269, %c0_270] : memref<64x64xf32, #tpu.memory_space<vmem>>, vector<64x64xf32>
    %c0_271 = arith.constant 0 : index
    %c0_272 = arith.constant 0 : index
    %1391 = vector.load %arg16[%c0_271, %c0_272] : memref<1x64xf32, #tpu.memory_space<vmem>>, vector<1x64xf32>
    %cst_273 = arith.constant dense<0.000000e+00> : vector<16x64xf32>
    %1392 = tpu.matmul %1389, %1390, %cst_273 {dimension_numbers = #tpu.dot_dimension_numbers<[1], [0], [0], [1], [0, 0, 1, 1], [], []>} : vector<16x64xf32>, vector<64x64xf32>, vector<16x64xf32> -> vector<16x64xf32>
    %1393 = vector.broadcast %1391 : vector<1x64xf32> to vector<16x64xf32>
    %1394 = arith.addf %1392, %1393 : vector<16x64xf32>
    %1395 = math.tanh %1394 : vector<16x64xf32>
    %c0_274 = arith.constant 0 : index
    %c0_275 = arith.constant 0 : index
    %1396 = vector.load %arg17[%c0_274, %c0_275] : memref<64x64xf32, #tpu.memory_space<vmem>>, vector<64x64xf32>
    %c0_276 = arith.constant 0 : index
    %c0_277 = arith.constant 0 : index
    %1397 = vector.load %arg18[%c0_276, %c0_277] : memref<1x64xf32, #tpu.memory_space<vmem>>, vector<1x64xf32>
    %cst_278 = arith.constant dense<0.000000e+00> : vector<16x64xf32>
    %1398 = tpu.matmul %1395, %1396, %cst_278 {dimension_numbers = #tpu.dot_dimension_numbers<[1], [0], [0], [1], [0, 0, 1, 1], [], []>} : vector<16x64xf32>, vector<64x64xf32>, vector<16x64xf32> -> vector<16x64xf32>
    %1399 = vector.broadcast %1397 : vector<1x64xf32> to vector<16x64xf32>
    %1400 = arith.addf %1398, %1399 : vector<16x64xf32>
    %1401 = math.tanh %1400 : vector<16x64xf32>
    %c0_279 = arith.constant 0 : index
    %c0_280 = arith.constant 0 : index
    %1402 = vector.load %arg19[%c0_279, %c0_280] : memref<64x10xf32, #tpu.memory_space<vmem>>, vector<64x10xf32>
    %c0_281 = arith.constant 0 : index
    %c0_282 = arith.constant 0 : index
    %1403 = vector.load %arg20[%c0_281, %c0_282] : memref<1x10xf32, #tpu.memory_space<vmem>>, vector<1x10xf32>
    %cst_283 = arith.constant dense<0.000000e+00> : vector<16x10xf32>
    %1404 = tpu.matmul %1401, %1402, %cst_283 {dimension_numbers = #tpu.dot_dimension_numbers<[1], [0], [0], [1], [0, 0, 1, 1], [], []>} : vector<16x64xf32>, vector<64x10xf32>, vector<16x10xf32> -> vector<16x10xf32>
    %1405 = vector.broadcast %1403 : vector<1x10xf32> to vector<16x10xf32>
    %1406 = arith.addf %1404, %1405 : vector<16x10xf32>
    %1407 = math.tanh %1406 : vector<16x10xf32>
    %cst_284 = arith.constant dense<0xFF800000> : vector<16xf32>
    %1408 = vector.multi_reduction <maximumf>, %1407, %cst_284 [1] : vector<16x10xf32> to vector<16xf32>
    %1409 = vector.shape_cast %1408 : vector<16xf32> to vector<16x1xf32>
    %1410 = vector.broadcast %1409 : vector<16x1xf32> to vector<16x10xf32>
    %1411 = arith.subf %1407, %1410 : vector<16x10xf32>
    %1412 = math.exp %1411 : vector<16x10xf32>
    %cst_285 = arith.constant dense<0.000000e+00> : vector<16xf32>
    %1413 = vector.multi_reduction <add>, %1412, %cst_285 [1] : vector<16x10xf32> to vector<16xf32>
    %1414 = vector.shape_cast %1413 : vector<16xf32> to vector<16x1xf32>
    %1415 = vector.broadcast %1414 : vector<16x1xf32> to vector<16x10xf32>
    %1416 = arith.divf %1412, %1415 : vector<16x10xf32>
    %c0_286 = arith.constant 0 : index
    %c0_287 = arith.constant 0 : index
    %1417 = vector.load %arg21[%c0_286, %c0_287] : memref<16x10xf32, #tpu.memory_space<vmem>>, vector<16x10xf32>
    tpu.vector_store %arg21[%c0_286, %c0_287], %1416 {strides = array<i32>} : memref<16x10xf32, #tpu.memory_space<vmem>>, vector<16x10xf32>,
    return
  }
  func.func @transform_0(%arg0: i32) -> (i32, i32) {
    %c0_i32 = arith.constant 0 : i32
    %c0_i32_0 = arith.constant 0 : i32
    %c0_i32_1 = arith.constant 0 : i32
    return %c0_i32, %c0_i32_0 : i32, i32
  }
  func.func @transform_1(%arg0: i32) -> (i32, i32) {
    %c0_i32 = arith.constant 0 : i32
    %c0_i32_0 = arith.constant 0 : i32
    %c0_i32_1 = arith.constant 0 : i32
    return %c0_i32, %c0_i32_0 : i32, i32
  }
  func.func @transform_2(%arg0: i32) -> (i32, i32) {
    %c0_i32 = arith.constant 0 : i32
    %c0_i32_0 = arith.constant 0 : i32
    %c0_i32_1 = arith.constant 0 : i32
    return %c0_i32, %c0_i32_0 : i32, i32
  }
  func.func @transform_3(%arg0: i32) -> (i32, i32) {
    %c0_i32 = arith.constant 0 : i32
    %c0_i32_0 = arith.constant 0 : i32
    %c0_i32_1 = arith.constant 0 : i32
    return %c0_i32, %c0_i32_0 : i32, i32
  }
  func.func @transform_4(%arg0: i32) -> (i32, i32) {
    %c0_i32 = arith.constant 0 : i32
    %c0_i32_0 = arith.constant 0 : i32
    %c0_i32_1 = arith.constant 0 : i32
    return %c0_i32, %c0_i32_0 : i32, i32
  }
  func.func @transform_5(%arg0: i32) -> (i32, i32) {
    %c0_i32 = arith.constant 0 : i32
    %c0_i32_0 = arith.constant 0 : i32
    %c0_i32_1 = arith.constant 0 : i32
    return %c0_i32, %c0_i32_0 : i32, i32
  }
  func.func @transform_6(%arg0: i32) -> (i32, i32) {
    %c0_i32 = arith.constant 0 : i32
    %c0_i32_0 = arith.constant 0 : i32
    %c0_i32_1 = arith.constant 0 : i32
    return %c0_i32, %c0_i32_0 : i32, i32
  }
  func.func @transform_7(%arg0: i32) -> (i32, i32) {
    %c0_i32 = arith.constant 0 : i32
    %c0_i32_0 = arith.constant 0 : i32
    %c0_i32_1 = arith.constant 0 : i32
    return %c0_i32, %c0_i32_0 : i32, i32
  }
  func.func @transform_8(%arg0: i32) -> (i32, i32) {
    %c0_i32 = arith.constant 0 : i32
    %c0_i32_0 = arith.constant 0 : i32
    %c0_i32_1 = arith.constant 0 : i32
    return %c0_i32, %c0_i32_0 : i32, i32
  }
  func.func @transform_9(%arg0: i32) -> (i32, i32) {
    %c0_i32 = arith.constant 0 : i32
    %c0_i32_0 = arith.constant 0 : i32
    %c0_i32_1 = arith.constant 0 : i32
    return %c0_i32, %c0_i32_0 : i32, i32
  }
  func.func @transform_10(%arg0: i32) -> (i32, i32) {
    %c0_i32 = arith.constant 0 : i32
    %c0_i32_0 = arith.constant 0 : i32
    %c0_i32_1 = arith.constant 0 : i32
    return %c0_i32, %c0_i32_0 : i32, i32
  }
  func.func @transform_11(%arg0: i32) -> (i32, i32) {
    %c0_i32 = arith.constant 0 : i32
    %c0_i32_0 = arith.constant 0 : i32
    %c0_i32_1 = arith.constant 0 : i32
    return %c0_i32, %c0_i32_0 : i32, i32
  }
  func.func @transform_12(%arg0: i32) -> (i32, i32) {
    %c0_i32 = arith.constant 0 : i32
    %c0_i32_0 = arith.constant 0 : i32
    %c0_i32_1 = arith.constant 0 : i32
    return %c0_i32, %c0_i32_0 : i32, i32
  }
  func.func @transform_13(%arg0: i32) -> (i32, i32) {
    %c0_i32 = arith.constant 0 : i32
    %c0_i32_0 = arith.constant 0 : i32
    %c0_i32_1 = arith.constant 0 : i32
    return %c0_i32, %c0_i32_0 : i32, i32
  }
  func.func @transform_14(%arg0: i32) -> (i32, i32) {
    %c0_i32 = arith.constant 0 : i32
    %c0_i32_0 = arith.constant 0 : i32
    %c0_i32_1 = arith.constant 0 : i32
    return %c0_i32, %c0_i32_0 : i32, i32
  }
  func.func @transform_15(%arg0: i32) -> (i32, i32) {
    %c0_i32 = arith.constant 0 : i32
    %c0_i32_0 = arith.constant 0 : i32
    %c0_i32_1 = arith.constant 0 : i32
    return %c0_i32, %c0_i32_0 : i32, i32
  }
  func.func @transform_16(%arg0: i32) -> (i32, i32) {
    %c0_i32 = arith.constant 0 : i32
    %c0_i32_0 = arith.constant 0 : i32
    %c0_i32_1 = arith.constant 0 : i32
    return %c0_i32, %c0_i32_0 : i32, i32
  }
  func.func @transform_17(%arg0: i32) -> (i32, i32) {
    %c0_i32 = arith.constant 0 : i32
    %c0_i32_0 = arith.constant 0 : i32
    %c0_i32_1 = arith.constant 0 : i32
    return %c0_i32, %c0_i32_0 : i32, i32
  }
  func.func @transform_18(%arg0: i32) -> (i32, i32) {
    %c0_i32 = arith.constant 0 : i32
    %c0_i32_0 = arith.constant 0 : i32
    %c0_i32_1 = arith.constant 0 : i32
    return %c0_i32, %c0_i32_0 : i32, i32
  }
  func.func @transform_19(%arg0: i32) -> (i32, i32) {
    %c0_i32 = arith.constant 0 : i32
    %c0_i32_0 = arith.constant 0 : i32
    %c0_i32_1 = arith.constant 0 : i32
    return %c0_i32, %c0_i32_0 : i32, i32
  }
  func.func @transform_20(%arg0: i32) -> (i32, i32) {
    %c0_i32 = arith.constant 0 : i32
    %c0_i32_0 = arith.constant 0 : i32
    %c0_i32_1 = arith.constant 0 : i32
    return %c0_i32, %c0_i32_0 : i32, i32
  }
}

</mosaic_0001>

<bundles_post_ra>
// kernel: lstm_tagger_forward.1
= control target key start
LH: loop header
LB: loop body
LE: loop exit
PB: predicated region body
PF: predicated region fallthrough
CT: control target
= control target key end

     0   :  { %s8888_s0 = inlined_call_operand.vmem [shape: s32[16,2], index: 0, kind: input, shape index: {}]   ;;  %s8889_s1 = inlined_call_operand.vmem [shape: f32[128,16], index: 1, kind: input, shape index: {}]   ;;  %s8890_s2 = inlined_call_operand.hbm [shape: f32[16,256], index: 2, kind: input, shape index: {}]   ;;  %s8891_s3 = inlined_call_operand.vmem [shape: f32[64,256], index: 3, kind: input, shape index: {}]   ;;  %s8892_s4 = inlined_call_operand.vmem [shape: f32[1,256], index: 4, kind: input, shape index: {}]   ;;  %s8893_s5 = inlined_call_operand.vmem [shape: f32[64,256], index: 5, kind: input, shape index: {}]   ;;  %s8894_s6 = inlined_call_operand.vmem [shape: f32[64,256], index: 6, kind: input, shape index: {}]   ;;  %s8895_s7 = inlined_call_operand.hbm [shape: f32[1,256], index: 7, kind: input, shape index: {}]   ;;  %s8896_s8 = inlined_call_operand.vmem [shape: f32[64,256], index: 8, kind: input, shape index: {}]   ;;  %s8897_s9 = inlined_call_operand.vmem [shape: f32[64,256], index: 9, kind: input, shape index: {}]   ;;  %s8898_s10 = inlined_call_operand.hbm [shape: f32[1,256], index: 10, kind: input, shape index: {}]   ;;  %s8899_s11 = inlined_call_operand.hbm [shape: f32[64,256], index: 11, kind: input, shape index: {}]   ;;  %s8900_s12 = inlined_call_operand.hbm [shape: f32[64,256], index: 12, kind: input, shape index: {}]   ;;  %s8901_s13 = inlined_call_operand.hbm [shape: f32[1,256], index: 13, kind: input, shape index: {}]   ;;  %s8902_s14 = inlined_call_operand.hbm [shape: f32[64,64], index: 14, kind: input, shape index: {}]   ;;  %s8903_s15 = inlined_call_operand.hbm [shape: f32[1,64], index: 15, kind: input, shape index: {}]   ;;  %s8904_s16 = inlined_call_operand.hbm [shape: f32[64,64], index: 16, kind: input, shape index: {}]   ;;  %s8905_s17 = inlined_call_operand.hbm [shape: f32[1,64], index: 17, kind: input, shape index: {}]   ;;  %s8906_s18 = inlined_call_operand.vmem [shape: f32[64,10], index: 18, kind: input, shape index: {}]   ;;  %s8907_s19 = inlined_call_operand.hbm [shape: f32[1,10], index: 19, kind: input, shape index: {}]   ;;  %s8908_s20 = inlined_call_operand.vmem [shape: f32[16,10], index: 20, kind: output, shape index: {}]  }
   0x1   :  { %8913 = sst [smem:[#allocation26_spill]] %s8888_s0 }
   0x2   :  { %8914 = sst [smem:[#allocation27_spill]] %s8889_s1 }
   0x3   :  { %8915 = sst [smem:[#allocation28_spill]] %s8890_s2 }
   0x4   :  { %8916 = sst [smem:[#allocation29_spill]] %s8891_s3 }
   0x5   :  { %8917 = sst [smem:[#allocation30_spill]] %s8892_s4 }
   0x6   :  { %25 = vsyncpa [#allocation4], 0 }
   0x7   :  { %26 = vsyncpa [#allocation6], 0 }
   0x8   :  { %27 = vsyncpa [#allocation9], 0 }
   0x9   :  { %28 = vsyncpa [#allocation12], 0 }
   0xa   :  { %29 = vsyncpa [#allocation15], 0 }
   0xb   :  { %30 = vsyncpa [#allocation18], 0  ;;  %s7296_s1 = smov [#allocation5]   ;;  %s7042_s2 = scalar_lea.hbm %s8895_s7, 32 }
   0xc   :  { %s61_s22 = sshll.u32 %s7296_s1, 4  ;;  %p7043_p0 = scmp.ne.s32.totalorder %s8895_s7, %s7042_s2  ;;  %s62_s22 = int_to_ptr.vmem [resolvable:$true] %s61_s22 }
   0xd   :  { %p7046_p1 = scmp.lt.u32.totalorder %s7042_s2, %s8895_s7 }
   0xf   :  { %p7048_p2 = pnand %p7046_p1, %p7043_p0 }
  0x11   :  { %7051 = shalt.err (!%p7048_p2)
}
  0x12   :  { %s7052_s28 = scalar_lea.vmem %s62_s22, 32  ;;  %p7057_p4 = scmp.lt.s32.totalorder %s62_s22, %s62_s22 }
  0x13   :  { %p7053_p3 = scmp.ne.s32.totalorder %s62_s22, %s7052_s28  ;;  %p7058_p5 = scmp.lt.s32.totalorder %s7052_s28, %s7052_s28 }
  0x15   :  { %p7059_p6 = por %p7058_p5, %p7057_p4 }
  0x17   :  { %p7060_p7 = pnand %p7059_p6, %p7053_p3 }
  0x19   :  { %7063 = shalt.err (!%p7060_p7)
}
  0x1a   :  { %64 = dma.hbm_to_vmem [thread:$0]  %s8895_s7, 32, %s62_s22, [#allocation6]  }
  0x1b   :  { %s7297_s30 = smov [#allocation8]   ;;  %s7298_s21 = smov [#allocation11]  }
  0x1c   :  { %s84_s0 = sshll.u32 %s7297_s30, 4  ;;  %s109_s1 = sshll.u32 %s7298_s21, 4  ;;  %s85_s0 = int_to_ptr.vmem [resolvable:$true] %s84_s0  ;;  %s110_s1 = int_to_ptr.vmem [resolvable:$true] %s109_s1 }
  0x1d   :  { %s7064_s2 = scalar_lea.hbm %s8899_s11, 2048 }
  0x1e   :  { %p7065_p8 = scmp.ne.s32.totalorder %s8899_s11, %s7064_s2  ;;  %p7068_p9 = scmp.lt.u32.totalorder %s7064_s2, %s8899_s11 }
  0x20   :  { %p7070_p10 = pnand %p7068_p9, %p7065_p8 }
  0x22   :  { %7073 = shalt.err (!%p7070_p10)
}
  0x23   :  { %s7074_s7 = scalar_lea.vmem %s85_s0, 2048  ;;  %p7079_p12 = scmp.lt.s32.totalorder %s85_s0, %s85_s0 }
  0x24   :  { %p7075_p11 = scmp.ne.s32.totalorder %s85_s0, %s7074_s7  ;;  %p7080_p13 = scmp.lt.s32.totalorder %s7074_s7, %s7074_s7 }
  0x26   :  { %p7081_p0 = por %p7080_p13, %p7079_p12 }
  0x28   :  { %p7082_p1 = pnand %p7081_p0, %p7075_p11 }
  0x2a   :  { %7085 = shalt.err (!%p7082_p1)
}
  0x2b   :  { %s7299_s22 = smov 256   ;;  %s7300_s28 = smov 16  }
  0x2c   :  { %90 = dma.hbm_to_vmem [thread:$0]  %s8899_s11, 2048, %s85_s0, [#allocation9], %s7299_s22, %s7299_s22, %s7300_s28  }
  0x2d   :  { %s7086_s23 = scalar_lea.hbm %s8901_s13, 32 }
  0x2e   :  { %p7087_p2 = scmp.ne.s32.totalorder %s8901_s13, %s7086_s23  ;;  %p7090_p3 = scmp.lt.u32.totalorder %s7086_s23, %s8901_s13 }
  0x30   :  { %p7092_p4 = pnand %p7090_p3, %p7087_p2 }
  0x32   :  { %7095 = shalt.err (!%p7092_p4)
}
  0x33   :  { %s7096_s26 = scalar_lea.vmem %s110_s1, 32  ;;  %p7101_p6 = scmp.lt.s32.totalorder %s110_s1, %s110_s1 }
  0x34   :  { %p7097_p5 = scmp.ne.s32.totalorder %s110_s1, %s7096_s26  ;;  %p7102_p7 = scmp.lt.s32.totalorder %s7096_s26, %s7096_s26 }
  0x36   :  { %p7103_p8 = por %p7102_p7, %p7101_p6 }
  0x38   :  { %p7104_p9 = pnand %p7103_p8, %p7097_p5 }
  0x3a   :  { %7107 = shalt.err (!%p7104_p9)
}
  0x3b   :  { %112 = dma.hbm_to_vmem [thread:$0]  %s8901_s13, 32, %s110_s1, [#allocation12]  }
  0x3c   :  { %s7301_s27 = smov [#allocation14]   ;;  %s7302_s4 = smov [#allocation17]  }
  0x3d   :  { %s131_s7 = sshll.u32 %s7301_s27, 4  ;;  %s153_s29 = sshll.u32 %s7302_s4, 4  ;;  %s132_s7 = int_to_ptr.vmem [resolvable:$true] %s131_s7  ;;  %s154_s29 = int_to_ptr.vmem [resolvable:$true] %s153_s29 }
  0x3e   :  { %s7108_s23 = scalar_lea.hbm %s8903_s15, 16 }
  0x3f   :  { %p7109_p10 = scmp.ne.s32.totalorder %s8903_s15, %s7108_s23  ;;  %p7112_p11 = scmp.lt.u32.totalorder %s7108_s23, %s8903_s15 }
  0x41   :  { %p7114_p12 = pnand %p7112_p11, %p7109_p10 }
  0x43   :  { %7117 = shalt.err (!%p7114_p12)
}
  0x44   :  { %s7118_s13 = scalar_lea.vmem %s132_s7, 16  ;;  %s7122_s1 = scalar_lea.vmem %s132_s7, 32 }
  0x45   :  { %p7119_p13 = scmp.ne.s32.totalorder %s132_s7, %s7118_s13  ;;  %p7123_p0 = scmp.lt.s32.totalorder %s132_s7, %s132_s7 }
  0x46   :  { %p7124_p1 = scmp.lt.s32.totalorder %s7122_s1, %s7118_s13 }
  0x48   :  { %p7125_p2 = por %p7124_p1, %p7123_p0 }
  0x4a   :  { %p7126_p3 = pnand %p7125_p2, %p7119_p13 }
  0x4c   :  { %7129 = shalt.err (!%p7126_p3)
}
  0x4d   :  { %134 = dma.hbm_to_vmem [thread:$0]  %s8903_s15, 16, %s132_s7, [#allocation15]  }
  0x4e   :  { %s7130_s4 = scalar_lea.hbm %s8905_s17, 16 }
  0x4f   :  { %p7131_p4 = scmp.ne.s32.totalorder %s8905_s17, %s7130_s4  ;;  %p7134_p5 = scmp.lt.u32.totalorder %s7130_s4, %s8905_s17 }
  0x51   :  { %p7136_p6 = pnand %p7134_p5, %p7131_p4 }
  0x53   :  { %7139 = shalt.err (!%p7136_p6)
}
  0x54   :  { %s7140_s2 = scalar_lea.vmem %s154_s29, 16  ;;  %s7144_s25 = scalar_lea.vmem %s154_s29, 32 }
  0x55   :  { %p7141_p7 = scmp.ne.s32.totalorder %s154_s29, %s7140_s2  ;;  %p7145_p8 = scmp.lt.s32.totalorder %s154_s29, %s154_s29 }
  0x56   :  { %p7146_p9 = scmp.lt.s32.totalorder %s7144_s25, %s7140_s2 }
  0x58   :  { %p7147_p10 = por %p7146_p9, %p7145_p8 }
  0x5a   :  { %p7148_p11 = pnand %p7147_p10, %p7141_p7 }
  0x5c   :  { %7151 = shalt.err (!%p7148_p11)
}
  0x5d   :  { %156 = dma.hbm_to_vmem [thread:$0]  %s8905_s17, 16, %s154_s29, [#allocation18]  }
  0x5e   :  { %s7303_s3 = smov [#allocation3]   ;;  %s7304_s1 = smov [#allocation7]  }
  0x5f   :  { %s40_s13 = sshll.u32 %s7303_s3, 4  ;;  %s75_s26 = sshll.u32 %s7304_s1, 4  ;;  %s41_s13 = int_to_ptr.vmem [resolvable:$true] %s40_s13  ;;  %s76_s26 = int_to_ptr.vmem [resolvable:$true] %s75_s26 }
  0x60   :  { %s8918_s27 = sld [smem:[#allocation28_spill]] }
  0x66   :  { %s7152_s4 = scalar_lea.hbm %s8918_s27, 512 }
  0x67   :  { %p7153_p12 = scmp.ne.s32.totalorder %s8918_s27, %s7152_s4  ;;  %p7156_p13 = scmp.lt.u32.totalorder %s7152_s4, %s8918_s27 }
  0x69   :  { %p7158_p0 = pnand %p7156_p13, %p7153_p12 }
  0x6b   :  { %7161 = shalt.err (!%p7158_p0)
}
  0x6c   :  { %s7162_s17 = scalar_lea.vmem %s41_s13, 512  ;;  %p7167_p2 = scmp.lt.s32.totalorder %s41_s13, %s41_s13 }
  0x6d   :  { %p7163_p1 = scmp.ne.s32.totalorder %s41_s13, %s7162_s17  ;;  %p7168_p3 = scmp.lt.s32.totalorder %s7162_s17, %s7162_s17 }
  0x6f   :  { %p7169_p4 = por %p7168_p3, %p7167_p2 }
  0x71   :  { %p7170_p5 = pnand %p7169_p4, %p7163_p1 }
  0x73   :  { %7173 = shalt.err (!%p7170_p5)
}
  0x74   :  { %46 = dma.hbm_to_vmem [thread:$0]  %s8918_s27, 512, %s41_s13, [#allocation4], %s7299_s22, %s7299_s22, %s7300_s28  }
  0x75   :  { %s7174_s7 = scalar_lea.hbm %s8898_s10, 32 }
  0x76   :  { %p7175_p6 = scmp.ne.s32.totalorder %s8898_s10, %s7174_s7  ;;  %p7178_p7 = scmp.lt.u32.totalorder %s7174_s7, %s8898_s10 }
  0x78   :  { %p7180_p8 = pnand %p7178_p7, %p7175_p6 }
  0x7a   :  { %7183 = shalt.err (!%p7180_p8)
}
  0x7b   :  { %s7184_s4 = scalar_lea.vmem %s76_s26, 32  ;;  %p7189_p10 = scmp.lt.s32.totalorder %s76_s26, %s76_s26 }
  0x7c   :  { %p7185_p9 = scmp.ne.s32.totalorder %s76_s26, %s7184_s4  ;;  %p7190_p11 = scmp.lt.s32.totalorder %s7184_s4, %s7184_s4 }
  0x7e   :  { %p7191_p12 = por %p7190_p11, %p7189_p10 }
  0x80   :  { %p7192_p13 = pnand %p7191_p12, %p7185_p9 }
  0x82   :  { %7195 = shalt.err (!%p7192_p13)
}
  0x83   :  { %78 = dma.hbm_to_vmem [thread:$0]  %s8898_s10, 32, %s76_s26, [#allocation6]  }
  0x84   :  { %s7305_s30 = smov [#allocation10]   ;;  %s7306_s23 = smov [#allocation13]  }
  0x85   :  { %s96_s21 = sshll.u32 %s7305_s30, 4  ;;  %s118_s24 = sshll.u32 %s7306_s23, 4  ;;  %s97_s21 = int_to_ptr.vmem [resolvable:$true] %s96_s21  ;;  %s119_s24 = int_to_ptr.vmem [resolvable:$true] %s118_s24 }
  0x86   :  { %s7196_s2 = scalar_lea.hbm %s8900_s12, 2048 }
  0x87   :  { %p7197_p0 = scmp.ne.s32.totalorder %s8900_s12, %s7196_s2  ;;  %p7200_p1 = scmp.lt.u32.totalorder %s7196_s2, %s8900_s12 }
  0x89   :  { %p7202_p2 = pnand %p7200_p1, %p7197_p0 }
  0x8b   :  { %7205 = shalt.err (!%p7202_p2)
}
  0x8c   :  { %s7206_s10 = scalar_lea.vmem %s97_s21, 2048  ;;  %p7211_p4 = scmp.lt.s32.totalorder %s97_s21, %s97_s21 }
  0x8d   :  { %p7207_p3 = scmp.ne.s32.totalorder %s97_s21, %s7206_s10  ;;  %p7212_p5 = scmp.lt.s32.totalorder %s7206_s10, %s7206_s10 }
  0x8f   :  { %p7213_p6 = por %p7212_p5, %p7211_p4 }
  0x91   :  { %p7214_p7 = pnand %p7213_p6, %p7207_p3 }
  0x93   :  { %7217 = shalt.err (!%p7214_p7)
}
  0x94   :  { %102 = dma.hbm_to_vmem [thread:$0]  %s8900_s12, 2048, %s97_s21, [#allocation9], %s7299_s22, %s7299_s22, %s7300_s28  }
  0x95   :  { %s7218_s4 = scalar_lea.hbm %s8902_s14, 1024 }
  0x96   :  { %p7219_p8 = scmp.ne.s32.totalorder %s8902_s14, %s7218_s4  ;;  %p7222_p9 = scmp.lt.u32.totalorder %s7218_s4, %s8902_s14 }
  0x98   :  { %p7224_p10 = pnand %p7222_p9, %p7219_p8 }
  0x9a   :  { %7227 = shalt.err (!%p7224_p10)
}
  0x9b   :  { %s7228_s17 = scalar_lea.vmem %s119_s24, 1024  ;;  %p7233_p12 = scmp.lt.s32.totalorder %s119_s24, %s119_s24 }
  0x9c   :  { %p7229_p11 = scmp.ne.s32.totalorder %s119_s24, %s7228_s17  ;;  %p7234_p13 = scmp.lt.s32.totalorder %s7228_s17, %s7228_s17 }
  0x9e   :  { %p7235_p0 = por %p7234_p13, %p7233_p12 }
  0xa0   :  { %p7236_p1 = pnand %p7235_p0, %p7229_p11 }
  0xa2   :  { %7239 = shalt.err (!%p7236_p1)
}
  0xa3   :  { %s7307_s12 = smov 128   ;;  %s7308_s22 = smov 8  }
  0xa4   :  { %124 = dma.hbm_to_vmem [thread:$0]  %s8902_s14, 1024, %s119_s24, [#allocation12], %s7307_s12, %s7307_s12, %s7308_s22  }
  0xa5   :  { %s7309_s29 = smov [#allocation16]   ;;  %s7310_s25 = smov [#allocation19]  }
  0xa6   :  { %s140_s2 = sshll.u32 %s7309_s29, 4  ;;  %s165_s15 = sshll.u32 %s7310_s25, 4  ;;  %s141_s2 = int_to_ptr.vmem [resolvable:$true] %s140_s2  ;;  %s166_s15 = int_to_ptr.vmem [resolvable:$true] %s165_s15 }
  0xa7   :  { %s7240_s10 = scalar_lea.hbm %s8904_s16, 1024 }
  0xa8   :  { %p7241_p2 = scmp.ne.s32.totalorder %s8904_s16, %s7240_s10  ;;  %p7244_p3 = scmp.lt.u32.totalorder %s7240_s10, %s8904_s16 }
  0xaa   :  { %p7246_p4 = pnand %p7244_p3, %p7241_p2 }
  0xac   :  { %7249 = shalt.err (!%p7246_p4)
}
  0xad   :  { %s7250_s14 = scalar_lea.vmem %s141_s2, 1024  ;;  %p7255_p6 = scmp.lt.s32.totalorder %s141_s2, %s141_s2 }
  0xae   :  { %p7251_p5 = scmp.ne.s32.totalorder %s141_s2, %s7250_s14  ;;  %p7256_p7 = scmp.lt.s32.totalorder %s7250_s14, %s7250_s14 }
  0xb0   :  { %p7257_p8 = por %p7256_p7, %p7255_p6 }
  0xb2   :  { %p7258_p9 = pnand %p7257_p8, %p7251_p5 }
  0xb4   :  { %7261 = shalt.err (!%p7258_p9)
}
  0xb5   :  { %146 = dma.hbm_to_vmem [thread:$0]  %s8904_s16, 1024, %s141_s2, [#allocation15], %s7307_s12, %s7307_s12, %s7308_s22  }
  0xb6   :  { %s7262_s30 = scalar_lea.hbm %s8907_s19, 16 }
  0xb7   :  { %p7263_p10 = scmp.ne.s32.totalorder %s8907_s19, %s7262_s30  ;;  %p7266_p11 = scmp.lt.u32.totalorder %s7262_s30, %s8907_s19 }
  0xb9   :  { %p7268_p12 = pnand %p7266_p11, %p7263_p10 }
  0xbb   :  { %7271 = shalt.err (!%p7268_p12)
}
  0xbc   :  { %s7272_s29 = scalar_lea.vmem %s166_s15, 16  ;;  %s7276_s25 = scalar_lea.vmem %s166_s15, 32 }
  0xbd   :  { %p7273_p13 = scmp.ne.s32.totalorder %s166_s15, %s7272_s29  ;;  %p7277_p0 = scmp.lt.s32.totalorder %s166_s15, %s166_s15 }
  0xbe   :  { %p7278_p1 = scmp.lt.s32.totalorder %s7276_s25, %s7272_s29 }
  0xc0   :  { %p7279_p2 = por %p7278_p1, %p7277_p0 }
  0xc2   :  { %p7280_p3 = pnand %p7279_p2, %p7273_p13 }
  0xc4   :  { %7283 = shalt.err (!%p7280_p3)
}
  0xc5   :  { %168 = dma.hbm_to_vmem [thread:$0]  %s8907_s19, 16, %s166_s15, [#allocation18]  }
  0xc6   :  { %7284 = dma.done.wait [#allocation4], 512  }
  0xc7   :  { %7285 = vsyncadd [#allocation4], 4294966784 }
  0xc8   :  { %7286 = dma.done.wait [#allocation6], 64  }
  0xc9   :  { %7287 = vsyncadd [#allocation6], 4294967232 }
  0xca   :  { %7288 = dma.done.wait [#allocation9], 4096  }
  0xcb   :  { %7289 = vsyncadd [#allocation9], 4294963200 }
  0xcc   :  { %7290 = dma.done.wait [#allocation12], 1056  }
  0xcd   :  { %7291 = vsyncadd [#allocation12], 4294966240 }
  0xce   :  { %7292 = dma.done.wait [#allocation15], 1040  }
  0xcf   :  { %7293 = vsyncadd [#allocation15], 4294966256 }
  0xd0   :  { %7294 = dma.done.wait [#allocation18], 32  }
  0xd1   :  { %7295 = vsyncadd [#allocation18], 4294967264  ;;  %v7311_v0 = vmov 0   ;;  %s8919_s7 = sld [smem:[#allocation26_spill]]  ;;  %s8920_s26 = sld [smem:[#allocation27_spill]]  ;;  %v7312_v9 = vmov 1   ;;  %v204_v34 = vlaneseq }
  0xd2   :  { %6504 = vset.pattern.permute.xlu1 %v7311_v0  ;;  %6502 = vset.pattern.permute.xlu0 %v7311_v0  ;;  %v320_v15 = vld [vmem:[#allocation3 + $0x8] sm:$0xff]  ;;  %v322_v16 = vld [vmem:[#allocation3 + $0x18] sm:$0xff]  ;;  %v319_v17 = vld [vmem:[#allocation3] sm:$0xff]  ;;  %v7313_v40 = vmov 1.0   ;;  %s8921_s27 = sld [smem:[#allocation29_spill]]  ;;  %v7314_v46 = vmov 0.0  }
  0xd3   :  { %v5869_v18 = vpack.c.bf16 %v322_v16, %v320_v15  ;;  %v321_v19 = vld [vmem:[#allocation3 + $0x10] sm:$0xff]  ;;  %v205_v37 = vand.u32 127, %v204_v34  ;;  %411 = vmatprep.mubr.f32.mxu1 %v7314_v46  ;;  %vm340_vm6 = vcmask 130048   ;;  %s8922_s16 = sld [smem:[#allocation30_spill]]  ;;  %s7315_s12 = smov 64   ;;  %vm567_vm7 = vcmask 254976  }
  0xd4   :  { %v5871_v21 = vpack.c.bf16 %v321_v19, %v319_v17  ;;  %s7316_s22 = smov 32   ;;  %vm573_vm8 = vcmask 517376   ;;  %vm575_vm9 = vcmask 261120   ;;  %vm435_vm10 = vcmask 523264  }
  0xd5   :  { %5870 = vmatprep.subr.bf16.mxu1 %v5869_v18  ;;  %vm5547_vm11 = vcmask 80896  }
  0xd6   :  { %5872 = vmatpush1.bf16.msra.mxu1 %v5871_v21 }
  0xd7   :  { %v203_v1 = vld [vmem:[%s8919_s7 + $0x8] sm:$0xff]  ;;  %v202_v2 = vld [vmem:[%s8919_s7] sm:$0xff]  ;;  %v230_v5 = vld [vmem:[%s8920_s26 + $0x10] sm:$0xff] }
  0xd8   :  { %v228_v3 = vld [vmem:[%s8920_s26] sm:$0xff]  ;;  %210 = vperm.xlu1 %6504, %v203_v1   ;;  %207 = vperm.xlu0 %6502, %v202_v2   ;;  %v229_v4 = vld [vmem:[%s8920_s26 + $0x8] sm:$0xff]  ;;  %v231_v6 = vld [vmem:[%s8920_s26 + $0x18] sm:$0xff] }
  0xd9   :  { %v5837_v7 = vpack.c.bf16 %v229_v4, %v228_v3  ;;  %v5841_v8 = vpack.c.bf16 %v231_v6, %v230_v5  ;;  %v232_v10 = vld [vmem:[%s8920_s26 + $0x20] sm:$0xff]  ;;  %v233_v11 = vld [vmem:[%s8920_s26 + $0x28] sm:$0xff]  ;;  %v234_v13 = vld [vmem:[%s8920_s26 + $0x30] sm:$0xff] }
  0xda   :  { %v5845_v12 = vpack.c.bf16 %v233_v11, %v232_v10  ;;  %v235_v14 = vld [vmem:[%s8920_s26 + $0x38] sm:$0xff]  ;;  %v236_v22 = vld [vmem:[%s8920_s26 + $0x40] sm:$0xff]  ;;  %v237_v23 = vld [vmem:[%s8920_s26 + $0x48] sm:$0xff] }
  0xdb   :  { %5838 = vmatprep.subr.bf16.mxu0 %v5837_v7  ;;  %v5849_v20 = vpack.c.bf16 %v235_v14, %v234_v13  ;;  %v5853_v24 = vpack.c.bf16 %v237_v23, %v236_v22  ;;  %v238_v25 = vld [vmem:[%s8920_s26 + $0x50] sm:$0xff]  ;;  %v239_v26 = vld [vmem:[%s8920_s26 + $0x58] sm:$0xff]  ;;  %v240_v28 = vld [vmem:[%s8920_s26 + $0x60] sm:$0xff] }
  0xdc   :  { %6505 = vset.pattern.permute.xlu1 %v7312_v9  ;;  %6503 = vset.pattern.permute.xlu0 %v7312_v9  ;;  %v5857_v27 = vpack.c.bf16 %v239_v26, %v238_v25  ;;  %v241_v29 = vld [vmem:[%s8920_s26 + $0x68] sm:$0xff]  ;;  %v242_v31 = vld [vmem:[%s8920_s26 + $0x70] sm:$0xff]  ;;  %v243_v32 = vld [vmem:[%s8920_s26 + $0x78] sm:$0xff] }
  0xdd   :  { %218 = vperm.xlu1 %6505, %v203_v1   ;;  %215 = vperm.xlu0 %6503, %v202_v2   ;;  %v5861_v30 = vpack.c.bf16 %v241_v29, %v240_v28  ;;  %v5865_v33 = vpack.c.bf16 %v243_v32, %v242_v31  ;;  %v324_v41 = vld [vmem:[%s8921_s27 + $0x8] sm:$0xff]  ;;  %v326_v42 = vld [vmem:[%s8921_s27 + $0x18] sm:$0xff]  ;;  %v323_v44 = vld [vmem:[%s8921_s27] sm:$0xff] }
  0xde   :  { %5840 = vmatpush3.bf16.msra.mxu0 %v5837_v7  ;;  %v7624_v43 = vpack.c.bf16 %v326_v42, %v324_v41  ;;  %v325_v45 = vld [vmem:[%s8921_s27 + $0x10] sm:$0xff]  ;;  %v328_v48 = vld [vmem:[%s8921_s27 + $0x28] sm:$0xff]  ;;  %v330_v49 = vld [vmem:[%s8921_s27 + $0x38] sm:$0xff]  ;;  %v426_v7 = vshrl.u32 %v204_v34, 7 }
  0xdf   :  { %5842 = vmatprep.subr.bf16.mxu0 %v5841_v8  ;;  %v7634_v47 = vpack.c.bf16 %v325_v45, %v323_v44  ;;  %v7645_v50 = vpack.c.bf16 %v330_v49, %v328_v48  ;;  %v327_v51 = vld [vmem:[%s8921_s27 + $0x20] sm:$0xff]  ;;  %v329_v52 = vld [vmem:[%s8921_s27 + $0x30] sm:$0xff]  ;;  %v332_v54 = vld [vmem:[%s8921_s27 + $0x48] sm:$0xff] }
  0xe0   :  { %5874 = vmatprep.subr.bf16.mxu1 %v7624_v43  ;;  %v7653_v53 = vpack.c.bf16 %v329_v52, %v327_v51  ;;  %v334_v55 = vld [vmem:[%s8921_s27 + $0x58] sm:$0xff]  ;;  %v331_v57 = vld [vmem:[%s8921_s27 + $0x40] sm:$0xff]  ;;  %v333_v58 = vld [vmem:[%s8921_s27 + $0x50] sm:$0xff]  ;;  %v7723_v9 = vsub.s32 0, %v426_v7  ;;  %v7728_v11 = vsub.s32 1, %v426_v7 }
  0xe1   :  { %v7663_v56 = vpack.c.bf16 %v334_v55, %v332_v54  ;;  %v7671_v59 = vpack.c.bf16 %v333_v58, %v331_v57  ;;  %v336_v60 = vld [vmem:[%s8921_s27 + $0x68] sm:$0xff]  ;;  %v338_v61 = vld [vmem:[%s8921_s27 + $0x78] sm:$0xff]  ;;  %v335_v63 = vld [vmem:[%s8921_s27 + $0x60] sm:$0xff] }
  0xe2   :  { %5844 = vmatpush3.bf16.msra.mxu0 %v5841_v8  ;;  %v7681_v62 = vpack.c.bf16 %v338_v61, %v336_v60  ;;  %v337_v0 = vld [vmem:[%s8921_s27 + $0x70] sm:$0xff]  ;;  %v339_v10 = vld [vmem:[%s8922_s16] sm:$0x3] }
  0xe3   :  { %5846 = vmatprep.subr.bf16.mxu0 %v5845_v12  ;;  %v7689_v1 = vpack.c.bf16 %v337_v0, %v335_v63  ;;  %v7734_v13 = vrot.slane %v339_v10, %v7728_v11 }
  0xe6   :  { %5848 = vmatpush3.bf16.msra.mxu0 %v5845_v12  ;;  %v7731_v12 = vrot.slane %v339_v10, %v7723_v9 }
  0xe7   :  { %5850 = vmatprep.subr.bf16.mxu0 %v5849_v20 }
  0xea   :  { %5852 = vmatpush3.bf16.msra.mxu0 %v5849_v20 }
  0xeb   :  { %5854 = vmatprep.subr.bf16.mxu0 %v5853_v24 }
  0xee   :  { %5856 = vmatpush3.bf16.msra.mxu0 %v5853_v24 }
  0xef   :  { %5858 = vmatprep.subr.bf16.mxu0 %v5857_v27 }
  0xf2   :  { %5860 = vmatpush3.bf16.msra.mxu0 %v5857_v27 }
  0xf3   :  { %5862 = vmatprep.subr.bf16.mxu0 %v5861_v30 }
  0xf6   :  { %5864 = vmatpush3.bf16.msra.mxu0 %v5861_v30 }
  0xf7   :  { %5866 = vmatprep.subr.bf16.mxu0 %v5865_v33 }
  0xfa   :  { %5868 = vmatpush3.bf16.msra.mxu0 %v5865_v33 }
  0xfb   :  { %5906 = vmatprep.subr.bf16.mxu0 %v7624_v43 }
 0x157   :  { %v208_v35 = vpop.permute.xlu0 %207  ;;  %v211_v36 = vpop.permute.xlu1 %210 }
 0x158   :  { %vm213_vm0 = vcmp.eq.s32.totalorder %v205_v37, %v211_v36  ;;  %vm212_vm4 = vcmp.eq.s32.totalorder %v205_v37, %v208_v35 }
 0x15c   :  { %v219_v38 = vpop.permute.xlu1 %218  ;;  %v216_v39 = vpop.permute.xlu0 %215 }
 0x15d   :  { %vm221_vm1 = vcmp.eq.s32.totalorder %v205_v37, %v219_v38  ;;  %vm220_vm2 = vcmp.eq.s32.totalorder %v205_v37, %v216_v39 }
 0x15e   :  { %vm223_vm3 = vmor %vm213_vm0, %vm221_vm1 }
 0x15f   :  { %vm222_vm5 = vmor %vm212_vm4, %vm220_vm2 }
 0x160   :  { %5777 = vmatprep.mubr.msk.f32.mxu0 %vm222_vm5, %v7313_v40 }
 0x161   :  { %5778 = vmatmul.mubr.msk.f32.vlgmr.msra.gmra.mrb[0].mxu0 %vm223_vm3, %v7313_v40 }
 0x162   :  { %784 = vmatprep.mubr.f32.mxu0 %v7314_v46  ;;  %5908 = vmatpush1.bf16.msra.mxu0 %v7634_v47 }
 0x163   :  { %5910 = vmatprep.subr.bf16.mxu0 %v7645_v50 }
 0x166   :  { %5912 = vmatpush1.bf16.msra.mxu0 %v7653_v53 }
 0x167   :  { %5914 = vmatprep.subr.bf16.mxu0 %v7663_v56 }
 0x16a   :  { %5916 = vmatpush1.bf16.msra.mxu0 %v7671_v59 }
 0x16b   :  { %5918 = vmatprep.subr.bf16.mxu0 %v7681_v62 }
 0x16e   :  { %5920 = vmatpush1.bf16.msra.mxu0 %v7689_v1 }
 0x16f   :  { %5938 = vmatprep.subr.bf16.mxu0 %v7624_v43 }
 0x234   :  { %v5779_v2 = vpop.f32.mrb[0].mxu0 }
 0x235   :  { %v310_v3 = vpop.f32.mrb[1].mxu0 }
 0x236   :  { %5586 = vmatmul.mubr.msk.f32.vlgmr.msra.gmra.mrb[0].mxu1 %vm340_vm6, %v310_v3 }
 0x237   :  { %5876 = vmatpush1.bf16.msra.mxu1 %v7634_v47  ;;  %417 = vmatprep.mubr.f32.mxu1 %v7314_v46 }
 0x238   :  { %5878 = vmatprep.subr.bf16.mxu1 %v7645_v50 }
 0x23a   :  { %5587 = vmatmul.mubr.msk.f32.gmra.mrb[2].mxu1 %vm340_vm6, %v5779_v2 }
 0x23b   :  { %5880 = vmatpush1.bf16.msra.mxu1 %v7653_v53  ;;  %503 = vmatprep.mubr.f32.mxu1 %v7314_v46 }
 0x23c   :  { %5882 = vmatprep.subr.bf16.mxu1 %v7663_v56 }
 0x23f   :  { %5884 = vmatpush1.bf16.msra.mxu1 %v7671_v59 }
 0x240   :  { %5886 = vmatprep.subr.bf16.mxu1 %v7681_v62 }
 0x243   :  { %5888 = vmatpush1.bf16.msra.mxu1 %v7689_v1 }
 0x244   :  { %5890 = vmatprep.subr.bf16.mxu1 %v7624_v43 }
 0x246   :  { %504 = vmatmul.mubr.f32.vlgmr.msra.gmra.mrb[4].mxu1 %v7314_v46 }
 0x247   :  { %5892 = vmatpush1.bf16.msra.mxu1 %v7634_v47  ;;  %644 = vmatprep.mubr.f32.mxu1 %v7314_v46 }
 0x248   :  { %5894 = vmatprep.subr.bf16.mxu1 %v7645_v50 }
 0x24b   :  { %5896 = vmatpush1.bf16.msra.mxu1 %v7653_v53 }
 0x24c   :  { %5898 = vmatprep.subr.bf16.mxu1 %v7663_v56 }
 0x24f   :  { %5900 = vmatpush1.bf16.msra.mxu1 %v7671_v59 }
 0x250   :  { %5902 = vmatprep.subr.bf16.mxu1 %v7681_v62 }
 0x253   :  { %5904 = vmatpush1.bf16.msra.mxu1 %v7689_v1 }
 0x254   :  { %5922 = vmatprep.subr.bf16.mxu1 %v7624_v43 }
 0x309   :  { %v7714_v4 = vpop.f32.mrb[0].mxu1 }
 0x30a   :  { %v7716_v5 = vpop.f32.mrb[1].mxu1  ;;  %v652_v58 = vrot.slane %v7714_v4, 2 }
 0x30d   :  { %v7718_v6 = vpop.f32.mrb[2].mxu1 }
 0x30e   :  { %v7721_v8 = vpop.f32.mrb[3].mxu1 }
 0x30f   :  { %v512_v18 = vrot.slane %v7721_v8, 6  ;;  %v655_v63 = vrot.slane %v7721_v8, 4 }
 0x319   :  { %v505_v14 = vpop.f32.mrb[4].mxu1 }
 0x31a   :  { %v506_v15 = vadd.f32 %v505_v14, %v7731_v12  ;;  %v507_v16 = vpop.f32.mrb[5].mxu1 }
 0x31b   :  { %v508_v17 = vadd.f32 %v507_v16, %v7734_v13 }
 0x31c   :  { %v510_v19 = vadd.f32 %v506_v15, %v7714_v4 }
 0x31d   :  { %v514_v20 = vadd.f32 %v512_v18, %v508_v17 }
 0x31e   :  { %6506 = vtanh.f32 %v510_v19  ;;  %v5588_v23 = vmul.f32 -1.442695, %v510_v19 }
 0x31f   :  { %6508 = vtanh.f32 %v514_v20  ;;  %v5589_v24 = vmul.f32 -1.442695, %v514_v20 }
 0x320   :  { %6510 = vpow2.f32 %v5588_v23 }
 0x321   :  { %6512 = vpow2.f32 %v5589_v24 }
 0x328   :  { %v6507_v21 = vpop.eup %6506 }
 0x329   :  { %v6509_v22 = vpop.eup %6508  ;;  %524 = vrot.lane.b32.xlu1 %v6507_v21, %s7315_s12 }
 0x32a   :  { %548 = vrot.lane.b32.xlu0 %v6509_v22, %s7315_s12  ;;  %v6511_v25 = vpop.eup %6510 }
 0x32b   :  { %v6513_v26 = vpop.eup %6512  ;;  %v518_v27 = vadd.f32 1.0, %v6511_v25 }
 0x32c   :  { %v542_v28 = vadd.f32 1.0, %v6513_v26 }
 0x32d   :  { %6514 = vrcp.f32 %v518_v27 }
 0x32e   :  { %6516 = vrcp.f32 %v542_v28 }
 0x337   :  { %v6515_v29 = vpop.eup %6514 }
 0x338   :  { %v6517_v31 = vpop.eup %6516  ;;  %v522_v35 = vmul.f32 0.0, %v6515_v29 }
 0x339   :  { %v546_v37 = vmul.f32 0.0, %v6517_v31 }
 0x39b   :  { %v525_v30 = vpop.permute.xlu1 %524 }
 0x39c   :  { %v527_v32 = vmul.f32 %v6515_v29, %v525_v30  ;;  %v549_v33 = vpop.permute.xlu0 %548 }
 0x39d   :  { %v551_v34 = vmul.f32 %v6517_v31, %v549_v33 }
 0x39e   :  { %529 = vrot.lane.b32.xlu1 %v527_v32, %s7316_s22 }
 0x39f   :  { %553 = vrot.lane.b32.xlu0 %v551_v34, %s7316_s22 }
 0x410   :  { %v530_v36 = vpop.permute.xlu1 %529 }
 0x411   :  { %v7744_v38 = vadd.f32 %v530_v36, %v522_v35  ;;  %v554_v39 = vpop.permute.xlu0 %553 }
 0x412   :  { %v7746_v40 = vadd.f32 %v554_v39, %v546_v37 }
 0x413   :  { %6518 = vtanh.f32 %v7744_v38 }
 0x414   :  { %6520 = vtanh.f32 %v7746_v40 }
 0x41d   :  { %v6519_v41 = vpop.eup %6518 }
 0x41e   :  { %v6521_v42 = vpop.eup %6520  ;;  %535 = vrot.lane.b32.xlu1 %v6519_v41, %s7315_s12 }
 0x41f   :  { %559 = vrot.lane.b32.xlu0 %v6521_v42, %s7315_s12  ;;  %v791_v42 = vrot.slane %v7714_v4, 4 }
 0x490   :  { %v536_v44 = vpop.permute.xlu1 %535 }
 0x491   :  { %v538_v45 = vmul.f32 %v6515_v29, %v536_v44  ;;  %v560_v48 = vpop.permute.xlu0 %559 }
 0x492   :  { %v562_v49 = vmul.f32 %v6517_v31, %v560_v48  ;;  %v794_v48 = vrot.slane %v7721_v8, 2 }
 0x493   :  { %564 = vrot.lane.b32.xlu1 %v538_v45, %s7316_s22 }
 0x494   :  { %570 = vrot.lane.b32.xlu0 %v562_v49, %s7315_s12 }
 0x505   :  { %v565_v51 = vpop.permute.xlu1 %564 }
 0x506   :  { %568 = vst.msk [vmem:[#allocation2] sm:$0x3] %vm567_vm7, %v565_v51  ;;  %v571_v52 = vpop.permute.xlu0 %570 }
 0x507   :  { %574 = vst.msk [vmem:[#allocation2 + $0xe] sm:$0x3] %vm573_vm8, %v571_v52  ;;  %v576_v54 = vsel %vm575_vm9, %v565_v51, %v571_v52 }
 0x508   :  { %5590 = vmatmul.mubr.msk.f32.vlgmr.msra.gmra.mrb[6].mxu1 %vm435_vm10, %v576_v54 }
 0x509   :  { %5924 = vmatpush1.bf16.msra.mxu1 %v7634_v47  ;;  %923 = vmatprep.mubr.f32.mxu1 %v7314_v46 }
 0x50a   :  { %5926 = vmatprep.subr.bf16.mxu1 %v7645_v50 }
 0x50d   :  { %5928 = vmatpush1.bf16.msra.mxu1 %v7653_v53 }
 0x50e   :  { %5930 = vmatprep.subr.bf16.mxu1 %v7663_v56 }
 0x511   :  { %5932 = vmatpush1.bf16.msra.mxu1 %v7671_v59 }
 0x512   :  { %5934 = vmatprep.subr.bf16.mxu1 %v7681_v62 }
 0x515   :  { %5936 = vmatpush1.bf16.msra.mxu1 %v7689_v1 }
 0x516   :  { %5954 = vmatprep.subr.bf16.mxu1 %v7624_v43 }
 0x5db   :  { %v646_v55 = vpop.f32.mrb[6].mxu1 }
 0x5dc   :  { %v647_v57 = vadd.f32 %v646_v55, %v7731_v12  ;;  %v648_v60 = vpop.f32.mrb[7].mxu1 }
 0x5dd   :  { %v649_v61 = vadd.f32 %v648_v60, %v7734_v13 }
 0x5de   :  { %v654_v0 = vadd.f32 %v652_v58, %v647_v57 }
 0x5df   :  { %v657_v2 = vadd.f32 %v655_v63, %v649_v61 }
 0x5e0   :  { %6522 = vtanh.f32 %v654_v0  ;;  %v5591_v10 = vmul.f32 -1.442695, %v654_v0 }
 0x5e1   :  { %6524 = vtanh.f32 %v657_v2  ;;  %v5592_v14 = vmul.f32 -1.442695, %v657_v2 }
 0x5e2   :  { %6526 = vpow2.f32 %v5591_v10 }
 0x5e3   :  { %6528 = vpow2.f32 %v5592_v14 }
 0x5ea   :  { %v6523_v3 = vpop.eup %6522 }
 0x5eb   :  { %v6525_v7 = vpop.eup %6524  ;;  %667 = vrot.lane.b32.xlu1 %v6523_v3, %s7315_s12 }
 0x5ec   :  { %691 = vrot.lane.b32.xlu0 %v6525_v7, %s7315_s12  ;;  %v6527_v15 = vpop.eup %6526 }
 0x5ed   :  { %v6529_v16 = vpop.eup %6528  ;;  %v661_v17 = vadd.f32 1.0, %v6527_v15 }
 0x5ee   :  { %v685_v18 = vadd.f32 1.0, %v6529_v16 }
 0x5ef   :  { %6530 = vrcp.f32 %v661_v17 }
 0x5f0   :  { %6532 = vrcp.f32 %v685_v18 }
 0x5f9   :  { %v6531_v19 = vpop.eup %6530 }
 0x5fa   :  { %v6533_v21 = vpop.eup %6532  ;;  %v665_v25 = vmul.f32 %v6531_v19, %v7744_v38 }
 0x5fb   :  { %v689_v27 = vmul.f32 %v6533_v21, %v7746_v40 }
 0x65d   :  { %v668_v20 = vpop.permute.xlu1 %667 }
 0x65e   :  { %v670_v22 = vmul.f32 %v6531_v19, %v668_v20  ;;  %v692_v23 = vpop.permute.xlu0 %691 }
 0x65f   :  { %v694_v24 = vmul.f32 %v6533_v21, %v692_v23 }
 0x660   :  { %672 = vrot.lane.b32.xlu1 %v670_v22, %s7316_s22 }
 0x661   :  { %696 = vrot.lane.b32.xlu0 %v694_v24, %s7316_s22 }
 0x6d2   :  { %v673_v26 = vpop.permute.xlu1 %672 }
 0x6d3   :  { %v675_v28 = vadd.f32 %v673_v26, %v665_v25  ;;  %v697_v29 = vpop.permute.xlu0 %696 }
 0x6d4   :  { %v699_v30 = vadd.f32 %v697_v29, %v689_v27 }
 0x6d5   :  { %6534 = vtanh.f32 %v675_v28 }
 0x6d6   :  { %6536 = vtanh.f32 %v699_v30 }
 0x6df   :  { %v6535_v31 = vpop.eup %6534 }
 0x6e0   :  { %v6537_v32 = vpop.eup %6536  ;;  %678 = vrot.lane.b32.xlu1 %v6535_v31, %s7315_s12 }
 0x6e1   :  { %702 = vrot.lane.b32.xlu0 %v6537_v32, %s7315_s12  ;;  %v930_v32 = vrot.slane %v7714_v4, 6 }
 0x752   :  { %v679_v33 = vpop.permute.xlu1 %678 }
 0x753   :  { %v681_v34 = vmul.f32 %v6531_v19, %v679_v33  ;;  %v703_v35 = vpop.permute.xlu0 %702 }
 0x754   :  { %v705_v36 = vmul.f32 %v6533_v21, %v703_v35 }
 0x755   :  { %707 = vrot.lane.b32.xlu1 %v681_v34, %s7316_s22 }
 0x756   :  { %712 = vrot.lane.b32.xlu0 %v705_v36, %s7315_s12 }
 0x7c7   :  { %v708_v37 = vpop.permute.xlu1 %707 }
 0x7c8   :  { %710 = vst.msk [vmem:[#allocation2 + $0x2] sm:$0x3] %vm567_vm7, %v708_v37  ;;  %v713_v38 = vpop.permute.xlu0 %712 }
 0x7c9   :  { %715 = vst.msk [vmem:[#allocation2 + $0xc] sm:$0x3] %vm573_vm8, %v713_v38  ;;  %v716_v39 = vsel %vm575_vm9, %v708_v37, %v713_v38 }
 0x7ca   :  { %5593 = vmatmul.mubr.msk.f32.vlgmr.msra.gmra.mrb[2].mxu0 %vm435_vm10, %v716_v39 }
 0x7cb   :  { %5940 = vmatpush1.bf16.msra.mxu0 %v7634_v47  ;;  %1060 = vmatprep.mubr.f32.mxu0 %v7314_v46 }
 0x7cc   :  { %5942 = vmatprep.subr.bf16.mxu0 %v7645_v50 }
 0x7cf   :  { %5944 = vmatpush1.bf16.msra.mxu0 %v7653_v53 }
 0x7d0   :  { %5946 = vmatprep.subr.bf16.mxu0 %v7663_v56 }
 0x7d3   :  { %5948 = vmatpush1.bf16.msra.mxu0 %v7671_v59 }
 0x7d4   :  { %5950 = vmatprep.subr.bf16.mxu0 %v7681_v62 }
 0x7d7   :  { %5952 = vmatpush1.bf16.msra.mxu0 %v7689_v1 }
 0x7d8   :  { %5970 = vmatprep.subr.bf16.mxu0 %v7624_v43 }
 0x89d   :  { %v786_v40 = vpop.f32.mrb[2].mxu0 }
 0x89e   :  { %v787_v41 = vadd.f32 %v786_v40, %v7731_v12  ;;  %v788_v44 = vpop.f32.mrb[3].mxu0 }
 0x89f   :  { %v789_v45 = vadd.f32 %v788_v44, %v7734_v13 }
 0x8a0   :  { %v793_v49 = vadd.f32 %v791_v42, %v787_v41 }
 0x8a1   :  { %v796_v51 = vadd.f32 %v794_v48, %v789_v45 }
 0x8a2   :  { %6538 = vtanh.f32 %v793_v49  ;;  %v5594_v55 = vmul.f32 -1.442695, %v793_v49 }
 0x8a3   :  { %6540 = vtanh.f32 %v796_v51  ;;  %v5595_v57 = vmul.f32 -1.442695, %v796_v51 }
 0x8a4   :  { %6542 = vpow2.f32 %v5594_v55 }
 0x8a5   :  { %6544 = vpow2.f32 %v5595_v57 }
 0x8ac   :  { %v6539_v52 = vpop.eup %6538 }
 0x8ad   :  { %v6541_v54 = vpop.eup %6540  ;;  %806 = vrot.lane.b32.xlu1 %v6539_v52, %s7315_s12 }
 0x8ae   :  { %830 = vrot.lane.b32.xlu0 %v6541_v54, %s7315_s12  ;;  %v6543_v58 = vpop.eup %6542 }
 0x8af   :  { %v6545_v60 = vpop.eup %6544  ;;  %v800_v61 = vadd.f32 1.0, %v6543_v58 }
 0x8b0   :  { %v824_v63 = vadd.f32 1.0, %v6545_v60 }
 0x8b1   :  { %6546 = vrcp.f32 %v800_v61 }
 0x8b2   :  { %6548 = vrcp.f32 %v824_v63 }
 0x8bb   :  { %v6547_v0 = vpop.eup %6546 }
 0x8bc   :  { %v6549_v3 = vpop.eup %6548  ;;  %v804_v15 = vmul.f32 %v6547_v0, %v675_v28 }
 0x8bd   :  { %v828_v17 = vmul.f32 %v6549_v3, %v699_v30 }
 0x91f   :  { %v807_v2 = vpop.permute.xlu1 %806 }
 0x920   :  { %v809_v7 = vmul.f32 %v6547_v0, %v807_v2  ;;  %v831_v10 = vpop.permute.xlu0 %830 }
 0x921   :  { %v833_v14 = vmul.f32 %v6549_v3, %v831_v10 }
 0x922   :  { %811 = vrot.lane.b32.xlu1 %v809_v7, %s7316_s22 }
 0x923   :  { %835 = vrot.lane.b32.xlu0 %v833_v14, %s7316_s22 }
 0x994   :  { %v812_v16 = vpop.permute.xlu1 %811 }
 0x995   :  { %v814_v18 = vadd.f32 %v812_v16, %v804_v15  ;;  %v836_v19 = vpop.permute.xlu0 %835 }
 0x996   :  { %v838_v20 = vadd.f32 %v836_v19, %v828_v17 }
 0x997   :  { %6550 = vtanh.f32 %v814_v18 }
 0x998   :  { %6552 = vtanh.f32 %v838_v20 }
 0x9a1   :  { %v6551_v21 = vpop.eup %6550 }
 0x9a2   :  { %v6553_v22 = vpop.eup %6552  ;;  %817 = vrot.lane.b32.xlu1 %v6551_v21, %s7315_s12 }
 0x9a3   :  { %841 = vrot.lane.b32.xlu0 %v6553_v22, %s7315_s12 }
 0xa14   :  { %v818_v23 = vpop.permute.xlu1 %817 }
 0xa15   :  { %v820_v24 = vmul.f32 %v6547_v0, %v818_v23  ;;  %v842_v25 = vpop.permute.xlu0 %841 }
 0xa16   :  { %v844_v26 = vmul.f32 %v6549_v3, %v842_v25 }
 0xa17   :  { %846 = vrot.lane.b32.xlu1 %v820_v24, %s7316_s22 }
 0xa18   :  { %851 = vrot.lane.b32.xlu0 %v844_v26, %s7315_s12 }
 0xa89   :  { %v847_v27 = vpop.permute.xlu1 %846 }
 0xa8a   :  { %849 = vst.msk [vmem:[#allocation2 + $0x4] sm:$0x3] %vm567_vm7, %v847_v27  ;;  %v852_v28 = vpop.permute.xlu0 %851 }
 0xa8b   :  { %854 = vst.msk [vmem:[#allocation2 + $0xa] sm:$0x3] %vm573_vm8, %v852_v28  ;;  %v855_v29 = vsel %vm575_vm9, %v847_v27, %v852_v28 }
 0xa8c   :  { %5596 = vmatmul.mubr.msk.f32.vlgmr.msra.gmra.mrb[8].mxu1 %vm435_vm10, %v855_v29 }
 0xa8d   :  { %5956 = vmatpush1.bf16.msra.mxu1 %v7634_v47  ;;  %1198 = vmatprep.mubr.f32.mxu1 %v7314_v46 }
 0xa8e   :  { %5958 = vmatprep.subr.bf16.mxu1 %v7645_v50 }
 0xa91   :  { %5960 = vmatpush1.bf16.msra.mxu1 %v7653_v53 }
 0xa92   :  { %5962 = vmatprep.subr.bf16.mxu1 %v7663_v56 }
 0xa95   :  { %5964 = vmatpush1.bf16.msra.mxu1 %v7671_v59 }
 0xa96   :  { %5966 = vmatprep.subr.bf16.mxu1 %v7681_v62 }
 0xa99   :  { %5968 = vmatpush1.bf16.msra.mxu1 %v7689_v1 }
 0xa9a   :  { %5986 = vmatprep.subr.bf16.mxu1 %v7624_v43 }
 0xb5f   :  { %v925_v30 = vpop.f32.mrb[8].mxu1 }
 0xb60   :  { %v926_v31 = vadd.f32 %v925_v30, %v7731_v12  ;;  %v927_v33 = vpop.f32.mrb[9].mxu1 }
 0xb61   :  { %v928_v34 = vadd.f32 %v927_v33, %v7734_v13 }
 0xb62   :  { %v932_v35 = vadd.f32 %v930_v32, %v926_v31 }
 0xb63   :  { %v933_v36 = vadd.f32 %v928_v34, %v7721_v8 }
 0xb64   :  { %6554 = vtanh.f32 %v932_v35  ;;  %v5597_v43 = vmul.f32 -1.442695, %v932_v35 }
 0xb65   :  { %6556 = vtanh.f32 %v933_v36  ;;  %v5598_v39 = vmul.f32 -1.442695, %v933_v36 }
 0xb66   :  { %6558 = vpow2.f32 %v5597_v43 }
 0xb67   :  { %6560 = vpow2.f32 %v5598_v39 }
 0xb6e   :  { %v6555_v37 = vpop.eup %6554 }
 0xb6f   :  { %v6557_v38 = vpop.eup %6556  ;;  %943 = vrot.lane.b32.xlu1 %v6555_v37, %s7315_s12 }
 0xb70   :  { %967 = vrot.lane.b32.xlu0 %v6557_v38, %s7315_s12  ;;  %v6559_v40 = vpop.eup %6558 }
 0xb71   :  { %v6561_v4 = vpop.eup %6560  ;;  %v937_v41 = vadd.f32 1.0, %v6559_v40 }
 0xb72   :  { %v961_v42 = vadd.f32 1.0, %v6561_v4 }
 0xb73   :  { %6562 = vrcp.f32 %v937_v41 }
 0xb74   :  { %6564 = vrcp.f32 %v961_v42 }
 0xb7d   :  { %v6563_v44 = vpop.eup %6562 }
 0xb7e   :  { %v6565_v45 = vpop.eup %6564  ;;  %v941_v52 = vmul.f32 %v6563_v44, %v814_v18 }
 0xb7f   :  { %v965_v55 = vmul.f32 %v6565_v45, %v838_v20  ;;  %v1069_v20 = vrot.slane %v7716_v5, 6 }
 0xbe1   :  { %v944_v8 = vpop.permute.xlu1 %943 }
 0xbe2   :  { %v946_v48 = vmul.f32 %v6563_v44, %v944_v8  ;;  %v968_v49 = vpop.permute.xlu0 %967 }
 0xbe3   :  { %v970_v51 = vmul.f32 %v6565_v45, %v968_v49 }
 0xbe4   :  { %948 = vrot.lane.b32.xlu1 %v946_v48, %s7316_s22 }
 0xbe5   :  { %972 = vrot.lane.b32.xlu0 %v970_v51, %s7316_s22 }
 0xc56   :  { %v949_v54 = vpop.permute.xlu1 %948 }
 0xc57   :  { %v951_v57 = vadd.f32 %v949_v54, %v941_v52  ;;  %v973_v58 = vpop.permute.xlu0 %972 }
 0xc58   :  { %v975_v60 = vadd.f32 %v973_v58, %v965_v55 }
 0xc59   :  { %6566 = vtanh.f32 %v951_v57 }
 0xc5a   :  { %6568 = vtanh.f32 %v975_v60 }
 0xc63   :  { %v6567_v61 = vpop.eup %6566 }
 0xc64   :  { %v6569_v63 = vpop.eup %6568  ;;  %954 = vrot.lane.b32.xlu1 %v6567_v61, %s7315_s12 }
 0xc65   :  { %978 = vrot.lane.b32.xlu0 %v6569_v63, %s7315_s12 }
 0xcd6   :  { %v955_v0 = vpop.permute.xlu1 %954 }
 0xcd7   :  { %v957_v2 = vmul.f32 %v6563_v44, %v955_v0  ;;  %v979_v3 = vpop.permute.xlu0 %978 }
 0xcd8   :  { %v981_v7 = vmul.f32 %v6565_v45, %v979_v3 }
 0xcd9   :  { %983 = vrot.lane.b32.xlu1 %v957_v2, %s7316_s22 }
 0xcda   :  { %988 = vrot.lane.b32.xlu0 %v981_v7, %s7315_s12 }
 0xd4b   :  { %v984_v10 = vpop.permute.xlu1 %983 }
 0xd4c   :  { %986 = vst.msk [vmem:[#allocation2 + $0x6] sm:$0x3] %vm567_vm7, %v984_v10  ;;  %v989_v14 = vpop.permute.xlu0 %988 }
 0xd4d   :  { %991 = vst.msk [vmem:[#allocation2 + $0x8] sm:$0x3] %vm573_vm8, %v989_v14  ;;  %v992_v15 = vsel %vm575_vm9, %v984_v10, %v989_v14 }
 0xd4e   :  { %5599 = vmatmul.mubr.msk.f32.vlgmr.msra.gmra.mrb[4].mxu0 %vm435_vm10, %v992_v15 }
 0xd4f   :  { %5972 = vmatpush1.bf16.msra.mxu0 %v7634_v47  ;;  %1338 = vmatprep.mubr.f32.mxu0 %v7314_v46 }
 0xd50   :  { %5974 = vmatprep.subr.bf16.mxu0 %v7645_v50 }
 0xd53   :  { %5976 = vmatpush1.bf16.msra.mxu0 %v7653_v53 }
 0xd54   :  { %5978 = vmatprep.subr.bf16.mxu0 %v7663_v56 }
 0xd57   :  { %5980 = vmatpush1.bf16.msra.mxu0 %v7671_v59 }
 0xd58   :  { %5982 = vmatprep.subr.bf16.mxu0 %v7681_v62 }
 0xd5b   :  { %5984 = vmatpush1.bf16.msra.mxu0 %v7689_v1 }
 0xe21   :  { %v1062_v16 = vpop.f32.mrb[4].mxu0 }
 0xe22   :  { %v1063_v17 = vadd.f32 %v1062_v16, %v7731_v12  ;;  %v1064_v18 = vpop.f32.mrb[5].mxu0 }
 0xe23   :  { %v1065_v19 = vadd.f32 %v1064_v18, %v7734_v13 }
 0xe24   :  { %v1067_v21 = vadd.f32 %v1063_v17, %v7718_v6 }
 0xe25   :  { %v1071_v22 = vadd.f32 %v1069_v20, %v1065_v19 }
 0xe26   :  { %6570 = vtanh.f32 %v1067_v21  ;;  %v5600_v25 = vmul.f32 -1.442695, %v1067_v21 }
 0xe27   :  { %6572 = vtanh.f32 %v1071_v22  ;;  %v5601_v26 = vmul.f32 -1.442695, %v1071_v22 }
 0xe28   :  { %6574 = vpow2.f32 %v5600_v25 }
 0xe29   :  { %6576 = vpow2.f32 %v5601_v26 }
 0xe30   :  { %v6571_v23 = vpop.eup %6570 }
 0xe31   :  { %v6573_v24 = vpop.eup %6572  ;;  %1081 = vrot.lane.b32.xlu1 %v6571_v23, %s7315_s12 }
 0xe32   :  { %1105 = vrot.lane.b32.xlu0 %v6573_v24, %s7315_s12  ;;  %v6575_v27 = vpop.eup %6574 }
 0xe33   :  { %v6577_v28 = vpop.eup %6576  ;;  %v1075_v29 = vadd.f32 1.0, %v6575_v27 }
 0xe34   :  { %v1099_v30 = vadd.f32 1.0, %v6577_v28 }
 0xe35   :  { %6578 = vrcp.f32 %v1075_v29 }
 0xe36   :  { %6580 = vrcp.f32 %v1099_v30 }
 0xe3f   :  { %v6579_v31 = vpop.eup %6578 }
 0xe40   :  { %v6581_v33 = vpop.eup %6580  ;;  %v1079_v37 = vmul.f32 %v6579_v31, %v951_v57  ;;  %v1206_v57 = vrot.slane %v7718_v6, 2 }
 0xe41   :  { %v1103_v43 = vmul.f32 %v6581_v33, %v975_v60 }
 0xea3   :  { %v1082_v32 = vpop.permute.xlu1 %1081 }
 0xea4   :  { %v1084_v34 = vmul.f32 %v6579_v31, %v1082_v32  ;;  %v1106_v35 = vpop.permute.xlu0 %1105 }
 0xea5   :  { %v1108_v36 = vmul.f32 %v6581_v33, %v1106_v35 }
 0xea6   :  { %1086 = vrot.lane.b32.xlu1 %v1084_v34, %s7316_s22  ;;  %v1345_v34 = vrot.slane %v7718_v6, 4 }
 0xea7   :  { %1110 = vrot.lane.b32.xlu0 %v1108_v36, %s7316_s22 }
 0xf18   :  { %v1087_v38 = vpop.permute.xlu1 %1086 }
 0xf19   :  { %v1089_v39 = vadd.f32 %v1087_v38, %v1079_v37  ;;  %v1111_v40 = vpop.permute.xlu0 %1110  ;;  %v1348_v37 = vrot.slane %v7716_v5, 2 }
 0xf1a   :  { %v1113_v4 = vadd.f32 %v1111_v40, %v1103_v43 }
 0xf1b   :  { %6582 = vtanh.f32 %v1089_v39 }
 0xf1c   :  { %6584 = vtanh.f32 %v1113_v4 }
 0xf25   :  { %v6583_v41 = vpop.eup %6582 }
 0xf26   :  { %v6585_v42 = vpop.eup %6584  ;;  %1092 = vrot.lane.b32.xlu1 %v6583_v41, %s7315_s12 }
 0xf27   :  { %1116 = vrot.lane.b32.xlu0 %v6585_v42, %s7315_s12 }
 0xf98   :  { %v1093_v44 = vpop.permute.xlu1 %1092 }
 0xf99   :  { %v1095_v8 = vmul.f32 %v6579_v31, %v1093_v44  ;;  %v1117_v45 = vpop.permute.xlu0 %1116 }
 0xf9a   :  { %v1119_v48 = vmul.f32 %v6581_v33, %v1117_v45 }
 0xf9b   :  { %1121 = vrot.lane.b32.xlu1 %v1095_v8, %s7316_s22 }
 0xf9c   :  { %1126 = vrot.lane.b32.xlu0 %v1119_v48, %s7315_s12 }
0x100d   :  { %v1122_v49 = vpop.permute.xlu1 %1121 }
0x100e   :  { %1124 = vst.msk [vmem:[#allocation2 + $0x8] sm:$0x3] %vm567_vm7, %v1122_v49  ;;  %v1127_v51 = vpop.permute.xlu0 %1126 }
0x100f   :  { %1129 = vst.msk [vmem:[#allocation2 + $0x6] sm:$0x3] %vm573_vm8, %v1127_v51  ;;  %v1130_v52 = vsel %vm575_vm9, %v1122_v49, %v1127_v51 }
0x1010   :  { %5602 = vmatmul.mubr.msk.f32.vlgmr.msra.gmra.mrb[10].mxu1 %vm435_vm10, %v1130_v52 }
0x1011   :  { %5988 = vmatpush1.bf16.msra.mxu1 %v7634_v47  ;;  %1477 = vmatprep.mubr.f32.mxu1 %v7314_v46 }
0x1012   :  { %5990 = vmatprep.subr.bf16.mxu1 %v7645_v50  ;;  %v1209_v50 = vrot.slane %v7716_v5, 4 }
0x1015   :  { %5992 = vmatpush1.bf16.msra.mxu1 %v7653_v53 }
0x1016   :  { %5994 = vmatprep.subr.bf16.mxu1 %v7663_v56 }
0x1019   :  { %5996 = vmatpush1.bf16.msra.mxu1 %v7671_v59 }
0x101a   :  { %5998 = vmatprep.subr.bf16.mxu1 %v7681_v62 }
0x101d   :  { %6000 = vmatpush1.bf16.msra.mxu1 %v7689_v1 }
0x10e3   :  { %v1200_v54 = vpop.f32.mrb[10].mxu1 }
0x10e4   :  { %v1201_v55 = vadd.f32 %v1200_v54, %v7731_v12  ;;  %v1202_v47 = vpop.f32.mrb[11].mxu1 }
0x10e5   :  { %v1203_v58 = vadd.f32 %v1202_v47, %v7734_v13 }
0x10e6   :  { %v1208_v60 = vadd.f32 %v1206_v57, %v1201_v55 }
0x10e7   :  { %v1211_v53 = vadd.f32 %v1209_v50, %v1203_v58 }
0x10e8   :  { %6586 = vtanh.f32 %v1208_v60  ;;  %v5603_v62 = vmul.f32 -1.442695, %v1208_v60 }
0x10e9   :  { %6588 = vtanh.f32 %v1211_v53  ;;  %v5604_v1 = vmul.f32 -1.442695, %v1211_v53 }
0x10ea   :  { %6590 = vpow2.f32 %v5603_v62 }
0x10eb   :  { %6592 = vpow2.f32 %v5604_v1 }
0x10f2   :  { %v6587_v56 = vpop.eup %6586 }
0x10f3   :  { %v6589_v59 = vpop.eup %6588  ;;  %1221 = vrot.lane.b32.xlu1 %v6587_v56, %s7315_s12 }
0x10f4   :  { %1245 = vrot.lane.b32.xlu0 %v6589_v59, %s7315_s12  ;;  %v6591_v61 = vpop.eup %6590 }
0x10f5   :  { %v6593_v63 = vpop.eup %6592  ;;  %v1215_v0 = vadd.f32 1.0, %v6591_v61 }
0x10f6   :  { %v1239_v2 = vadd.f32 1.0, %v6593_v63 }
0x10f7   :  { %6594 = vrcp.f32 %v1215_v0 }
0x10f8   :  { %6596 = vrcp.f32 %v1239_v2 }
0x1101   :  { %v6595_v3 = vpop.eup %6594 }
0x1102   :  { %v6597_v10 = vpop.eup %6596  ;;  %v1219_v17 = vmul.f32 %v6595_v3, %v1089_v39 }
0x1103   :  { %v1243_v19 = vmul.f32 %v6597_v10, %v1113_v4 }
0x1165   :  { %v1222_v7 = vpop.permute.xlu1 %1221 }
0x1166   :  { %v1224_v14 = vmul.f32 %v6595_v3, %v1222_v7  ;;  %v1246_v15 = vpop.permute.xlu0 %1245 }
0x1167   :  { %v1248_v16 = vmul.f32 %v6597_v10, %v1246_v15 }
0x1168   :  { %1226 = vrot.lane.b32.xlu1 %v1224_v14, %s7316_s22  ;;  %v1484_v14 = vrot.slane %v7718_v6, 6 }
0x1169   :  { %1250 = vrot.lane.b32.xlu0 %v1248_v16, %s7316_s22 }
0x11da   :  { %v1227_v18 = vpop.permute.xlu1 %1226 }
0x11db   :  { %v1229_v20 = vadd.f32 %v1227_v18, %v1219_v17  ;;  %v1251_v21 = vpop.permute.xlu0 %1250 }
0x11dc   :  { %v1253_v22 = vadd.f32 %v1251_v21, %v1243_v19 }
0x11dd   :  { %6598 = vtanh.f32 %v1229_v20 }
0x11de   :  { %6600 = vtanh.f32 %v1253_v22 }
0x11e7   :  { %v6599_v23 = vpop.eup %6598 }
0x11e8   :  { %v6601_v24 = vpop.eup %6600  ;;  %1232 = vrot.lane.b32.xlu1 %v6599_v23, %s7315_s12 }
0x11e9   :  { %1256 = vrot.lane.b32.xlu0 %v6601_v24, %s7315_s12 }
0x125a   :  { %v1233_v25 = vpop.permute.xlu1 %1232 }
0x125b   :  { %v1235_v26 = vmul.f32 %v6595_v3, %v1233_v25  ;;  %v1257_v27 = vpop.permute.xlu0 %1256 }
0x125c   :  { %v1259_v28 = vmul.f32 %v6597_v10, %v1257_v27 }
0x125d   :  { %1261 = vrot.lane.b32.xlu1 %v1235_v26, %s7316_s22 }
0x125e   :  { %1266 = vrot.lane.b32.xlu0 %v1259_v28, %s7315_s12 }
0x12cf   :  { %v1262_v29 = vpop.permute.xlu1 %1261 }
0x12d0   :  { %1264 = vst.msk [vmem:[#allocation2 + $0xa] sm:$0x3] %vm567_vm7, %v1262_v29  ;;  %v1267_v30 = vpop.permute.xlu0 %1266 }
0x12d1   :  { %1269 = vst.msk [vmem:[#allocation2 + $0x4] sm:$0x3] %vm573_vm8, %v1267_v30  ;;  %v1270_v31 = vsel %vm575_vm9, %v1262_v29, %v1267_v30 }
0x12d2   :  { %5605 = vmatmul.mubr.msk.f32.vlgmr.msra.gmra.mrb[6].mxu0 %vm435_vm10, %v1270_v31 }
0x12d3   :  { %1651 = vmatprep.mubr.f32.mxu0 %v7314_v46 }
0x13a5   :  { %v1340_v32 = vpop.f32.mrb[6].mxu0 }
0x13a6   :  { %v1341_v33 = vadd.f32 %v1340_v32, %v7731_v12  ;;  %v1342_v35 = vpop.f32.mrb[7].mxu0 }
0x13a7   :  { %v1343_v36 = vadd.f32 %v1342_v35, %v7734_v13  ;;  %v1565_v35 = vld [vmem:[%s8894_s6 + $0x8] sm:$0xff] }
0x13a8   :  { %v1347_v38 = vadd.f32 %v1345_v34, %v1341_v33 }
0x13a9   :  { %v1350_v43 = vadd.f32 %v1348_v37, %v1343_v36  ;;  %v1567_v36 = vld [vmem:[%s8894_s6 + $0x18] sm:$0xff]  ;;  %v1564_v37 = vld [vmem:[%s8894_s6] sm:$0xff] }
0x13aa   :  { %6602 = vtanh.f32 %v1347_v38  ;;  %v5606_v4 = vmul.f32 -1.442695, %v1347_v38  ;;  %v7926_v38 = vpack.c.bf16 %v1567_v36, %v1565_v35 }
0x13ab   :  { %6604 = vtanh.f32 %v1350_v43  ;;  %v5607_v41 = vmul.f32 -1.442695, %v1350_v43  ;;  %v1566_v43 = vld [vmem:[%s8894_s6 + $0x10] sm:$0xff] }
0x13ac   :  { %6606 = vpow2.f32 %v5606_v4  ;;  %v7937_v4 = vpack.c.bf16 %v1566_v43, %v1564_v37  ;;  %6018 = vmatprep.subr.bf16.mxu1 %v7926_v38 }
0x13ad   :  { %6608 = vpow2.f32 %v5607_v41 }
0x13b4   :  { %v6603_v39 = vpop.eup %6602 }
0x13b5   :  { %v6605_v40 = vpop.eup %6604  ;;  %1360 = vrot.lane.b32.xlu1 %v6603_v39, %s7315_s12  ;;  %v1549_v39 = vld [vmem:[%s8893_s5 + $0x8] sm:$0xff] }
0x13b6   :  { %1384 = vrot.lane.b32.xlu0 %v6605_v40, %s7315_s12  ;;  %v6607_v42 = vpop.eup %6606  ;;  %v1551_v40 = vld [vmem:[%s8893_s5 + $0x18] sm:$0xff] }
0x13b7   :  { %v6609_v44 = vpop.eup %6608  ;;  %v1354_v8 = vadd.f32 1.0, %v6607_v42  ;;  %v6001_v41 = vpack.c.bf16 %v1551_v40, %v1549_v39  ;;  %v1548_v42 = vld [vmem:[%s8893_s5] sm:$0xff] }
0x13b8   :  { %v1378_v45 = vadd.f32 1.0, %v6609_v44  ;;  %v1550_v44 = vld [vmem:[%s8893_s5 + $0x10] sm:$0xff] }
0x13b9   :  { %6610 = vrcp.f32 %v1354_v8  ;;  %v1569_v8 = vld [vmem:[%s8894_s6 + $0x28] sm:$0xff]  ;;  %6002 = vmatprep.subr.bf16.mxu0 %v6001_v41 }
0x13ba   :  { %6612 = vrcp.f32 %v1378_v45  ;;  %v6003_v45 = vpack.c.bf16 %v1550_v44, %v1548_v42 }
0x13bc   :  { %6004 = vmatpush1.bf16.msra.mxu0 %v6003_v45 }
0x13c3   :  { %v6611_v48 = vpop.eup %6610 }
0x13c4   :  { %v6613_v51 = vpop.eup %6612  ;;  %v1358_v57 = vmul.f32 %v6611_v48, %v1229_v20 }
0x13c5   :  { %v1382_v58 = vmul.f32 %v6613_v51, %v1253_v22 }
0x1427   :  { %v1361_v49 = vpop.permute.xlu1 %1360 }
0x1428   :  { %v1363_v52 = vmul.f32 %v6611_v48, %v1361_v49  ;;  %v1385_v54 = vpop.permute.xlu0 %1384  ;;  %v1568_v49 = vld [vmem:[%s8894_s6 + $0x20] sm:$0xff] }
0x1429   :  { %v1387_v55 = vmul.f32 %v6613_v51, %v1385_v54 }
0x142a   :  { %1365 = vrot.lane.b32.xlu1 %v1363_v52, %s7316_s22 }
0x142b   :  { %1389 = vrot.lane.b32.xlu0 %v1387_v55, %s7316_s22  ;;  %v1553_v55 = vld [vmem:[%s8893_s5 + $0x28] sm:$0xff] }
0x149c   :  { %v1366_v47 = vpop.permute.xlu1 %1365 }
0x149d   :  { %v1368_v50 = vadd.f32 %v1366_v47, %v1358_v57  ;;  %v1390_v60 = vpop.permute.xlu0 %1389  ;;  %v1555_v57 = vld [vmem:[%s8893_s5 + $0x38] sm:$0xff]  ;;  %v1552_v47 = vld [vmem:[%s8893_s5 + $0x20] sm:$0xff] }
0x149e   :  { %v1392_v53 = vadd.f32 %v1390_v60, %v1382_v58  ;;  %v6005_v58 = vpack.c.bf16 %v1555_v57, %v1553_v55  ;;  %v1573_v60 = vld [vmem:[%s8894_s6 + $0x48] sm:$0xff] }
0x149f   :  { %6614 = vtanh.f32 %v1368_v50 }
0x14a0   :  { %6616 = vtanh.f32 %v1392_v53  ;;  %6006 = vmatprep.subr.bf16.mxu0 %v6005_v58 }
0x14a9   :  { %v6615_v56 = vpop.eup %6614 }
0x14aa   :  { %v6617_v59 = vpop.eup %6616  ;;  %1371 = vrot.lane.b32.xlu1 %v6615_v56, %s7315_s12 }
0x14ab   :  { %1395 = vrot.lane.b32.xlu0 %v6617_v59, %s7315_s12 }
0x151c   :  { %v1372_v62 = vpop.permute.xlu1 %1371 }
0x151d   :  { %v1374_v1 = vmul.f32 %v6611_v48, %v1372_v62  ;;  %v1396_v61 = vpop.permute.xlu0 %1395  ;;  %v1571_v48 = vld [vmem:[%s8894_s6 + $0x38] sm:$0xff] }
0x151e   :  { %v1398_v63 = vmul.f32 %v6613_v51, %v1396_v61  ;;  %v1570_v51 = vld [vmem:[%s8894_s6 + $0x30] sm:$0xff]  ;;  %v7959_v52 = vpack.c.bf16 %v1571_v48, %v1569_v8  ;;  %v1572_v61 = vld [vmem:[%s8894_s6 + $0x40] sm:$0xff] }
0x151f   :  { %1400 = vrot.lane.b32.xlu1 %v1374_v1, %s7316_s22  ;;  %v7961_v54 = vpack.c.bf16 %v1570_v51, %v1568_v49 }
0x1520   :  { %1405 = vrot.lane.b32.xlu0 %v1398_v63, %s7315_s12  ;;  %v1574_v63 = vld [vmem:[%s8894_s6 + $0x50] sm:$0xff] }
0x1591   :  { %v1401_v0 = vpop.permute.xlu1 %1400 }
0x1592   :  { %1403 = vst.msk [vmem:[#allocation2 + $0xc] sm:$0x3] %vm567_vm7, %v1401_v0  ;;  %v1406_v2 = vpop.permute.xlu0 %1405 }
0x1593   :  { %1408 = vst.msk [vmem:[#allocation2 + $0x2] sm:$0x3] %vm573_vm8, %v1406_v2  ;;  %v1409_v3 = vsel %vm575_vm9, %v1401_v0, %v1406_v2  ;;  %v7994_v0 = vpack.c.bf16 %v1574_v63, %v1572_v61  ;;  %v1557_v2 = vld [vmem:[%s8893_s5 + $0x48] sm:$0xff] }
0x1594   :  { %5608 = vmatmul.mubr.msk.f32.vlgmr.msra.gmra.mrb[12].mxu1 %vm435_vm10, %v1409_v3  ;;  %v1559_v3 = vld [vmem:[%s8893_s5 + $0x58] sm:$0xff] }
0x1595   :  { %1739 = vmatprep.mubr.f32.mxu1 %v7314_v46  ;;  %6020 = vmatpush1.bf16.msra.mxu1 %v7937_v4 }
0x1596   :  { %6022 = vmatprep.subr.bf16.mxu1 %v7959_v52 }
0x1599   :  { %6024 = vmatpush1.bf16.msra.mxu1 %v7961_v54 }
0x1667   :  { %v1479_v7 = vpop.f32.mrb[12].mxu1 }
0x1668   :  { %v1480_v10 = vadd.f32 %v1479_v7, %v7731_v12  ;;  %v1481_v15 = vpop.f32.mrb[13].mxu1  ;;  %v6009_v7 = vpack.c.bf16 %v1559_v3, %v1557_v2 }
0x1669   :  { %v1482_v16 = vadd.f32 %v1481_v15, %v7734_v13 }
0x166a   :  { %v1486_v17 = vadd.f32 %v1484_v14, %v1480_v10  ;;  %v1556_v10 = vld [vmem:[%s8893_s5 + $0x40] sm:$0xff]  ;;  %v1558_v14 = vld [vmem:[%s8893_s5 + $0x50] sm:$0xff] }
0x166b   :  { %v1487_v18 = vadd.f32 %v1482_v16, %v7716_v5  ;;  %v6011_v15 = vpack.c.bf16 %v1558_v14, %v1556_v10  ;;  %v1577_v16 = vld [vmem:[%s8894_s6 + $0x68] sm:$0xff] }
0x166c   :  { %6618 = vtanh.f32 %v1486_v17  ;;  %v5609_v21 = vmul.f32 -1.442695, %v1486_v17  ;;  %v1579_v17 = vld [vmem:[%s8894_s6 + $0x78] sm:$0xff] }
0x166d   :  { %6620 = vtanh.f32 %v1487_v18  ;;  %v5610_v22 = vmul.f32 -1.442695, %v1487_v18  ;;  %v8015_v18 = vpack.c.bf16 %v1579_v17, %v1577_v16 }
0x166e   :  { %6622 = vpow2.f32 %v5609_v21 }
0x166f   :  { %6624 = vpow2.f32 %v5610_v22  ;;  %v1561_v22 = vld [vmem:[%s8893_s5 + $0x68] sm:$0xff] }
0x1676   :  { %v6619_v19 = vpop.eup %6618 }
0x1677   :  { %v6621_v20 = vpop.eup %6620  ;;  %1497 = vrot.lane.b32.xlu0 %v6619_v19, %s7315_s12  ;;  %v1576_v19 = vld [vmem:[%s8894_s6 + $0x60] sm:$0xff] }
0x1678   :  { %1521 = vrot.lane.b32.xlu1 %v6621_v20, %s7315_s12  ;;  %v6623_v12 = vpop.eup %6622  ;;  %v1578_v20 = vld [vmem:[%s8894_s6 + $0x70] sm:$0xff] }
0x1679   :  { %v6625_v6 = vpop.eup %6624  ;;  %v1491_v23 = vadd.f32 1.0, %v6623_v12  ;;  %v8023_v21 = vpack.c.bf16 %v1578_v20, %v1576_v19  ;;  %v1563_v12 = vld [vmem:[%s8893_s5 + $0x78] sm:$0xff] }
0x167a   :  { %v1515_v24 = vadd.f32 1.0, %v6625_v6  ;;  %v6013_v6 = vpack.c.bf16 %v1563_v12, %v1561_v22 }
0x167b   :  { %6626 = vrcp.f32 %v1491_v23  ;;  %v1560_v23 = vld [vmem:[%s8893_s5 + $0x60] sm:$0xff] }
0x167c   :  { %6628 = vrcp.f32 %v1515_v24  ;;  %v1562_v24 = vld [vmem:[%s8893_s5 + $0x70] sm:$0xff] }
0x1685   :  { %v7907_v13 = vpop.eup %6626 }
0x1686   :  { %v7909_v25 = vpop.eup %6628  ;;  %v1495_v29 = vmul.f32 %v7907_v13, %v1368_v50  ;;  %v1554_v50 = vld [vmem:[%s8893_s5 + $0x30] sm:$0xff] }
0x1687   :  { %v1519_v31 = vmul.f32 %v7909_v25, %v1392_v53  ;;  %v1575_v53 = vld [vmem:[%s8894_s6 + $0x58] sm:$0xff]  ;;  %v6007_v56 = vpack.c.bf16 %v1554_v50, %v1552_v47 }
0x1688   :  { %v7982_v59 = vpack.c.bf16 %v1575_v53, %v1573_v60 }
0x1689   :  { %6008 = vmatpush1.bf16.msra.mxu0 %v6007_v56 }
0x168a   :  { %6026 = vmatprep.subr.bf16.mxu1 %v7982_v59  ;;  %6010 = vmatprep.subr.bf16.mxu0 %v6009_v7 }
0x168b   :  { %6028 = vmatpush1.bf16.msra.mxu1 %v7994_v0 }
0x168c   :  { %6030 = vmatprep.subr.bf16.mxu1 %v8015_v18 }
0x168d   :  { %6012 = vmatpush1.bf16.msra.mxu0 %v6011_v15 }
0x168e   :  { %6014 = vmatprep.subr.bf16.mxu0 %v6013_v6 }
0x168f   :  { %6032 = vmatpush1.bf16.msra.mxu1 %v8023_v21 }
0x1690   :  { %6050 = vmatprep.subr.bf16.mxu1 %v7926_v38 }
0x1692   :  { %1740 = vmatmul.mubr.f32.vlgmr.msra.gmra.mrb[14].mxu1 %v7314_v46 }
0x1693   :  { %6052 = vmatpush1.bf16.msra.mxu1 %v7937_v4  ;;  %2017 = vmatprep.mubr.f32.mxu1 %v7314_v46 }
0x1694   :  { %6054 = vmatprep.subr.bf16.mxu1 %v7959_v52 }
0x1697   :  { %6056 = vmatpush1.bf16.msra.mxu1 %v7961_v54 }
0x1698   :  { %6058 = vmatprep.subr.bf16.mxu1 %v7982_v59 }
0x169b   :  { %6060 = vmatpush1.bf16.msra.mxu1 %v7994_v0 }
0x169c   :  { %6062 = vmatprep.subr.bf16.mxu1 %v8015_v18 }
0x169f   :  { %6064 = vmatpush1.bf16.msra.mxu1 %v8023_v21 }
0x16a0   :  { %6082 = vmatprep.subr.bf16.mxu1 %v7926_v38 }
0x16e9   :  { %v1498_v5 = vpop.permute.xlu0 %1497 }
0x16ea   :  { %v1500_v26 = vmul.f32 %v7907_v13, %v1498_v5  ;;  %v1522_v27 = vpop.permute.xlu1 %1521  ;;  %v6015_v5 = vpack.c.bf16 %v1562_v24, %v1560_v23 }
0x16eb   :  { %v1524_v28 = vmul.f32 %v7909_v25, %v1522_v27 }
0x16ec   :  { %1502 = vrot.lane.b32.xlu0 %v1500_v26, %s7316_s22  ;;  %6016 = vmatpush1.bf16.msra.mxu0 %v6015_v5 }
0x16ed   :  { %1526 = vrot.lane.b32.xlu1 %v1524_v28, %s7316_s22  ;;  %6034 = vmatprep.subr.bf16.mxu0 %v7926_v38 }
0x175e   :  { %v1503_v30 = vpop.permute.xlu0 %1502 }
0x175f   :  { %v1505_v32 = vadd.f32 %v1503_v30, %v1495_v29  ;;  %v1527_v33 = vpop.permute.xlu1 %1526 }
0x1760   :  { %v1529_v34 = vadd.f32 %v1527_v33, %v1519_v31 }
0x1761   :  { %6630 = vtanh.f32 %v1505_v32 }
0x1762   :  { %6632 = vtanh.f32 %v1529_v34  ;;  %v1580_v34 = vld [vmem:[#allocation5] sm:$0x3] }
0x1763   :  { %v8070_v35 = vrot.slane %v1580_v34, %v7723_v9  ;;  %v8074_v37 = vrot.slane %v1580_v34, %v7728_v11 }
0x1765   :  { %v1741_v32 = vpop.f32.mrb[14].mxu1 }
0x1766   :  { %v1743_v33 = vpop.f32.mrb[15].mxu1  ;;  %v1742_v36 = vadd.f32 %v1741_v32, %v8070_v35 }
0x1767   :  { %v1744_v42 = vadd.f32 %v1743_v33, %v8074_v37 }
0x176b   :  { %v6631_v62 = vpop.eup %6630 }
0x176c   :  { %v6633_v1 = vpop.eup %6632  ;;  %1508 = vrot.lane.b32.xlu0 %v6631_v62, %s7315_s12 }
0x176d   :  { %1532 = vrot.lane.b32.xlu1 %v6633_v1, %s7315_s12 }
0x17de   :  { %v1509_v26 = vpop.permute.xlu0 %1508 }
0x17df   :  { %v1511_v27 = vmul.f32 %v7907_v13, %v1509_v26  ;;  %v1533_v28 = vpop.permute.xlu1 %1532 }
0x17e0   :  { %v1535_v29 = vmul.f32 %v7909_v25, %v1533_v28 }
0x17e1   :  { %1537 = vrot.lane.b32.xlu0 %v1511_v27, %s7316_s22 }
0x17e2   :  { %1542 = vrot.lane.b32.xlu1 %v1535_v29, %s7315_s12 }
0x1853   :  { %v1538_v13 = vpop.permute.xlu0 %1537 }
0x1854   :  { %1540 = vst.msk [vmem:[#allocation2 + $0xe] sm:$0x3] %vm567_vm7, %v1538_v13  ;;  %v1543_v25 = vpop.permute.xlu1 %1542 }
0x1855   :  { %1545 = vst.msk [vmem:[#allocation2] sm:$0x3] %vm573_vm8, %v1543_v25 }
0x185b   :  { %v1547_v31 = vld [vmem:[#allocation2 + $0x8] sm:$0xff] }
0x185c   :  { %v1546_v30 = vld [vmem:[#allocation2] sm:$0xff] }
0x185d   :  { %5611 = vmatmul.mubr.msk.f32.vlgmr.msra.gmra.mrb[8].mxu0 %vm435_vm10, %v1546_v30 }
0x185e   :  { %1657 = vmatprep.mubr.f32.mxu0 %v7314_v46  ;;  %6036 = vmatpush1.bf16.msra.mxu0 %v7937_v4 }
0x185f   :  { %6038 = vmatprep.subr.bf16.mxu0 %v7959_v52 }
0x1861   :  { %5612 = vmatmul.mubr.msk.f32.gmra.mrb[10].mxu0 %vm435_vm10, %v1547_v31 }
0x1862   :  { %6040 = vmatpush1.bf16.msra.mxu0 %v7961_v54  ;;  %1877 = vmatprep.mubr.f32.mxu0 %v7314_v46 }
0x1863   :  { %6042 = vmatprep.subr.bf16.mxu0 %v7982_v59 }
0x1866   :  { %6044 = vmatpush1.bf16.msra.mxu0 %v7994_v0 }
0x1867   :  { %6046 = vmatprep.subr.bf16.mxu0 %v8015_v18 }
0x186a   :  { %6048 = vmatpush1.bf16.msra.mxu0 %v8023_v21 }
0x186b   :  { %6066 = vmatprep.subr.bf16.mxu0 %v7926_v38 }
0x1930   :  { %v8076_v43 = vpop.f32.mrb[8].mxu0 }
0x1931   :  { %v1746_v39 = vadd.f32 %v1742_v36, %v8076_v43  ;;  %v8079_v40 = vpop.f32.mrb[9].mxu0  ;;  %v1885_v26 = vrot.slane %v8076_v43, 2 }
0x1933   :  { %6634 = vtanh.f32 %v1746_v39  ;;  %v5613_v51 = vmul.f32 -1.442695, %v1746_v39 }
0x1934   :  { %v8081_v41 = vpop.f32.mrb[10].mxu0 }
0x1935   :  { %v8084_v44 = vpop.f32.mrb[11].mxu0 }
0x1936   :  { %v1748_v8 = vrot.slane %v8084_v44, 6  ;;  %v1888_v29 = vrot.slane %v8084_v44, 4 }
0x1938   :  { %v1750_v45 = vadd.f32 %v1748_v8, %v1744_v42 }
0x193a   :  { %6636 = vtanh.f32 %v1750_v45  ;;  %v5614_v55 = vmul.f32 -1.442695, %v1750_v45 }
0x193b   :  { %6638 = vpow2.f32 %v5613_v51 }
0x193c   :  { %6640 = vpow2.f32 %v5614_v55 }
0x193d   :  { %v6635_v48 = vpop.eup %6634 }
0x193e   :  { %1760 = vrot.lane.b32.xlu1 %v6635_v48, %s7315_s12 }
0x1944   :  { %v6637_v49 = vpop.eup %6636 }
0x1945   :  { %1784 = vrot.lane.b32.xlu0 %v6637_v49, %s7315_s12  ;;  %v6639_v57 = vpop.eup %6638 }
0x1946   :  { %v1754_v47 = vadd.f32 1.0, %v6639_v57  ;;  %v6641_v58 = vpop.eup %6640 }
0x1947   :  { %v1778_v50 = vadd.f32 1.0, %v6641_v58 }
0x1948   :  { %6642 = vrcp.f32 %v1754_v47 }
0x1949   :  { %6644 = vrcp.f32 %v1778_v50 }
0x1952   :  { %v6643_v60 = vpop.eup %6642 }
0x1953   :  { %v6645_v62 = vpop.eup %6644  ;;  %v1758_v63 = vmul.f32 0.0, %v6643_v60 }
0x1954   :  { %v1782_v7 = vmul.f32 0.0, %v6645_v62 }
0x19b0   :  { %v1761_v53 = vpop.permute.xlu1 %1760 }
0x19b1   :  { %v1763_v56 = vmul.f32 %v6643_v60, %v1761_v53 }
0x19b3   :  { %1765 = vrot.lane.b32.xlu1 %v1763_v56, %s7316_s22 }
0x19b7   :  { %v1785_v1 = vpop.permute.xlu0 %1784 }
0x19b8   :  { %v1787_v61 = vmul.f32 %v6645_v62, %v1785_v1 }
0x19ba   :  { %1789 = vrot.lane.b32.xlu0 %v1787_v61, %s7316_s22 }
0x1a25   :  { %v1766_v2 = vpop.permute.xlu1 %1765 }
0x1a26   :  { %v8091_v3 = vadd.f32 %v1766_v2, %v1758_v63 }
0x1a28   :  { %6646 = vtanh.f32 %v8091_v3 }
0x1a2c   :  { %v1790_v10 = vpop.permute.xlu0 %1789 }
0x1a2d   :  { %v1792_v14 = vadd.f32 %v1790_v10, %v1782_v7 }
0x1a2f   :  { %6648 = vtanh.f32 %v1792_v14 }
0x1a32   :  { %v6647_v15 = vpop.eup %6646 }
0x1a33   :  { %1771 = vrot.lane.b32.xlu1 %v6647_v15, %s7315_s12 }
0x1a39   :  { %v6649_v16 = vpop.eup %6648 }
0x1a3a   :  { %1795 = vrot.lane.b32.xlu0 %v6649_v16, %s7315_s12  ;;  %v2024_v16 = vrot.slane %v8076_v43, 4 }
0x1aa5   :  { %v1772_v17 = vpop.permute.xlu1 %1771 }
0x1aa6   :  { %v1774_v19 = vmul.f32 %v6643_v60, %v1772_v17 }
0x1aa8   :  { %1800 = vrot.lane.b32.xlu1 %v1774_v19, %s7316_s22 }
0x1aac   :  { %v1796_v20 = vpop.permute.xlu0 %1795 }
0x1aad   :  { %v1798_v22 = vmul.f32 %v6645_v62, %v1796_v20  ;;  %v2027_v20 = vrot.slane %v8084_v44, 2 }
0x1aaf   :  { %1805 = vrot.lane.b32.xlu0 %v1798_v22, %s7315_s12 }
0x1b1a   :  { %v1801_v12 = vpop.permute.xlu1 %1800 }
0x1b1b   :  { %1803 = vst.msk [vmem:[#allocation2] sm:$0x3] %vm567_vm7, %v1801_v12 }
0x1b21   :  { %v1806_v6 = vpop.permute.xlu0 %1805 }
0x1b22   :  { %1808 = vst.msk [vmem:[#allocation2 + $0xe] sm:$0x3] %vm573_vm8, %v1806_v6  ;;  %v1809_v23 = vsel %vm575_vm9, %v1801_v12, %v1806_v6 }
0x1b23   :  { %5615 = vmatmul.mubr.msk.f32.vlgmr.msra.gmra.mrb[12].mxu0 %vm435_vm10, %v1809_v23 }
0x1b24   :  { %6068 = vmatpush1.bf16.msra.mxu0 %v7937_v4  ;;  %2156 = vmatprep.mubr.f32.mxu0 %v7314_v46 }
0x1b25   :  { %6070 = vmatprep.subr.bf16.mxu0 %v7959_v52 }
0x1b28   :  { %6072 = vmatpush1.bf16.msra.mxu0 %v7961_v54 }
0x1b29   :  { %6074 = vmatprep.subr.bf16.mxu0 %v7982_v59 }
0x1b2c   :  { %6076 = vmatpush1.bf16.msra.mxu0 %v7994_v0 }
0x1b2d   :  { %6078 = vmatprep.subr.bf16.mxu0 %v8015_v18 }
0x1b30   :  { %6080 = vmatpush1.bf16.msra.mxu0 %v8023_v21 }
0x1b31   :  { %6098 = vmatprep.subr.bf16.mxu0 %v7926_v38 }
0x1bf6   :  { %v1879_v24 = vpop.f32.mrb[12].mxu0 }
0x1bf7   :  { %v1880_v5 = vadd.f32 %v1879_v24, %v8070_v35  ;;  %v1881_v27 = vpop.f32.mrb[13].mxu0 }
0x1bf8   :  { %v1882_v28 = vadd.f32 %v1881_v27, %v8074_v37 }
0x1bf9   :  { %v1887_v13 = vadd.f32 %v1885_v26, %v1880_v5 }
0x1bfa   :  { %v1890_v25 = vadd.f32 %v1888_v29, %v1882_v28 }
0x1bfb   :  { %6650 = vtanh.f32 %v1887_v13  ;;  %v5616_v32 = vmul.f32 -1.442695, %v1887_v13 }
0x1bfc   :  { %6652 = vtanh.f32 %v1890_v25  ;;  %v5617_v33 = vmul.f32 -1.442695, %v1890_v25 }
0x1bfd   :  { %6654 = vpow2.f32 %v5616_v32 }
0x1bfe   :  { %6656 = vpow2.f32 %v5617_v33 }
0x1c05   :  { %v6651_v30 = vpop.eup %6650 }
0x1c06   :  { %v6653_v31 = vpop.eup %6652  ;;  %1900 = vrot.lane.b32.xlu1 %v6651_v30, %s7315_s12 }
0x1c07   :  { %1924 = vrot.lane.b32.xlu0 %v6653_v31, %s7315_s12  ;;  %v6655_v34 = vpop.eup %6654 }
0x1c08   :  { %v6657_v36 = vpop.eup %6656  ;;  %v1894_v39 = vadd.f32 1.0, %v6655_v34 }
0x1c09   :  { %v1918_v42 = vadd.f32 1.0, %v6657_v36 }
0x1c0a   :  { %6658 = vrcp.f32 %v1894_v39 }
0x1c0b   :  { %6660 = vrcp.f32 %v1918_v42 }
0x1c14   :  { %v6659_v8 = vpop.eup %6658 }
0x1c15   :  { %v6661_v48 = vpop.eup %6660  ;;  %v1898_v57 = vmul.f32 %v6659_v8, %v8091_v3 }
0x1c16   :  { %v1922_v58 = vmul.f32 %v6661_v48, %v1792_v14 }
0x1c78   :  { %v1901_v45 = vpop.permute.xlu1 %1900 }
0x1c79   :  { %v1903_v49 = vmul.f32 %v6659_v8, %v1901_v45  ;;  %v1925_v51 = vpop.permute.xlu0 %1924 }
0x1c7a   :  { %v1927_v55 = vmul.f32 %v6661_v48, %v1925_v51 }
0x1c7b   :  { %1905 = vrot.lane.b32.xlu1 %v1903_v49, %s7316_s22 }
0x1c7c   :  { %1929 = vrot.lane.b32.xlu0 %v1927_v55, %s7316_s22 }
0x1ced   :  { %v1906_v47 = vpop.permute.xlu1 %1905 }
0x1cee   :  { %v1908_v50 = vadd.f32 %v1906_v47, %v1898_v57  ;;  %v1930_v60 = vpop.permute.xlu0 %1929 }
0x1cef   :  { %v1932_v53 = vadd.f32 %v1930_v60, %v1922_v58 }
0x1cf0   :  { %6662 = vtanh.f32 %v1908_v50 }
0x1cf1   :  { %6664 = vtanh.f32 %v1932_v53 }
0x1cfa   :  { %v6663_v56 = vpop.eup %6662 }
0x1cfb   :  { %v6665_v62 = vpop.eup %6664  ;;  %1911 = vrot.lane.b32.xlu1 %v6663_v56, %s7315_s12 }
0x1cfc   :  { %1935 = vrot.lane.b32.xlu0 %v6665_v62, %s7315_s12  ;;  %v2163_v62 = vrot.slane %v8076_v43, 6 }
0x1d6d   :  { %v1912_v1 = vpop.permute.xlu1 %1911 }
0x1d6e   :  { %v1914_v61 = vmul.f32 %v6659_v8, %v1912_v1  ;;  %v1936_v63 = vpop.permute.xlu0 %1935 }
0x1d6f   :  { %v1938_v2 = vmul.f32 %v6661_v48, %v1936_v63 }
0x1d70   :  { %1940 = vrot.lane.b32.xlu1 %v1914_v61, %s7316_s22 }
0x1d71   :  { %1945 = vrot.lane.b32.xlu0 %v1938_v2, %s7315_s12 }
0x1de2   :  { %v1941_v3 = vpop.permute.xlu1 %1940 }
0x1de3   :  { %1943 = vst.msk [vmem:[#allocation2 + $0x2] sm:$0x3] %vm567_vm7, %v1941_v3  ;;  %v1946_v7 = vpop.permute.xlu0 %1945 }
0x1de4   :  { %1948 = vst.msk [vmem:[#allocation2 + $0xc] sm:$0x3] %vm573_vm8, %v1946_v7  ;;  %v1949_v10 = vsel %vm575_vm9, %v1941_v3, %v1946_v7 }
0x1de5   :  { %5618 = vmatmul.mubr.msk.f32.vlgmr.msra.gmra.mrb[16].mxu1 %vm435_vm10, %v1949_v10 }
0x1de6   :  { %6084 = vmatpush1.bf16.msra.mxu1 %v7937_v4  ;;  %2293 = vmatprep.mubr.f32.mxu1 %v7314_v46 }
0x1de7   :  { %6086 = vmatprep.subr.bf16.mxu1 %v7959_v52 }
0x1dea   :  { %6088 = vmatpush1.bf16.msra.mxu1 %v7961_v54 }
0x1deb   :  { %6090 = vmatprep.subr.bf16.mxu1 %v7982_v59 }
0x1dee   :  { %6092 = vmatpush1.bf16.msra.mxu1 %v7994_v0 }
0x1def   :  { %6094 = vmatprep.subr.bf16.mxu1 %v8015_v18 }
0x1df2   :  { %6096 = vmatpush1.bf16.msra.mxu1 %v8023_v21 }
0x1df3   :  { %6114 = vmatprep.subr.bf16.mxu1 %v7926_v38 }
0x1eb8   :  { %v2019_v14 = vpop.f32.mrb[16].mxu1 }
0x1eb9   :  { %v2020_v15 = vadd.f32 %v2019_v14, %v8070_v35  ;;  %v2021_v17 = vpop.f32.mrb[17].mxu1 }
0x1eba   :  { %v2022_v19 = vadd.f32 %v2021_v17, %v8074_v37 }
0x1ebb   :  { %v2026_v22 = vadd.f32 %v2024_v16, %v2020_v15 }
0x1ebc   :  { %v2029_v12 = vadd.f32 %v2027_v20, %v2022_v19 }
0x1ebd   :  { %6666 = vtanh.f32 %v2026_v22  ;;  %v5619_v24 = vmul.f32 -1.442695, %v2026_v22 }
0x1ebe   :  { %6668 = vtanh.f32 %v2029_v12  ;;  %v5620_v5 = vmul.f32 -1.442695, %v2029_v12 }
0x1ebf   :  { %6670 = vpow2.f32 %v5619_v24 }
0x1ec0   :  { %6672 = vpow2.f32 %v5620_v5 }
0x1ec7   :  { %v6667_v6 = vpop.eup %6666 }
0x1ec8   :  { %v6669_v23 = vpop.eup %6668  ;;  %2039 = vrot.lane.b32.xlu1 %v6667_v6, %s7315_s12 }
0x1ec9   :  { %2063 = vrot.lane.b32.xlu0 %v6669_v23, %s7315_s12  ;;  %v6671_v26 = vpop.eup %6670 }
0x1eca   :  { %v6673_v27 = vpop.eup %6672  ;;  %v2033_v28 = vadd.f32 1.0, %v6671_v26 }
0x1ecb   :  { %v2057_v29 = vadd.f32 1.0, %v6673_v27 }
0x1ecc   :  { %6674 = vrcp.f32 %v2033_v28 }
0x1ecd   :  { %6676 = vrcp.f32 %v2057_v29 }
0x1ed6   :  { %v6675_v13 = vpop.eup %6674 }
0x1ed7   :  { %v6677_v30 = vpop.eup %6676  ;;  %v2037_v34 = vmul.f32 %v6675_v13, %v1908_v50 }
0x1ed8   :  { %v2061_v39 = vmul.f32 %v6677_v30, %v1932_v53 }
0x1f3a   :  { %v2040_v25 = vpop.permute.xlu1 %2039 }
0x1f3b   :  { %v2042_v31 = vmul.f32 %v6675_v13, %v2040_v25  ;;  %v2064_v32 = vpop.permute.xlu0 %2063 }
0x1f3c   :  { %v2066_v33 = vmul.f32 %v6677_v30, %v2064_v32 }
0x1f3d   :  { %2044 = vrot.lane.b32.xlu1 %v2042_v31, %s7316_s22 }
0x1f3e   :  { %2068 = vrot.lane.b32.xlu0 %v2066_v33, %s7316_s22 }
0x1faf   :  { %v2045_v36 = vpop.permute.xlu1 %2044 }
0x1fb0   :  { %v2047_v42 = vadd.f32 %v2045_v36, %v2037_v34  ;;  %v2069_v8 = vpop.permute.xlu0 %2068 }
0x1fb1   :  { %v2071_v45 = vadd.f32 %v2069_v8, %v2061_v39 }
0x1fb2   :  { %6678 = vtanh.f32 %v2047_v42 }
0x1fb3   :  { %6680 = vtanh.f32 %v2071_v45 }
0x1fbc   :  { %v6679_v48 = vpop.eup %6678 }
0x1fbd   :  { %v6681_v49 = vpop.eup %6680  ;;  %2050 = vrot.lane.b32.xlu1 %v6679_v48, %s7315_s12 }
0x1fbe   :  { %2074 = vrot.lane.b32.xlu0 %v6681_v49, %s7315_s12 }
0x202f   :  { %v2051_v51 = vpop.permute.xlu1 %2050 }
0x2030   :  { %v2053_v55 = vmul.f32 %v6675_v13, %v2051_v51  ;;  %v2075_v57 = vpop.permute.xlu0 %2074 }
0x2031   :  { %v2077_v47 = vmul.f32 %v6677_v30, %v2075_v57 }
0x2032   :  { %2079 = vrot.lane.b32.xlu1 %v2053_v55, %s7316_s22 }
0x2033   :  { %2084 = vrot.lane.b32.xlu0 %v2077_v47, %s7315_s12 }
0x20a4   :  { %v2080_v58 = vpop.permute.xlu1 %2079 }
0x20a5   :  { %2082 = vst.msk [vmem:[#allocation2 + $0x4] sm:$0x3] %vm567_vm7, %v2080_v58  ;;  %v2085_v50 = vpop.permute.xlu0 %2084 }
0x20a6   :  { %2087 = vst.msk [vmem:[#allocation2 + $0xa] sm:$0x3] %vm573_vm8, %v2085_v50  ;;  %v2088_v60 = vsel %vm575_vm9, %v2080_v58, %v2085_v50 }
0x20a7   :  { %5621 = vmatmul.mubr.msk.f32.vlgmr.msra.gmra.mrb[14].mxu0 %vm435_vm10, %v2088_v60 }
0x20a8   :  { %6100 = vmatpush1.bf16.msra.mxu0 %v7937_v4  ;;  %2431 = vmatprep.mubr.f32.mxu0 %v7314_v46 }
0x20a9   :  { %6102 = vmatprep.subr.bf16.mxu0 %v7959_v52 }
0x20ac   :  { %6104 = vmatpush1.bf16.msra.mxu0 %v7961_v54 }
0x20ad   :  { %6106 = vmatprep.subr.bf16.mxu0 %v7982_v59 }
0x20b0   :  { %6108 = vmatpush1.bf16.msra.mxu0 %v7994_v0 }
0x20b1   :  { %6110 = vmatprep.subr.bf16.mxu0 %v8015_v18 }
0x20b4   :  { %6112 = vmatpush1.bf16.msra.mxu0 %v8023_v21 }
0x20b5   :  { %6130 = vmatprep.subr.bf16.mxu0 %v7926_v38 }
0x217a   :  { %v2158_v53 = vpop.f32.mrb[14].mxu0 }
0x217b   :  { %v2159_v56 = vadd.f32 %v2158_v53, %v8070_v35  ;;  %v2160_v1 = vpop.f32.mrb[15].mxu0 }
0x217c   :  { %v2161_v61 = vadd.f32 %v2160_v1, %v8074_v37 }
0x217d   :  { %v2165_v63 = vadd.f32 %v2163_v62, %v2159_v56 }
0x217e   :  { %v2166_v2 = vadd.f32 %v2161_v61, %v8084_v44 }
0x217f   :  { %6682 = vtanh.f32 %v2165_v63  ;;  %v5622_v38 = vmul.f32 -1.442695, %v2165_v63 }
0x2180   :  { %6684 = vtanh.f32 %v2166_v2  ;;  %v5623_v10 = vmul.f32 -1.442695, %v2166_v2 }
0x2181   :  { %6686 = vpow2.f32 %v5622_v38 }
0x2182   :  { %6688 = vpow2.f32 %v5623_v10 }
0x2189   :  { %v6683_v3 = vpop.eup %6682 }
0x218a   :  { %v6685_v7 = vpop.eup %6684  ;;  %2176 = vrot.lane.b32.xlu1 %v6683_v3, %s7315_s12 }
0x218b   :  { %2200 = vrot.lane.b32.xlu0 %v6685_v7, %s7315_s12  ;;  %v6687_v14 = vpop.eup %6686 }
0x218c   :  { %v6689_v43 = vpop.eup %6688  ;;  %v2170_v15 = vadd.f32 1.0, %v6687_v14 }
0x218d   :  { %v2194_v16 = vadd.f32 1.0, %v6689_v43 }
0x218e   :  { %6690 = vrcp.f32 %v2170_v15 }
0x218f   :  { %6692 = vrcp.f32 %v2194_v16 }
0x2198   :  { %v6691_v17 = vpop.eup %6690 }
0x2199   :  { %v6693_v19 = vpop.eup %6692  ;;  %v2174_v6 = vmul.f32 %v6691_v17, %v2047_v42 }
0x219a   :  { %v2198_v24 = vmul.f32 %v6693_v19, %v2071_v45  ;;  %v2302_v45 = vrot.slane %v8079_v40, 6 }
0x21fc   :  { %v2177_v44 = vpop.permute.xlu1 %2176 }
0x21fd   :  { %v2179_v20 = vmul.f32 %v6691_v17, %v2177_v44  ;;  %v2201_v22 = vpop.permute.xlu0 %2200 }
0x21fe   :  { %v2203_v12 = vmul.f32 %v6693_v19, %v2201_v22 }
0x21ff   :  { %2181 = vrot.lane.b32.xlu1 %v2179_v20, %s7316_s22 }
0x2200   :  { %2205 = vrot.lane.b32.xlu0 %v2203_v12, %s7316_s22 }
0x2271   :  { %v2182_v23 = vpop.permute.xlu1 %2181 }
0x2272   :  { %v2184_v5 = vadd.f32 %v2182_v23, %v2174_v6  ;;  %v2206_v26 = vpop.permute.xlu0 %2205 }
0x2273   :  { %v2208_v27 = vadd.f32 %v2206_v26, %v2198_v24 }
0x2274   :  { %6694 = vtanh.f32 %v2184_v5 }
0x2275   :  { %6696 = vtanh.f32 %v2208_v27 }
0x227e   :  { %v6695_v28 = vpop.eup %6694 }
0x227f   :  { %v6697_v29 = vpop.eup %6696  ;;  %2187 = vrot.lane.b32.xlu1 %v6695_v28, %s7315_s12 }
0x2280   :  { %2211 = vrot.lane.b32.xlu0 %v6697_v29, %s7315_s12 }
0x22f1   :  { %v2188_v13 = vpop.permute.xlu1 %2187 }
0x22f2   :  { %v2190_v25 = vmul.f32 %v6691_v17, %v2188_v13  ;;  %v2212_v30 = vpop.permute.xlu0 %2211 }
0x22f3   :  { %v2214_v31 = vmul.f32 %v6693_v19, %v2212_v30 }
0x22f4   :  { %2216 = vrot.lane.b32.xlu1 %v2190_v25, %s7316_s22 }
0x22f5   :  { %2221 = vrot.lane.b32.xlu0 %v2214_v31, %s7315_s12 }
0x2366   :  { %v2217_v32 = vpop.permute.xlu1 %2216 }
0x2367   :  { %2219 = vst.msk [vmem:[#allocation2 + $0x6] sm:$0x3] %vm567_vm7, %v2217_v32  ;;  %v2222_v33 = vpop.permute.xlu0 %2221 }
0x2368   :  { %2224 = vst.msk [vmem:[#allocation2 + $0x8] sm:$0x3] %vm573_vm8, %v2222_v33  ;;  %v2225_v34 = vsel %vm575_vm9, %v2217_v32, %v2222_v33 }
0x2369   :  { %5624 = vmatmul.mubr.msk.f32.vlgmr.msra.gmra.mrb[18].mxu1 %vm435_vm10, %v2225_v34 }
0x236a   :  { %6116 = vmatpush1.bf16.msra.mxu1 %v7937_v4  ;;  %2571 = vmatprep.mubr.f32.mxu1 %v7314_v46 }
0x236b   :  { %6118 = vmatprep.subr.bf16.mxu1 %v7959_v52 }
0x236e   :  { %6120 = vmatpush1.bf16.msra.mxu1 %v7961_v54 }
0x236f   :  { %6122 = vmatprep.subr.bf16.mxu1 %v7982_v59 }
0x2372   :  { %6124 = vmatpush1.bf16.msra.mxu1 %v7994_v0 }
0x2373   :  { %6126 = vmatprep.subr.bf16.mxu1 %v8015_v18 }
0x2376   :  { %6128 = vmatpush1.bf16.msra.mxu1 %v8023_v21 }
0x243c   :  { %v2295_v36 = vpop.f32.mrb[18].mxu1 }
0x243d   :  { %v2296_v39 = vadd.f32 %v2295_v36, %v8070_v35  ;;  %v2297_v42 = vpop.f32.mrb[19].mxu1 }
0x243e   :  { %v2298_v8 = vadd.f32 %v2297_v42, %v8074_v37 }
0x243f   :  { %v2300_v48 = vadd.f32 %v2296_v39, %v8081_v41 }
0x2440   :  { %v2304_v49 = vadd.f32 %v2302_v45, %v2298_v8 }
0x2441   :  { %6698 = vtanh.f32 %v2300_v48  ;;  %v5625_v57 = vmul.f32 -1.442695, %v2300_v48 }
0x2442   :  { %6700 = vtanh.f32 %v2304_v49  ;;  %v5626_v47 = vmul.f32 -1.442695, %v2304_v49 }
0x2443   :  { %6702 = vpow2.f32 %v5625_v57 }
0x2444   :  { %6704 = vpow2.f32 %v5626_v47 }
0x244b   :  { %v6699_v51 = vpop.eup %6698 }
0x244c   :  { %v6701_v55 = vpop.eup %6700  ;;  %2314 = vrot.lane.b32.xlu1 %v6699_v51, %s7315_s12 }
0x244d   :  { %2338 = vrot.lane.b32.xlu0 %v6701_v55, %s7315_s12  ;;  %v6703_v58 = vpop.eup %6702 }
0x244e   :  { %v6705_v50 = vpop.eup %6704  ;;  %v2308_v60 = vadd.f32 1.0, %v6703_v58 }
0x244f   :  { %v2332_v53 = vadd.f32 1.0, %v6705_v50 }
0x2450   :  { %6706 = vrcp.f32 %v2308_v60 }
0x2451   :  { %6708 = vrcp.f32 %v2332_v53 }
0x245a   :  { %v6707_v56 = vpop.eup %6706 }
0x245b   :  { %v6709_v1 = vpop.eup %6708  ;;  %v2312_v3 = vmul.f32 %v6707_v56, %v2184_v5  ;;  %v2439_v5 = vrot.slane %v8081_v41, 2 }
0x245c   :  { %v2336_v38 = vmul.f32 %v6709_v1, %v2208_v27 }
0x24be   :  { %v2315_v62 = vpop.permute.xlu1 %2314 }
0x24bf   :  { %v2317_v61 = vmul.f32 %v6707_v56, %v2315_v62  ;;  %v2339_v63 = vpop.permute.xlu0 %2338 }
0x24c0   :  { %v2341_v2 = vmul.f32 %v6709_v1, %v2339_v63 }
0x24c1   :  { %2319 = vrot.lane.b32.xlu1 %v2317_v61, %s7316_s22  ;;  %v2578_v61 = vrot.slane %v8081_v41, 4 }
0x24c2   :  { %2343 = vrot.lane.b32.xlu0 %v2341_v2, %s7316_s22 }
0x2533   :  { %v2320_v7 = vpop.permute.xlu1 %2319 }
0x2534   :  { %v2322_v10 = vadd.f32 %v2320_v7, %v2312_v3  ;;  %v2344_v14 = vpop.permute.xlu0 %2343  ;;  %v2581_v3 = vrot.slane %v8079_v40, 2 }
0x2535   :  { %v2346_v43 = vadd.f32 %v2344_v14, %v2336_v38 }
0x2536   :  { %6710 = vtanh.f32 %v2322_v10 }
0x2537   :  { %6712 = vtanh.f32 %v2346_v43 }
0x2540   :  { %v6711_v15 = vpop.eup %6710 }
0x2541   :  { %v6713_v16 = vpop.eup %6712  ;;  %2325 = vrot.lane.b32.xlu1 %v6711_v15, %s7315_s12 }
0x2542   :  { %2349 = vrot.lane.b32.xlu0 %v6713_v16, %s7315_s12 }
0x25b3   :  { %v2326_v17 = vpop.permute.xlu1 %2325 }
0x25b4   :  { %v2328_v44 = vmul.f32 %v6707_v56, %v2326_v17  ;;  %v2350_v19 = vpop.permute.xlu0 %2349 }
0x25b5   :  { %v2352_v20 = vmul.f32 %v6709_v1, %v2350_v19 }
0x25b6   :  { %2354 = vrot.lane.b32.xlu1 %v2328_v44, %s7316_s22 }
0x25b7   :  { %2359 = vrot.lane.b32.xlu0 %v2352_v20, %s7315_s12 }
0x2628   :  { %v2355_v22 = vpop.permute.xlu1 %2354 }
0x2629   :  { %2357 = vst.msk [vmem:[#allocation2 + $0x8] sm:$0x3] %vm567_vm7, %v2355_v22  ;;  %v2360_v12 = vpop.permute.xlu0 %2359 }
0x262a   :  { %2362 = vst.msk [vmem:[#allocation2 + $0x6] sm:$0x3] %vm573_vm8, %v2360_v12  ;;  %v2363_v6 = vsel %vm575_vm9, %v2355_v22, %v2360_v12 }
0x262b   :  { %5627 = vmatmul.mubr.msk.f32.vlgmr.msra.gmra.mrb[16].mxu0 %vm435_vm10, %v2363_v6 }
0x262c   :  { %6132 = vmatpush1.bf16.msra.mxu0 %v7937_v4  ;;  %2710 = vmatprep.mubr.f32.mxu0 %v7314_v46 }
0x262d   :  { %6134 = vmatprep.subr.bf16.mxu0 %v7959_v52  ;;  %v2442_v52 = vrot.slane %v8079_v40, 4 }
0x2630   :  { %6136 = vmatpush1.bf16.msra.mxu0 %v7961_v54 }
0x2631   :  { %6138 = vmatprep.subr.bf16.mxu0 %v7982_v59 }
0x2634   :  { %6140 = vmatpush1.bf16.msra.mxu0 %v7994_v0 }
0x2635   :  { %6142 = vmatprep.subr.bf16.mxu0 %v8015_v18 }
0x2638   :  { %6144 = vmatpush1.bf16.msra.mxu0 %v8023_v21 }
0x26fe   :  { %v2433_v23 = vpop.f32.mrb[16].mxu0 }
0x26ff   :  { %v2434_v24 = vadd.f32 %v2433_v23, %v8070_v35  ;;  %v2435_v4 = vpop.f32.mrb[17].mxu0 }
0x2700   :  { %v2436_v26 = vadd.f32 %v2435_v4, %v8074_v37 }
0x2701   :  { %v2441_v27 = vadd.f32 %v2439_v5, %v2434_v24 }
0x2702   :  { %v2444_v54 = vadd.f32 %v2442_v52, %v2436_v26 }
0x2703   :  { %6714 = vtanh.f32 %v2441_v27  ;;  %v5628_v18 = vmul.f32 -1.442695, %v2441_v27 }
0x2704   :  { %6716 = vtanh.f32 %v2444_v54  ;;  %v5629_v21 = vmul.f32 -1.442695, %v2444_v54 }
0x2705   :  { %6718 = vpow2.f32 %v5628_v18 }
0x2706   :  { %6720 = vpow2.f32 %v5629_v21 }
0x270d   :  { %v6715_v59 = vpop.eup %6714 }
0x270e   :  { %v6717_v0 = vpop.eup %6716  ;;  %2454 = vrot.lane.b32.xlu1 %v6715_v59, %s7315_s12 }
0x270f   :  { %2478 = vrot.lane.b32.xlu0 %v6717_v0, %s7315_s12  ;;  %v6719_v28 = vpop.eup %6718 }
0x2710   :  { %v6721_v29 = vpop.eup %6720  ;;  %v2448_v13 = vadd.f32 1.0, %v6719_v28 }
0x2711   :  { %v2472_v25 = vadd.f32 1.0, %v6721_v29 }
0x2712   :  { %6722 = vrcp.f32 %v2448_v13 }
0x2713   :  { %6724 = vrcp.f32 %v2472_v25 }
0x271c   :  { %v6723_v30 = vpop.eup %6722 }
0x271d   :  { %v6725_v32 = vpop.eup %6724  ;;  %v2452_v39 = vmul.f32 %v6723_v30, %v2322_v10 }
0x271e   :  { %v2476_v8 = vmul.f32 %v6725_v32, %v2346_v43 }
0x2780   :  { %v2455_v31 = vpop.permute.xlu1 %2454 }
0x2781   :  { %v2457_v33 = vmul.f32 %v6723_v30, %v2455_v31  ;;  %v2479_v34 = vpop.permute.xlu0 %2478 }
0x2782   :  { %v2481_v36 = vmul.f32 %v6725_v32, %v2479_v34 }
0x2783   :  { %2459 = vrot.lane.b32.xlu1 %v2457_v33, %s7316_s22  ;;  %v2717_v33 = vrot.slane %v8081_v41, 6 }
0x2784   :  { %2483 = vrot.lane.b32.xlu0 %v2481_v36, %s7316_s22 }
0x27f5   :  { %v2460_v42 = vpop.permute.xlu1 %2459 }
0x27f6   :  { %v2462_v45 = vadd.f32 %v2460_v42, %v2452_v39  ;;  %v2484_v48 = vpop.permute.xlu0 %2483 }
0x27f7   :  { %v2486_v49 = vadd.f32 %v2484_v48, %v2476_v8 }
0x27f8   :  { %6726 = vtanh.f32 %v2462_v45 }
0x27f9   :  { %6728 = vtanh.f32 %v2486_v49 }
0x2802   :  { %v6727_v51 = vpop.eup %6726 }
0x2803   :  { %v6729_v55 = vpop.eup %6728  ;;  %2465 = vrot.lane.b32.xlu1 %v6727_v51, %s7315_s12 }
0x2804   :  { %2489 = vrot.lane.b32.xlu0 %v6729_v55, %s7315_s12 }
0x2875   :  { %v2466_v57 = vpop.permute.xlu1 %2465 }
0x2876   :  { %v2468_v47 = vmul.f32 %v6723_v30, %v2466_v57  ;;  %v2490_v58 = vpop.permute.xlu0 %2489 }
0x2877   :  { %v2492_v50 = vmul.f32 %v6725_v32, %v2490_v58 }
0x2878   :  { %2494 = vrot.lane.b32.xlu1 %v2468_v47, %s7316_s22 }
0x2879   :  { %2499 = vrot.lane.b32.xlu0 %v2492_v50, %s7315_s12 }
0x28ea   :  { %v2495_v60 = vpop.permute.xlu1 %2494 }
0x28eb   :  { %2497 = vst.msk [vmem:[#allocation2 + $0xa] sm:$0x3] %vm567_vm7, %v2495_v60  ;;  %v2500_v53 = vpop.permute.xlu0 %2499 }
0x28ec   :  { %2502 = vst.msk [vmem:[#allocation2 + $0x4] sm:$0x3] %vm573_vm8, %v2500_v53  ;;  %v2503_v56 = vsel %vm575_vm9, %v2495_v60, %v2500_v53 }
0x28ed   :  { %5630 = vmatmul.mubr.msk.f32.vlgmr.msra.gmra.mrb[20].mxu1 %vm435_vm10, %v2503_v56 }
0x28ee   :  { %2884 = vmatprep.mubr.f32.mxu1 %v7314_v46 }
0x29c0   :  { %v2573_v62 = vpop.f32.mrb[20].mxu1 }
0x29c1   :  { %v2574_v1 = vadd.f32 %v2573_v62, %v8070_v35  ;;  %v2575_v63 = vpop.f32.mrb[21].mxu1 }
0x29c2   :  { %v2576_v2 = vadd.f32 %v2575_v63, %v8074_v37  ;;  %v2798_v63 = vld [vmem:[%s8897_s9 + $0x8] sm:$0xff] }
0x29c3   :  { %v2580_v7 = vadd.f32 %v2578_v61, %v2574_v1 }
0x29c4   :  { %v2583_v38 = vadd.f32 %v2581_v3, %v2576_v2  ;;  %v2800_v2 = vld [vmem:[%s8897_s9 + $0x18] sm:$0xff]  ;;  %v2797_v3 = vld [vmem:[%s8897_s9] sm:$0xff] }
0x29c5   :  { %6730 = vtanh.f32 %v2580_v7  ;;  %v5631_v43 = vmul.f32 -1.442695, %v2580_v7  ;;  %v8269_v7 = vpack.c.bf16 %v2800_v2, %v2798_v63 }
0x29c6   :  { %6732 = vtanh.f32 %v2583_v38  ;;  %v5632_v15 = vmul.f32 -1.442695, %v2583_v38  ;;  %v2799_v38 = vld [vmem:[%s8897_s9 + $0x10] sm:$0xff] }
0x29c7   :  { %6734 = vpow2.f32 %v5631_v43  ;;  %v8280_v43 = vpack.c.bf16 %v2799_v38, %v2797_v3  ;;  %6162 = vmatprep.subr.bf16.mxu0 %v8269_v7 }
0x29c8   :  { %6736 = vpow2.f32 %v5632_v15 }
0x29cf   :  { %v6731_v10 = vpop.eup %6730 }
0x29d0   :  { %v6733_v14 = vpop.eup %6732  ;;  %2593 = vrot.lane.b32.xlu1 %v6731_v10, %s7315_s12  ;;  %v2782_v10 = vld [vmem:[%s8896_s8 + $0x8] sm:$0xff] }
0x29d1   :  { %2617 = vrot.lane.b32.xlu0 %v6733_v14, %s7315_s12  ;;  %v6735_v16 = vpop.eup %6734  ;;  %v2784_v14 = vld [vmem:[%s8896_s8 + $0x18] sm:$0xff] }
0x29d2   :  { %v6737_v17 = vpop.eup %6736  ;;  %v2587_v44 = vadd.f32 1.0, %v6735_v16  ;;  %v6145_v15 = vpack.c.bf16 %v2784_v14, %v2782_v10  ;;  %v2781_v16 = vld [vmem:[%s8896_s8] sm:$0xff] }
0x29d3   :  { %v2611_v19 = vadd.f32 1.0, %v6737_v17  ;;  %v2783_v17 = vld [vmem:[%s8896_s8 + $0x10] sm:$0xff] }
0x29d4   :  { %6738 = vrcp.f32 %v2587_v44  ;;  %v2802_v44 = vld [vmem:[%s8897_s9 + $0x28] sm:$0xff]  ;;  %6146 = vmatprep.subr.bf16.mxu1 %v6145_v15 }
0x29d5   :  { %6740 = vrcp.f32 %v2611_v19  ;;  %v6147_v19 = vpack.c.bf16 %v2783_v17, %v2781_v16 }
0x29d7   :  { %6148 = vmatpush1.bf16.msra.mxu1 %v6147_v19 }
0x29de   :  { %v6739_v20 = vpop.eup %6738 }
0x29df   :  { %v6741_v12 = vpop.eup %6740  ;;  %v2591_v5 = vmul.f32 %v6739_v20, %v2462_v45 }
0x29e0   :  { %v2615_v26 = vmul.f32 %v6741_v12, %v2486_v49 }
0x2a42   :  { %v2594_v22 = vpop.permute.xlu1 %2593 }
0x2a43   :  { %v2596_v6 = vmul.f32 %v6739_v20, %v2594_v22  ;;  %v2618_v23 = vpop.permute.xlu0 %2617  ;;  %v2801_v22 = vld [vmem:[%s8897_s9 + $0x20] sm:$0xff] }
0x2a44   :  { %v2620_v24 = vmul.f32 %v6741_v12, %v2618_v23 }
0x2a45   :  { %2598 = vrot.lane.b32.xlu1 %v2596_v6, %s7316_s22 }
0x2a46   :  { %2622 = vrot.lane.b32.xlu0 %v2620_v24, %s7316_s22  ;;  %v2786_v24 = vld [vmem:[%s8896_s8 + $0x28] sm:$0xff] }
0x2ab7   :  { %v2599_v4 = vpop.permute.xlu1 %2598 }
0x2ab8   :  { %v2601_v52 = vadd.f32 %v2599_v4, %v2591_v5  ;;  %v2623_v27 = vpop.permute.xlu0 %2622  ;;  %v2788_v5 = vld [vmem:[%s8896_s8 + $0x38] sm:$0xff]  ;;  %v2785_v4 = vld [vmem:[%s8896_s8 + $0x20] sm:$0xff] }
0x2ab9   :  { %v2625_v54 = vadd.f32 %v2623_v27, %v2615_v26  ;;  %v6149_v26 = vpack.c.bf16 %v2788_v5, %v2786_v24  ;;  %v2806_v27 = vld [vmem:[%s8897_s9 + $0x48] sm:$0xff] }
0x2aba   :  { %6742 = vtanh.f32 %v2601_v52 }
0x2abb   :  { %6744 = vtanh.f32 %v2625_v54  ;;  %6150 = vmatprep.subr.bf16.mxu1 %v6149_v26 }
0x2ac4   :  { %v6743_v59 = vpop.eup %6742 }
0x2ac5   :  { %v6745_v0 = vpop.eup %6744  ;;  %2604 = vrot.lane.b32.xlu1 %v6743_v59, %s7315_s12 }
0x2ac6   :  { %2628 = vrot.lane.b32.xlu0 %v6745_v0, %s7315_s12 }
0x2b37   :  { %v2605_v18 = vpop.permute.xlu1 %2604 }
0x2b38   :  { %v2607_v21 = vmul.f32 %v6739_v20, %v2605_v18  ;;  %v2629_v28 = vpop.permute.xlu0 %2628  ;;  %v2804_v20 = vld [vmem:[%s8897_s9 + $0x38] sm:$0xff] }
0x2b39   :  { %v2631_v29 = vmul.f32 %v6741_v12, %v2629_v28  ;;  %v2803_v12 = vld [vmem:[%s8897_s9 + $0x30] sm:$0xff]  ;;  %v8302_v6 = vpack.c.bf16 %v2804_v20, %v2802_v44  ;;  %v2805_v28 = vld [vmem:[%s8897_s9 + $0x40] sm:$0xff] }
0x2b3a   :  { %2633 = vrot.lane.b32.xlu1 %v2607_v21, %s7316_s22  ;;  %v8304_v23 = vpack.c.bf16 %v2803_v12, %v2801_v22 }
0x2b3b   :  { %2638 = vrot.lane.b32.xlu0 %v2631_v29, %s7315_s12  ;;  %v2807_v29 = vld [vmem:[%s8897_s9 + $0x50] sm:$0xff] }
0x2bac   :  { %v2634_v13 = vpop.permute.xlu1 %2633 }
0x2bad   :  { %2636 = vst.msk [vmem:[#allocation2 + $0xc] sm:$0x3] %vm567_vm7, %v2634_v13  ;;  %v2639_v25 = vpop.permute.xlu0 %2638 }
0x2bae   :  { %2641 = vst.msk [vmem:[#allocation2 + $0x2] sm:$0x3] %vm573_vm8, %v2639_v25  ;;  %v2642_v30 = vsel %vm575_vm9, %v2634_v13, %v2639_v25  ;;  %v8337_v13 = vpack.c.bf16 %v2807_v29, %v2805_v28  ;;  %v2790_v25 = vld [vmem:[%s8896_s8 + $0x48] sm:$0xff] }
0x2baf   :  { %5633 = vmatmul.mubr.msk.f32.vlgmr.msra.gmra.mrb[18].mxu0 %vm435_vm10, %v2642_v30  ;;  %v2792_v30 = vld [vmem:[%s8896_s8 + $0x58] sm:$0xff] }
0x2bb0   :  { %2972 = vmatprep.mubr.f32.mxu0 %v7314_v46  ;;  %6164 = vmatpush1.bf16.msra.mxu0 %v8280_v43 }
0x2bb1   :  { %6166 = vmatprep.subr.bf16.mxu0 %v8302_v6 }
0x2bb4   :  { %6168 = vmatpush1.bf16.msra.mxu0 %v8304_v23 }
0x2c82   :  { %v2712_v31 = vpop.f32.mrb[18].mxu0 }
0x2c83   :  { %v2713_v32 = vadd.f32 %v2712_v31, %v8070_v35  ;;  %v2714_v34 = vpop.f32.mrb[19].mxu0  ;;  %v6153_v31 = vpack.c.bf16 %v2792_v30, %v2790_v25 }
0x2c84   :  { %v2715_v36 = vadd.f32 %v2714_v34, %v8074_v37 }
0x2c85   :  { %v2719_v39 = vadd.f32 %v2717_v33, %v2713_v32  ;;  %v2789_v32 = vld [vmem:[%s8896_s8 + $0x40] sm:$0xff]  ;;  %v2791_v33 = vld [vmem:[%s8896_s8 + $0x50] sm:$0xff] }
0x2c86   :  { %v2720_v42 = vadd.f32 %v2715_v36, %v8079_v40  ;;  %v6155_v34 = vpack.c.bf16 %v2791_v33, %v2789_v32  ;;  %v2810_v36 = vld [vmem:[%s8897_s9 + $0x68] sm:$0xff] }
0x2c87   :  { %6746 = vtanh.f32 %v2719_v39  ;;  %v5634_v48 = vmul.f32 -1.442695, %v2719_v39  ;;  %v2812_v39 = vld [vmem:[%s8897_s9 + $0x78] sm:$0xff] }
0x2c88   :  { %6748 = vtanh.f32 %v2720_v42  ;;  %v5635_v49 = vmul.f32 -1.442695, %v2720_v42  ;;  %v8358_v42 = vpack.c.bf16 %v2812_v39, %v2810_v36 }
0x2c89   :  { %6750 = vpow2.f32 %v5634_v48 }
0x2c8a   :  { %6752 = vpow2.f32 %v5635_v49  ;;  %v2794_v49 = vld [vmem:[%s8896_s8 + $0x68] sm:$0xff] }
0x2c91   :  { %v6747_v8 = vpop.eup %6746 }
0x2c92   :  { %v6749_v45 = vpop.eup %6748  ;;  %2730 = vrot.lane.b32.xlu0 %v6747_v8, %s7315_s12  ;;  %v2809_v8 = vld [vmem:[%s8897_s9 + $0x60] sm:$0xff] }
0x2c93   :  { %2754 = vrot.lane.b32.xlu1 %v6749_v45, %s7315_s12  ;;  %v6751_v35 = vpop.eup %6750  ;;  %v2811_v45 = vld [vmem:[%s8897_s9 + $0x70] sm:$0xff] }
0x2c94   :  { %v6753_v41 = vpop.eup %6752  ;;  %v2724_v51 = vadd.f32 1.0, %v6751_v35  ;;  %v8366_v48 = vpack.c.bf16 %v2811_v45, %v2809_v8  ;;  %v2796_v35 = vld [vmem:[%s8896_s8 + $0x78] sm:$0xff] }
0x2c95   :  { %v2748_v55 = vadd.f32 1.0, %v6753_v41  ;;  %v6157_v41 = vpack.c.bf16 %v2796_v35, %v2794_v49 }
0x2c96   :  { %6754 = vrcp.f32 %v2724_v51  ;;  %v2793_v51 = vld [vmem:[%s8896_s8 + $0x60] sm:$0xff] }
0x2c97   :  { %6756 = vrcp.f32 %v2748_v55  ;;  %v2795_v55 = vld [vmem:[%s8896_s8 + $0x70] sm:$0xff] }
0x2ca0   :  { %v8250_v37 = vpop.eup %6754 }
0x2ca1   :  { %v8252_v57 = vpop.eup %6756  ;;  %v2728_v60 = vmul.f32 %v8250_v37, %v2601_v52  ;;  %v2787_v52 = vld [vmem:[%s8896_s8 + $0x30] sm:$0xff] }
0x2ca2   :  { %v2752_v56 = vmul.f32 %v8252_v57, %v2625_v54  ;;  %v2808_v54 = vld [vmem:[%s8897_s9 + $0x58] sm:$0xff]  ;;  %v6151_v59 = vpack.c.bf16 %v2787_v52, %v2785_v4 }
0x2ca3   :  { %v8325_v0 = vpack.c.bf16 %v2808_v54, %v2806_v27 }
0x2ca4   :  { %6152 = vmatpush1.bf16.msra.mxu1 %v6151_v59 }
0x2ca5   :  { %6170 = vmatprep.subr.bf16.mxu0 %v8325_v0  ;;  %6154 = vmatprep.subr.bf16.mxu1 %v6153_v31 }
0x2ca6   :  { %6172 = vmatpush1.bf16.msra.mxu0 %v8337_v13 }
0x2ca7   :  { %6174 = vmatprep.subr.bf16.mxu0 %v8358_v42 }
0x2ca8   :  { %6156 = vmatpush1.bf16.msra.mxu1 %v6155_v34 }
0x2ca9   :  { %6158 = vmatprep.subr.bf16.mxu1 %v6157_v41 }
0x2caa   :  { %6176 = vmatpush1.bf16.msra.mxu0 %v8366_v48 }
0x2cab   :  { %6194 = vmatprep.subr.bf16.mxu0 %v8269_v7 }
0x2cad   :  { %2973 = vmatmul.mubr.f32.vlgmr.msra.gmra.mrb[20].mxu0 %v7314_v46 }
0x2cae   :  { %6196 = vmatpush1.bf16.msra.mxu0 %v8280_v43  ;;  %3250 = vmatprep.mubr.f32.mxu0 %v7314_v46 }
0x2caf   :  { %6198 = vmatprep.subr.bf16.mxu0 %v8302_v6 }
0x2cb2   :  { %6200 = vmatpush1.bf16.msra.mxu0 %v8304_v23 }
0x2cb3   :  { %6202 = vmatprep.subr.bf16.mxu0 %v8325_v0 }
0x2cb6   :  { %6204 = vmatpush1.bf16.msra.mxu0 %v8337_v13 }
0x2cb7   :  { %6206 = vmatprep.subr.bf16.mxu0 %v8358_v42 }
0x2cba   :  { %6208 = vmatpush1.bf16.msra.mxu0 %v8366_v48 }
0x2cbb   :  { %6226 = vmatprep.subr.bf16.mxu0 %v8269_v7 }
0x2d04   :  { %v2731_v40 = vpop.permute.xlu0 %2730 }
0x2d05   :  { %v2733_v47 = vmul.f32 %v8250_v37, %v2731_v40  ;;  %v2755_v58 = vpop.permute.xlu1 %2754  ;;  %v6159_v40 = vpack.c.bf16 %v2795_v55, %v2793_v51 }
0x2d06   :  { %v2757_v50 = vmul.f32 %v8252_v57, %v2755_v58 }
0x2d07   :  { %2735 = vrot.lane.b32.xlu0 %v2733_v47, %s7316_s22  ;;  %6160 = vmatpush1.bf16.msra.mxu1 %v6159_v40 }
0x2d08   :  { %2759 = vrot.lane.b32.xlu1 %v2757_v50, %s7316_s22  ;;  %6178 = vmatprep.subr.bf16.mxu1 %v8269_v7 }
0x2d79   :  { %v2736_v53 = vpop.permute.xlu0 %2735 }
0x2d7a   :  { %v2738_v62 = vadd.f32 %v2736_v53, %v2728_v60  ;;  %v2760_v1 = vpop.permute.xlu1 %2759 }
0x2d7b   :  { %v2762_v61 = vadd.f32 %v2760_v1, %v2752_v56 }
0x2d7c   :  { %6758 = vtanh.f32 %v2738_v62 }
0x2d7d   :  { %6760 = vtanh.f32 %v2762_v61  ;;  %v2813_v61 = vld [vmem:[#allocation7] sm:$0x3] }
0x2d7e   :  { %v8413_v63 = vrot.slane %v2813_v61, %v7723_v9  ;;  %v8417_v3 = vrot.slane %v2813_v61, %v7728_v11 }
0x2d80   :  { %v2974_v62 = vpop.f32.mrb[20].mxu0 }
0x2d81   :  { %v2976_v1 = vpop.f32.mrb[21].mxu0  ;;  %v2975_v2 = vadd.f32 %v2974_v62, %v8413_v63 }
0x2d82   :  { %v2977_v16 = vadd.f32 %v2976_v1, %v8417_v3 }
0x2d86   :  { %v6759_v18 = vpop.eup %6758 }
0x2d87   :  { %v6761_v21 = vpop.eup %6760  ;;  %2741 = vrot.lane.b32.xlu0 %v6759_v18, %s7315_s12 }
0x2d88   :  { %2765 = vrot.lane.b32.xlu1 %v6761_v21, %s7315_s12 }
0x2df9   :  { %v2742_v47 = vpop.permute.xlu0 %2741 }
0x2dfa   :  { %v2744_v58 = vmul.f32 %v8250_v37, %v2742_v47  ;;  %v2766_v50 = vpop.permute.xlu1 %2765 }
0x2dfb   :  { %v2768_v60 = vmul.f32 %v8252_v57, %v2766_v50 }
0x2dfc   :  { %2770 = vrot.lane.b32.xlu0 %v2744_v58, %s7316_s22 }
0x2dfd   :  { %2775 = vrot.lane.b32.xlu1 %v2768_v60, %s7315_s12 }
0x2e6e   :  { %v2771_v37 = vpop.permute.xlu0 %2770 }
0x2e6f   :  { %2773 = vst.msk [vmem:[#allocation2 + $0xe] sm:$0x3] %vm567_vm7, %v2771_v37  ;;  %v2776_v57 = vpop.permute.xlu1 %2775 }
0x2e70   :  { %2778 = vst.msk [vmem:[#allocation2] sm:$0x3] %vm573_vm8, %v2776_v57 }
0x2e76   :  { %v2780_v56 = vld [vmem:[#allocation2 + $0x8] sm:$0xff] }
0x2e77   :  { %v2779_v53 = vld [vmem:[#allocation2] sm:$0xff] }
0x2e78   :  { %5636 = vmatmul.mubr.msk.f32.vlgmr.msra.gmra.mrb[22].mxu1 %vm435_vm10, %v2779_v53 }
0x2e79   :  { %2890 = vmatprep.mubr.f32.mxu1 %v7314_v46  ;;  %6180 = vmatpush1.bf16.msra.mxu1 %v8280_v43 }
0x2e7a   :  { %6182 = vmatprep.subr.bf16.mxu1 %v8302_v6 }
0x2e7c   :  { %5637 = vmatmul.mubr.msk.f32.gmra.mrb[24].mxu1 %vm435_vm10, %v2780_v56 }
0x2e7d   :  { %6184 = vmatpush1.bf16.msra.mxu1 %v8304_v23  ;;  %3110 = vmatprep.mubr.f32.mxu1 %v7314_v46 }
0x2e7e   :  { %6186 = vmatprep.subr.bf16.mxu1 %v8325_v0 }
0x2e81   :  { %6188 = vmatpush1.bf16.msra.mxu1 %v8337_v13 }
0x2e82   :  { %6190 = vmatprep.subr.bf16.mxu1 %v8358_v42 }
0x2e85   :  { %6192 = vmatpush1.bf16.msra.mxu1 %v8366_v48 }
0x2e86   :  { %6210 = vmatprep.subr.bf16.mxu1 %v8269_v7 }
0x2f4b   :  { %v8419_v38 = vpop.f32.mrb[22].mxu1 }
0x2f4c   :  { %v2979_v10 = vadd.f32 %v2975_v2, %v8419_v38  ;;  %v8422_v14 = vpop.f32.mrb[23].mxu1  ;;  %v3118_v47 = vrot.slane %v8419_v38, 2 }
0x2f4e   :  { %6762 = vtanh.f32 %v2979_v10  ;;  %v5638_v12 = vmul.f32 -1.442695, %v2979_v10 }
0x2f4f   :  { %v8424_v15 = vpop.f32.mrb[24].mxu1 }
0x2f50   :  { %v8427_v17 = vpop.f32.mrb[25].mxu1 }
0x2f51   :  { %v2981_v44 = vrot.slane %v8427_v17, 6  ;;  %v3121_v60 = vrot.slane %v8427_v17, 4 }
0x2f53   :  { %v2983_v19 = vadd.f32 %v2981_v44, %v2977_v16 }
0x2f55   :  { %6764 = vtanh.f32 %v2983_v19  ;;  %v5639_v24 = vmul.f32 -1.442695, %v2983_v19 }
0x2f56   :  { %6766 = vpow2.f32 %v5638_v12 }
0x2f57   :  { %6768 = vpow2.f32 %v5639_v24 }
0x2f58   :  { %v6763_v20 = vpop.eup %6762 }
0x2f59   :  { %2993 = vrot.lane.b32.xlu1 %v6763_v20, %s7315_s12 }
0x2f5f   :  { %v6765_v22 = vpop.eup %6764 }
0x2f60   :  { %3017 = vrot.lane.b32.xlu0 %v6765_v22, %s7315_s12  ;;  %v6767_v5 = vpop.eup %6766 }
0x2f61   :  { %v2987_v4 = vadd.f32 1.0, %v6767_v5  ;;  %v6769_v26 = vpop.eup %6768 }
0x2f62   :  { %v3011_v52 = vadd.f32 1.0, %v6769_v26 }
0x2f63   :  { %6770 = vrcp.f32 %v2987_v4 }
0x2f64   :  { %6772 = vrcp.f32 %v3011_v52 }
0x2f6d   :  { %v6771_v27 = vpop.eup %6770 }
0x2f6e   :  { %v6773_v18 = vpop.eup %6772  ;;  %v2991_v29 = vmul.f32 0.0, %v6771_v27 }
0x2f6f   :  { %v3015_v31 = vmul.f32 0.0, %v6773_v18 }
0x2fcb   :  { %v2994_v54 = vpop.permute.xlu1 %2993 }
0x2fcc   :  { %v2996_v59 = vmul.f32 %v6771_v27, %v2994_v54 }
0x2fce   :  { %2998 = vrot.lane.b32.xlu1 %v2996_v59, %s7316_s22 }
0x2fd2   :  { %v3018_v21 = vpop.permute.xlu0 %3017 }
0x2fd3   :  { %v3020_v28 = vmul.f32 %v6773_v18, %v3018_v21 }
0x2fd5   :  { %3022 = vrot.lane.b32.xlu0 %v3020_v28, %s7316_s22 }
0x3040   :  { %v2999_v25 = vpop.permute.xlu1 %2998 }
0x3041   :  { %v8434_v30 = vadd.f32 %v2999_v25, %v2991_v29 }
0x3043   :  { %6774 = vtanh.f32 %v8434_v30 }
0x3047   :  { %v3023_v32 = vpop.permute.xlu0 %3022 }
0x3048   :  { %v3025_v33 = vadd.f32 %v3023_v32, %v3015_v31 }
0x304a   :  { %6776 = vtanh.f32 %v3025_v33 }
0x304d   :  { %v6775_v34 = vpop.eup %6774 }
0x304e   :  { %3004 = vrot.lane.b32.xlu1 %v6775_v34, %s7315_s12 }
0x3054   :  { %v6777_v36 = vpop.eup %6776 }
0x3055   :  { %3028 = vrot.lane.b32.xlu0 %v6777_v36, %s7315_s12  ;;  %v3257_v36 = vrot.slane %v8419_v38, 4 }
0x30c0   :  { %v3005_v39 = vpop.permute.xlu1 %3004 }
0x30c1   :  { %v3007_v8 = vmul.f32 %v6771_v27, %v3005_v39 }
0x30c3   :  { %3033 = vrot.lane.b32.xlu1 %v3007_v8, %s7316_s22 }
0x30c7   :  { %v3029_v45 = vpop.permute.xlu0 %3028 }
0x30c8   :  { %v3031_v49 = vmul.f32 %v6773_v18, %v3029_v45  ;;  %v3260_v45 = vrot.slane %v8427_v17, 2 }
0x30ca   :  { %3038 = vrot.lane.b32.xlu0 %v3031_v49, %s7315_s12 }
0x3135   :  { %v3034_v35 = vpop.permute.xlu1 %3033 }
0x3136   :  { %3036 = vst.msk [vmem:[#allocation2] sm:$0x3] %vm567_vm7, %v3034_v35 }
0x313c   :  { %v3039_v41 = vpop.permute.xlu0 %3038 }
0x313d   :  { %3041 = vst.msk [vmem:[#allocation2 + $0xe] sm:$0x3] %vm573_vm8, %v3039_v41  ;;  %v3042_v51 = vsel %vm575_vm9, %v3034_v35, %v3039_v41 }
0x313e   :  { %5640 = vmatmul.mubr.msk.f32.vlgmr.msra.gmra.mrb[26].mxu1 %vm435_vm10, %v3042_v51 }
0x313f   :  { %6212 = vmatpush1.bf16.msra.mxu1 %v8280_v43  ;;  %3389 = vmatprep.mubr.f32.mxu1 %v7314_v46 }
0x3140   :  { %6214 = vmatprep.subr.bf16.mxu1 %v8302_v6 }
0x3143   :  { %6216 = vmatpush1.bf16.msra.mxu1 %v8304_v23 }
0x3144   :  { %6218 = vmatprep.subr.bf16.mxu1 %v8325_v0 }
0x3147   :  { %6220 = vmatpush1.bf16.msra.mxu1 %v8337_v13 }
0x3148   :  { %6222 = vmatprep.subr.bf16.mxu1 %v8358_v42 }
0x314b   :  { %6224 = vmatpush1.bf16.msra.mxu1 %v8366_v48 }
0x314c   :  { %6242 = vmatprep.subr.bf16.mxu1 %v8269_v7 }
0x3211   :  { %v3112_v55 = vpop.f32.mrb[26].mxu1 }
0x3212   :  { %v3113_v40 = vadd.f32 %v3112_v55, %v8413_v63  ;;  %v3114_v58 = vpop.f32.mrb[27].mxu1 }
0x3213   :  { %v3115_v50 = vadd.f32 %v3114_v58, %v8417_v3 }
0x3214   :  { %v3120_v37 = vadd.f32 %v3118_v47, %v3113_v40 }
0x3215   :  { %v3123_v57 = vadd.f32 %v3121_v60, %v3115_v50 }
0x3216   :  { %6778 = vtanh.f32 %v3120_v37  ;;  %v5641_v62 = vmul.f32 -1.442695, %v3120_v37 }
0x3217   :  { %6780 = vtanh.f32 %v3123_v57  ;;  %v5642_v1 = vmul.f32 -1.442695, %v3123_v57 }
0x3218   :  { %6782 = vpow2.f32 %v5641_v62 }
0x3219   :  { %6784 = vpow2.f32 %v5642_v1 }
0x3220   :  { %v6779_v53 = vpop.eup %6778 }
0x3221   :  { %v6781_v56 = vpop.eup %6780  ;;  %3133 = vrot.lane.b32.xlu1 %v6779_v53, %s7315_s12 }
0x3222   :  { %3157 = vrot.lane.b32.xlu0 %v6781_v56, %s7315_s12  ;;  %v6783_v61 = vpop.eup %6782 }
0x3223   :  { %v6785_v2 = vpop.eup %6784  ;;  %v3127_v10 = vadd.f32 1.0, %v6783_v61 }
0x3224   :  { %v3151_v16 = vadd.f32 1.0, %v6785_v2 }
0x3225   :  { %6786 = vrcp.f32 %v3127_v10 }
0x3226   :  { %6788 = vrcp.f32 %v3151_v16 }
0x322f   :  { %v6787_v44 = vpop.eup %6786 }
0x3230   :  { %v6789_v20 = vpop.eup %6788  ;;  %v3131_v5 = vmul.f32 %v6787_v44, %v8434_v30 }
0x3231   :  { %v3155_v26 = vmul.f32 %v6789_v20, %v3025_v33 }
0x3293   :  { %v3134_v19 = vpop.permute.xlu1 %3133 }
0x3294   :  { %v3136_v22 = vmul.f32 %v6787_v44, %v3134_v19  ;;  %v3158_v12 = vpop.permute.xlu0 %3157 }
0x3295   :  { %v3160_v24 = vmul.f32 %v6789_v20, %v3158_v12 }
0x3296   :  { %3138 = vrot.lane.b32.xlu1 %v3136_v22, %s7316_s22 }
0x3297   :  { %3162 = vrot.lane.b32.xlu0 %v3160_v24, %s7316_s22 }
0x3308   :  { %v3139_v4 = vpop.permute.xlu1 %3138 }
0x3309   :  { %v3141_v52 = vadd.f32 %v3139_v4, %v3131_v5  ;;  %v3163_v27 = vpop.permute.xlu0 %3162 }
0x330a   :  { %v3165_v54 = vadd.f32 %v3163_v27, %v3155_v26 }
0x330b   :  { %6790 = vtanh.f32 %v3141_v52 }
0x330c   :  { %6792 = vtanh.f32 %v3165_v54 }
0x3315   :  { %v6791_v59 = vpop.eup %6790 }
0x3316   :  { %v6793_v18 = vpop.eup %6792  ;;  %3144 = vrot.lane.b32.xlu1 %v6791_v59, %s7315_s12 }
0x3317   :  { %3168 = vrot.lane.b32.xlu0 %v6793_v18, %s7315_s12  ;;  %v3396_v18 = vrot.slane %v8419_v38, 6 }
0x3388   :  { %v3145_v21 = vpop.permute.xlu1 %3144 }
0x3389   :  { %v3147_v28 = vmul.f32 %v6787_v44, %v3145_v21  ;;  %v3169_v29 = vpop.permute.xlu0 %3168 }
0x338a   :  { %v3171_v25 = vmul.f32 %v6789_v20, %v3169_v29 }
0x338b   :  { %3173 = vrot.lane.b32.xlu1 %v3147_v28, %s7316_s22 }
0x338c   :  { %3178 = vrot.lane.b32.xlu0 %v3171_v25, %s7315_s12 }
0x33fd   :  { %v3174_v30 = vpop.permute.xlu1 %3173 }
0x33fe   :  { %3176 = vst.msk [vmem:[#allocation2 + $0x2] sm:$0x3] %vm567_vm7, %v3174_v30  ;;  %v3179_v31 = vpop.permute.xlu0 %3178 }
0x33ff   :  { %3181 = vst.msk [vmem:[#allocation2 + $0xc] sm:$0x3] %vm573_vm8, %v3179_v31  ;;  %v3182_v32 = vsel %vm575_vm9, %v3174_v30, %v3179_v31 }
0x3400   :  { %5643 = vmatmul.mubr.msk.f32.vlgmr.msra.gmra.mrb[22].mxu0 %vm435_vm10, %v3182_v32 }
0x3401   :  { %6228 = vmatpush1.bf16.msra.mxu0 %v8280_v43  ;;  %3526 = vmatprep.mubr.f32.mxu0 %v7314_v46 }
0x3402   :  { %6230 = vmatprep.subr.bf16.mxu0 %v8302_v6 }
0x3405   :  { %6232 = vmatpush1.bf16.msra.mxu0 %v8304_v23 }
0x3406   :  { %6234 = vmatprep.subr.bf16.mxu0 %v8325_v0 }
0x3409   :  { %6236 = vmatpush1.bf16.msra.mxu0 %v8337_v13 }
0x340a   :  { %6238 = vmatprep.subr.bf16.mxu0 %v8358_v42 }
0x340d   :  { %6240 = vmatpush1.bf16.msra.mxu0 %v8366_v48 }
0x340e   :  { %6258 = vmatprep.subr.bf16.mxu0 %v8269_v7 }
0x34d3   :  { %v3252_v33 = vpop.f32.mrb[22].mxu0 }
0x34d4   :  { %v3253_v34 = vadd.f32 %v3252_v33, %v8413_v63  ;;  %v3254_v39 = vpop.f32.mrb[23].mxu0 }
0x34d5   :  { %v3255_v8 = vadd.f32 %v3254_v39, %v8417_v3 }
0x34d6   :  { %v3259_v49 = vadd.f32 %v3257_v36, %v3253_v34 }
0x34d7   :  { %v3262_v35 = vadd.f32 %v3260_v45, %v3255_v8 }
0x34d8   :  { %6794 = vtanh.f32 %v3259_v49  ;;  %v5644_v55 = vmul.f32 -1.442695, %v3259_v49 }
0x34d9   :  { %6796 = vtanh.f32 %v3262_v35  ;;  %v5645_v40 = vmul.f32 -1.442695, %v3262_v35 }
0x34da   :  { %6798 = vpow2.f32 %v5644_v55 }
0x34db   :  { %6800 = vpow2.f32 %v5645_v40 }
0x34e2   :  { %v6795_v41 = vpop.eup %6794 }
0x34e3   :  { %v6797_v51 = vpop.eup %6796  ;;  %3272 = vrot.lane.b32.xlu1 %v6795_v41, %s7315_s12 }
0x34e4   :  { %3296 = vrot.lane.b32.xlu0 %v6797_v51, %s7315_s12  ;;  %v6799_v47 = vpop.eup %6798 }
0x34e5   :  { %v6801_v58 = vpop.eup %6800  ;;  %v3266_v50 = vadd.f32 1.0, %v6799_v47 }
0x34e6   :  { %v3290_v60 = vadd.f32 1.0, %v6801_v58 }
0x34e7   :  { %6802 = vrcp.f32 %v3266_v50 }
0x34e8   :  { %6804 = vrcp.f32 %v3290_v60 }
0x34f1   :  { %v6803_v37 = vpop.eup %6802 }
0x34f2   :  { %v6805_v53 = vpop.eup %6804  ;;  %v3270_v61 = vmul.f32 %v6803_v37, %v3141_v52 }
0x34f3   :  { %v3294_v10 = vmul.f32 %v6805_v53, %v3165_v54 }
0x3555   :  { %v3273_v57 = vpop.permute.xlu1 %3272 }
0x3556   :  { %v3275_v56 = vmul.f32 %v6803_v37, %v3273_v57  ;;  %v3297_v62 = vpop.permute.xlu0 %3296 }
0x3557   :  { %v3299_v1 = vmul.f32 %v6805_v53, %v3297_v62 }
0x3558   :  { %3277 = vrot.lane.b32.xlu1 %v3275_v56, %s7316_s22 }
0x3559   :  { %3301 = vrot.lane.b32.xlu0 %v3299_v1, %s7316_s22 }
0x35ca   :  { %v3278_v2 = vpop.permute.xlu1 %3277 }
0x35cb   :  { %v3280_v16 = vadd.f32 %v3278_v2, %v3270_v61  ;;  %v3302_v44 = vpop.permute.xlu0 %3301 }
0x35cc   :  { %v3304_v19 = vadd.f32 %v3302_v44, %v3294_v10 }
0x35cd   :  { %6806 = vtanh.f32 %v3280_v16 }
0x35ce   :  { %6808 = vtanh.f32 %v3304_v19 }
0x35d7   :  { %v6807_v20 = vpop.eup %6806 }
0x35d8   :  { %v6809_v22 = vpop.eup %6808  ;;  %3283 = vrot.lane.b32.xlu1 %v6807_v20, %s7315_s12 }
0x35d9   :  { %3307 = vrot.lane.b32.xlu0 %v6809_v22, %s7315_s12 }
0x364a   :  { %v3284_v12 = vpop.permute.xlu1 %3283 }
0x364b   :  { %v3286_v24 = vmul.f32 %v6803_v37, %v3284_v12  ;;  %v3308_v5 = vpop.permute.xlu0 %3307 }
0x364c   :  { %v3310_v4 = vmul.f32 %v6805_v53, %v3308_v5 }
0x364d   :  { %3312 = vrot.lane.b32.xlu1 %v3286_v24, %s7316_s22 }
0x364e   :  { %3317 = vrot.lane.b32.xlu0 %v3310_v4, %s7315_s12 }
0x36bf   :  { %v3313_v26 = vpop.permute.xlu1 %3312 }
0x36c0   :  { %3315 = vst.msk [vmem:[#allocation2 + $0x4] sm:$0x3] %vm567_vm7, %v3313_v26  ;;  %v3318_v52 = vpop.permute.xlu0 %3317 }
0x36c1   :  { %3320 = vst.msk [vmem:[#allocation2 + $0xa] sm:$0x3] %vm573_vm8, %v3318_v52  ;;  %v3321_v27 = vsel %vm575_vm9, %v3313_v26, %v3318_v52 }
0x36c2   :  { %5646 = vmatmul.mubr.msk.f32.vlgmr.msra.gmra.mrb[28].mxu1 %vm435_vm10, %v3321_v27 }
0x36c3   :  { %6244 = vmatpush1.bf16.msra.mxu1 %v8280_v43  ;;  %3664 = vmatprep.mubr.f32.mxu1 %v7314_v46 }
0x36c4   :  { %6246 = vmatprep.subr.bf16.mxu1 %v8302_v6 }
0x36c7   :  { %6248 = vmatpush1.bf16.msra.mxu1 %v8304_v23 }
0x36c8   :  { %6250 = vmatprep.subr.bf16.mxu1 %v8325_v0 }
0x36cb   :  { %6252 = vmatpush1.bf16.msra.mxu1 %v8337_v13 }
0x36cc   :  { %6254 = vmatprep.subr.bf16.mxu1 %v8358_v42 }
0x36cf   :  { %6256 = vmatpush1.bf16.msra.mxu1 %v8366_v48 }
0x36d0   :  { %6274 = vmatprep.subr.bf16.mxu1 %v8269_v7 }
0x3795   :  { %v3391_v54 = vpop.f32.mrb[28].mxu1 }
0x3796   :  { %v3392_v59 = vadd.f32 %v3391_v54, %v8413_v63  ;;  %v3393_v21 = vpop.f32.mrb[29].mxu1 }
0x3797   :  { %v3394_v28 = vadd.f32 %v3393_v21, %v8417_v3 }
0x3798   :  { %v3398_v29 = vadd.f32 %v3396_v18, %v3392_v59 }
0x3799   :  { %v3399_v25 = vadd.f32 %v3394_v28, %v8427_v17 }
0x379a   :  { %6810 = vtanh.f32 %v3398_v29  ;;  %v5647_v7 = vmul.f32 -1.442695, %v3398_v29 }
0x379b   :  { %6812 = vtanh.f32 %v3399_v25  ;;  %v5648_v32 = vmul.f32 -1.442695, %v3399_v25 }
0x379c   :  { %6814 = vpow2.f32 %v5647_v7 }
0x379d   :  { %6816 = vpow2.f32 %v5648_v32 }
0x37a4   :  { %v6811_v30 = vpop.eup %6810 }
0x37a5   :  { %v6813_v31 = vpop.eup %6812  ;;  %3409 = vrot.lane.b32.xlu1 %v6811_v30, %s7315_s12 }
0x37a6   :  { %3433 = vrot.lane.b32.xlu0 %v6813_v31, %s7315_s12  ;;  %v6815_v33 = vpop.eup %6814 }
0x37a7   :  { %v6817_v38 = vpop.eup %6816  ;;  %v3403_v34 = vadd.f32 1.0, %v6815_v33 }
0x37a8   :  { %v3427_v36 = vadd.f32 1.0, %v6817_v38 }
0x37a9   :  { %6818 = vrcp.f32 %v3403_v34 }
0x37aa   :  { %6820 = vrcp.f32 %v3427_v36 }
0x37b3   :  { %v6819_v39 = vpop.eup %6818 }
0x37b4   :  { %v6821_v8 = vpop.eup %6820  ;;  %v3407_v41 = vmul.f32 %v6819_v39, %v3280_v16 }
0x37b5   :  { %v3431_v55 = vmul.f32 %v6821_v8, %v3304_v19  ;;  %v3535_v19 = vrot.slane %v8422_v14, 6 }
0x3817   :  { %v3410_v17 = vpop.permute.xlu1 %3409 }
0x3818   :  { %v3412_v45 = vmul.f32 %v6819_v39, %v3410_v17  ;;  %v3434_v49 = vpop.permute.xlu0 %3433 }
0x3819   :  { %v3436_v35 = vmul.f32 %v6821_v8, %v3434_v49 }
0x381a   :  { %3414 = vrot.lane.b32.xlu1 %v3412_v45, %s7316_s22 }
0x381b   :  { %3438 = vrot.lane.b32.xlu0 %v3436_v35, %s7316_s22 }
0x388c   :  { %v3415_v51 = vpop.permute.xlu1 %3414 }
0x388d   :  { %v3417_v40 = vadd.f32 %v3415_v51, %v3407_v41  ;;  %v3439_v47 = vpop.permute.xlu0 %3438 }
0x388e   :  { %v3441_v58 = vadd.f32 %v3439_v47, %v3431_v55 }
0x388f   :  { %6822 = vtanh.f32 %v3417_v40 }
0x3890   :  { %6824 = vtanh.f32 %v3441_v58 }
0x3899   :  { %v6823_v50 = vpop.eup %6822 }
0x389a   :  { %v6825_v60 = vpop.eup %6824  ;;  %3420 = vrot.lane.b32.xlu1 %v6823_v50, %s7315_s12 }
0x389b   :  { %3444 = vrot.lane.b32.xlu0 %v6825_v60, %s7315_s12 }
0x390c   :  { %v3421_v37 = vpop.permute.xlu1 %3420 }
0x390d   :  { %v3423_v57 = vmul.f32 %v6819_v39, %v3421_v37  ;;  %v3445_v53 = vpop.permute.xlu0 %3444 }
0x390e   :  { %v3447_v56 = vmul.f32 %v6821_v8, %v3445_v53 }
0x390f   :  { %3449 = vrot.lane.b32.xlu1 %v3423_v57, %s7316_s22 }
0x3910   :  { %3454 = vrot.lane.b32.xlu0 %v3447_v56, %s7315_s12 }
0x3981   :  { %v3450_v62 = vpop.permute.xlu1 %3449 }
0x3982   :  { %3452 = vst.msk [vmem:[#allocation2 + $0x6] sm:$0x3] %vm567_vm7, %v3450_v62  ;;  %v3455_v1 = vpop.permute.xlu0 %3454 }
0x3983   :  { %3457 = vst.msk [vmem:[#allocation2 + $0x8] sm:$0x3] %vm573_vm8, %v3455_v1  ;;  %v3458_v61 = vsel %vm575_vm9, %v3450_v62, %v3455_v1 }
0x3984   :  { %5649 = vmatmul.mubr.msk.f32.vlgmr.msra.gmra.mrb[24].mxu0 %vm435_vm10, %v3458_v61 }
0x3985   :  { %6260 = vmatpush1.bf16.msra.mxu0 %v8280_v43  ;;  %3804 = vmatprep.mubr.f32.mxu0 %v7314_v46 }
0x3986   :  { %6262 = vmatprep.subr.bf16.mxu0 %v8302_v6 }
0x3989   :  { %6264 = vmatpush1.bf16.msra.mxu0 %v8304_v23 }
0x398a   :  { %6266 = vmatprep.subr.bf16.mxu0 %v8325_v0 }
0x398d   :  { %6268 = vmatpush1.bf16.msra.mxu0 %v8337_v13 }
0x398e   :  { %6270 = vmatprep.subr.bf16.mxu0 %v8358_v42 }
0x3991   :  { %6272 = vmatpush1.bf16.msra.mxu0 %v8366_v48 }
0x3a57   :  { %v3528_v2 = vpop.f32.mrb[24].mxu0 }
0x3a58   :  { %v3529_v10 = vadd.f32 %v3528_v2, %v8413_v63  ;;  %v3530_v16 = vpop.f32.mrb[25].mxu0 }
0x3a59   :  { %v3531_v44 = vadd.f32 %v3530_v16, %v8417_v3 }
0x3a5a   :  { %v3533_v20 = vadd.f32 %v3529_v10, %v8424_v15 }
0x3a5b   :  { %v3537_v22 = vadd.f32 %v3535_v19, %v3531_v44 }
0x3a5c   :  { %6826 = vtanh.f32 %v3533_v20  ;;  %v5650_v5 = vmul.f32 -1.442695, %v3533_v20 }
0x3a5d   :  { %6828 = vtanh.f32 %v3537_v22  ;;  %v5651_v4 = vmul.f32 -1.442695, %v3537_v22 }
0x3a5e   :  { %6830 = vpow2.f32 %v5650_v5 }
0x3a5f   :  { %6832 = vpow2.f32 %v5651_v4 }
0x3a66   :  { %v6827_v12 = vpop.eup %6826 }
0x3a67   :  { %v6829_v24 = vpop.eup %6828  ;;  %3547 = vrot.lane.b32.xlu1 %v6827_v12, %s7315_s12 }
0x3a68   :  { %3571 = vrot.lane.b32.xlu0 %v6829_v24, %s7315_s12  ;;  %v6831_v26 = vpop.eup %6830 }
0x3a69   :  { %v6833_v52 = vpop.eup %6832  ;;  %v3541_v27 = vadd.f32 1.0, %v6831_v26 }
0x3a6a   :  { %v3565_v54 = vadd.f32 1.0, %v6833_v52 }
0x3a6b   :  { %6834 = vrcp.f32 %v3541_v27 }
0x3a6c   :  { %6836 = vrcp.f32 %v3565_v54 }
0x3a75   :  { %v6835_v59 = vpop.eup %6834 }
0x3a76   :  { %v6837_v21 = vpop.eup %6836  ;;  %v3545_v30 = vmul.f32 %v6835_v59, %v3417_v40  ;;  %v3672_v40 = vrot.slane %v8424_v15, 2 }
0x3a77   :  { %v3569_v7 = vmul.f32 %v6837_v21, %v3441_v58 }
0x3ad9   :  { %v3548_v18 = vpop.permute.xlu1 %3547 }
0x3ada   :  { %v3550_v28 = vmul.f32 %v6835_v59, %v3548_v18  ;;  %v3572_v29 = vpop.permute.xlu0 %3571 }
0x3adb   :  { %v3574_v25 = vmul.f32 %v6837_v21, %v3572_v29 }
0x3adc   :  { %3552 = vrot.lane.b32.xlu1 %v3550_v28, %s7316_s22  ;;  %v3811_v28 = vrot.slane %v8424_v15, 4 }
0x3add   :  { %3576 = vrot.lane.b32.xlu0 %v3574_v25, %s7316_s22 }
0x3b4e   :  { %v3553_v31 = vpop.permute.xlu1 %3552 }
0x3b4f   :  { %v3555_v32 = vadd.f32 %v3553_v31, %v3545_v30  ;;  %v3577_v33 = vpop.permute.xlu0 %3576  ;;  %v3814_v30 = vrot.slane %v8422_v14, 2 }
0x3b50   :  { %v3579_v38 = vadd.f32 %v3577_v33, %v3569_v7 }
0x3b51   :  { %6838 = vtanh.f32 %v3555_v32 }
0x3b52   :  { %6840 = vtanh.f32 %v3579_v38 }
0x3b5b   :  { %v6839_v34 = vpop.eup %6838 }
0x3b5c   :  { %v6841_v36 = vpop.eup %6840  ;;  %3558 = vrot.lane.b32.xlu1 %v6839_v34, %s7315_s12 }
0x3b5d   :  { %3582 = vrot.lane.b32.xlu0 %v6841_v36, %s7315_s12 }
0x3bce   :  { %v3559_v39 = vpop.permute.xlu1 %3558 }
0x3bcf   :  { %v3561_v17 = vmul.f32 %v6835_v59, %v3559_v39  ;;  %v3583_v8 = vpop.permute.xlu0 %3582 }
0x3bd0   :  { %v3585_v45 = vmul.f32 %v6837_v21, %v3583_v8 }
0x3bd1   :  { %3587 = vrot.lane.b32.xlu1 %v3561_v17, %s7316_s22 }
0x3bd2   :  { %3592 = vrot.lane.b32.xlu0 %v3585_v45, %s7315_s12 }
0x3c43   :  { %v3588_v49 = vpop.permute.xlu1 %3587 }
0x3c44   :  { %3590 = vst.msk [vmem:[#allocation2 + $0x8] sm:$0x3] %vm567_vm7, %v3588_v49  ;;  %v3593_v35 = vpop.permute.xlu0 %3592 }
0x3c45   :  { %3595 = vst.msk [vmem:[#allocation2 + $0x6] sm:$0x3] %vm573_vm8, %v3593_v35  ;;  %v3596_v41 = vsel %vm575_vm9, %v3588_v49, %v3593_v35 }
0x3c46   :  { %5652 = vmatmul.mubr.msk.f32.vlgmr.msra.gmra.mrb[30].mxu1 %vm435_vm10, %v3596_v41 }
0x3c47   :  { %6276 = vmatpush1.bf16.msra.mxu1 %v8280_v43  ;;  %3943 = vmatprep.mubr.f32.mxu1 %v7314_v46 }
0x3c48   :  { %6278 = vmatprep.subr.bf16.mxu1 %v8302_v6  ;;  %v3675_v6 = vrot.slane %v8422_v14, 4 }
0x3c4b   :  { %6280 = vmatpush1.bf16.msra.mxu1 %v8304_v23 }
0x3c4c   :  { %6282 = vmatprep.subr.bf16.mxu1 %v8325_v0 }
0x3c4f   :  { %6284 = vmatpush1.bf16.msra.mxu1 %v8337_v13 }
0x3c50   :  { %6286 = vmatprep.subr.bf16.mxu1 %v8358_v42 }
0x3c53   :  { %6288 = vmatpush1.bf16.msra.mxu1 %v8366_v48 }
0x3d19   :  { %v3666_v51 = vpop.f32.mrb[30].mxu1 }
0x3d1a   :  { %v3667_v55 = vadd.f32 %v3666_v51, %v8413_v63  ;;  %v3668_v43 = vpop.f32.mrb[31].mxu1 }
0x3d1b   :  { %v3669_v47 = vadd.f32 %v3668_v43, %v8417_v3 }
0x3d1c   :  { %v3674_v58 = vadd.f32 %v3672_v40, %v3667_v55 }
0x3d1d   :  { %v3677_v23 = vadd.f32 %v3675_v6, %v3669_v47 }
0x3d1e   :  { %6842 = vtanh.f32 %v3674_v58  ;;  %v5653_v42 = vmul.f32 -1.442695, %v3674_v58 }
0x3d1f   :  { %6844 = vtanh.f32 %v3677_v23  ;;  %v5654_v48 = vmul.f32 -1.442695, %v3677_v23 }
0x3d20   :  { %6846 = vpow2.f32 %v5653_v42 }
0x3d21   :  { %6848 = vpow2.f32 %v5654_v48 }
0x3d28   :  { %v6843_v0 = vpop.eup %6842 }
0x3d29   :  { %v6845_v13 = vpop.eup %6844  ;;  %3687 = vrot.lane.b32.xlu1 %v6843_v0, %s7315_s12 }
0x3d2a   :  { %3711 = vrot.lane.b32.xlu0 %v6845_v13, %s7315_s12  ;;  %v6847_v50 = vpop.eup %6846 }
0x3d2b   :  { %v6849_v60 = vpop.eup %6848  ;;  %v3681_v37 = vadd.f32 1.0, %v6847_v50 }
0x3d2c   :  { %v3705_v57 = vadd.f32 1.0, %v6849_v60 }
0x3d2d   :  { %6850 = vrcp.f32 %v3681_v37 }
0x3d2e   :  { %6852 = vrcp.f32 %v3705_v57 }
0x3d37   :  { %v6851_v53 = vpop.eup %6850 }
0x3d38   :  { %v6853_v62 = vpop.eup %6852  ;;  %v3685_v10 = vmul.f32 %v6851_v53, %v3555_v32 }
0x3d39   :  { %v3709_v44 = vmul.f32 %v6853_v62, %v3579_v38 }
0x3d9b   :  { %v3688_v56 = vpop.permute.xlu1 %3687 }
0x3d9c   :  { %v3690_v1 = vmul.f32 %v6851_v53, %v3688_v56  ;;  %v3712_v61 = vpop.permute.xlu0 %3711 }
0x3d9d   :  { %v3714_v2 = vmul.f32 %v6853_v62, %v3712_v61 }
0x3d9e   :  { %3692 = vrot.lane.b32.xlu1 %v3690_v1, %s7316_s22  ;;  %v3950_v1 = vrot.slane %v8424_v15, 6 }
0x3d9f   :  { %3716 = vrot.lane.b32.xlu0 %v3714_v2, %s7316_s22 }
0x3e10   :  { %v3693_v16 = vpop.permute.xlu1 %3692 }
0x3e11   :  { %v3695_v19 = vadd.f32 %v3693_v16, %v3685_v10  ;;  %v3717_v20 = vpop.permute.xlu0 %3716 }
0x3e12   :  { %v3719_v22 = vadd.f32 %v3717_v20, %v3709_v44 }
0x3e13   :  { %6854 = vtanh.f32 %v3695_v19 }
0x3e14   :  { %6856 = vtanh.f32 %v3719_v22 }
0x3e1d   :  { %v6855_v12 = vpop.eup %6854 }
0x3e1e   :  { %v6857_v24 = vpop.eup %6856  ;;  %3698 = vrot.lane.b32.xlu1 %v6855_v12, %s7315_s12 }
0x3e1f   :  { %3722 = vrot.lane.b32.xlu0 %v6857_v24, %s7315_s12 }
0x3e90   :  { %v3699_v5 = vpop.permute.xlu1 %3698 }
0x3e91   :  { %v3701_v4 = vmul.f32 %v6851_v53, %v3699_v5  ;;  %v3723_v26 = vpop.permute.xlu0 %3722 }
0x3e92   :  { %v3725_v52 = vmul.f32 %v6853_v62, %v3723_v26 }
0x3e93   :  { %3727 = vrot.lane.b32.xlu1 %v3701_v4, %s7316_s22 }
0x3e94   :  { %3732 = vrot.lane.b32.xlu0 %v3725_v52, %s7315_s12 }
0x3f05   :  { %v3728_v27 = vpop.permute.xlu1 %3727 }
0x3f06   :  { %3730 = vst.msk [vmem:[#allocation2 + $0xa] sm:$0x3] %vm567_vm7, %v3728_v27  ;;  %v3733_v54 = vpop.permute.xlu0 %3732 }
0x3f07   :  { %3735 = vst.msk [vmem:[#allocation2 + $0x4] sm:$0x3] %vm573_vm8, %v3733_v54  ;;  %v3736_v59 = vsel %vm575_vm9, %v3728_v27, %v3733_v54 }
0x3f08   :  { %5655 = vmatmul.mubr.msk.f32.vlgmr.msra.gmra.mrb[26].mxu0 %vm435_vm10, %v3736_v59 }
0x3f09   :  { %4117 = vmatprep.mubr.f32.mxu0 %v7314_v46 }
0x3fdb   :  { %v3806_v18 = vpop.f32.mrb[26].mxu0 }
0x3fdc   :  { %v3807_v21 = vadd.f32 %v3806_v18, %v8413_v63  ;;  %v3808_v29 = vpop.f32.mrb[27].mxu0 }
0x3fdd   :  { %v3809_v25 = vadd.f32 %v3808_v29, %v8417_v3  ;;  %v4031_v29 = vld [vmem:[#allocation10 + $0x8] sm:$0xff] }
0x3fde   :  { %v3813_v31 = vadd.f32 %v3811_v28, %v3807_v21 }
0x3fdf   :  { %v3816_v7 = vadd.f32 %v3814_v30, %v3809_v25  ;;  %v4033_v25 = vld [vmem:[#allocation10 + $0x18] sm:$0xff]  ;;  %v4030_v30 = vld [vmem:[#allocation10] sm:$0xff] }
0x3fe0   :  { %6858 = vtanh.f32 %v3813_v31  ;;  %v5656_v38 = vmul.f32 -1.442695, %v3813_v31  ;;  %v8603_v31 = vpack.c.bf16 %v4033_v25, %v4031_v29 }
0x3fe1   :  { %6860 = vtanh.f32 %v3816_v7  ;;  %v5657_v34 = vmul.f32 -1.442695, %v3816_v7  ;;  %v4032_v7 = vld [vmem:[#allocation10 + $0x10] sm:$0xff] }
0x3fe2   :  { %6862 = vpow2.f32 %v5656_v38  ;;  %v8605_v38 = vpack.c.bf16 %v4032_v7, %v4030_v30  ;;  %6306 = vmatprep.subr.bf16.mxu1 %v8603_v31 }
0x3fe3   :  { %6864 = vpow2.f32 %v5657_v34 }
0x3fea   :  { %v6859_v32 = vpop.eup %6858 }
0x3feb   :  { %v6861_v33 = vpop.eup %6860  ;;  %3826 = vrot.lane.b32.xlu1 %v6859_v32, %s7315_s12  ;;  %v4015_v32 = vld [vmem:[#allocation8 + $0x8] sm:$0xff] }
0x3fec   :  { %3850 = vrot.lane.b32.xlu0 %v6861_v33, %s7315_s12  ;;  %v6863_v36 = vpop.eup %6862  ;;  %v4017_v33 = vld [vmem:[#allocation8 + $0x18] sm:$0xff] }
0x3fed   :  { %v6865_v39 = vpop.eup %6864  ;;  %v3820_v17 = vadd.f32 1.0, %v6863_v36  ;;  %v6289_v34 = vpack.c.bf16 %v4017_v33, %v4015_v32  ;;  %v4014_v36 = vld [vmem:[#allocation8] sm:$0xff] }
0x3fee   :  { %v3844_v8 = vadd.f32 1.0, %v6865_v39  ;;  %v4016_v39 = vld [vmem:[#allocation8 + $0x10] sm:$0xff] }
0x3fef   :  { %6866 = vrcp.f32 %v3820_v17  ;;  %v4035_v17 = vld [vmem:[#allocation10 + $0x28] sm:$0xff]  ;;  %6290 = vmatprep.subr.bf16.mxu0 %v6289_v34 }
0x3ff0   :  { %6868 = vrcp.f32 %v3844_v8  ;;  %v6291_v8 = vpack.c.bf16 %v4016_v39, %v4014_v36 }
0x3ff2   :  { %6292 = vmatpush1.bf16.msra.mxu0 %v6291_v8 }
0x3ff9   :  { %v6867_v45 = vpop.eup %6866 }
0x3ffa   :  { %v6869_v35 = vpop.eup %6868  ;;  %v3824_v40 = vmul.f32 %v6867_v45, %v3695_v19 }
0x3ffb   :  { %v3848_v47 = vmul.f32 %v6869_v35, %v3719_v22 }
0x405d   :  { %v3827_v49 = vpop.permute.xlu1 %3826 }
0x405e   :  { %v3829_v41 = vmul.f32 %v6867_v45, %v3827_v49  ;;  %v3851_v51 = vpop.permute.xlu0 %3850  ;;  %v4034_v49 = vld [vmem:[#allocation10 + $0x20] sm:$0xff] }
0x405f   :  { %v3853_v55 = vmul.f32 %v6869_v35, %v3851_v51 }
0x4060   :  { %3831 = vrot.lane.b32.xlu1 %v3829_v41, %s7316_s22 }
0x4061   :  { %3855 = vrot.lane.b32.xlu0 %v3853_v55, %s7316_s22  ;;  %v4019_v55 = vld [vmem:[#allocation8 + $0x28] sm:$0xff] }
0x40d2   :  { %v3832_v43 = vpop.permute.xlu1 %3831 }
0x40d3   :  { %v3834_v6 = vadd.f32 %v3832_v43, %v3824_v40  ;;  %v3856_v58 = vpop.permute.xlu0 %3855  ;;  %v4021_v40 = vld [vmem:[#allocation8 + $0x38] sm:$0xff]  ;;  %v4018_v43 = vld [vmem:[#allocation8 + $0x20] sm:$0xff] }
0x40d4   :  { %v3858_v23 = vadd.f32 %v3856_v58, %v3848_v47  ;;  %v6293_v47 = vpack.c.bf16 %v4021_v40, %v4019_v55  ;;  %v4039_v58 = vld [vmem:[#allocation10 + $0x48] sm:$0xff] }
0x40d5   :  { %6870 = vtanh.f32 %v3834_v6 }
0x40d6   :  { %6872 = vtanh.f32 %v3858_v23  ;;  %6294 = vmatprep.subr.bf16.mxu0 %v6293_v47 }
0x40df   :  { %v6871_v0 = vpop.eup %6870 }
0x40e0   :  { %v6873_v13 = vpop.eup %6872  ;;  %3837 = vrot.lane.b32.xlu1 %v6871_v0, %s7315_s12 }
0x40e1   :  { %3861 = vrot.lane.b32.xlu0 %v6873_v13, %s7315_s12 }
0x4152   :  { %v3838_v42 = vpop.permute.xlu1 %3837 }
0x4153   :  { %v3840_v48 = vmul.f32 %v6867_v45, %v3838_v42  ;;  %v3862_v50 = vpop.permute.xlu0 %3861  ;;  %v4037_v45 = vld [vmem:[#allocation10 + $0x38] sm:$0xff] }
0x4154   :  { %v3864_v60 = vmul.f32 %v6869_v35, %v3862_v50  ;;  %v4036_v35 = vld [vmem:[#allocation10 + $0x30] sm:$0xff]  ;;  %v8609_v41 = vpack.c.bf16 %v4037_v45, %v4035_v17  ;;  %v4038_v50 = vld [vmem:[#allocation10 + $0x40] sm:$0xff] }
0x4155   :  { %3866 = vrot.lane.b32.xlu1 %v3840_v48, %s7316_s22  ;;  %v8611_v51 = vpack.c.bf16 %v4036_v35, %v4034_v49 }
0x4156   :  { %3871 = vrot.lane.b32.xlu0 %v3864_v60, %s7315_s12  ;;  %v4040_v60 = vld [vmem:[#allocation10 + $0x50] sm:$0xff] }
0x41c7   :  { %v3867_v37 = vpop.permute.xlu1 %3866 }
0x41c8   :  { %3869 = vst.msk [vmem:[#allocation2 + $0xc] sm:$0x3] %vm567_vm7, %v3867_v37  ;;  %v3872_v57 = vpop.permute.xlu0 %3871 }
0x41c9   :  { %3874 = vst.msk [vmem:[#allocation2 + $0x2] sm:$0x3] %vm573_vm8, %v3872_v57  ;;  %v3875_v53 = vsel %vm575_vm9, %v3867_v37, %v3872_v57  ;;  %v8620_v37 = vpack.c.bf16 %v4040_v60, %v4038_v50  ;;  %v4023_v57 = vld [vmem:[#allocation8 + $0x48] sm:$0xff] }
0x41ca   :  { %5658 = vmatmul.mubr.msk.f32.vlgmr.msra.gmra.mrb[32].mxu1 %vm435_vm10, %v3875_v53  ;;  %v4025_v53 = vld [vmem:[#allocation8 + $0x58] sm:$0xff] }
0x41cb   :  { %4205 = vmatprep.mubr.f32.mxu1 %v7314_v46  ;;  %6308 = vmatpush1.bf16.msra.mxu1 %v8605_v38 }
0x41cc   :  { %6310 = vmatprep.subr.bf16.mxu1 %v8609_v41 }
0x41cf   :  { %6312 = vmatpush1.bf16.msra.mxu1 %v8611_v51 }
0x429d   :  { %v3945_v56 = vpop.f32.mrb[32].mxu1 }
0x429e   :  { %v3946_v62 = vadd.f32 %v3945_v56, %v8413_v63  ;;  %v3947_v61 = vpop.f32.mrb[33].mxu1  ;;  %v6297_v56 = vpack.c.bf16 %v4025_v53, %v4023_v57 }
0x429f   :  { %v3948_v2 = vadd.f32 %v3947_v61, %v8417_v3 }
0x42a0   :  { %v3952_v10 = vadd.f32 %v3950_v1, %v3946_v62  ;;  %v4022_v62 = vld [vmem:[#allocation8 + $0x40] sm:$0xff]  ;;  %v4024_v1 = vld [vmem:[#allocation8 + $0x50] sm:$0xff] }
0x42a1   :  { %v3953_v16 = vadd.f32 %v3948_v2, %v8422_v14  ;;  %v6299_v61 = vpack.c.bf16 %v4024_v1, %v4022_v62  ;;  %v4043_v2 = vld [vmem:[#allocation10 + $0x68] sm:$0xff] }
0x42a2   :  { %6874 = vtanh.f32 %v3952_v10  ;;  %v5659_v20 = vmul.f32 -1.442695, %v3952_v10  ;;  %v4045_v10 = vld [vmem:[#allocation10 + $0x78] sm:$0xff] }
0x42a3   :  { %6876 = vtanh.f32 %v3953_v16  ;;  %v5660_v22 = vmul.f32 -1.442695, %v3953_v16  ;;  %v8623_v16 = vpack.c.bf16 %v4045_v10, %v4043_v2 }
0x42a4   :  { %6878 = vpow2.f32 %v5659_v20  ;;  %v4027_v20 = vld [vmem:[#allocation8 + $0x68] sm:$0xff] }
0x42a5   :  { %6880 = vpow2.f32 %v5660_v22 }
0x42ac   :  { %v6875_v44 = vpop.eup %6874 }
0x42ad   :  { %v6877_v19 = vpop.eup %6876  ;;  %3963 = vrot.lane.b32.xlu0 %v6875_v44, %s7315_s12  ;;  %v4042_v44 = vld [vmem:[#allocation10 + $0x60] sm:$0xff] }
0x42ae   :  { %3987 = vrot.lane.b32.xlu1 %v6877_v19, %s7315_s12  ;;  %v6879_v63 = vpop.eup %6878  ;;  %v4044_v19 = vld [vmem:[#allocation10 + $0x70] sm:$0xff] }
0x42af   :  { %v6881_v15 = vpop.eup %6880  ;;  %v3957_v12 = vadd.f32 1.0, %v6879_v63  ;;  %v8625_v22 = vpack.c.bf16 %v4044_v19, %v4042_v44  ;;  %v4029_v63 = vld [vmem:[#allocation8 + $0x78] sm:$0xff] }
0x42b0   :  { %v3981_v24 = vadd.f32 1.0, %v6881_v15  ;;  %v4026_v15 = vld [vmem:[#allocation8 + $0x60] sm:$0xff] }
0x42b1   :  { %6882 = vrcp.f32 %v3957_v12  ;;  %v4028_v12 = vld [vmem:[#allocation8 + $0x70] sm:$0xff] }
0x42b2   :  { %6884 = vrcp.f32 %v3981_v24  ;;  %v6301_v24 = vpack.c.bf16 %v4029_v63, %v4027_v20 }
0x42bb   :  { %v8593_v3 = vpop.eup %6882 }
0x42bc   :  { %v8595_v5 = vpop.eup %6884  ;;  %v3961_v27 = vmul.f32 %v8593_v3, %v3834_v6  ;;  %v4020_v6 = vld [vmem:[#allocation8 + $0x30] sm:$0xff] }
0x42bd   :  { %v3985_v59 = vmul.f32 %v8595_v5, %v3858_v23  ;;  %v4041_v23 = vld [vmem:[#allocation10 + $0x58] sm:$0xff]  ;;  %v6295_v0 = vpack.c.bf16 %v4020_v6, %v4018_v43 }
0x42be   :  { %v8614_v13 = vpack.c.bf16 %v4041_v23, %v4039_v58 }
0x42bf   :  { %6296 = vmatpush1.bf16.msra.mxu0 %v6295_v0 }
0x42c0   :  { %6314 = vmatprep.subr.bf16.mxu1 %v8614_v13  ;;  %6298 = vmatprep.subr.bf16.mxu0 %v6297_v56 }
0x42c1   :  { %6316 = vmatpush1.bf16.msra.mxu1 %v8620_v37 }
0x42c2   :  { %6318 = vmatprep.subr.bf16.mxu1 %v8623_v16 }
0x42c3   :  { %6300 = vmatpush1.bf16.msra.mxu0 %v6299_v61 }
0x42c4   :  { %6302 = vmatprep.subr.bf16.mxu0 %v6301_v24 }
0x42c5   :  { %6320 = vmatpush1.bf16.msra.mxu1 %v8625_v22 }
0x42c6   :  { %6338 = vmatprep.subr.bf16.mxu1 %v8603_v31 }
0x42c8   :  { %4206 = vmatmul.mubr.f32.vlgmr.msra.gmra.mrb[34].mxu1 %v7314_v46 }
0x42c9   :  { %6340 = vmatpush1.bf16.msra.mxu1 %v8605_v38  ;;  %4483 = vmatprep.mubr.f32.mxu1 %v7314_v46 }
0x42ca   :  { %6342 = vmatprep.subr.bf16.mxu1 %v8609_v41 }
0x42cd   :  { %6344 = vmatpush1.bf16.msra.mxu1 %v8611_v51 }
0x42ce   :  { %6346 = vmatprep.subr.bf16.mxu1 %v8614_v13 }
0x42d1   :  { %6348 = vmatpush1.bf16.msra.mxu1 %v8620_v37 }
0x42d2   :  { %6350 = vmatprep.subr.bf16.mxu1 %v8623_v16 }
0x42d5   :  { %6352 = vmatpush1.bf16.msra.mxu1 %v8625_v22 }
0x42d6   :  { %6370 = vmatprep.subr.bf16.mxu1 %v8603_v31 }
0x431f   :  { %v3964_v14 = vpop.permute.xlu0 %3963 }
0x4320   :  { %v3966_v4 = vmul.f32 %v8593_v3, %v3964_v14  ;;  %v3988_v26 = vpop.permute.xlu1 %3987  ;;  %v6303_v14 = vpack.c.bf16 %v4028_v12, %v4026_v15 }
0x4321   :  { %v3990_v52 = vmul.f32 %v8595_v5, %v3988_v26 }
0x4322   :  { %3968 = vrot.lane.b32.xlu0 %v3966_v4, %s7316_s22  ;;  %6304 = vmatpush1.bf16.msra.mxu0 %v6303_v14 }
0x4323   :  { %3992 = vrot.lane.b32.xlu1 %v3990_v52, %s7316_s22  ;;  %6322 = vmatprep.subr.bf16.mxu0 %v8603_v31 }
0x4394   :  { %v3969_v54 = vpop.permute.xlu0 %3968 }
0x4395   :  { %v3971_v18 = vadd.f32 %v3969_v54, %v3961_v27  ;;  %v3993_v21 = vpop.permute.xlu1 %3992 }
0x4396   :  { %v3995_v28 = vadd.f32 %v3993_v21, %v3985_v59 }
0x4397   :  { %6886 = vtanh.f32 %v3971_v18 }
0x4398   :  { %6888 = vtanh.f32 %v3995_v28  ;;  %v4046_v28 = vld [vmem:[#allocation11] sm:$0x3] }
0x4399   :  { %v8660_v29 = vrot.slane %v4046_v28, %v7723_v9  ;;  %v8664_v30 = vrot.slane %v4046_v28, %v7728_v11 }
0x439b   :  { %v4207_v18 = vpop.f32.mrb[34].mxu1 }
0x439c   :  { %v4209_v21 = vpop.f32.mrb[35].mxu1  ;;  %v4208_v25 = vadd.f32 %v4207_v18, %v8660_v29 }
0x439d   :  { %v4210_v36 = vadd.f32 %v4209_v21, %v8664_v30 }
0x43a1   :  { %v6887_v42 = vpop.eup %6886 }
0x43a2   :  { %v6889_v48 = vpop.eup %6888  ;;  %3974 = vrot.lane.b32.xlu0 %v6887_v42, %s7315_s12 }
0x43a3   :  { %3998 = vrot.lane.b32.xlu1 %v6889_v48, %s7315_s12 }
0x4414   :  { %v3975_v4 = vpop.permute.xlu0 %3974 }
0x4415   :  { %v3977_v26 = vmul.f32 %v8593_v3, %v3975_v4  ;;  %v3999_v52 = vpop.permute.xlu1 %3998 }
0x4416   :  { %v4001_v27 = vmul.f32 %v8595_v5, %v3999_v52 }
0x4417   :  { %4003 = vrot.lane.b32.xlu0 %v3977_v26, %s7316_s22 }
0x4418   :  { %4008 = vrot.lane.b32.xlu1 %v4001_v27, %s7315_s12 }
0x4489   :  { %v4004_v3 = vpop.permute.xlu0 %4003 }
0x448a   :  { %4006 = vst.msk [vmem:[#allocation2 + $0xe] sm:$0x3] %vm567_vm7, %v4004_v3  ;;  %v4009_v5 = vpop.permute.xlu1 %4008 }
0x448b   :  { %4011 = vst.msk [vmem:[#allocation2] sm:$0x3] %vm573_vm8, %v4009_v5 }
0x4491   :  { %v4013_v59 = vld [vmem:[#allocation2 + $0x8] sm:$0xff] }
0x4492   :  { %v4012_v54 = vld [vmem:[#allocation2] sm:$0xff] }
0x4493   :  { %5661 = vmatmul.mubr.msk.f32.vlgmr.msra.gmra.mrb[28].mxu0 %vm435_vm10, %v4012_v54 }
0x4494   :  { %4123 = vmatprep.mubr.f32.mxu0 %v7314_v46  ;;  %6324 = vmatpush1.bf16.msra.mxu0 %v8605_v38 }
0x4495   :  { %6326 = vmatprep.subr.bf16.mxu0 %v8609_v41 }
0x4497   :  { %5662 = vmatmul.mubr.msk.f32.gmra.mrb[30].mxu0 %vm435_vm10, %v4013_v59 }
0x4498   :  { %6328 = vmatpush1.bf16.msra.mxu0 %v8611_v51  ;;  %4343 = vmatprep.mubr.f32.mxu0 %v7314_v46 }
0x4499   :  { %6330 = vmatprep.subr.bf16.mxu0 %v8614_v13 }
0x449c   :  { %6332 = vmatpush1.bf16.msra.mxu0 %v8620_v37 }
0x449d   :  { %6334 = vmatprep.subr.bf16.mxu0 %v8623_v16 }
0x44a0   :  { %6336 = vmatpush1.bf16.msra.mxu0 %v8625_v22 }
0x44a1   :  { %6354 = vmatprep.subr.bf16.mxu0 %v8603_v31 }
0x4566   :  { %v8666_v7 = vpop.f32.mrb[28].mxu0 }
0x4567   :  { %v4212_v32 = vadd.f32 %v4208_v25, %v8666_v7  ;;  %v8669_v33 = vpop.f32.mrb[29].mxu0  ;;  %v4351_v24 = vrot.slane %v8666_v7, 2 }
0x4569   :  { %6890 = vtanh.f32 %v4212_v32  ;;  %v5663_v45 = vmul.f32 -1.442695, %v4212_v32 }
0x456a   :  { %v8671_v34 = vpop.f32.mrb[30].mxu0 }
0x456b   :  { %v8674_v39 = vpop.f32.mrb[31].mxu0 }
0x456c   :  { %v4214_v9 = vrot.slane %v8674_v39, 6  ;;  %v4354_v26 = vrot.slane %v8674_v39, 4 }
0x456e   :  { %v4216_v17 = vadd.f32 %v4214_v9, %v4210_v36 }
0x4570   :  { %6892 = vtanh.f32 %v4216_v17  ;;  %v5664_v49 = vmul.f32 -1.442695, %v4216_v17 }
0x4571   :  { %6894 = vpow2.f32 %v5663_v45 }
0x4572   :  { %6896 = vpow2.f32 %v5664_v49 }
0x4573   :  { %v6891_v8 = vpop.eup %6890 }
0x4574   :  { %4226 = vrot.lane.b32.xlu1 %v6891_v8, %s7315_s12 }
0x457a   :  { %v6893_v11 = vpop.eup %6892 }
0x457b   :  { %4250 = vrot.lane.b32.xlu0 %v6893_v11, %s7315_s12  ;;  %v6895_v35 = vpop.eup %6894 }
0x457c   :  { %v4220_v55 = vadd.f32 1.0, %v6895_v35  ;;  %v6897_v40 = vpop.eup %6896 }
0x457d   :  { %v4244_v43 = vadd.f32 1.0, %v6897_v40 }
0x457e   :  { %6898 = vrcp.f32 %v4220_v55 }
0x457f   :  { %6900 = vrcp.f32 %v4244_v43 }
0x4588   :  { %v6899_v47 = vpop.eup %6898 }
0x4589   :  { %v6901_v23 = vpop.eup %6900  ;;  %v4224_v48 = vmul.f32 0.0, %v6899_v47 }
0x458a   :  { %v4248_v57 = vmul.f32 0.0, %v6901_v23 }
0x45e6   :  { %v4227_v6 = vpop.permute.xlu1 %4226 }
0x45e7   :  { %v4229_v58 = vmul.f32 %v6899_v47, %v4227_v6 }
0x45e9   :  { %4231 = vrot.lane.b32.xlu1 %v4229_v58, %s7316_s22 }
0x45ed   :  { %v4251_v0 = vpop.permute.xlu0 %4250 }
0x45ee   :  { %v4253_v42 = vmul.f32 %v6901_v23, %v4251_v0 }
0x45f0   :  { %4255 = vrot.lane.b32.xlu0 %v4253_v42, %s7316_s22 }
0x465b   :  { %v4232_v50 = vpop.permute.xlu1 %4231 }
0x465c   :  { %v8681_v60 = vadd.f32 %v4232_v50, %v4224_v48 }
0x465e   :  { %6902 = vtanh.f32 %v8681_v60 }
0x4662   :  { %v4256_v53 = vpop.permute.xlu0 %4255 }
0x4663   :  { %v4258_v56 = vadd.f32 %v4256_v53, %v4248_v57 }
0x4665   :  { %6904 = vtanh.f32 %v4258_v56 }
0x4668   :  { %v6903_v62 = vpop.eup %6902 }
0x4669   :  { %4237 = vrot.lane.b32.xlu1 %v6903_v62, %s7315_s12 }
0x466f   :  { %v6905_v1 = vpop.eup %6904 }
0x4670   :  { %4261 = vrot.lane.b32.xlu0 %v6905_v1, %s7315_s12 }
0x46db   :  { %v4238_v61 = vpop.permute.xlu1 %4237 }
0x46dc   :  { %v4240_v2 = vmul.f32 %v6899_v47, %v4238_v61  ;;  %v4493_v61 = vrot.slane %v8674_v39, 2 }
0x46de   :  { %4266 = vrot.lane.b32.xlu1 %v4240_v2, %s7316_s22 }
0x46e2   :  { %v4262_v10 = vpop.permute.xlu0 %4261 }
0x46e3   :  { %v4264_v44 = vmul.f32 %v6901_v23, %v4262_v10 }
0x46e5   :  { %4271 = vrot.lane.b32.xlu0 %v4264_v44, %s7315_s12 }
0x4750   :  { %v4267_v19 = vpop.permute.xlu1 %4266 }
0x4751   :  { %4269 = vst.msk [vmem:[#allocation2] sm:$0x3] %vm567_vm7, %v4267_v19 }
0x4757   :  { %v4272_v20 = vpop.permute.xlu0 %4271 }
0x4758   :  { %4274 = vst.msk [vmem:[#allocation2 + $0xe] sm:$0x3] %vm573_vm8, %v4272_v20  ;;  %v4275_v63 = vsel %vm575_vm9, %v4267_v19, %v4272_v20 }
0x4759   :  { %5665 = vmatmul.mubr.msk.f32.vlgmr.msra.gmra.mrb[32].mxu0 %vm435_vm10, %v4275_v63 }
0x475a   :  { %6356 = vmatpush1.bf16.msra.mxu0 %v8605_v38  ;;  %4622 = vmatprep.mubr.f32.mxu0 %v7314_v46 }
0x475b   :  { %6358 = vmatprep.subr.bf16.mxu0 %v8609_v41 }
0x475e   :  { %6360 = vmatpush1.bf16.msra.mxu0 %v8611_v51 }
0x475f   :  { %6362 = vmatprep.subr.bf16.mxu0 %v8614_v13 }
0x4762   :  { %6364 = vmatpush1.bf16.msra.mxu0 %v8620_v37 }
0x4763   :  { %6366 = vmatprep.subr.bf16.mxu0 %v8623_v16 }
0x4766   :  { %6368 = vmatpush1.bf16.msra.mxu0 %v8625_v22 }
0x4767   :  { %6386 = vmatprep.subr.bf16.mxu0 %v8603_v31 }
0x482c   :  { %v4345_v15 = vpop.f32.mrb[32].mxu0 }
0x482d   :  { %v4346_v12 = vadd.f32 %v4345_v15, %v8660_v29  ;;  %v4347_v14 = vpop.f32.mrb[33].mxu0 }
0x482e   :  { %v4348_v4 = vadd.f32 %v4347_v14, %v8664_v30 }
0x482f   :  { %v4353_v52 = vadd.f32 %v4351_v24, %v4346_v12 }
0x4830   :  { %v4356_v27 = vadd.f32 %v4354_v26, %v4348_v4 }
0x4831   :  { %6906 = vtanh.f32 %v4353_v52  ;;  %v5666_v54 = vmul.f32 -1.442695, %v4353_v52 }
0x4832   :  { %6908 = vtanh.f32 %v4356_v27  ;;  %v5667_v59 = vmul.f32 -1.442695, %v4356_v27 }
0x4833   :  { %6910 = vpow2.f32 %v5666_v54 }
0x4834   :  { %6912 = vpow2.f32 %v5667_v59 }
0x483b   :  { %v6907_v3 = vpop.eup %6906 }
0x483c   :  { %v6909_v5 = vpop.eup %6908  ;;  %4366 = vrot.lane.b32.xlu1 %v6907_v3, %s7315_s12 }
0x483d   :  { %4390 = vrot.lane.b32.xlu0 %v6909_v5, %s7315_s12  ;;  %v6911_v18 = vpop.eup %6910 }
0x483e   :  { %v6913_v21 = vpop.eup %6912  ;;  %v4360_v28 = vadd.f32 1.0, %v6911_v18 }
0x483f   :  { %v4384_v25 = vadd.f32 1.0, %v6913_v21 }
0x4840   :  { %6914 = vrcp.f32 %v4360_v28 }
0x4841   :  { %6916 = vrcp.f32 %v4384_v25 }
0x484a   :  { %v6915_v32 = vpop.eup %6914 }
0x484b   :  { %v6917_v9 = vpop.eup %6916  ;;  %v4364_v45 = vmul.f32 %v6915_v32, %v8681_v60 }
0x484c   :  { %v4388_v35 = vmul.f32 %v6917_v9, %v4258_v56  ;;  %v4490_v56 = vrot.slane %v8666_v7, 4 }
0x48ae   :  { %v4367_v36 = vpop.permute.xlu1 %4366 }
0x48af   :  { %v4369_v17 = vmul.f32 %v6915_v32, %v4367_v36  ;;  %v4391_v8 = vpop.permute.xlu0 %4390 }
0x48b0   :  { %v4393_v11 = vmul.f32 %v6917_v9, %v4391_v8 }
0x48b1   :  { %4371 = vrot.lane.b32.xlu1 %v4369_v17, %s7316_s22 }
0x48b2   :  { %4395 = vrot.lane.b32.xlu0 %v4393_v11, %s7316_s22 }
0x4923   :  { %v4372_v49 = vpop.permute.xlu1 %4371 }
0x4924   :  { %v4374_v55 = vadd.f32 %v4372_v49, %v4364_v45  ;;  %v4396_v40 = vpop.permute.xlu0 %4395 }
0x4925   :  { %v4398_v43 = vadd.f32 %v4396_v40, %v4388_v35 }
0x4926   :  { %6918 = vtanh.f32 %v4374_v55 }
0x4927   :  { %6920 = vtanh.f32 %v4398_v43 }
0x4930   :  { %v6919_v47 = vpop.eup %6918 }
0x4931   :  { %v6921_v6 = vpop.eup %6920  ;;  %4377 = vrot.lane.b32.xlu1 %v6919_v47, %s7315_s12 }
0x4932   :  { %4401 = vrot.lane.b32.xlu0 %v6921_v6, %s7315_s12 }
0x49a3   :  { %v4378_v58 = vpop.permute.xlu1 %4377 }
0x49a4   :  { %v4380_v23 = vmul.f32 %v6915_v32, %v4378_v58  ;;  %v4402_v0 = vpop.permute.xlu0 %4401 }
0x49a5   :  { %v4404_v42 = vmul.f32 %v6917_v9, %v4402_v0 }
0x49a6   :  { %4406 = vrot.lane.b32.xlu1 %v4380_v23, %s7316_s22 }
0x49a7   :  { %4411 = vrot.lane.b32.xlu0 %v4404_v42, %s7315_s12 }
0x4a18   :  { %v4407_v48 = vpop.permute.xlu1 %4406 }
0x4a19   :  { %4409 = vst.msk [vmem:[#allocation2 + $0x2] sm:$0x3] %vm567_vm7, %v4407_v48  ;;  %v4412_v50 = vpop.permute.xlu0 %4411 }
0x4a1a   :  { %4414 = vst.msk [vmem:[#allocation2 + $0xc] sm:$0x3] %vm573_vm8, %v4412_v50  ;;  %v4415_v60 = vsel %vm575_vm9, %v4407_v48, %v4412_v50 }
0x4a1b   :  { %5668 = vmatmul.mubr.msk.f32.vlgmr.msra.gmra.mrb[36].mxu1 %vm435_vm10, %v4415_v60 }
0x4a1c   :  { %6372 = vmatpush1.bf16.msra.mxu1 %v8605_v38  ;;  %4759 = vmatprep.mubr.f32.mxu1 %v7314_v46 }
0x4a1d   :  { %6374 = vmatprep.subr.bf16.mxu1 %v8609_v41 }
0x4a20   :  { %6376 = vmatpush1.bf16.msra.mxu1 %v8611_v51 }
0x4a21   :  { %6378 = vmatprep.subr.bf16.mxu1 %v8614_v13 }
0x4a24   :  { %6380 = vmatpush1.bf16.msra.mxu1 %v8620_v37 }
0x4a25   :  { %6382 = vmatprep.subr.bf16.mxu1 %v8623_v16 }
0x4a28   :  { %6384 = vmatpush1.bf16.msra.mxu1 %v8625_v22 }
0x4a29   :  { %6402 = vmatprep.subr.bf16.mxu1 %v8603_v31 }
0x4aee   :  { %v4485_v57 = vpop.f32.mrb[36].mxu1 }
0x4aef   :  { %v4486_v53 = vadd.f32 %v4485_v57, %v8660_v29  ;;  %v4487_v62 = vpop.f32.mrb[37].mxu1 }
0x4af0   :  { %v4488_v1 = vadd.f32 %v4487_v62, %v8664_v30 }
0x4af1   :  { %v4492_v2 = vadd.f32 %v4490_v56, %v4486_v53 }
0x4af2   :  { %v4495_v10 = vadd.f32 %v4493_v61, %v4488_v1 }
0x4af3   :  { %6922 = vtanh.f32 %v4492_v2  ;;  %v5669_v20 = vmul.f32 -1.442695, %v4492_v2 }
0x4af4   :  { %6924 = vtanh.f32 %v4495_v10  ;;  %v5670_v63 = vmul.f32 -1.442695, %v4495_v10 }
0x4af5   :  { %6926 = vpow2.f32 %v5669_v20 }
0x4af6   :  { %6928 = vpow2.f32 %v5670_v63 }
0x4afd   :  { %v6923_v44 = vpop.eup %6922 }
0x4afe   :  { %v6925_v19 = vpop.eup %6924  ;;  %4505 = vrot.lane.b32.xlu1 %v6923_v44, %s7315_s12 }
0x4aff   :  { %4529 = vrot.lane.b32.xlu0 %v6925_v19, %s7315_s12  ;;  %v6927_v15 = vpop.eup %6926 }
0x4b00   :  { %v6929_v12 = vpop.eup %6928  ;;  %v4499_v24 = vadd.f32 1.0, %v6927_v15 }
0x4b01   :  { %v4523_v14 = vadd.f32 1.0, %v6929_v12 }
0x4b02   :  { %6930 = vrcp.f32 %v4499_v24 }
0x4b03   :  { %6932 = vrcp.f32 %v4523_v14 }
0x4b0c   :  { %v6931_v4 = vpop.eup %6930 }
0x4b0d   :  { %v6933_v52 = vpop.eup %6932  ;;  %v4503_v54 = vmul.f32 %v6931_v4, %v4374_v55 }
0x4b0e   :  { %v4527_v18 = vmul.f32 %v6933_v52, %v4398_v43  ;;  %v4629_v43 = vrot.slane %v8666_v7, 6 }
0x4b70   :  { %v4506_v26 = vpop.permute.xlu1 %4505 }
0x4b71   :  { %v4508_v27 = vmul.f32 %v6931_v4, %v4506_v26  ;;  %v4530_v3 = vpop.permute.xlu0 %4529 }
0x4b72   :  { %v4532_v5 = vmul.f32 %v6933_v52, %v4530_v3 }
0x4b73   :  { %4510 = vrot.lane.b32.xlu1 %v4508_v27, %s7316_s22 }
0x4b74   :  { %4534 = vrot.lane.b32.xlu0 %v4532_v5, %s7316_s22 }
0x4be5   :  { %v4511_v59 = vpop.permute.xlu1 %4510 }
0x4be6   :  { %v4513_v21 = vadd.f32 %v4511_v59, %v4503_v54  ;;  %v4535_v28 = vpop.permute.xlu0 %4534 }
0x4be7   :  { %v4537_v25 = vadd.f32 %v4535_v28, %v4527_v18 }
0x4be8   :  { %6934 = vtanh.f32 %v4513_v21 }
0x4be9   :  { %6936 = vtanh.f32 %v4537_v25 }
0x4bf2   :  { %v6935_v32 = vpop.eup %6934 }
0x4bf3   :  { %v6937_v36 = vpop.eup %6936  ;;  %4516 = vrot.lane.b32.xlu1 %v6935_v32, %s7315_s12 }
0x4bf4   :  { %4540 = vrot.lane.b32.xlu0 %v6937_v36, %s7315_s12 }
0x4c65   :  { %v4517_v9 = vpop.permute.xlu1 %4516 }
0x4c66   :  { %v4519_v17 = vmul.f32 %v6931_v4, %v4517_v9  ;;  %v4541_v8 = vpop.permute.xlu0 %4540 }
0x4c67   :  { %v4543_v11 = vmul.f32 %v6933_v52, %v4541_v8 }
0x4c68   :  { %4545 = vrot.lane.b32.xlu1 %v4519_v17, %s7316_s22 }
0x4c69   :  { %4550 = vrot.lane.b32.xlu0 %v4543_v11, %s7315_s12 }
0x4cda   :  { %v4546_v45 = vpop.permute.xlu1 %4545 }
0x4cdb   :  { %4548 = vst.msk [vmem:[#allocation2 + $0x4] sm:$0x3] %vm567_vm7, %v4546_v45  ;;  %v4551_v49 = vpop.permute.xlu0 %4550 }
0x4cdc   :  { %4553 = vst.msk [vmem:[#allocation2 + $0xa] sm:$0x3] %vm573_vm8, %v4551_v49  ;;  %v4554_v35 = vsel %vm575_vm9, %v4546_v45, %v4551_v49 }
0x4cdd   :  { %5671 = vmatmul.mubr.msk.f32.vlgmr.msra.gmra.mrb[34].mxu0 %vm435_vm10, %v4554_v35 }
0x4cde   :  { %6388 = vmatpush1.bf16.msra.mxu0 %v8605_v38  ;;  %4897 = vmatprep.mubr.f32.mxu0 %v7314_v46 }
0x4cdf   :  { %6390 = vmatprep.subr.bf16.mxu0 %v8609_v41 }
0x4ce2   :  { %6392 = vmatpush1.bf16.msra.mxu0 %v8611_v51 }
0x4ce3   :  { %6394 = vmatprep.subr.bf16.mxu0 %v8614_v13 }
0x4ce6   :  { %6396 = vmatpush1.bf16.msra.mxu0 %v8620_v37 }
0x4ce7   :  { %6398 = vmatprep.subr.bf16.mxu0 %v8623_v16 }
0x4cea   :  { %6400 = vmatpush1.bf16.msra.mxu0 %v8625_v22 }
0x4ceb   :  { %6418 = vmatprep.subr.bf16.mxu0 %v8603_v31 }
0x4db0   :  { %v4624_v55 = vpop.f32.mrb[34].mxu0 }
0x4db1   :  { %v4625_v40 = vadd.f32 %v4624_v55, %v8660_v29  ;;  %v4626_v47 = vpop.f32.mrb[35].mxu0 }
0x4db2   :  { %v4627_v6 = vadd.f32 %v4626_v47, %v8664_v30 }
0x4db3   :  { %v4631_v58 = vadd.f32 %v4629_v43, %v4625_v40 }
0x4db4   :  { %v4632_v23 = vadd.f32 %v4627_v6, %v8674_v39 }
0x4db5   :  { %6938 = vtanh.f32 %v4631_v58  ;;  %v5672_v31 = vmul.f32 -1.442695, %v4631_v58 }
0x4db6   :  { %6940 = vtanh.f32 %v4632_v23  ;;  %v5673_v48 = vmul.f32 -1.442695, %v4632_v23 }
0x4db7   :  { %6942 = vpow2.f32 %v5672_v31 }
0x4db8   :  { %6944 = vpow2.f32 %v5673_v48 }
0x4dbf   :  { %v6939_v0 = vpop.eup %6938 }
0x4dc0   :  { %v6941_v42 = vpop.eup %6940  ;;  %4642 = vrot.lane.b32.xlu1 %v6939_v0, %s7315_s12 }
0x4dc1   :  { %4666 = vrot.lane.b32.xlu0 %v6941_v42, %s7315_s12  ;;  %v6943_v50 = vpop.eup %6942 }
0x4dc2   :  { %v6945_v7 = vpop.eup %6944  ;;  %v4636_v60 = vadd.f32 1.0, %v6943_v50 }
0x4dc3   :  { %v4660_v57 = vadd.f32 1.0, %v6945_v7 }
0x4dc4   :  { %6946 = vrcp.f32 %v4636_v60 }
0x4dc5   :  { %6948 = vrcp.f32 %v4660_v57 }
0x4dce   :  { %v6947_v53 = vpop.eup %6946 }
0x4dcf   :  { %v6949_v56 = vpop.eup %6948  ;;  %v4640_v2 = vmul.f32 %v6947_v53, %v4513_v21  ;;  %v4768_v21 = vrot.slane %v8669_v33, 6 }
0x4dd0   :  { %v4664_v44 = vmul.f32 %v6949_v56, %v4537_v25 }
0x4e32   :  { %v4643_v39 = vpop.permute.xlu1 %4642 }
0x4e33   :  { %v4645_v62 = vmul.f32 %v6947_v53, %v4643_v39  ;;  %v4667_v1 = vpop.permute.xlu0 %4666 }
0x4e34   :  { %v4669_v61 = vmul.f32 %v6949_v56, %v4667_v1 }
0x4e35   :  { %4647 = vrot.lane.b32.xlu1 %v4645_v62, %s7316_s22 }
0x4e36   :  { %4671 = vrot.lane.b32.xlu0 %v4669_v61, %s7316_s22 }
0x4ea7   :  { %v4648_v10 = vpop.permute.xlu1 %4647 }
0x4ea8   :  { %v4650_v19 = vadd.f32 %v4648_v10, %v4640_v2  ;;  %v4672_v20 = vpop.permute.xlu0 %4671  ;;  %v4905_v10 = vrot.slane %v8671_v34, 2 }
0x4ea9   :  { %v4674_v63 = vadd.f32 %v4672_v20, %v4664_v44 }
0x4eaa   :  { %6950 = vtanh.f32 %v4650_v19 }
0x4eab   :  { %6952 = vtanh.f32 %v4674_v63 }
0x4eb4   :  { %v6951_v15 = vpop.eup %6950 }
0x4eb5   :  { %v6953_v12 = vpop.eup %6952  ;;  %4653 = vrot.lane.b32.xlu1 %v6951_v15, %s7315_s12 }
0x4eb6   :  { %4677 = vrot.lane.b32.xlu0 %v6953_v12, %s7315_s12 }
0x4f27   :  { %v4654_v24 = vpop.permute.xlu1 %4653 }
0x4f28   :  { %v4656_v14 = vmul.f32 %v6947_v53, %v4654_v24  ;;  %v4678_v4 = vpop.permute.xlu0 %4677 }
0x4f29   :  { %v4680_v26 = vmul.f32 %v6949_v56, %v4678_v4 }
0x4f2a   :  { %4682 = vrot.lane.b32.xlu1 %v4656_v14, %s7316_s22 }
0x4f2b   :  { %4687 = vrot.lane.b32.xlu0 %v4680_v26, %s7315_s12 }
0x4f9c   :  { %v4683_v52 = vpop.permute.xlu1 %4682 }
0x4f9d   :  { %4685 = vst.msk [vmem:[#allocation2 + $0x6] sm:$0x3] %vm567_vm7, %v4683_v52  ;;  %v4688_v27 = vpop.permute.xlu0 %4687 }
0x4f9e   :  { %4690 = vst.msk [vmem:[#allocation2 + $0x8] sm:$0x3] %vm573_vm8, %v4688_v27  ;;  %v4691_v3 = vsel %vm575_vm9, %v4683_v52, %v4688_v27 }
0x4f9f   :  { %5674 = vmatmul.mubr.msk.f32.vlgmr.msra.gmra.mrb[38].mxu1 %vm435_vm10, %v4691_v3 }
0x4fa0   :  { %6404 = vmatpush1.bf16.msra.mxu1 %v8605_v38  ;;  %5037 = vmatprep.mubr.f32.mxu1 %v7314_v46 }
0x4fa1   :  { %6406 = vmatprep.subr.bf16.mxu1 %v8609_v41 }
0x4fa4   :  { %6408 = vmatpush1.bf16.msra.mxu1 %v8611_v51 }
0x4fa5   :  { %6410 = vmatprep.subr.bf16.mxu1 %v8614_v13 }
0x4fa8   :  { %6412 = vmatpush1.bf16.msra.mxu1 %v8620_v37 }
0x4fa9   :  { %6414 = vmatprep.subr.bf16.mxu1 %v8623_v16 }
0x4fac   :  { %6416 = vmatpush1.bf16.msra.mxu1 %v8625_v22 }
0x5072   :  { %v4761_v5 = vpop.f32.mrb[38].mxu1 }
0x5073   :  { %v4762_v54 = vadd.f32 %v4761_v5, %v8660_v29  ;;  %v4763_v59 = vpop.f32.mrb[39].mxu1 }
0x5074   :  { %v4764_v18 = vadd.f32 %v4763_v59, %v8664_v30 }
0x5075   :  { %v4766_v28 = vadd.f32 %v4762_v54, %v8671_v34 }
0x5076   :  { %v4770_v25 = vadd.f32 %v4768_v21, %v4764_v18 }
0x5077   :  { %6954 = vtanh.f32 %v4766_v28  ;;  %v5675_v9 = vmul.f32 -1.442695, %v4766_v28 }
0x5078   :  { %6956 = vtanh.f32 %v4770_v25  ;;  %v5676_v17 = vmul.f32 -1.442695, %v4770_v25 }
0x5079   :  { %6958 = vpow2.f32 %v5675_v9 }
0x507a   :  { %6960 = vpow2.f32 %v5676_v17 }
0x5081   :  { %v6955_v32 = vpop.eup %6954 }
0x5082   :  { %v6957_v36 = vpop.eup %6956  ;;  %4780 = vrot.lane.b32.xlu1 %v6955_v32, %s7315_s12 }
0x5083   :  { %4804 = vrot.lane.b32.xlu0 %v6957_v36, %s7315_s12  ;;  %v6959_v8 = vpop.eup %6958 }
0x5084   :  { %v6961_v11 = vpop.eup %6960  ;;  %v4774_v45 = vadd.f32 1.0, %v6959_v8 }
0x5085   :  { %v4798_v49 = vadd.f32 1.0, %v6961_v11 }
0x5086   :  { %6962 = vrcp.f32 %v4774_v45 }
0x5087   :  { %6964 = vrcp.f32 %v4798_v49 }
0x5090   :  { %v6963_v35 = vpop.eup %6962 }
0x5091   :  { %v6965_v40 = vpop.eup %6964  ;;  %v4778_v58 = vmul.f32 %v6963_v35, %v4650_v19 }
0x5092   :  { %v4802_v0 = vmul.f32 %v6965_v40, %v4674_v63 }
0x50f4   :  { %v4781_v55 = vpop.permute.xlu1 %4780 }
0x50f5   :  { %v4783_v43 = vmul.f32 %v6963_v35, %v4781_v55  ;;  %v4805_v47 = vpop.permute.xlu0 %4804 }
0x50f6   :  { %v4807_v6 = vmul.f32 %v6965_v40, %v4805_v47 }
0x50f7   :  { %4785 = vrot.lane.b32.xlu1 %v4783_v43, %s7316_s22  ;;  %v5047_v43 = vrot.slane %v8669_v33, 2 }
0x50f8   :  { %4809 = vrot.lane.b32.xlu0 %v4807_v6, %s7316_s22 }
0x5169   :  { %v4786_v23 = vpop.permute.xlu1 %4785 }
0x516a   :  { %v4788_v42 = vadd.f32 %v4786_v23, %v4778_v58  ;;  %v4810_v31 = vpop.permute.xlu0 %4809 }
0x516b   :  { %v4812_v48 = vadd.f32 %v4810_v31, %v4802_v0 }
0x516c   :  { %6966 = vtanh.f32 %v4788_v42 }
0x516d   :  { %6968 = vtanh.f32 %v4812_v48 }
0x5176   :  { %v6967_v50 = vpop.eup %6966 }
0x5177   :  { %v6969_v7 = vpop.eup %6968  ;;  %4791 = vrot.lane.b32.xlu1 %v6967_v50, %s7315_s12 }
0x5178   :  { %4815 = vrot.lane.b32.xlu0 %v6969_v7, %s7315_s12 }
0x51e9   :  { %v4792_v60 = vpop.permute.xlu1 %4791 }
0x51ea   :  { %v4794_v57 = vmul.f32 %v6963_v35, %v4792_v60  ;;  %v4816_v53 = vpop.permute.xlu0 %4815  ;;  %v5044_v35 = vrot.slane %v8671_v34, 4 }
0x51eb   :  { %v4818_v39 = vmul.f32 %v6965_v40, %v4816_v53 }
0x51ec   :  { %4820 = vrot.lane.b32.xlu1 %v4794_v57, %s7316_s22 }
0x51ed   :  { %4825 = vrot.lane.b32.xlu0 %v4818_v39, %s7315_s12 }
0x525e   :  { %v4821_v56 = vpop.permute.xlu1 %4820 }
0x525f   :  { %4823 = vst.msk [vmem:[#allocation2 + $0x8] sm:$0x3] %vm567_vm7, %v4821_v56  ;;  %v4826_v62 = vpop.permute.xlu0 %4825 }
0x5260   :  { %4828 = vst.msk [vmem:[#allocation2 + $0x6] sm:$0x3] %vm573_vm8, %v4826_v62  ;;  %v4829_v1 = vsel %vm575_vm9, %v4821_v56, %v4826_v62 }
0x5261   :  { %5677 = vmatmul.mubr.msk.f32.vlgmr.msra.gmra.mrb[36].mxu0 %vm435_vm10, %v4829_v1 }
0x5262   :  { %6420 = vmatpush1.bf16.msra.mxu0 %v8605_v38  ;;  %5176 = vmatprep.mubr.f32.mxu0 %v7314_v46 }
0x5263   :  { %6422 = vmatprep.subr.bf16.mxu0 %v8609_v41  ;;  %v4908_v41 = vrot.slane %v8669_v33, 4 }
0x5266   :  { %6424 = vmatpush1.bf16.msra.mxu0 %v8611_v51 }
0x5267   :  { %6426 = vmatprep.subr.bf16.mxu0 %v8614_v13 }
0x526a   :  { %6428 = vmatpush1.bf16.msra.mxu0 %v8620_v37 }
0x526b   :  { %6430 = vmatprep.subr.bf16.mxu0 %v8623_v16 }
0x526e   :  { %6432 = vmatpush1.bf16.msra.mxu0 %v8625_v22 }
0x5334   :  { %v4899_v61 = vpop.f32.mrb[36].mxu0 }
0x5335   :  { %v4900_v2 = vadd.f32 %v4899_v61, %v8660_v29  ;;  %v4901_v38 = vpop.f32.mrb[37].mxu0 }
0x5336   :  { %v4902_v46 = vadd.f32 %v4901_v38, %v8664_v30 }
0x5337   :  { %v4907_v44 = vadd.f32 %v4905_v10, %v4900_v2 }
0x5338   :  { %v4910_v51 = vadd.f32 %v4908_v41, %v4902_v46 }
0x5339   :  { %6970 = vtanh.f32 %v4907_v44  ;;  %v5678_v16 = vmul.f32 -1.442695, %v4907_v44 }
0x533a   :  { %6972 = vtanh.f32 %v4910_v51  ;;  %v5679_v22 = vmul.f32 -1.442695, %v4910_v51 }
0x533b   :  { %6974 = vpow2.f32 %v5678_v16 }
0x533c   :  { %6976 = vpow2.f32 %v5679_v22 }
0x5343   :  { %v6971_v13 = vpop.eup %6970 }
0x5344   :  { %v6973_v37 = vpop.eup %6972  ;;  %4920 = vrot.lane.b32.xlu1 %v6971_v13, %s7315_s12 }
0x5345   :  { %4944 = vrot.lane.b32.xlu0 %v6973_v37, %s7315_s12  ;;  %v6975_v19 = vpop.eup %6974 }
0x5346   :  { %v6977_v20 = vpop.eup %6976  ;;  %v4914_v63 = vadd.f32 1.0, %v6975_v19 }
0x5347   :  { %v4938_v15 = vadd.f32 1.0, %v6977_v20 }
0x5348   :  { %6978 = vrcp.f32 %v4914_v63 }
0x5349   :  { %6980 = vrcp.f32 %v4938_v15 }
0x5352   :  { %v6979_v12 = vpop.eup %6978 }
0x5353   :  { %v6981_v14 = vpop.eup %6980  ;;  %v4918_v27 = vmul.f32 %v6979_v12, %v4788_v42 }
0x5354   :  { %v4942_v5 = vmul.f32 %v6981_v14, %v4812_v48 }
0x53b6   :  { %v4921_v24 = vpop.permute.xlu1 %4920 }
0x53b7   :  { %v4923_v4 = vmul.f32 %v6979_v12, %v4921_v24  ;;  %v4945_v26 = vpop.permute.xlu0 %4944 }
0x53b8   :  { %v4947_v52 = vmul.f32 %v6981_v14, %v4945_v26 }
0x53b9   :  { %4925 = vrot.lane.b32.xlu1 %v4923_v4, %s7316_s22 }
0x53ba   :  { %4949 = vrot.lane.b32.xlu0 %v4947_v52, %s7316_s22 }
0x542b   :  { %v4926_v3 = vpop.permute.xlu1 %4925 }
0x542c   :  { %v4928_v54 = vadd.f32 %v4926_v3, %v4918_v27  ;;  %v4950_v59 = vpop.permute.xlu0 %4949 }
0x542d   :  { %v4952_v18 = vadd.f32 %v4950_v59, %v4942_v5 }
0x542e   :  { %6982 = vtanh.f32 %v4928_v54 }
0x542f   :  { %6984 = vtanh.f32 %v4952_v18 }
0x5438   :  { %v6983_v21 = vpop.eup %6982 }
0x5439   :  { %v6985_v28 = vpop.eup %6984  ;;  %4931 = vrot.lane.b32.xlu1 %v6983_v21, %s7315_s12 }
0x543a   :  { %4955 = vrot.lane.b32.xlu0 %v6985_v28, %s7315_s12 }
0x54ab   :  { %v4932_v25 = vpop.permute.xlu1 %4931 }
0x54ac   :  { %v4934_v32 = vmul.f32 %v6979_v12, %v4932_v25  ;;  %v4956_v36 = vpop.permute.xlu0 %4955  ;;  %v5183_v12 = vrot.slane %v8671_v34, 6 }
0x54ad   :  { %v4958_v9 = vmul.f32 %v6981_v14, %v4956_v36 }
0x54ae   :  { %4960 = vrot.lane.b32.xlu1 %v4934_v32, %s7316_s22 }
0x54af   :  { %4965 = vrot.lane.b32.xlu0 %v4958_v9, %s7315_s12 }
0x5520   :  { %v4961_v17 = vpop.permute.xlu1 %4960 }
0x5521   :  { %4963 = vst.msk [vmem:[#allocation2 + $0xa] sm:$0x3] %vm567_vm7, %v4961_v17  ;;  %v4966_v8 = vpop.permute.xlu0 %4965 }
0x5522   :  { %4968 = vst.msk [vmem:[#allocation2 + $0x4] sm:$0x3] %vm573_vm8, %v4966_v8  ;;  %v4969_v11 = vsel %vm575_vm9, %v4961_v17, %v4966_v8 }
0x5523   :  { %5680 = vmatmul.mubr.msk.f32.vlgmr.msra.gmra.mrb[40].mxu1 %vm435_vm10, %v4969_v11 }
0x55f6   :  { %v5039_v45 = vpop.f32.mrb[40].mxu1 }
0x55f7   :  { %v5040_v49 = vadd.f32 %v5039_v45, %v8660_v29  ;;  %v5041_v55 = vpop.f32.mrb[41].mxu1 }
0x55f8   :  { %v5042_v40 = vadd.f32 %v5041_v55, %v8664_v30  ;;  %v5254_v55 = vld [vmem:[#allocation13 + $0x8] sm:$0xff] }
0x55f9   :  { %v5046_v47 = vadd.f32 %v5044_v35, %v5040_v49  ;;  %v5253_v35 = vld [vmem:[#allocation13] sm:$0xff] }
0x55fa   :  { %v5049_v6 = vadd.f32 %v5047_v43, %v5042_v40  ;;  %v6433_v40 = vpack.c.bf16 %v5254_v55, %v5253_v35  ;;  %v5255_v43 = vld [vmem:[#allocation13 + $0x10] sm:$0xff] }
0x55fb   :  { %6986 = vtanh.f32 %v5046_v47  ;;  %v5681_v0 = vmul.f32 -1.442695, %v5046_v47  ;;  %v5256_v47 = vld [vmem:[#allocation13 + $0x18] sm:$0xff] }
0x55fc   :  { %6988 = vtanh.f32 %v5049_v6  ;;  %v5682_v42 = vmul.f32 -1.442695, %v5049_v6  ;;  %6434 = vmatprep.subr.bf16.mxu1 %v6433_v40  ;;  %v6437_v6 = vpack.c.bf16 %v5256_v47, %v5255_v43 }
0x55fd   :  { %6990 = vpow2.f32 %v5681_v0  ;;  %6436 = vmatpush3.bf16.msra.mxu1 %v6433_v40  ;;  %v5258_v0 = vld [vmem:[#allocation13 + $0x28] sm:$0xff] }
0x55fe   :  { %6992 = vpow2.f32 %v5682_v42  ;;  %v5259_v42 = vld [vmem:[#allocation13 + $0x30] sm:$0xff]  ;;  %6438 = vmatprep.subr.bf16.mxu1 %v6437_v6 }
0x5601   :  { %6440 = vmatpush3.bf16.msra.mxu1 %v6437_v6 }
0x5605   :  { %v6987_v58 = vpop.eup %6986 }
0x5606   :  { %v6989_v23 = vpop.eup %6988  ;;  %5059 = vrot.lane.b32.xlu1 %v6987_v58, %s7315_s12 }
0x5607   :  { %5083 = vrot.lane.b32.xlu0 %v6989_v23, %s7315_s12  ;;  %v6991_v31 = vpop.eup %6990  ;;  %v5257_v23 = vld [vmem:[#allocation13 + $0x20] sm:$0xff] }
0x5608   :  { %v6993_v48 = vpop.eup %6992  ;;  %v5053_v50 = vadd.f32 1.0, %v6991_v31 }
0x5609   :  { %v5077_v7 = vadd.f32 1.0, %v6993_v48 }
0x560a   :  { %6994 = vrcp.f32 %v5053_v50  ;;  %v6441_v50 = vpack.c.bf16 %v5258_v0, %v5257_v23 }
0x560b   :  { %6996 = vrcp.f32 %v5077_v7  ;;  %v5260_v7 = vld [vmem:[#allocation13 + $0x38] sm:$0xff] }
0x560c   :  { %6442 = vmatprep.subr.bf16.mxu1 %v6441_v50 }
0x560d   :  { %6444 = vmatpush3.bf16.msra.mxu1 %v6441_v50 }
0x5614   :  { %v6995_v60 = vpop.eup %6994 }
0x5615   :  { %v6997_v53 = vpop.eup %6996  ;;  %v5057_v1 = vmul.f32 %v6995_v60, %v4928_v54 }
0x5616   :  { %v5081_v2 = vmul.f32 %v6997_v53, %v4952_v18 }
0x5678   :  { %v5060_v57 = vpop.permute.xlu1 %5059 }
0x5679   :  { %v5062_v39 = vmul.f32 %v6995_v60, %v5060_v57  ;;  %v5084_v56 = vpop.permute.xlu0 %5083  ;;  %v6445_v57 = vpack.c.bf16 %v5260_v7, %v5259_v42 }
0x567a   :  { %v5086_v62 = vmul.f32 %v6997_v53, %v5084_v56 }
0x567b   :  { %5064 = vrot.lane.b32.xlu1 %v5062_v39, %s7316_s22  ;;  %6446 = vmatprep.subr.bf16.mxu1 %v6445_v57 }
0x567c   :  { %5088 = vrot.lane.b32.xlu0 %v5086_v62, %s7316_s22  ;;  %6448 = vmatpush3.bf16.msra.mxu1 %v6445_v57 }
0x56ed   :  { %v5065_v61 = vpop.permute.xlu1 %5064 }
0x56ee   :  { %v5067_v10 = vadd.f32 %v5065_v61, %v5057_v1  ;;  %v5089_v38 = vpop.permute.xlu0 %5088 }
0x56ef   :  { %v5091_v46 = vadd.f32 %v5089_v38, %v5081_v2  ;;  %v5351_v38 = vld [vmem:[#allocation16] sm:$0xff] }
0x56f0   :  { %6998 = vtanh.f32 %v5067_v10 }
0x56f1   :  { %7000 = vtanh.f32 %v5091_v46 }
0x56fa   :  { %v6999_v41 = vpop.eup %6998 }
0x56fb   :  { %v7001_v44 = vpop.eup %7000  ;;  %5070 = vrot.lane.b32.xlu1 %v6999_v41, %s7315_s12 }
0x56fc   :  { %5094 = vrot.lane.b32.xlu0 %v7001_v44, %s7315_s12  ;;  %v5353_v44 = vld [vmem:[#allocation16 + $0x10] sm:$0xff] }
0x576d   :  { %v5071_v51 = vpop.permute.xlu1 %5070 }
0x576e   :  { %v5073_v13 = vmul.f32 %v6995_v60, %v5071_v51  ;;  %v5095_v37 = vpop.permute.xlu0 %5094  ;;  %v5354_v51 = vld [vmem:[#allocation16 + $0x18] sm:$0xff] }
0x576f   :  { %v5097_v16 = vmul.f32 %v6997_v53, %v5095_v37  ;;  %v5355_v37 = vld [vmem:[#allocation16 + $0x20] sm:$0xff] }
0x5770   :  { %5099 = vrot.lane.b32.xlu1 %v5073_v13, %s7316_s22  ;;  %v6453_v13 = vpack.c.bf16 %v5354_v51, %v5353_v44 }
0x5771   :  { %5104 = vrot.lane.b32.xlu0 %v5097_v16, %s7315_s12  ;;  %v5356_v16 = vld [vmem:[#allocation16 + $0x28] sm:$0xff] }
0x57e2   :  { %v5100_v22 = vpop.permute.xlu1 %5099 }
0x57e3   :  { %5102 = vst.msk [vmem:[#allocation2 + $0xc] sm:$0x3] %vm567_vm7, %v5100_v22  ;;  %v5105_v19 = vpop.permute.xlu0 %5104 }
0x57e4   :  { %5107 = vst.msk [vmem:[#allocation2 + $0x2] sm:$0x3] %vm573_vm8, %v5105_v19  ;;  %v5108_v20 = vsel %vm575_vm9, %v5100_v22, %v5105_v19  ;;  %v5357_v22 = vld [vmem:[#allocation16 + $0x30] sm:$0xff]  ;;  %v6457_v19 = vpack.c.bf16 %v5356_v16, %v5355_v37 }
0x57e5   :  { %5683 = vmatmul.mubr.msk.f32.vlgmr.msra.gmra.mrb[38].mxu0 %vm435_vm10, %v5108_v20  ;;  %v5358_v20 = vld [vmem:[#allocation16 + $0x38] sm:$0xff] }
0x58b8   :  { %v5178_v63 = vpop.f32.mrb[38].mxu0 }
0x58b9   :  { %v5179_v15 = vadd.f32 %v5178_v63, %v8660_v29  ;;  %v5180_v24 = vpop.f32.mrb[39].mxu0  ;;  %v6461_v63 = vpack.c.bf16 %v5358_v20, %v5357_v22 }
0x58ba   :  { %v5181_v14 = vadd.f32 %v5180_v24, %v8664_v30 }
0x58bb   :  { %v5185_v4 = vadd.f32 %v5183_v12, %v5179_v15  ;;  %v5688_v15 = vld [vmem:[#allocation14] ss:$0 sm:$0xff] }
0x58bc   :  { %v5186_v26 = vadd.f32 %v5181_v14, %v8669_v33 }
0x58bd   :  { %7002 = vtanh.f32 %v5185_v4  ;;  %v5684_v3 = vmul.f32 -1.442695, %v5185_v4 }
0x58be   :  { %7004 = vtanh.f32 %v5186_v26  ;;  %v5685_v5 = vmul.f32 -1.442695, %v5186_v26 }
0x58bf   :  { %7006 = vpow2.f32 %v5684_v3  ;;  %v5450_v3 = vld [vmem:[%s8906_s18 + $0x8] sm:$0xff] }
0x58c0   :  { %7008 = vpow2.f32 %v5685_v5 }
0x58c7   :  { %v7003_v52 = vpop.eup %7002 }
0x58c8   :  { %v7005_v27 = vpop.eup %7004  ;;  %5196 = vrot.lane.b32.xlu0 %v7003_v52, %s7315_s12 }
0x58c9   :  { %5220 = vrot.lane.b32.xlu1 %v7005_v27, %s7315_s12  ;;  %v7007_v29 = vpop.eup %7006  ;;  %v5449_v27 = vld [vmem:[%s8906_s18] sm:$0xff] }
0x58ca   :  { %v7009_v34 = vpop.eup %7008  ;;  %v5190_v54 = vadd.f32 1.0, %v7007_v29  ;;  %v6465_v5 = vpack.c.bf16 %v5450_v3, %v5449_v27  ;;  %v5451_v29 = vld [vmem:[%s8906_s18 + $0x10] sm:$0xff] }
0x58cb   :  { %v5214_v59 = vadd.f32 1.0, %v7009_v34  ;;  %v5452_v34 = vld [vmem:[%s8906_s18 + $0x18] sm:$0xff] }
0x58cc   :  { %7010 = vrcp.f32 %v5190_v54  ;;  %6466 = vmatprep.subr.bf16.mxu1 %v6465_v5  ;;  %v6469_v54 = vpack.c.bf16 %v5452_v34, %v5451_v29 }
0x58cd   :  { %7012 = vrcp.f32 %v5214_v59  ;;  %v5453_v59 = vld [vmem:[%s8906_s18 + $0x20] sm:$0xff] }
0x58d6   :  { %v7011_v30 = vpop.eup %7010 }
0x58d7   :  { %v7013_v18 = vpop.eup %7012  ;;  %v5194_v32 = vmul.f32 %v7011_v30, %v5067_v10 }
0x58d8   :  { %v5218_v9 = vmul.f32 %v7013_v18, %v5091_v46  ;;  %v5352_v46 = vld [vmem:[#allocation16 + $0x8] sm:$0xff] }
0x58d9   :  { %v6449_v41 = vpack.c.bf16 %v5352_v46, %v5351_v38 }
0x58db   :  { %6450 = vmatprep.subr.bf16.mxu0 %v6449_v41 }
0x58dc   :  { %6452 = vmatpush3.bf16.msra.mxu0 %v6449_v41 }
0x58dd   :  { %6454 = vmatprep.subr.bf16.mxu0 %v6453_v13 }
0x58e0   :  { %6456 = vmatpush3.bf16.msra.mxu0 %v6453_v13 }
0x58e1   :  { %6458 = vmatprep.subr.bf16.mxu0 %v6457_v19 }
0x58e4   :  { %6460 = vmatpush3.bf16.msra.mxu0 %v6457_v19 }
0x58e5   :  { %6462 = vmatprep.subr.bf16.mxu0 %v6461_v63 }
0x58e8   :  { %6464 = vmatpush3.bf16.msra.mxu0 %v6461_v63 }
0x593a   :  { %v5197_v33 = vpop.permute.xlu0 %5196 }
0x593b   :  { %v5199_v21 = vmul.f32 %v7011_v30, %v5197_v33  ;;  %v5221_v28 = vpop.permute.xlu1 %5220  ;;  %v5455_v33 = vld [vmem:[%s8906_s18 + $0x30] sm:$0xff] }
0x593c   :  { %v5223_v25 = vmul.f32 %v7013_v18, %v5221_v28 }
0x593d   :  { %5201 = vrot.lane.b32.xlu0 %v5199_v21, %s7316_s22  ;;  %v5456_v21 = vld [vmem:[%s8906_s18 + $0x38] sm:$0xff] }
0x593e   :  { %5225 = vrot.lane.b32.xlu1 %v5223_v25, %s7316_s22  ;;  %v6477_v28 = vpack.c.bf16 %v5456_v21, %v5455_v33  ;;  %v5691_v25 = vld [vmem:[#allocation17] ss:$0 sm:$0xff] }
0x59af   :  { %v5202_v36 = vpop.permute.xlu0 %5201 }
0x59b0   :  { %v5204_v17 = vadd.f32 %v5202_v36, %v5194_v32  ;;  %v5226_v8 = vpop.permute.xlu1 %5225 }
0x59b1   :  { %v5228_v11 = vadd.f32 %v5226_v8, %v5218_v9 }
0x59b2   :  { %7014 = vtanh.f32 %v5204_v17 }
0x59b3   :  { %7016 = vtanh.f32 %v5228_v11 }
0x59bc   :  { %v7015_v45 = vpop.eup %7014 }
0x59bd   :  { %v7017_v49 = vpop.eup %7016  ;;  %5207 = vrot.lane.b32.xlu0 %v7015_v45, %s7315_s12  ;;  %v5694_v45 = vld [vmem:[#allocation19] ss:$0 sm:$0xff] }
0x59be   :  { %5231 = vrot.lane.b32.xlu1 %v7017_v49, %s7315_s12 }
0x5a2f   :  { %v5208_v58 = vpop.permute.xlu0 %5207 }
0x5a30   :  { %v5210_v31 = vmul.f32 %v7011_v30, %v5208_v58  ;;  %v5232_v48 = vpop.permute.xlu1 %5231  ;;  %v5454_v30 = vld [vmem:[%s8906_s18 + $0x28] sm:$0xff] }
0x5a31   :  { %v5234_v60 = vmul.f32 %v7013_v18, %v5232_v48  ;;  %v6473_v18 = vpack.c.bf16 %v5454_v30, %v5453_v59 }
0x5a32   :  { %5236 = vrot.lane.b32.xlu0 %v5210_v31, %s7316_s22 }
0x5a33   :  { %5241 = vrot.lane.b32.xlu1 %v5234_v60, %s7315_s12 }
0x5aa4   :  { %v5237_v53 = vpop.permute.xlu0 %5236 }
0x5aa5   :  { %5239 = vst.msk [vmem:[#allocation2 + $0xe] sm:$0x3] %vm567_vm7, %v5237_v53  ;;  %v5242_v39 = vpop.permute.xlu1 %5241 }
0x5aa6   :  { %5244 = vst.msk [vmem:[#allocation2] sm:$0x3] %vm573_vm8, %v5242_v39 }
0x5aac   :  { %v5246_v56 = vld [vmem:[#allocation2 + $0x8] sm:$0xff] }
0x5aad   :  { %v5687_v62 = vclamps-f32 %v5246_v56, 0.99999  ;;  %v5245_v1 = vld [vmem:[#allocation2] sm:$0xff] }
0x5aae   :  { %v5686_v61 = vclamps-f32 %v5245_v1, 0.99999 }
0x5ab0   :  { %7018 = vtanh.f32 %v5686_v61 }
0x5ab1   :  { %7020 = vtanh.f32 %v5687_v62 }
0x5aba   :  { %v7019_v2 = vpop.eup %7018 }
0x5abb   :  { %v7021_v10 = vpop.eup %7020  ;;  %5796 = vmatprep.mubr.msk.f32.mxu1 %vm435_vm10, %v7019_v2 }
0x5abc   :  { %5797 = vmatmul.mubr.msk.f32.vlgmr.msra.gmra.mrb[42].mxu1 %vm435_vm10, %v7021_v10 }
0x5abd   :  { %6468 = vmatpush3.bf16.msra.mxu1 %v6465_v5 }
0x5abe   :  { %6470 = vmatprep.subr.bf16.mxu1 %v6469_v54 }
0x5ac1   :  { %6472 = vmatpush3.bf16.msra.mxu1 %v6469_v54 }
0x5ac2   :  { %6474 = vmatprep.subr.bf16.mxu1 %v6473_v18 }
0x5ac5   :  { %6476 = vmatpush3.bf16.msra.mxu1 %v6473_v18 }
0x5ac6   :  { %6478 = vmatprep.subr.bf16.mxu1 %v6477_v28 }
0x5ac9   :  { %6480 = vmatpush3.bf16.msra.mxu1 %v6477_v28 }
0x5b8f   :  { %v5798_v12 = vpop.f32.mrb[42].mxu1 }
0x5b90   :  { %v5346_v24 = vadd.f32 %v5798_v12, %v5688_v15  ;;  %v5340_v14 = vpop.f32.mrb[43].mxu1 }
0x5b91   :  { %v5341_v4 = vadd.f32 %v5688_v15, %v5340_v14 }
0x5b93   :  { %7022 = vtanh.f32 %v5341_v4 }
0x5b94   :  { %7024 = vtanh.f32 %v5346_v24 }
0x5b9d   :  { %v7023_v26 = vpop.eup %7022 }
0x5b9e   :  { %v7025_v52 = vpop.eup %7024  ;;  %5815 = vmatprep.mubr.msk.f32.mxu0 %vm435_vm10, %v7023_v26 }
0x5b9f   :  { %5816 = vmatmul.mubr.msk.f32.vlgmr.msra.gmra.mrb[40].mxu0 %vm435_vm10, %v7025_v52 }
0x5c72   :  { %v5817_v32 = vpop.f32.mrb[40].mxu0 }
0x5c73   :  { %v5444_v36 = vadd.f32 %v5817_v32, %v5691_v25  ;;  %v5438_v9 = vpop.f32.mrb[41].mxu0 }
0x5c74   :  { %v5439_v17 = vadd.f32 %v5691_v25, %v5438_v9 }
0x5c76   :  { %7026 = vtanh.f32 %v5439_v17 }
0x5c77   :  { %7028 = vtanh.f32 %v5444_v36 }
0x5c80   :  { %v7027_v8 = vpop.eup %7026 }
0x5c81   :  { %v7029_v11 = vpop.eup %7028  ;;  %5834 = vmatprep.mubr.msk.f32.mxu1 %vm435_vm10, %v7027_v8 }
0x5c82   :  { %5835 = vmatmul.mubr.msk.f32.vlgmr.msra.gmra.mrb[44].mxu1 %vm435_vm10, %v7029_v11 }
0x5d55   :  { %v5836_v49 = vpop.f32.mrb[44].mxu1 }
0x5d56   :  { %v5542_v35 = vadd.f32 %v5836_v49, %v5694_v45  ;;  %v5536_v55 = vpop.f32.mrb[45].mxu1 }
0x5d57   :  { %v5537_v40 = vadd.f32 %v5694_v45, %v5536_v55 }
0x5d58   :  { %7030 = vtanh.f32 %v5542_v35 }
0x5d59   :  { %7032 = vtanh.f32 %v5537_v40 }
0x5d62   :  { %v7031_v43 = vpop.eup %7030 }
0x5d63   :  { %v7033_v47 = vpop.eup %7032  ;;  %v5551_v6 = vsel %vm5547_vm11, %v7031_v43, -inf }
0x5d64   :  { %5552 = vmax.xlane.f32.xlu0 %v5551_v6  ;;  %v5548_v58 = vsel %vm5547_vm11, %v7033_v47, -inf }
0x5d65   :  { %5549 = vmax.xlane.f32.xlu1 %v5548_v58 }
0x5df1   :  { %v5553_v23 = vpop.xlane.xlu0 %5552 }
0x5df2   :  { %v5555_v0 = vsub.f32 %v7031_v43, %v5553_v23  ;;  %v5550_v42 = vpop.xlane.xlu1 %5549 }
0x5df3   :  { %v5554_v31 = vsub.f32 %v7033_v47, %v5550_v42 }
0x5df4   :  { %v5558_v48 = vmul.f32 1.442695, %v5555_v0 }
0x5df5   :  { %v5556_v50 = vmul.f32 1.442695, %v5554_v31 }
0x5df6   :  { %7034 = vpow2.f32 %v5558_v48 }
0x5df7   :  { %7036 = vpow2.f32 %v5556_v50 }
0x5e00   :  { %v7035_v7 = vpop.eup %7034 }
0x5e01   :  { %v7037_v60 = vpop.eup %7036  ;;  %v5563_v57 = vsel %vm5547_vm11, %v7035_v7, 0.0 }
0x5e02   :  { %5564 = vadd.xlane.f32.xlu1 %v5563_v57  ;;  %v5560_v53 = vsel %vm5547_vm11, %v7037_v60, 0.0 }
0x5e03   :  { %5561 = vadd.xlane.f32.xlu0 %v5560_v53 }
0x5e8f   :  { %v5565_v39 = vpop.xlane.xlu1 %5564 }
0x5e90   :  { %7038 = vrcp.f32 %v5565_v39  ;;  %v5562_v56 = vpop.xlane.xlu0 %5561 }
0x5e91   :  { %7040 = vrcp.f32 %v5562_v56 }
0x5e9a   :  { %v7039_v62 = vpop.eup %7038 }
0x5e9b   :  { %v7041_v1 = vpop.eup %7040  ;;  %v5569_v61 = vmul.f32 %v7039_v62, %v7035_v7 }
0x5e9c   :  { %v5567_v2 = vmul.f32 %v7041_v1, %v7037_v60 }
0x5e9d   :  { %5571 = vst.msk [vmem:[%s8908_s20 + $0x8] sm:$0xff] %vm5547_vm11, %v5569_v61 }
0x5e9e   :  { %5570 = vst.msk [vmem:[%s8908_s20] sm:$0xff] %vm5547_vm11, %v5567_v2 }
0x5e9f   :  { %5576 = vsyncpa [#allocation4], 1 }
0x5ea0   :  { %5577 = vsyncpa [#allocation6], 1 }
0x5ea1   :  { %5578 = vsyncpa [#allocation9], 1 }
0x5ea2   :  { %5579 = vsyncpa [#allocation12], 1 }
0x5ea3   :  { %5580 = vsyncpa [#allocation15], 1 }
0x5ea4   :  { %5581 = vsyncpa [#allocation18], 1 }

</bundles_post_ra>
